<compile_context>
chip_gen: v7x
topology: tpu7x:2x2x1
jax: 0.10.0
libtpu: 0.0.40
codegen_flags: <defaults>
</compile_context>

<pallas_src>
from functools import partial

import numpy as np
import jax
import jax.numpy as jnp
from jax import lax
from jax.experimental import pallas as pl
from jax.experimental.pallas import tpu as pltpu


# ----------------------------------------------------------------------------
# Fused Decoder forward: one Pallas call does the whole DoubleConv decoder step
# ----------------------------------------------------------------------------
def decoder_forward(params, encoder_features, x, num_groups=8):
    """encoder_features: (N, C_enc, D, H, W); x: (N, C_x, Dl, Hl, Wl) -- NCDHW."""
    N, C_enc, D, H, W = encoder_features.shape
    _, C_x, Dl, Hl, Wl = x.shape
    Cin = C_enc + C_x
    Cout = params["w1"].shape[0]
    G = num_groups if Cout >= num_groups else 1
    assert Cout % G == 0
    Cpg = Cout // G
    eps = 1e-5

    # flattened / padded spatial bookkeeping ("shift-by-flat-offset" conv)
    Hp, Wp = H + 2, W + 2
    HWp = Hp * Wp
    P = (D + 2) * HWp                    # padded flattened spatial length
    OFFMAX = 2 * HWp + 2 * Wp + 2        # largest tap offset
    B = P - OFFMAX                       # contiguous base-index range
    SHIFT = HWp + Wp + 1                 # padded index = base index + SHIFT
    S = D * H * W
    Sl = Dl * Hl * Wl

    # ---- static index plumbing (numpy -> compile-time constants) -----------
    dd, hh, ww = np.meshgrid(np.arange(D), np.arange(H), np.arange(W),
                             indexing="ij")
    p_of_s = ((dd + 1) * HWp + (hh + 1) * Wp + (ww + 1)).reshape(-1)   # (S,)
    b_of_s = (dd * HWp + hh * Wp + ww).reshape(-1)                     # (S,)
    assert np.all(p_of_s == b_of_s + SHIFT)
    # PyTorch F.interpolate(mode='nearest'): src = floor(dst * in / out)
    di = (dd * Dl) // D
    hi = (hh * Hl) // H
    wi = (ww * Wl) // W
    ss_of_s = (di * (Hl * Wl) + hi * Wl + wi).reshape(-1)              # (S,)

    E1 = np.zeros((S, P), np.float32)          # scatter: voxel s -> padded flat
    E1[np.arange(S), p_of_s] = 1.0
    UE1 = np.zeros((Sl, P), np.float32)        # nearest-upsample + scatter
    UE1[ss_of_s, p_of_s] = 1.0
    ch = np.arange(Cout)                       # group-average (incl. 1/Cpg)
    GM = ((ch[:, None] // Cpg) == (ch[None, :] // Cpg)).astype(np.float32) / Cpg
    # valid-voxel mask over the contiguous base-index range (host precomputed)
    bb = np.arange(B)
    rem = bb % HWp
    MASK = ((bb // HWp < D) & (rem // Wp < H) & (rem % Wp < W)
            ).astype(np.float32)[None, :]      # (1, B)

    # 0/1 scatter matrices are exact in bf16 -> bf16 x bf16 MXU everywhere
    E1j = jnp.asarray(E1, jnp.bfloat16)
    UE1j = jnp.asarray(UE1, jnp.bfloat16)
    GMj = jnp.asarray(GM, jnp.float32)         # tiny, applied to (Cout,1) vecs
    MASKj = jnp.asarray(MASK, jnp.float32)

    # ---- weights: (Cout, Cin, 3,3,3) OIDHW -> (Cout, 27*Cin), tap-major, bf16
    w1c = jnp.transpose(params["w1"], (0, 2, 3, 4, 1)).reshape(
        Cout, 27 * Cin).astype(jnp.bfloat16)
    w2c = jnp.transpose(params["w2"], (0, 2, 3, 4, 1)).reshape(
        Cout, 27 * Cout).astype(jnp.bfloat16)
    g1 = params["g1"].reshape(Cout, 1).astype(jnp.float32)
    b1 = params["b1"].reshape(Cout, 1).astype(jnp.float32)
    g2 = params["g2"].reshape(Cout, 1).astype(jnp.float32)
    b2 = params["b2"].reshape(Cout, 1).astype(jnp.float32)

    enc_flat = encoder_features.reshape(N, C_enc, S).astype(jnp.bfloat16)
    x_flat = x.reshape(N, C_x, Sl).astype(jnp.bfloat16)

    taps = [(kd, kh, kw) for kd in range(3) for kh in range(3) for kw in range(3)]
    inv_S = 1.0 / S

    # ------------------------------------------------------------------------
    def kernel(enc_ref, xs_ref, e1_ref, ue1_ref, mask_ref,
               w1_ref, g1_ref, b1_ref, w2_ref, g2_ref, b2_ref, gm_ref,
               o_ref, xp1_ref, col1_ref, xp2_ref, col2_ref):
        # ---- fused upsample + concat + zero-pad, directly in VMEM ----------
        # (scatter matmuls produce zeros at the padding positions)
        xp1_ref[0:C_enc, :] = jnp.dot(
            enc_ref[0], e1_ref[...],
            preferred_element_type=jnp.float32).astype(xp1_ref.dtype)
        xp1_ref[C_enc:Cin, :] = jnp.dot(
            xs_ref[0], ue1_ref[...],
            preferred_element_type=jnp.float32).astype(xp1_ref.dtype)

        mask = mask_ref[...]                               # (1, B) f32

        def conv_relu_gn(xp_ref, col_ref, cin, w_ref, gamma_ref, beta_ref):
            # im2col: 27 contiguous lane-slices of the padded flat volume (bf16)
            for t, (kd, kh, kw) in enumerate(taps):
                off = kd * HWp + kh * Wp + kw
                col_ref[t * cin:(t + 1) * cin, :] = xp_ref[:, off:off + B]
            # single MXU matmul per conv: bf16 x bf16, f32 accumulation.
            y = jnp.dot(w_ref[...], col_ref[...],
                        preferred_element_type=jnp.float32)   # (Cout, B)
            y = jnp.maximum(y, 0.0)                           # ReLU ('crg')
            # GroupNorm: lane-reduce first, then tiny group-average matmuls.
            # Two-pass variance (numerically stable vs. E[x^2]-E[x]^2).
            sum_c = jnp.sum(y * mask, axis=1, keepdims=True)          # (Cout,1)
            mean = jnp.dot(gm_ref[...], sum_c,
                           preferred_element_type=jnp.float32) * inv_S
            yc = (y - mean) * mask
            ssq_c = jnp.sum(yc * yc, axis=1, keepdims=True)           # (Cout,1)
            var = jnp.dot(gm_ref[...], ssq_c,
                          preferred_element_type=jnp.float32) * inv_S
            inv = lax.rsqrt(var + eps)
            return (y - mean) * (inv * gamma_ref[...]) + beta_ref[...]

        # ---- SingleConv1 ----------------------------------------------------
        h1 = conv_relu_gn(xp1_ref, col1_ref, Cin, w1_ref, g1_ref, b1_ref)

        # re-pad conv1 output for conv2: a constant +SHIFT lane shift of the
        # masked activation (no compaction/rescatter matmuls, no HBM traffic).
        xp2_ref[...] = jnp.zeros_like(xp2_ref)
        xp2_ref[:, SHIFT:SHIFT + B] = (h1 * mask).astype(xp2_ref.dtype)

        # ---- SingleConv2 ----------------------------------------------------
        h2 = conv_relu_gn(xp2_ref, col2_ref, Cout, w2_ref, g2_ref, b2_ref)

        # lane-dense (B-wide) output store in padded-base layout; the halo is
        # stripped host-side with a free reshape/slice.
        o_ref[0] = h2.astype(o_ref.dtype)

    # ------------------------------------------------------------------------
    in_specs = [
        pl.BlockSpec((1, C_enc, S), lambda n: (n, 0, 0)),      # encoder features
        pl.BlockSpec((1, C_x, Sl), lambda n: (n, 0, 0)),       # low-res x
        pl.BlockSpec((S, P), lambda n: (0, 0)),                # E1 scatter (bf16)
        pl.BlockSpec((Sl, P), lambda n: (0, 0)),               # UE1 upsample+scatter
        pl.BlockSpec((1, B), lambda n: (0, 0)),                # valid-voxel mask
        pl.BlockSpec((Cout, 27 * Cin), lambda n: (0, 0)),      # conv1 weights (bf16)
        pl.BlockSpec((Cout, 1), lambda n: (0, 0)),             # gamma1
        pl.BlockSpec((Cout, 1), lambda n: (0, 0)),             # beta1
        pl.BlockSpec((Cout, 27 * Cout), lambda n: (0, 0)),     # conv2 weights (bf16)
        pl.BlockSpec((Cout, 1), lambda n: (0, 0)),             # gamma2
        pl.BlockSpec((Cout, 1), lambda n: (0, 0)),             # beta2
        pl.BlockSpec((Cout, Cout), lambda n: (0, 0)),          # group-avg matrix
    ]

    out_raw = pl.pallas_call(
        kernel,
        out_shape=jax.ShapeDtypeStruct((N, Cout, B), jnp.float32),
        grid=(N,),
        in_specs=in_specs,
        out_specs=pl.BlockSpec((1, Cout, B), lambda n: (n, 0, 0)),
        scratch_shapes=[
            pltpu.VMEM((Cin, P), jnp.bfloat16),        # padded conv1 input
            pltpu.VMEM((27 * Cin, B), jnp.bfloat16),   # conv1 im2col buffer
            pltpu.VMEM((Cout, P), jnp.bfloat16),       # padded conv2 input
            pltpu.VMEM((27 * Cout, B), jnp.bfloat16),  # conv2 im2col buffer
        ],
        compiler_params=pltpu.CompilerParams(
            dimension_semantics=("parallel",),
            vmem_limit_bytes=32 * 1024 * 1024,
        ),
    )(enc_flat, x_flat, E1j, UE1j, MASKj, w1c, g1, b1, w2c, g2, b2, GMj)

    # Strip the conv halo host-side (pure layout plumbing: pad/reshape/slice).
    out = jnp.pad(out_raw, ((0, 0), (0, 0), (0, D * HWp - B)))
    out = out.reshape(N, Cout, D, Hp, Wp)[:, :, :, :H, :W]
    return out


# ----------------------------------------------------------------------------
# Pure-JAX reference (for correctness check), NCDHW like PyTorch
# ----------------------------------------------------------------------------
def nearest_upsample_ncdhw(x, out_size):
    N, C, d, h, w = x.shape
    D, H, W = out_size
    di = (jnp.arange(D) * d) // D
    hi = (jnp.arange(H) * h) // H
    wi = (jnp.arange(W) * w) // W
    x = jnp.take(x, di, axis=2)
    x = jnp.take(x, hi, axis=3)
    x = jnp.take(x, wi, axis=4)
    return x


def ref_conv_relu_gn(x, w, gamma, beta, G):
    y = lax.conv_general_dilated(
        x, w, window_strides=(1, 1, 1), padding="SAME",
        dimension_numbers=("NCDHW", "OIDHW", "NCDHW"),
        precision=lax.Precision.HIGHEST)
    y = jnp.maximum(y, 0.0)
    N, C, D, H, W = y.shape
    yg = y.reshape(N, G, C // G, D, H, W)
    mean = yg.mean(axis=(2, 3, 4, 5), keepdims=True)
    var = ((yg - mean) ** 2).mean(axis=(2, 3, 4, 5), keepdims=True)
    yn = ((yg - mean) * lax.rsqrt(var + 1e-5)).reshape(N, C, D, H, W)
    return yn * gamma.reshape(1, C, 1, 1, 1) + beta.reshape(1, C, 1, 1, 1)


def ref_decoder_forward(params, encoder_features, x, num_groups=8):
    out_size = encoder_features.shape[2:]
    x_up = nearest_upsample_ncdhw(x, out_size)
    xj = jnp.concatenate([encoder_features, x_up], axis=1)
    h = ref_conv_relu_gn(xj, params["w1"], params["g1"], params["b1"], num_groups)
    h = ref_conv_relu_gn(h, params["w2"], params["g2"], params["b2"], num_groups)
    return h


# ----------------------------------------------------------------------------
if __name__ == "__main__":
    key = jax.random.PRNGKey(0)
    ks = jax.random.split(key, 8)

    # Decoder level: encoder features at (8,8,8) with 16 channels, deeper
    # feature x at (4,4,4) with 16 channels -> in_channels = 32, out = 16.
    N, D, H, W = 2, 8, 8, 8
    C_enc, C_x = 16, 16
    Cin = C_enc + C_x
    Cout = 16
    G = 8

    encoder_features = jax.random.normal(ks[0], (N, C_enc, D, H, W), jnp.float32)
    x = jax.random.normal(ks[1], (N, C_x, D // 2, H // 2, W // 2), jnp.float32)

    params = {
        "w1": 0.1 * jax.random.normal(ks[2], (Cout, Cin, 3, 3, 3), jnp.float32),
        "g1": 1.0 + 0.1 * jax.random.normal(ks[3], (Cout,), jnp.float32),
        "b1": 0.1 * jax.random.normal(ks[4], (Cout,), jnp.float32),
        "w2": 0.1 * jax.random.normal(ks[5], (Cout, Cout, 3, 3, 3), jnp.float32),
        "g2": 1.0 + 0.1 * jax.random.normal(ks[6], (Cout,), jnp.float32),
        "b2": 0.1 * jax.random.normal(ks[7], (Cout,), jnp.float32),
    }

    out = jax.jit(partial(decoder_forward, num_groups=G))(
        params, encoder_features, x)
    out = jax.block_until_ready(out)

    ref = ref_decoder_forward(params, encoder_features, x, num_groups=G)
    ref = jax.block_until_ready(ref)

    assert out.shape == (N, Cout, D, H, W), out.shape
    assert bool(jnp.all(jnp.isfinite(out)))
    max_err = float(jnp.max(jnp.abs(out - ref)))
    rms_err = float(jnp.sqrt(jnp.mean((out - ref) ** 2)))
    # bf16 MXU operands for both convs; error compounds through two conv+GN
    # stages (prior run measured max_err ~0.03 at these magnitudes).
    assert rms_err < 2.5e-2, (rms_err, max_err)
    assert jnp.allclose(out, ref, rtol=5e-2, atol=5e-2), (max_err, rms_err)

    print("KERNEL_OK")
</pallas_src>

<mosaic_0001>
module attributes {stable_mosaic.version = 11 : i64} {
  func.func @kernel(%arg0: i32, %arg1: memref<1x16x512xbf16, #tpu.memory_space<vmem>>, %arg2: memref<1x16x64xbf16, #tpu.memory_space<vmem>>, %arg3: memref<512x1000xbf16, #tpu.memory_space<vmem>>, %arg4: memref<64x1000xbf16, #tpu.memory_space<vmem>>, %arg5: memref<1x778xf32, #tpu.memory_space<vmem>>, %arg6: memref<16x864xbf16, #tpu.memory_space<vmem>>, %arg7: memref<16x1xf32, #tpu.memory_space<vmem>>, %arg8: memref<16x1xf32, #tpu.memory_space<vmem>>, %arg9: memref<16x432xbf16, #tpu.memory_space<vmem>>, %arg10: memref<16x1xf32, #tpu.memory_space<vmem>>, %arg11: memref<16x1xf32, #tpu.memory_space<vmem>>, %arg12: memref<16x16xf32, #tpu.memory_space<vmem>>, %arg13: memref<1x16x778xf32, #tpu.memory_space<vmem>>, %arg14: memref<32x1000xbf16, #tpu.memory_space<vmem>>, %arg15: memref<864x778xbf16, #tpu.memory_space<vmem>>, %arg16: memref<16x1000xbf16, #tpu.memory_space<vmem>>, %arg17: memref<432x778xbf16, #tpu.memory_space<vmem>>) attributes {dimension_semantics = [#tpu.dimension_semantics<parallel>], iteration_bounds = array<i64: 2>, scalar_prefetch = 0 : i64, scratch_operands = 4 : i64, tpu.core_type = #tpu.core_type<tc>, window_params = [{transform_indices = @transform_0, window_bounds = array<i64: 1, 16, 512>}, {transform_indices = @transform_1, window_bounds = array<i64: 1, 16, 64>}, {pipeline_mode = #tpu.pipeline_mode<synchronous>, transform_indices = @transform_2, window_bounds = array<i64: 512, 1000>}, {pipeline_mode = #tpu.pipeline_mode<synchronous>, transform_indices = @transform_3, window_bounds = array<i64: 64, 1000>}, {pipeline_mode = #tpu.pipeline_mode<synchronous>, transform_indices = @transform_4, window_bounds = array<i64: 1, 778>}, {pipeline_mode = #tpu.pipeline_mode<synchronous>, transform_indices = @transform_5, window_bounds = array<i64: 16, 864>}, {pipeline_mode = #tpu.pipeline_mode<synchronous>, transform_indices = @transform_6, window_bounds = array<i64: 16, 1>}, {pipeline_mode = #tpu.pipeline_mode<synchronous>, transform_indices = @transform_7, window_bounds = array<i64: 16, 1>}, {pipeline_mode = #tpu.pipeline_mode<synchronous>, transform_indices = @transform_8, window_bounds = array<i64: 16, 432>}, {pipeline_mode = #tpu.pipeline_mode<synchronous>, transform_indices = @transform_9, window_bounds = array<i64: 16, 1>}, {pipeline_mode = #tpu.pipeline_mode<synchronous>, transform_indices = @transform_10, window_bounds = array<i64: 16, 1>}, {pipeline_mode = #tpu.pipeline_mode<synchronous>, transform_indices = @transform_11, window_bounds = array<i64: 16, 16>}, {transform_indices = @transform_12, window_bounds = array<i64: 1, 16, 778>}]} {
    %c0 = arith.constant 0 : index
    %c0_0 = arith.constant 0 : index
    %c0_1 = arith.constant 0 : index
    %0 = vector.load %arg1[%c0, %c0_0, %c0_1] : memref<1x16x512xbf16, #tpu.memory_space<vmem>>, vector<1x16x512xbf16>
    %1 = vector.shape_cast %0 : vector<1x16x512xbf16> to vector<16x512xbf16>
    %c0_2 = arith.constant 0 : index
    %c0_3 = arith.constant 0 : index
    %2 = vector.load %arg3[%c0_2, %c0_3] : memref<512x1000xbf16, #tpu.memory_space<vmem>>, vector<512x1000xbf16>
    %cst = arith.constant dense<0.000000e+00> : vector<16x1000xf32>
    %3 = tpu.matmul %1, %2, %cst {dimension_numbers = #tpu.dot_dimension_numbers<[1], [0], [0], [1], [0, 0, 1, 1], [], []>} : vector<16x512xbf16>, vector<512x1000xbf16>, vector<16x1000xf32> -> vector<16x1000xf32>
    %4 = arith.truncf %3 : vector<16x1000xf32> to vector<16x1000xbf16>
    %c0_4 = arith.constant 0 : index
    %c0_5 = arith.constant 0 : index
    %5 = vector.load %arg14[%c0_4, %c0_5] : memref<32x1000xbf16, #tpu.memory_space<vmem>>, vector<16x1000xbf16>
    tpu.vector_store %arg14[%c0_4, %c0_5], %4 {strides = array<i32>} : memref<32x1000xbf16, #tpu.memory_space<vmem>>, vector<16x1000xbf16>,
    %c0_6 = arith.constant 0 : index
    %c0_7 = arith.constant 0 : index
    %c0_8 = arith.constant 0 : index
    %6 = vector.load %arg2[%c0_6, %c0_7, %c0_8] : memref<1x16x64xbf16, #tpu.memory_space<vmem>>, vector<1x16x64xbf16>
    %7 = vector.shape_cast %6 : vector<1x16x64xbf16> to vector<16x64xbf16>
    %c0_9 = arith.constant 0 : index
    %c0_10 = arith.constant 0 : index
    %8 = vector.load %arg4[%c0_9, %c0_10] : memref<64x1000xbf16, #tpu.memory_space<vmem>>, vector<64x1000xbf16>
    %cst_11 = arith.constant dense<0.000000e+00> : vector<16x1000xf32>
    %9 = tpu.matmul %7, %8, %cst_11 {dimension_numbers = #tpu.dot_dimension_numbers<[1], [0], [0], [1], [0, 0, 1, 1], [], []>} : vector<16x64xbf16>, vector<64x1000xbf16>, vector<16x1000xf32> -> vector<16x1000xf32>
    %10 = arith.truncf %9 : vector<16x1000xf32> to vector<16x1000xbf16>
    %c16 = arith.constant 16 : index
    %c0_12 = arith.constant 0 : index
    %11 = vector.load %arg14[%c16, %c0_12] : memref<32x1000xbf16, #tpu.memory_space<vmem>>, vector<16x1000xbf16>
    tpu.vector_store %arg14[%c16, %c0_12], %10 {strides = array<i32>} : memref<32x1000xbf16, #tpu.memory_space<vmem>>, vector<16x1000xbf16>,
    %c0_13 = arith.constant 0 : index
    %c0_14 = arith.constant 0 : index
    %12 = vector.load %arg5[%c0_13, %c0_14] : memref<1x778xf32, #tpu.memory_space<vmem>>, vector<1x778xf32>
    %c0_15 = arith.constant 0 : index
    %c0_16 = arith.constant 0 : index
    %13 = vector.load %arg14[%c0_15, %c0_16] : memref<32x1000xbf16, #tpu.memory_space<vmem>>, vector<32x778xbf16>
    %c0_17 = arith.constant 0 : index
    %c0_18 = arith.constant 0 : index
    %14 = vector.load %arg15[%c0_17, %c0_18] : memref<864x778xbf16, #tpu.memory_space<vmem>>, vector<32x778xbf16>
    tpu.vector_store %arg15[%c0_17, %c0_18], %13 {strides = array<i32>} : memref<864x778xbf16, #tpu.memory_space<vmem>>, vector<32x778xbf16>,
    %c0_19 = arith.constant 0 : index
    %c1 = arith.constant 1 : index
    %15 = vector.load %arg14[%c0_19, %c1] : memref<32x1000xbf16, #tpu.memory_space<vmem>>, vector<32x778xbf16>
    %c32 = arith.constant 32 : index
    %c0_20 = arith.constant 0 : index
    %16 = vector.load %arg15[%c32, %c0_20] : memref<864x778xbf16, #tpu.memory_space<vmem>>, vector<32x778xbf16>
    tpu.vector_store %arg15[%c32, %c0_20], %15 {strides = array<i32>} : memref<864x778xbf16, #tpu.memory_space<vmem>>, vector<32x778xbf16>,
    %c0_21 = arith.constant 0 : index
    %c2 = arith.constant 2 : index
    %17 = vector.load %arg14[%c0_21, %c2] : memref<32x1000xbf16, #tpu.memory_space<vmem>>, vector<32x778xbf16>
    %c64 = arith.constant 64 : index
    %c0_22 = arith.constant 0 : index
    %18 = vector.load %arg15[%c64, %c0_22] : memref<864x778xbf16, #tpu.memory_space<vmem>>, vector<32x778xbf16>
    tpu.vector_store %arg15[%c64, %c0_22], %17 {strides = array<i32>} : memref<864x778xbf16, #tpu.memory_space<vmem>>, vector<32x778xbf16>,
    %c0_23 = arith.constant 0 : index
    %c10 = arith.constant 10 : index
    %19 = vector.load %arg14[%c0_23, %c10] : memref<32x1000xbf16, #tpu.memory_space<vmem>>, vector<32x778xbf16>
    %c96 = arith.constant 96 : index
    %c0_24 = arith.constant 0 : index
    %20 = vector.load %arg15[%c96, %c0_24] : memref<864x778xbf16, #tpu.memory_space<vmem>>, vector<32x778xbf16>
    tpu.vector_store %arg15[%c96, %c0_24], %19 {strides = array<i32>} : memref<864x778xbf16, #tpu.memory_space<vmem>>, vector<32x778xbf16>,
    %c0_25 = arith.constant 0 : index
    %c11 = arith.constant 11 : index
    %21 = vector.load %arg14[%c0_25, %c11] : memref<32x1000xbf16, #tpu.memory_space<vmem>>, vector<32x778xbf16>
    %c128 = arith.constant 128 : index
    %c0_26 = arith.constant 0 : index
    %22 = vector.load %arg15[%c128, %c0_26] : memref<864x778xbf16, #tpu.memory_space<vmem>>, vector<32x778xbf16>
    tpu.vector_store %arg15[%c128, %c0_26], %21 {strides = array<i32>} : memref<864x778xbf16, #tpu.memory_space<vmem>>, vector<32x778xbf16>,
    %c0_27 = arith.constant 0 : index
    %c12 = arith.constant 12 : index
    %23 = vector.load %arg14[%c0_27, %c12] : memref<32x1000xbf16, #tpu.memory_space<vmem>>, vector<32x778xbf16>
    %c160 = arith.constant 160 : index
    %c0_28 = arith.constant 0 : index
    %24 = vector.load %arg15[%c160, %c0_28] : memref<864x778xbf16, #tpu.memory_space<vmem>>, vector<32x778xbf16>
    tpu.vector_store %arg15[%c160, %c0_28], %23 {strides = array<i32>} : memref<864x778xbf16, #tpu.memory_space<vmem>>, vector<32x778xbf16>,
    %c0_29 = arith.constant 0 : index
    %c20 = arith.constant 20 : index
    %25 = vector.load %arg14[%c0_29, %c20] : memref<32x1000xbf16, #tpu.memory_space<vmem>>, vector<32x778xbf16>
    %c192 = arith.constant 192 : index
    %c0_30 = arith.constant 0 : index
    %26 = vector.load %arg15[%c192, %c0_30] : memref<864x778xbf16, #tpu.memory_space<vmem>>, vector<32x778xbf16>
    tpu.vector_store %arg15[%c192, %c0_30], %25 {strides = array<i32>} : memref<864x778xbf16, #tpu.memory_space<vmem>>, vector<32x778xbf16>,
    %c0_31 = arith.constant 0 : index
    %c21 = arith.constant 21 : index
    %27 = vector.load %arg14[%c0_31, %c21] : memref<32x1000xbf16, #tpu.memory_space<vmem>>, vector<32x778xbf16>
    %c224 = arith.constant 224 : index
    %c0_32 = arith.constant 0 : index
    %28 = vector.load %arg15[%c224, %c0_32] : memref<864x778xbf16, #tpu.memory_space<vmem>>, vector<32x778xbf16>
    tpu.vector_store %arg15[%c224, %c0_32], %27 {strides = array<i32>} : memref<864x778xbf16, #tpu.memory_space<vmem>>, vector<32x778xbf16>,
    %c0_33 = arith.constant 0 : index
    %c22 = arith.constant 22 : index
    %29 = vector.load %arg14[%c0_33, %c22] : memref<32x1000xbf16, #tpu.memory_space<vmem>>, vector<32x778xbf16>
    %c256 = arith.constant 256 : index
    %c0_34 = arith.constant 0 : index
    %30 = vector.load %arg15[%c256, %c0_34] : memref<864x778xbf16, #tpu.memory_space<vmem>>, vector<32x778xbf16>
    tpu.vector_store %arg15[%c256, %c0_34], %29 {strides = array<i32>} : memref<864x778xbf16, #tpu.memory_space<vmem>>, vector<32x778xbf16>,
    %c0_35 = arith.constant 0 : index
    %c100 = arith.constant 100 : index
    %31 = vector.load %arg14[%c0_35, %c100] : memref<32x1000xbf16, #tpu.memory_space<vmem>>, vector<32x778xbf16>
    %c288 = arith.constant 288 : index
    %c0_36 = arith.constant 0 : index
    %32 = vector.load %arg15[%c288, %c0_36] : memref<864x778xbf16, #tpu.memory_space<vmem>>, vector<32x778xbf16>
    tpu.vector_store %arg15[%c288, %c0_36], %31 {strides = array<i32>} : memref<864x778xbf16, #tpu.memory_space<vmem>>, vector<32x778xbf16>,
    %c0_37 = arith.constant 0 : index
    %c101 = arith.constant 101 : index
    %33 = vector.load %arg14[%c0_37, %c101] : memref<32x1000xbf16, #tpu.memory_space<vmem>>, vector<32x778xbf16>
    %c320 = arith.constant 320 : index
    %c0_38 = arith.constant 0 : index
    %34 = vector.load %arg15[%c320, %c0_38] : memref<864x778xbf16, #tpu.memory_space<vmem>>, vector<32x778xbf16>
    tpu.vector_store %arg15[%c320, %c0_38], %33 {strides = array<i32>} : memref<864x778xbf16, #tpu.memory_space<vmem>>, vector<32x778xbf16>,
    %c0_39 = arith.constant 0 : index
    %c102 = arith.constant 102 : index
    %35 = vector.load %arg14[%c0_39, %c102] : memref<32x1000xbf16, #tpu.memory_space<vmem>>, vector<32x778xbf16>
    %c352 = arith.constant 352 : index
    %c0_40 = arith.constant 0 : index
    %36 = vector.load %arg15[%c352, %c0_40] : memref<864x778xbf16, #tpu.memory_space<vmem>>, vector<32x778xbf16>
    tpu.vector_store %arg15[%c352, %c0_40], %35 {strides = array<i32>} : memref<864x778xbf16, #tpu.memory_space<vmem>>, vector<32x778xbf16>,
    %c0_41 = arith.constant 0 : index
    %c110 = arith.constant 110 : index
    %37 = vector.load %arg14[%c0_41, %c110] : memref<32x1000xbf16, #tpu.memory_space<vmem>>, vector<32x778xbf16>
    %c384 = arith.constant 384 : index
    %c0_42 = arith.constant 0 : index
    %38 = vector.load %arg15[%c384, %c0_42] : memref<864x778xbf16, #tpu.memory_space<vmem>>, vector<32x778xbf16>
    tpu.vector_store %arg15[%c384, %c0_42], %37 {strides = array<i32>} : memref<864x778xbf16, #tpu.memory_space<vmem>>, vector<32x778xbf16>,
    %c0_43 = arith.constant 0 : index
    %c111 = arith.constant 111 : index
    %39 = vector.load %arg14[%c0_43, %c111] : memref<32x1000xbf16, #tpu.memory_space<vmem>>, vector<32x778xbf16>
    %c416 = arith.constant 416 : index
    %c0_44 = arith.constant 0 : index
    %40 = vector.load %arg15[%c416, %c0_44] : memref<864x778xbf16, #tpu.memory_space<vmem>>, vector<32x778xbf16>
    tpu.vector_store %arg15[%c416, %c0_44], %39 {strides = array<i32>} : memref<864x778xbf16, #tpu.memory_space<vmem>>, vector<32x778xbf16>,
    %c0_45 = arith.constant 0 : index
    %c112 = arith.constant 112 : index
    %41 = vector.load %arg14[%c0_45, %c112] : memref<32x1000xbf16, #tpu.memory_space<vmem>>, vector<32x778xbf16>
    %c448 = arith.constant 448 : index
    %c0_46 = arith.constant 0 : index
    %42 = vector.load %arg15[%c448, %c0_46] : memref<864x778xbf16, #tpu.memory_space<vmem>>, vector<32x778xbf16>
    tpu.vector_store %arg15[%c448, %c0_46], %41 {strides = array<i32>} : memref<864x778xbf16, #tpu.memory_space<vmem>>, vector<32x778xbf16>,
    %c0_47 = arith.constant 0 : index
    %c120 = arith.constant 120 : index
    %43 = vector.load %arg14[%c0_47, %c120] : memref<32x1000xbf16, #tpu.memory_space<vmem>>, vector<32x778xbf16>
    %c480 = arith.constant 480 : index
    %c0_48 = arith.constant 0 : index
    %44 = vector.load %arg15[%c480, %c0_48] : memref<864x778xbf16, #tpu.memory_space<vmem>>, vector<32x778xbf16>
    tpu.vector_store %arg15[%c480, %c0_48], %43 {strides = array<i32>} : memref<864x778xbf16, #tpu.memory_space<vmem>>, vector<32x778xbf16>,
    %c0_49 = arith.constant 0 : index
    %c121 = arith.constant 121 : index
    %45 = vector.load %arg14[%c0_49, %c121] : memref<32x1000xbf16, #tpu.memory_space<vmem>>, vector<32x778xbf16>
    %c512 = arith.constant 512 : index
    %c0_50 = arith.constant 0 : index
    %46 = vector.load %arg15[%c512, %c0_50] : memref<864x778xbf16, #tpu.memory_space<vmem>>, vector<32x778xbf16>
    tpu.vector_store %arg15[%c512, %c0_50], %45 {strides = array<i32>} : memref<864x778xbf16, #tpu.memory_space<vmem>>, vector<32x778xbf16>,
    %c0_51 = arith.constant 0 : index
    %c122 = arith.constant 122 : index
    %47 = vector.load %arg14[%c0_51, %c122] : memref<32x1000xbf16, #tpu.memory_space<vmem>>, vector<32x778xbf16>
    %c544 = arith.constant 544 : index
    %c0_52 = arith.constant 0 : index
    %48 = vector.load %arg15[%c544, %c0_52] : memref<864x778xbf16, #tpu.memory_space<vmem>>, vector<32x778xbf16>
    tpu.vector_store %arg15[%c544, %c0_52], %47 {strides = array<i32>} : memref<864x778xbf16, #tpu.memory_space<vmem>>, vector<32x778xbf16>,
    %c0_53 = arith.constant 0 : index
    %c200 = arith.constant 200 : index
    %49 = vector.load %arg14[%c0_53, %c200] : memref<32x1000xbf16, #tpu.memory_space<vmem>>, vector<32x778xbf16>
    %c576 = arith.constant 576 : index
    %c0_54 = arith.constant 0 : index
    %50 = vector.load %arg15[%c576, %c0_54] : memref<864x778xbf16, #tpu.memory_space<vmem>>, vector<32x778xbf16>
    tpu.vector_store %arg15[%c576, %c0_54], %49 {strides = array<i32>} : memref<864x778xbf16, #tpu.memory_space<vmem>>, vector<32x778xbf16>,
    %c0_55 = arith.constant 0 : index
    %c201 = arith.constant 201 : index
    %51 = vector.load %arg14[%c0_55, %c201] : memref<32x1000xbf16, #tpu.memory_space<vmem>>, vector<32x778xbf16>
    %c608 = arith.constant 608 : index
    %c0_56 = arith.constant 0 : index
    %52 = vector.load %arg15[%c608, %c0_56] : memref<864x778xbf16, #tpu.memory_space<vmem>>, vector<32x778xbf16>
    tpu.vector_store %arg15[%c608, %c0_56], %51 {strides = array<i32>} : memref<864x778xbf16, #tpu.memory_space<vmem>>, vector<32x778xbf16>,
    %c0_57 = arith.constant 0 : index
    %c202 = arith.constant 202 : index
    %53 = vector.load %arg14[%c0_57, %c202] : memref<32x1000xbf16, #tpu.memory_space<vmem>>, vector<32x778xbf16>
    %c640 = arith.constant 640 : index
    %c0_58 = arith.constant 0 : index
    %54 = vector.load %arg15[%c640, %c0_58] : memref<864x778xbf16, #tpu.memory_space<vmem>>, vector<32x778xbf16>
    tpu.vector_store %arg15[%c640, %c0_58], %53 {strides = array<i32>} : memref<864x778xbf16, #tpu.memory_space<vmem>>, vector<32x778xbf16>,
    %c0_59 = arith.constant 0 : index
    %c210 = arith.constant 210 : index
    %55 = vector.load %arg14[%c0_59, %c210] : memref<32x1000xbf16, #tpu.memory_space<vmem>>, vector<32x778xbf16>
    %c672 = arith.constant 672 : index
    %c0_60 = arith.constant 0 : index
    %56 = vector.load %arg15[%c672, %c0_60] : memref<864x778xbf16, #tpu.memory_space<vmem>>, vector<32x778xbf16>
    tpu.vector_store %arg15[%c672, %c0_60], %55 {strides = array<i32>} : memref<864x778xbf16, #tpu.memory_space<vmem>>, vector<32x778xbf16>,
    %c0_61 = arith.constant 0 : index
    %c211 = arith.constant 211 : index
    %57 = vector.load %arg14[%c0_61, %c211] : memref<32x1000xbf16, #tpu.memory_space<vmem>>, vector<32x778xbf16>
    %c704 = arith.constant 704 : index
    %c0_62 = arith.constant 0 : index
    %58 = vector.load %arg15[%c704, %c0_62] : memref<864x778xbf16, #tpu.memory_space<vmem>>, vector<32x778xbf16>
    tpu.vector_store %arg15[%c704, %c0_62], %57 {strides = array<i32>} : memref<864x778xbf16, #tpu.memory_space<vmem>>, vector<32x778xbf16>,
    %c0_63 = arith.constant 0 : index
    %c212 = arith.constant 212 : index
    %59 = vector.load %arg14[%c0_63, %c212] : memref<32x1000xbf16, #tpu.memory_space<vmem>>, vector<32x778xbf16>
    %c736 = arith.constant 736 : index
    %c0_64 = arith.constant 0 : index
    %60 = vector.load %arg15[%c736, %c0_64] : memref<864x778xbf16, #tpu.memory_space<vmem>>, vector<32x778xbf16>
    tpu.vector_store %arg15[%c736, %c0_64], %59 {strides = array<i32>} : memref<864x778xbf16, #tpu.memory_space<vmem>>, vector<32x778xbf16>,
    %c0_65 = arith.constant 0 : index
    %c220 = arith.constant 220 : index
    %61 = vector.load %arg14[%c0_65, %c220] : memref<32x1000xbf16, #tpu.memory_space<vmem>>, vector<32x778xbf16>
    %c768 = arith.constant 768 : index
    %c0_66 = arith.constant 0 : index
    %62 = vector.load %arg15[%c768, %c0_66] : memref<864x778xbf16, #tpu.memory_space<vmem>>, vector<32x778xbf16>
    tpu.vector_store %arg15[%c768, %c0_66], %61 {strides = array<i32>} : memref<864x778xbf16, #tpu.memory_space<vmem>>, vector<32x778xbf16>,
    %c0_67 = arith.constant 0 : index
    %c221 = arith.constant 221 : index
    %63 = vector.load %arg14[%c0_67, %c221] : memref<32x1000xbf16, #tpu.memory_space<vmem>>, vector<32x778xbf16>
    %c800 = arith.constant 800 : index
    %c0_68 = arith.constant 0 : index
    %64 = vector.load %arg15[%c800, %c0_68] : memref<864x778xbf16, #tpu.memory_space<vmem>>, vector<32x778xbf16>
    tpu.vector_store %arg15[%c800, %c0_68], %63 {strides = array<i32>} : memref<864x778xbf16, #tpu.memory_space<vmem>>, vector<32x778xbf16>,
    %c0_69 = arith.constant 0 : index
    %c222 = arith.constant 222 : index
    %65 = vector.load %arg14[%c0_69, %c222] : memref<32x1000xbf16, #tpu.memory_space<vmem>>, vector<32x778xbf16>
    %c832 = arith.constant 832 : index
    %c0_70 = arith.constant 0 : index
    %66 = vector.load %arg15[%c832, %c0_70] : memref<864x778xbf16, #tpu.memory_space<vmem>>, vector<32x778xbf16>
    tpu.vector_store %arg15[%c832, %c0_70], %65 {strides = array<i32>} : memref<864x778xbf16, #tpu.memory_space<vmem>>, vector<32x778xbf16>,
    %c0_71 = arith.constant 0 : index
    %c0_72 = arith.constant 0 : index
    %67 = vector.load %arg6[%c0_71, %c0_72] : memref<16x864xbf16, #tpu.memory_space<vmem>>, vector<16x864xbf16>
    %c0_73 = arith.constant 0 : index
    %c0_74 = arith.constant 0 : index
    %68 = vector.load %arg15[%c0_73, %c0_74] : memref<864x778xbf16, #tpu.memory_space<vmem>>, vector<864x778xbf16>
    %cst_75 = arith.constant dense<0.000000e+00> : vector<16x778xf32>
    %69 = tpu.matmul %67, %68, %cst_75 {dimension_numbers = #tpu.dot_dimension_numbers<[1], [0], [0], [1], [0, 0, 1, 1], [], []>} : vector<16x864xbf16>, vector<864x778xbf16>, vector<16x778xf32> -> vector<16x778xf32>
    %cst_76 = arith.constant 0.000000e+00 : f32
    %70 = vector.broadcast %cst_76 : f32 to vector<16x778xf32>
    %71 = arith.maximumf %69, %70 : vector<16x778xf32>
    %72 = vector.broadcast %12 : vector<1x778xf32> to vector<16x778xf32>
    %73 = arith.mulf %71, %72 : vector<16x778xf32>
    %cst_77 = arith.constant dense<0.000000e+00> : vector<16xf32>
    %74 = vector.multi_reduction <add>, %73, %cst_77 [1] : vector<16x778xf32> to vector<16xf32>
    %75 = vector.shape_cast %74 : vector<16xf32> to vector<16x1xf32>
    %c0_78 = arith.constant 0 : index
    %c0_79 = arith.constant 0 : index
    %76 = vector.load %arg12[%c0_78, %c0_79] : memref<16x16xf32, #tpu.memory_space<vmem>>, vector<16x16xf32>
    %cst_80 = arith.constant dense<0.000000e+00> : vector<16x1xf32>
    %77 = tpu.matmul %76, %75, %cst_80 {dimension_numbers = #tpu.dot_dimension_numbers<[1], [0], [0], [1], [0, 0, 1, 1], [], []>} : vector<16x16xf32>, vector<16x1xf32>, vector<16x1xf32> -> vector<16x1xf32>
    %cst_81 = arith.constant 0.001953125 : f32
    %78 = vector.broadcast %cst_81 : f32 to vector<16x1xf32>
    %79 = arith.mulf %77, %78 : vector<16x1xf32>
    %80 = vector.broadcast %79 : vector<16x1xf32> to vector<16x778xf32>
    %81 = arith.subf %71, %80 : vector<16x778xf32>
    %82 = vector.broadcast %12 : vector<1x778xf32> to vector<16x778xf32>
    %83 = arith.mulf %81, %82 : vector<16x778xf32>
    %84 = arith.mulf %83, %83 : vector<16x778xf32>
    %cst_82 = arith.constant dense<0.000000e+00> : vector<16xf32>
    %85 = vector.multi_reduction <add>, %84, %cst_82 [1] : vector<16x778xf32> to vector<16xf32>
    %86 = vector.shape_cast %85 : vector<16xf32> to vector<16x1xf32>
    %c0_83 = arith.constant 0 : index
    %c0_84 = arith.constant 0 : index
    %87 = vector.load %arg12[%c0_83, %c0_84] : memref<16x16xf32, #tpu.memory_space<vmem>>, vector<16x16xf32>
    %cst_85 = arith.constant dense<0.000000e+00> : vector<16x1xf32>
    %88 = tpu.matmul %87, %86, %cst_85 {dimension_numbers = #tpu.dot_dimension_numbers<[1], [0], [0], [1], [0, 0, 1, 1], [], []>} : vector<16x16xf32>, vector<16x1xf32>, vector<16x1xf32> -> vector<16x1xf32>
    %cst_86 = arith.constant 0.001953125 : f32
    %89 = vector.broadcast %cst_86 : f32 to vector<16x1xf32>
    %90 = arith.mulf %88, %89 : vector<16x1xf32>
    %cst_87 = arith.constant 9.99999974E-6 : f32
    %91 = vector.broadcast %cst_87 : f32 to vector<16x1xf32>
    %92 = arith.addf %90, %91 : vector<16x1xf32>
    %93 = math.rsqrt %92 : vector<16x1xf32>
    %94 = vector.broadcast %79 : vector<16x1xf32> to vector<16x778xf32>
    %95 = arith.subf %71, %94 : vector<16x778xf32>
    %c0_88 = arith.constant 0 : index
    %c0_89 = arith.constant 0 : index
    %96 = vector.load %arg7[%c0_88, %c0_89] : memref<16x1xf32, #tpu.memory_space<vmem>>, vector<16x1xf32>
    %97 = arith.mulf %93, %96 : vector<16x1xf32>
    %98 = vector.broadcast %97 : vector<16x1xf32> to vector<16x778xf32>
    %99 = arith.mulf %95, %98 : vector<16x778xf32>
    %c0_90 = arith.constant 0 : index
    %c0_91 = arith.constant 0 : index
    %100 = vector.load %arg8[%c0_90, %c0_91] : memref<16x1xf32, #tpu.memory_space<vmem>>, vector<16x1xf32>
    %101 = vector.broadcast %100 : vector<16x1xf32> to vector<16x778xf32>
    %102 = arith.addf %99, %101 : vector<16x778xf32>
    %cst_92 = arith.constant 0.000000e+00 : bf16
    %103 = vector.broadcast %cst_92 : bf16 to vector<16x1000xbf16>
    %c0_93 = arith.constant 0 : index
    %c0_94 = arith.constant 0 : index
    %104 = vector.load %arg16[%c0_93, %c0_94] : memref<16x1000xbf16, #tpu.memory_space<vmem>>, vector<16x1000xbf16>
    tpu.vector_store %arg16[%c0_93, %c0_94], %103 {strides = array<i32>} : memref<16x1000xbf16, #tpu.memory_space<vmem>>, vector<16x1000xbf16>,
    %105 = vector.broadcast %12 : vector<1x778xf32> to vector<16x778xf32>
    %106 = arith.mulf %102, %105 : vector<16x778xf32>
    %107 = arith.truncf %106 : vector<16x778xf32> to vector<16x778xbf16>
    %c0_95 = arith.constant 0 : index
    %c111_96 = arith.constant 111 : index
    %108 = vector.load %arg16[%c0_95, %c111_96] : memref<16x1000xbf16, #tpu.memory_space<vmem>>, vector<16x778xbf16>
    tpu.vector_store %arg16[%c0_95, %c111_96], %107 {strides = array<i32>} : memref<16x1000xbf16, #tpu.memory_space<vmem>>, vector<16x778xbf16>,
    %c0_97 = arith.constant 0 : index
    %c0_98 = arith.constant 0 : index
    %109 = vector.load %arg16[%c0_97, %c0_98] : memref<16x1000xbf16, #tpu.memory_space<vmem>>, vector<16x778xbf16>
    %c0_99 = arith.constant 0 : index
    %c0_100 = arith.constant 0 : index
    %110 = vector.load %arg17[%c0_99, %c0_100] : memref<432x778xbf16, #tpu.memory_space<vmem>>, vector<16x778xbf16>
    tpu.vector_store %arg17[%c0_99, %c0_100], %109 {strides = array<i32>} : memref<432x778xbf16, #tpu.memory_space<vmem>>, vector<16x778xbf16>,
    %c0_101 = arith.constant 0 : index
    %c1_102 = arith.constant 1 : index
    %111 = vector.load %arg16[%c0_101, %c1_102] : memref<16x1000xbf16, #tpu.memory_space<vmem>>, vector<16x778xbf16>
    %c16_103 = arith.constant 16 : index
    %c0_104 = arith.constant 0 : index
    %112 = vector.load %arg17[%c16_103, %c0_104] : memref<432x778xbf16, #tpu.memory_space<vmem>>, vector<16x778xbf16>
    tpu.vector_store %arg17[%c16_103, %c0_104], %111 {strides = array<i32>} : memref<432x778xbf16, #tpu.memory_space<vmem>>, vector<16x778xbf16>,
    %c0_105 = arith.constant 0 : index
    %c2_106 = arith.constant 2 : index
    %113 = vector.load %arg16[%c0_105, %c2_106] : memref<16x1000xbf16, #tpu.memory_space<vmem>>, vector<16x778xbf16>
    %c32_107 = arith.constant 32 : index
    %c0_108 = arith.constant 0 : index
    %114 = vector.load %arg17[%c32_107, %c0_108] : memref<432x778xbf16, #tpu.memory_space<vmem>>, vector<16x778xbf16>
    tpu.vector_store %arg17[%c32_107, %c0_108], %113 {strides = array<i32>} : memref<432x778xbf16, #tpu.memory_space<vmem>>, vector<16x778xbf16>,
    %c0_109 = arith.constant 0 : index
    %c10_110 = arith.constant 10 : index
    %115 = vector.load %arg16[%c0_109, %c10_110] : memref<16x1000xbf16, #tpu.memory_space<vmem>>, vector<16x778xbf16>
    %c48 = arith.constant 48 : index
    %c0_111 = arith.constant 0 : index
    %116 = vector.load %arg17[%c48, %c0_111] : memref<432x778xbf16, #tpu.memory_space<vmem>>, vector<16x778xbf16>
    tpu.vector_store %arg17[%c48, %c0_111], %115 {strides = array<i32>} : memref<432x778xbf16, #tpu.memory_space<vmem>>, vector<16x778xbf16>,
    %c0_112 = arith.constant 0 : index
    %c11_113 = arith.constant 11 : index
    %117 = vector.load %arg16[%c0_112, %c11_113] : memref<16x1000xbf16, #tpu.memory_space<vmem>>, vector<16x778xbf16>
    %c64_114 = arith.constant 64 : index
    %c0_115 = arith.constant 0 : index
    %118 = vector.load %arg17[%c64_114, %c0_115] : memref<432x778xbf16, #tpu.memory_space<vmem>>, vector<16x778xbf16>
    tpu.vector_store %arg17[%c64_114, %c0_115], %117 {strides = array<i32>} : memref<432x778xbf16, #tpu.memory_space<vmem>>, vector<16x778xbf16>,
    %c0_116 = arith.constant 0 : index
    %c12_117 = arith.constant 12 : index
    %119 = vector.load %arg16[%c0_116, %c12_117] : memref<16x1000xbf16, #tpu.memory_space<vmem>>, vector<16x778xbf16>
    %c80 = arith.constant 80 : index
    %c0_118 = arith.constant 0 : index
    %120 = vector.load %arg17[%c80, %c0_118] : memref<432x778xbf16, #tpu.memory_space<vmem>>, vector<16x778xbf16>
    tpu.vector_store %arg17[%c80, %c0_118], %119 {strides = array<i32>} : memref<432x778xbf16, #tpu.memory_space<vmem>>, vector<16x778xbf16>,
    %c0_119 = arith.constant 0 : index
    %c20_120 = arith.constant 20 : index
    %121 = vector.load %arg16[%c0_119, %c20_120] : memref<16x1000xbf16, #tpu.memory_space<vmem>>, vector<16x778xbf16>
    %c96_121 = arith.constant 96 : index
    %c0_122 = arith.constant 0 : index
    %122 = vector.load %arg17[%c96_121, %c0_122] : memref<432x778xbf16, #tpu.memory_space<vmem>>, vector<16x778xbf16>
    tpu.vector_store %arg17[%c96_121, %c0_122], %121 {strides = array<i32>} : memref<432x778xbf16, #tpu.memory_space<vmem>>, vector<16x778xbf16>,
    %c0_123 = arith.constant 0 : index
    %c21_124 = arith.constant 21 : index
    %123 = vector.load %arg16[%c0_123, %c21_124] : memref<16x1000xbf16, #tpu.memory_space<vmem>>, vector<16x778xbf16>
    %c112_125 = arith.constant 112 : index
    %c0_126 = arith.constant 0 : index
    %124 = vector.load %arg17[%c112_125, %c0_126] : memref<432x778xbf16, #tpu.memory_space<vmem>>, vector<16x778xbf16>
    tpu.vector_store %arg17[%c112_125, %c0_126], %123 {strides = array<i32>} : memref<432x778xbf16, #tpu.memory_space<vmem>>, vector<16x778xbf16>,
    %c0_127 = arith.constant 0 : index
    %c22_128 = arith.constant 22 : index
    %125 = vector.load %arg16[%c0_127, %c22_128] : memref<16x1000xbf16, #tpu.memory_space<vmem>>, vector<16x778xbf16>
    %c128_129 = arith.constant 128 : index
    %c0_130 = arith.constant 0 : index
    %126 = vector.load %arg17[%c128_129, %c0_130] : memref<432x778xbf16, #tpu.memory_space<vmem>>, vector<16x778xbf16>
    tpu.vector_store %arg17[%c128_129, %c0_130], %125 {strides = array<i32>} : memref<432x778xbf16, #tpu.memory_space<vmem>>, vector<16x778xbf16>,
    %c0_131 = arith.constant 0 : index
    %c100_132 = arith.constant 100 : index
    %127 = vector.load %arg16[%c0_131, %c100_132] : memref<16x1000xbf16, #tpu.memory_space<vmem>>, vector<16x778xbf16>
    %c144 = arith.constant 144 : index
    %c0_133 = arith.constant 0 : index
    %128 = vector.load %arg17[%c144, %c0_133] : memref<432x778xbf16, #tpu.memory_space<vmem>>, vector<16x778xbf16>
    tpu.vector_store %arg17[%c144, %c0_133], %127 {strides = array<i32>} : memref<432x778xbf16, #tpu.memory_space<vmem>>, vector<16x778xbf16>,
    %c0_134 = arith.constant 0 : index
    %c101_135 = arith.constant 101 : index
    %129 = vector.load %arg16[%c0_134, %c101_135] : memref<16x1000xbf16, #tpu.memory_space<vmem>>, vector<16x778xbf16>
    %c160_136 = arith.constant 160 : index
    %c0_137 = arith.constant 0 : index
    %130 = vector.load %arg17[%c160_136, %c0_137] : memref<432x778xbf16, #tpu.memory_space<vmem>>, vector<16x778xbf16>
    tpu.vector_store %arg17[%c160_136, %c0_137], %129 {strides = array<i32>} : memref<432x778xbf16, #tpu.memory_space<vmem>>, vector<16x778xbf16>,
    %c0_138 = arith.constant 0 : index
    %c102_139 = arith.constant 102 : index
    %131 = vector.load %arg16[%c0_138, %c102_139] : memref<16x1000xbf16, #tpu.memory_space<vmem>>, vector<16x778xbf16>
    %c176 = arith.constant 176 : index
    %c0_140 = arith.constant 0 : index
    %132 = vector.load %arg17[%c176, %c0_140] : memref<432x778xbf16, #tpu.memory_space<vmem>>, vector<16x778xbf16>
    tpu.vector_store %arg17[%c176, %c0_140], %131 {strides = array<i32>} : memref<432x778xbf16, #tpu.memory_space<vmem>>, vector<16x778xbf16>,
    %c0_141 = arith.constant 0 : index
    %c110_142 = arith.constant 110 : index
    %133 = vector.load %arg16[%c0_141, %c110_142] : memref<16x1000xbf16, #tpu.memory_space<vmem>>, vector<16x778xbf16>
    %c192_143 = arith.constant 192 : index
    %c0_144 = arith.constant 0 : index
    %134 = vector.load %arg17[%c192_143, %c0_144] : memref<432x778xbf16, #tpu.memory_space<vmem>>, vector<16x778xbf16>
    tpu.vector_store %arg17[%c192_143, %c0_144], %133 {strides = array<i32>} : memref<432x778xbf16, #tpu.memory_space<vmem>>, vector<16x778xbf16>,
    %c0_145 = arith.constant 0 : index
    %c111_146 = arith.constant 111 : index
    %135 = vector.load %arg16[%c0_145, %c111_146] : memref<16x1000xbf16, #tpu.memory_space<vmem>>, vector<16x778xbf16>
    %c208 = arith.constant 208 : index
    %c0_147 = arith.constant 0 : index
    %136 = vector.load %arg17[%c208, %c0_147] : memref<432x778xbf16, #tpu.memory_space<vmem>>, vector<16x778xbf16>
    tpu.vector_store %arg17[%c208, %c0_147], %135 {strides = array<i32>} : memref<432x778xbf16, #tpu.memory_space<vmem>>, vector<16x778xbf16>,
    %c0_148 = arith.constant 0 : index
    %c112_149 = arith.constant 112 : index
    %137 = vector.load %arg16[%c0_148, %c112_149] : memref<16x1000xbf16, #tpu.memory_space<vmem>>, vector<16x778xbf16>
    %c224_150 = arith.constant 224 : index
    %c0_151 = arith.constant 0 : index
    %138 = vector.load %arg17[%c224_150, %c0_151] : memref<432x778xbf16, #tpu.memory_space<vmem>>, vector<16x778xbf16>
    tpu.vector_store %arg17[%c224_150, %c0_151], %137 {strides = array<i32>} : memref<432x778xbf16, #tpu.memory_space<vmem>>, vector<16x778xbf16>,
    %c0_152 = arith.constant 0 : index
    %c120_153 = arith.constant 120 : index
    %139 = vector.load %arg16[%c0_152, %c120_153] : memref<16x1000xbf16, #tpu.memory_space<vmem>>, vector<16x778xbf16>
    %c240 = arith.constant 240 : index
    %c0_154 = arith.constant 0 : index
    %140 = vector.load %arg17[%c240, %c0_154] : memref<432x778xbf16, #tpu.memory_space<vmem>>, vector<16x778xbf16>
    tpu.vector_store %arg17[%c240, %c0_154], %139 {strides = array<i32>} : memref<432x778xbf16, #tpu.memory_space<vmem>>, vector<16x778xbf16>,
    %c0_155 = arith.constant 0 : index
    %c121_156 = arith.constant 121 : index
    %141 = vector.load %arg16[%c0_155, %c121_156] : memref<16x1000xbf16, #tpu.memory_space<vmem>>, vector<16x778xbf16>
    %c256_157 = arith.constant 256 : index
    %c0_158 = arith.constant 0 : index
    %142 = vector.load %arg17[%c256_157, %c0_158] : memref<432x778xbf16, #tpu.memory_space<vmem>>, vector<16x778xbf16>
    tpu.vector_store %arg17[%c256_157, %c0_158], %141 {strides = array<i32>} : memref<432x778xbf16, #tpu.memory_space<vmem>>, vector<16x778xbf16>,
    %c0_159 = arith.constant 0 : index
    %c122_160 = arith.constant 122 : index
    %143 = vector.load %arg16[%c0_159, %c122_160] : memref<16x1000xbf16, #tpu.memory_space<vmem>>, vector<16x778xbf16>
    %c272 = arith.constant 272 : index
    %c0_161 = arith.constant 0 : index
    %144 = vector.load %arg17[%c272, %c0_161] : memref<432x778xbf16, #tpu.memory_space<vmem>>, vector<16x778xbf16>
    tpu.vector_store %arg17[%c272, %c0_161], %143 {strides = array<i32>} : memref<432x778xbf16, #tpu.memory_space<vmem>>, vector<16x778xbf16>,
    %c0_162 = arith.constant 0 : index
    %c200_163 = arith.constant 200 : index
    %145 = vector.load %arg16[%c0_162, %c200_163] : memref<16x1000xbf16, #tpu.memory_space<vmem>>, vector<16x778xbf16>
    %c288_164 = arith.constant 288 : index
    %c0_165 = arith.constant 0 : index
    %146 = vector.load %arg17[%c288_164, %c0_165] : memref<432x778xbf16, #tpu.memory_space<vmem>>, vector<16x778xbf16>
    tpu.vector_store %arg17[%c288_164, %c0_165], %145 {strides = array<i32>} : memref<432x778xbf16, #tpu.memory_space<vmem>>, vector<16x778xbf16>,
    %c0_166 = arith.constant 0 : index
    %c201_167 = arith.constant 201 : index
    %147 = vector.load %arg16[%c0_166, %c201_167] : memref<16x1000xbf16, #tpu.memory_space<vmem>>, vector<16x778xbf16>
    %c304 = arith.constant 304 : index
    %c0_168 = arith.constant 0 : index
    %148 = vector.load %arg17[%c304, %c0_168] : memref<432x778xbf16, #tpu.memory_space<vmem>>, vector<16x778xbf16>
    tpu.vector_store %arg17[%c304, %c0_168], %147 {strides = array<i32>} : memref<432x778xbf16, #tpu.memory_space<vmem>>, vector<16x778xbf16>,
    %c0_169 = arith.constant 0 : index
    %c202_170 = arith.constant 202 : index
    %149 = vector.load %arg16[%c0_169, %c202_170] : memref<16x1000xbf16, #tpu.memory_space<vmem>>, vector<16x778xbf16>
    %c320_171 = arith.constant 320 : index
    %c0_172 = arith.constant 0 : index
    %150 = vector.load %arg17[%c320_171, %c0_172] : memref<432x778xbf16, #tpu.memory_space<vmem>>, vector<16x778xbf16>
    tpu.vector_store %arg17[%c320_171, %c0_172], %149 {strides = array<i32>} : memref<432x778xbf16, #tpu.memory_space<vmem>>, vector<16x778xbf16>,
    %c0_173 = arith.constant 0 : index
    %c210_174 = arith.constant 210 : index
    %151 = vector.load %arg16[%c0_173, %c210_174] : memref<16x1000xbf16, #tpu.memory_space<vmem>>, vector<16x778xbf16>
    %c336 = arith.constant 336 : index
    %c0_175 = arith.constant 0 : index
    %152 = vector.load %arg17[%c336, %c0_175] : memref<432x778xbf16, #tpu.memory_space<vmem>>, vector<16x778xbf16>
    tpu.vector_store %arg17[%c336, %c0_175], %151 {strides = array<i32>} : memref<432x778xbf16, #tpu.memory_space<vmem>>, vector<16x778xbf16>,
    %c0_176 = arith.constant 0 : index
    %c211_177 = arith.constant 211 : index
    %153 = vector.load %arg16[%c0_176, %c211_177] : memref<16x1000xbf16, #tpu.memory_space<vmem>>, vector<16x778xbf16>
    %c352_178 = arith.constant 352 : index
    %c0_179 = arith.constant 0 : index
    %154 = vector.load %arg17[%c352_178, %c0_179] : memref<432x778xbf16, #tpu.memory_space<vmem>>, vector<16x778xbf16>
    tpu.vector_store %arg17[%c352_178, %c0_179], %153 {strides = array<i32>} : memref<432x778xbf16, #tpu.memory_space<vmem>>, vector<16x778xbf16>,
    %c0_180 = arith.constant 0 : index
    %c212_181 = arith.constant 212 : index
    %155 = vector.load %arg16[%c0_180, %c212_181] : memref<16x1000xbf16, #tpu.memory_space<vmem>>, vector<16x778xbf16>
    %c368 = arith.constant 368 : index
    %c0_182 = arith.constant 0 : index
    %156 = vector.load %arg17[%c368, %c0_182] : memref<432x778xbf16, #tpu.memory_space<vmem>>, vector<16x778xbf16>
    tpu.vector_store %arg17[%c368, %c0_182], %155 {strides = array<i32>} : memref<432x778xbf16, #tpu.memory_space<vmem>>, vector<16x778xbf16>,
    %c0_183 = arith.constant 0 : index
    %c220_184 = arith.constant 220 : index
    %157 = vector.load %arg16[%c0_183, %c220_184] : memref<16x1000xbf16, #tpu.memory_space<vmem>>, vector<16x778xbf16>
    %c384_185 = arith.constant 384 : index
    %c0_186 = arith.constant 0 : index
    %158 = vector.load %arg17[%c384_185, %c0_186] : memref<432x778xbf16, #tpu.memory_space<vmem>>, vector<16x778xbf16>
    tpu.vector_store %arg17[%c384_185, %c0_186], %157 {strides = array<i32>} : memref<432x778xbf16, #tpu.memory_space<vmem>>, vector<16x778xbf16>,
    %c0_187 = arith.constant 0 : index
    %c221_188 = arith.constant 221 : index
    %159 = vector.load %arg16[%c0_187, %c221_188] : memref<16x1000xbf16, #tpu.memory_space<vmem>>, vector<16x778xbf16>
    %c400 = arith.constant 400 : index
    %c0_189 = arith.constant 0 : index
    %160 = vector.load %arg17[%c400, %c0_189] : memref<432x778xbf16, #tpu.memory_space<vmem>>, vector<16x778xbf16>
    tpu.vector_store %arg17[%c400, %c0_189], %159 {strides = array<i32>} : memref<432x778xbf16, #tpu.memory_space<vmem>>, vector<16x778xbf16>,
    %c0_190 = arith.constant 0 : index
    %c222_191 = arith.constant 222 : index
    %161 = vector.load %arg16[%c0_190, %c222_191] : memref<16x1000xbf16, #tpu.memory_space<vmem>>, vector<16x778xbf16>
    %c416_192 = arith.constant 416 : index
    %c0_193 = arith.constant 0 : index
    %162 = vector.load %arg17[%c416_192, %c0_193] : memref<432x778xbf16, #tpu.memory_space<vmem>>, vector<16x778xbf16>
    tpu.vector_store %arg17[%c416_192, %c0_193], %161 {strides = array<i32>} : memref<432x778xbf16, #tpu.memory_space<vmem>>, vector<16x778xbf16>,
    %c0_194 = arith.constant 0 : index
    %c0_195 = arith.constant 0 : index
    %163 = vector.load %arg9[%c0_194, %c0_195] : memref<16x432xbf16, #tpu.memory_space<vmem>>, vector<16x432xbf16>
    %c0_196 = arith.constant 0 : index
    %c0_197 = arith.constant 0 : index
    %164 = vector.load %arg17[%c0_196, %c0_197] : memref<432x778xbf16, #tpu.memory_space<vmem>>, vector<432x778xbf16>
    %cst_198 = arith.constant dense<0.000000e+00> : vector<16x778xf32>
    %165 = tpu.matmul %163, %164, %cst_198 {dimension_numbers = #tpu.dot_dimension_numbers<[1], [0], [0], [1], [0, 0, 1, 1], [], []>} : vector<16x432xbf16>, vector<432x778xbf16>, vector<16x778xf32> -> vector<16x778xf32>
    %cst_199 = arith.constant 0.000000e+00 : f32
    %166 = vector.broadcast %cst_199 : f32 to vector<16x778xf32>
    %167 = arith.maximumf %165, %166 : vector<16x778xf32>
    %168 = vector.broadcast %12 : vector<1x778xf32> to vector<16x778xf32>
    %169 = arith.mulf %167, %168 : vector<16x778xf32>
    %cst_200 = arith.constant dense<0.000000e+00> : vector<16xf32>
    %170 = vector.multi_reduction <add>, %169, %cst_200 [1] : vector<16x778xf32> to vector<16xf32>
    %171 = vector.shape_cast %170 : vector<16xf32> to vector<16x1xf32>
    %c0_201 = arith.constant 0 : index
    %c0_202 = arith.constant 0 : index
    %172 = vector.load %arg12[%c0_201, %c0_202] : memref<16x16xf32, #tpu.memory_space<vmem>>, vector<16x16xf32>
    %cst_203 = arith.constant dense<0.000000e+00> : vector<16x1xf32>
    %173 = tpu.matmul %172, %171, %cst_203 {dimension_numbers = #tpu.dot_dimension_numbers<[1], [0], [0], [1], [0, 0, 1, 1], [], []>} : vector<16x16xf32>, vector<16x1xf32>, vector<16x1xf32> -> vector<16x1xf32>
    %cst_204 = arith.constant 0.001953125 : f32
    %174 = vector.broadcast %cst_204 : f32 to vector<16x1xf32>
    %175 = arith.mulf %173, %174 : vector<16x1xf32>
    %176 = vector.broadcast %175 : vector<16x1xf32> to vector<16x778xf32>
    %177 = arith.subf %167, %176 : vector<16x778xf32>
    %178 = vector.broadcast %12 : vector<1x778xf32> to vector<16x778xf32>
    %179 = arith.mulf %177, %178 : vector<16x778xf32>
    %180 = arith.mulf %179, %179 : vector<16x778xf32>
    %cst_205 = arith.constant dense<0.000000e+00> : vector<16xf32>
    %181 = vector.multi_reduction <add>, %180, %cst_205 [1] : vector<16x778xf32> to vector<16xf32>
    %182 = vector.shape_cast %181 : vector<16xf32> to vector<16x1xf32>
    %c0_206 = arith.constant 0 : index
    %c0_207 = arith.constant 0 : index
    %183 = vector.load %arg12[%c0_206, %c0_207] : memref<16x16xf32, #tpu.memory_space<vmem>>, vector<16x16xf32>
    %cst_208 = arith.constant dense<0.000000e+00> : vector<16x1xf32>
    %184 = tpu.matmul %183, %182, %cst_208 {dimension_numbers = #tpu.dot_dimension_numbers<[1], [0], [0], [1], [0, 0, 1, 1], [], []>} : vector<16x16xf32>, vector<16x1xf32>, vector<16x1xf32> -> vector<16x1xf32>
    %cst_209 = arith.constant 0.001953125 : f32
    %185 = vector.broadcast %cst_209 : f32 to vector<16x1xf32>
    %186 = arith.mulf %184, %185 : vector<16x1xf32>
    %cst_210 = arith.constant 9.99999974E-6 : f32
    %187 = vector.broadcast %cst_210 : f32 to vector<16x1xf32>
    %188 = arith.addf %186, %187 : vector<16x1xf32>
    %189 = math.rsqrt %188 : vector<16x1xf32>
    %190 = vector.broadcast %175 : vector<16x1xf32> to vector<16x778xf32>
    %191 = arith.subf %167, %190 : vector<16x778xf32>
    %c0_211 = arith.constant 0 : index
    %c0_212 = arith.constant 0 : index
    %192 = vector.load %arg10[%c0_211, %c0_212] : memref<16x1xf32, #tpu.memory_space<vmem>>, vector<16x1xf32>
    %193 = arith.mulf %189, %192 : vector<16x1xf32>
    %194 = vector.broadcast %193 : vector<16x1xf32> to vector<16x778xf32>
    %195 = arith.mulf %191, %194 : vector<16x778xf32>
    %c0_213 = arith.constant 0 : index
    %c0_214 = arith.constant 0 : index
    %196 = vector.load %arg11[%c0_213, %c0_214] : memref<16x1xf32, #tpu.memory_space<vmem>>, vector<16x1xf32>
    %197 = vector.broadcast %196 : vector<16x1xf32> to vector<16x778xf32>
    %198 = arith.addf %195, %197 : vector<16x778xf32>
    %c0_215 = arith.constant 0 : index
    %c0_216 = arith.constant 0 : index
    %c0_217 = arith.constant 0 : index
    %199 = vector.load %arg13[%c0_215, %c0_216, %c0_217] : memref<1x16x778xf32, #tpu.memory_space<vmem>>, vector<1x16x778xf32>
    %200 = vector.shape_cast %199 : vector<1x16x778xf32> to vector<16x778xf32>
    %201 = vector.shape_cast %198 : vector<16x778xf32> to vector<1x16x778xf32>
    tpu.vector_store %arg13[%c0_215, %c0_216, %c0_217], %201 {strides = array<i32>} : memref<1x16x778xf32, #tpu.memory_space<vmem>>, vector<1x16x778xf32>,
    return
  }
  func.func @transform_0(%arg0: i32) -> (i32, i32, i32) {
    %c0_i32 = arith.constant 0 : i32
    %c0_i32_0 = arith.constant 0 : i32
    %c0_i32_1 = arith.constant 0 : i32
    return %arg0, %c0_i32, %c0_i32_0 : i32, i32, i32
  }
  func.func @transform_1(%arg0: i32) -> (i32, i32, i32) {
    %c0_i32 = arith.constant 0 : i32
    %c0_i32_0 = arith.constant 0 : i32
    %c0_i32_1 = arith.constant 0 : i32
    return %arg0, %c0_i32, %c0_i32_0 : i32, i32, i32
  }
  func.func @transform_2(%arg0: i32) -> (i32, i32) {
    %c0_i32 = arith.constant 0 : i32
    %c0_i32_0 = arith.constant 0 : i32
    %c0_i32_1 = arith.constant 0 : i32
    return %c0_i32, %c0_i32_0 : i32, i32
  }
  func.func @transform_3(%arg0: i32) -> (i32, i32) {
    %c0_i32 = arith.constant 0 : i32
    %c0_i32_0 = arith.constant 0 : i32
    %c0_i32_1 = arith.constant 0 : i32
    return %c0_i32, %c0_i32_0 : i32, i32
  }
  func.func @transform_4(%arg0: i32) -> (i32, i32) {
    %c0_i32 = arith.constant 0 : i32
    %c0_i32_0 = arith.constant 0 : i32
    %c0_i32_1 = arith.constant 0 : i32
    return %c0_i32, %c0_i32_0 : i32, i32
  }
  func.func @transform_5(%arg0: i32) -> (i32, i32) {
    %c0_i32 = arith.constant 0 : i32
    %c0_i32_0 = arith.constant 0 : i32
    %c0_i32_1 = arith.constant 0 : i32
    return %c0_i32, %c0_i32_0 : i32, i32
  }
  func.func @transform_6(%arg0: i32) -> (i32, i32) {
    %c0_i32 = arith.constant 0 : i32
    %c0_i32_0 = arith.constant 0 : i32
    %c0_i32_1 = arith.constant 0 : i32
    return %c0_i32, %c0_i32_0 : i32, i32
  }
  func.func @transform_7(%arg0: i32) -> (i32, i32) {
    %c0_i32 = arith.constant 0 : i32
    %c0_i32_0 = arith.constant 0 : i32
    %c0_i32_1 = arith.constant 0 : i32
    return %c0_i32, %c0_i32_0 : i32, i32
  }
  func.func @transform_8(%arg0: i32) -> (i32, i32) {
    %c0_i32 = arith.constant 0 : i32
    %c0_i32_0 = arith.constant 0 : i32
    %c0_i32_1 = arith.constant 0 : i32
    return %c0_i32, %c0_i32_0 : i32, i32
  }
  func.func @transform_9(%arg0: i32) -> (i32, i32) {
    %c0_i32 = arith.constant 0 : i32
    %c0_i32_0 = arith.constant 0 : i32
    %c0_i32_1 = arith.constant 0 : i32
    return %c0_i32, %c0_i32_0 : i32, i32
  }
  func.func @transform_10(%arg0: i32) -> (i32, i32) {
    %c0_i32 = arith.constant 0 : i32
    %c0_i32_0 = arith.constant 0 : i32
    %c0_i32_1 = arith.constant 0 : i32
    return %c0_i32, %c0_i32_0 : i32, i32
  }
  func.func @transform_11(%arg0: i32) -> (i32, i32) {
    %c0_i32 = arith.constant 0 : i32
    %c0_i32_0 = arith.constant 0 : i32
    %c0_i32_1 = arith.constant 0 : i32
    return %c0_i32, %c0_i32_0 : i32, i32
  }
  func.func @transform_12(%arg0: i32) -> (i32, i32, i32) {
    %c0_i32 = arith.constant 0 : i32
    %c0_i32_0 = arith.constant 0 : i32
    %c0_i32_1 = arith.constant 0 : i32
    return %arg0, %c0_i32, %c0_i32_0 : i32, i32, i32
  }
}

</mosaic_0001>

<bundles_post_ra>
// kernel: decoder_forward.1
= control target key start
LH: loop header
LB: loop body
LE: loop exit
PB: predicated region body
PF: predicated region fallthrough
CT: control target
= control target key end

     0   :  { %s9897_s21 = smov 0   ;;  %s14495_s0 = inlined_call_operand.vmem [shape: bf16[2,16,512], index: 0, kind: input, shape index: {}]   ;;  %s14496_s1 = inlined_call_operand.vmem [shape: bf16[2,16,64], index: 1, kind: input, shape index: {}]   ;;  %s14497_s2 = inlined_call_operand.vmem [shape: bf16[512,1000], index: 2, kind: input, shape index: {}]   ;;  %s14498_s3 = inlined_call_operand.vmem [shape: bf16[64,1000], index: 3, kind: input, shape index: {}]   ;;  %s14499_s4 = inlined_call_operand.vmem [shape: f32[1,778], index: 4, kind: input, shape index: {}]   ;;  %s14500_s5 = inlined_call_operand.vmem [shape: bf16[16,864], index: 5, kind: input, shape index: {}]   ;;  %s14501_s6 = inlined_call_operand.vmem [shape: f32[16,1], index: 6, kind: input, shape index: {}]   ;;  %s14502_s7 = inlined_call_operand.vmem [shape: f32[16,1], index: 7, kind: input, shape index: {}]   ;;  %s14503_s8 = inlined_call_operand.vmem [shape: bf16[16,432], index: 8, kind: input, shape index: {}]   ;;  %s14504_s9 = inlined_call_operand.vmem [shape: f32[16,1], index: 9, kind: input, shape index: {}]   ;;  %s14505_s10 = inlined_call_operand.vmem [shape: f32[16,1], index: 10, kind: input, shape index: {}]   ;;  %s14506_s11 = inlined_call_operand.vmem [shape: f32[16,16], index: 11, kind: input, shape index: {}]   ;;  %s14507_s12 = inlined_call_operand.vmem [shape: f32[2,16,778], index: 12, kind: output, shape index: {}]  }
   0x1   :  { %14610 = sst [smem:[#allocation30_spill]] %s14495_s0 }
   0x2   :  { %14611 = sst [smem:[#allocation31_spill]] %s14496_s1 }
   0x3   :  { %14612 = sst [smem:[#allocation32_spill]] %s14497_s2 }
   0x4   :  { %14613 = sst [smem:[#allocation33_spill]] %s14498_s3 }
   0x5   :  { %14614 = sst [smem:[#allocation34_spill]] %s14499_s4 }
   0x6   :  { %14615 = sst [smem:[#allocation35_spill]] %s14500_s5 }
   0x7   :  { %14616 = sst [smem:[#allocation36_spill]] %s14501_s6 }
   0x8   :  { %14617 = sst [smem:[#allocation37_spill]] %s14502_s7 }
   0x9   :  { %14618 = sst [smem:[#allocation38_spill]] %s14503_s8 }
   0xa   :  { %14619 = sst [smem:[#allocation39_spill]] %s14504_s9 }
   0xb   :  { %14620 = sst [smem:[#allocation40_spill]] %s14505_s10 }
   0xc   :  { %14621 = sst [smem:[#allocation41_spill]] %s14506_s11 }
   0xd   :  { %14622 = sst [smem:[#allocation42_spill]] %s14507_s12 }
   0xe LB: > { %14623 = sst [smem:[#allocation6_spill]] %s9800_s21  ;;  %s9130_s22 = sadd.s32 4294967295, %s9800_s21   ;;  %s9800_s21 = sphi %s9897_s21, %s22_s21  }
   0xf   : > { %p9134_p0 = scmp.ge.s32.totalorder %s9800_s21, 1  ;;  %p372_p1 = scmp.lt.s32.totalorder %s9800_s21, 3 }
  0x11   : > { %p373_p2 = pnand %p9134_p0, %p372_p1 }
  0x13   : > { %376 = sbr.rel (%p373_p2) target bundleno = 4417 (0x1141), region = 68 }
  0x1a   : > { %s14624_s2 = sld [smem:[#allocation32_spill]]  ;;  %p419_p3 = scmp.lt.s32.totalorder %s9130_s22, 1  ;;  %vm2555_vm0 = vcmask 523264   ;;  %vm2354_vm1 = vcmask 850944   ;;  %vm14608_vm2 = vcmask 80896   ;;  %vm14609_vm3 = vcmask 457728  }
  0x1b   : > { %s14626_s0 = sld [smem:[#allocation30_spill]]  ;;  %s14627_s1 = sld [smem:[#allocation31_spill]]  ;;  %vm14605_vm4 = vcmask 449536   ;;  %vm14579_vm5 = vcmask 441344   ;;  %vm14583_vm6 = vcmask 375808   ;;  %vm14567_vm7 = vcmask 367616  }
  0x1c   : > { %s14956_s22 = smov (!%p419_p3, %s9130_s22), 1  ;;  %s14628_s3 = sld [smem:[#allocation33_spill]]  ;;  %vm14566_vm8 = vcmask 359424   ;;  %vm14565_vm9 = vcmask 293888   ;;  %vm14564_vm10 = vcmask 285696   ;;  %vm14559_vm11 = vcmask 277504  }
  0x1d   : > { %14625 = sst [smem:[#allocation7_spill]] %s14956_s22  ;;  %s9466_s23 = sshll.u32 %s14956_s22, 5  ;;  %vm14572_vm12 = vcmask 1039360   ;;  %vm14575_vm13 = vcmask 1031168   ;;  %vm14578_vm14 = vcmask 965632   ;;  %vm3124_vm15 = vcmask 957440  }
  0x1e   : > { %s9467_s25 = sshll.u32 %s14956_s22, 3  ;;  %s14549_s27 = smov 127  }
  0x1f   : > { %s14553_s28 = smov 126   ;;  %s14551_s29 = smov 118  }
  0x20   : > { %v439_v0 = vld [vmem:[%s14624_s2] sm:$0xff]  ;;  %v440_v2 = vld [vmem:[%s14624_s2 + $0x8] sm:$0xff]  ;;  %s14555_s30 = smov 117   ;;  %s14538_s13 = smov 116  }
  0x21   : > { %v443_v1 = vld [vmem:[%s14624_s2 + $0x20] sm:$0xff]  ;;  %v444_v4 = vld [vmem:[%s14624_s2 + $0x28] sm:$0xff]  ;;  %s9999_s16 = scalar_lea.vmem %s14626_s0, %s9466_s23  ;;  %s10410_s15 = scalar_lea.vmem %s14627_s1, %s9467_s25 }
  0x22   : > { %v9145_v3 = vcombine.high %v439_v0, %v443_v1  ;;  %v9144_v5 = vcombine.low %v439_v0, %v443_v1  ;;  %v447_v6 = vld [vmem:[%s14624_s2 + $0x40] sm:$0xff]  ;;  %v9147_v8 = vcombine.high %v440_v2, %v444_v4  ;;  %v9146_v9 = vcombine.low %v440_v2, %v444_v4  ;;  %v448_v11 = vld [vmem:[%s14624_s2 + $0x48] sm:$0xff]  ;;  %s14540_s14 = smov 108   ;;  %s14542_s17 = smov 107  }
  0x23   : > { %v451_v7 = vld [vmem:[%s14624_s2 + $0x60] sm:$0xff]  ;;  %v452_v12 = vld [vmem:[%s14624_s2 + $0x68] sm:$0xff]  ;;  %s14545_s18 = smov 106   ;;  %s14562_s19 = smov 28  }
  0x24   : > { %v9153_v10 = vcombine.high %v447_v6, %v451_v7  ;;  %v455_v13 = vld [vmem:[%s14624_s2 + $0x80] sm:$0xff]  ;;  %1995 = vmatprep.subr.bf16.mxu0 %v9145_v3  ;;  %v9155_v14 = vcombine.high %v448_v11, %v452_v12  ;;  %v456_v16 = vld [vmem:[%s14624_s2 + $0x88] sm:$0xff]  ;;  %2081 = vmatprep.subr.bf16.mxu1 %v9147_v8  ;;  %v9152_v18 = vcombine.low %v447_v6, %v451_v7  ;;  %s14560_s20 = smov 27   ;;  %s14557_s23 = smov 26  }
  0x25   : > { %v459_v15 = vld [vmem:[%s14624_s2 + $0xa0] sm:$0xff]  ;;  %v460_v17 = vld [vmem:[%s14624_s2 + $0xa8] sm:$0xff]  ;;  %1996 = vmatpush1.bf16.msra.mxu0 %v9144_v5  ;;  %2082 = vmatpush1.bf16.msra.mxu1 %v9146_v9  ;;  %v9154_v19 = vcombine.low %v448_v11, %v452_v12  ;;  %s14536_s24 = smov 18   ;;  %s14510_s25 = smov 16  }
  0x26   : > { %1997 = vmatprep.subr.bf16.mxu0 %v9153_v10  ;;  %v9161_v20 = vcombine.high %v455_v13, %v459_v15  ;;  %2083 = vmatprep.subr.bf16.mxu1 %v9155_v14  ;;  %v9163_v21 = vcombine.high %v456_v16, %v460_v17  ;;  %v463_v22 = vld [vmem:[%s14624_s2 + $0xc0] sm:$0xff]  ;;  %v464_v24 = vld [vmem:[%s14624_s2 + $0xc8] sm:$0xff]  ;;  %v9160_v26 = vcombine.low %v455_v13, %v459_v15  ;;  %s14512_s26 = smov 8   ;;  %s14649_s0 = smov 106  }
  0x27   : > { %v467_v23 = vld [vmem:[%s14624_s2 + $0xe0] sm:$0xff]  ;;  %v468_v25 = vld [vmem:[%s14624_s2 + $0xe8] sm:$0xff]  ;;  %v9162_v27 = vcombine.low %v456_v16, %v460_v17  ;;  %s14650_s1 = smov 28   ;;  %s14653_s21 = smov 26  }
  0x28   : > { %v9169_v28 = vcombine.high %v463_v22, %v467_v23  ;;  %v9171_v29 = vcombine.high %v464_v24, %v468_v25  ;;  %v471_v30 = vld [vmem:[%s14624_s2 + $0x100] sm:$0xff]  ;;  %v472_v32 = vld [vmem:[%s14624_s2 + $0x108] sm:$0xff]  ;;  %v9168_v34 = vcombine.low %v463_v22, %v467_v23  ;;  %v9170_v35 = vcombine.low %v464_v24, %v468_v25  ;;  %s14654_s12 = smov 34   ;;  %s14659_s10 = smov 127  }
  0x29   : > { %1998 = vmatpush1.bf16.msra.mxu0 %v9152_v18  ;;  %2084 = vmatpush1.bf16.msra.mxu1 %v9154_v19  ;;  %v475_v31 = vld [vmem:[%s14624_s2 + $0x120] sm:$0xff]  ;;  %v476_v33 = vld [vmem:[%s14624_s2 + $0x128] sm:$0xff]  ;;  %s14661_s9 = smov 126   ;;  %s14663_s22 = smov 118  }
  0x2a   : > { %1999 = vmatprep.subr.bf16.mxu0 %v9161_v20  ;;  %2085 = vmatprep.subr.bf16.mxu1 %v9163_v21  ;;  %v9177_v36 = vcombine.high %v471_v30, %v475_v31  ;;  %v9179_v37 = vcombine.high %v472_v32, %v476_v33  ;;  %v479_v38 = vld [vmem:[%s14624_s2 + $0x140] sm:$0xff]  ;;  %v480_v40 = vld [vmem:[%s14624_s2 + $0x148] sm:$0xff]  ;;  %v9176_v42 = vcombine.low %v471_v30, %v475_v31  ;;  %s14665_s8 = smov 117   ;;  %s14673_s5 = sld [smem:[#allocation35_spill]] }
  0x2b   : > { %v483_v39 = vld [vmem:[%s14624_s2 + $0x160] sm:$0xff]  ;;  %v484_v41 = vld [vmem:[%s14624_s2 + $0x168] sm:$0xff]  ;;  %v9178_v43 = vcombine.low %v472_v32, %v476_v33  ;;  %s14832_s4 = sld [smem:[#allocation34_spill]]  ;;  %s14833_s7 = sld [smem:[#allocation41_spill]] }
  0x2c   : > { %v9185_v44 = vcombine.high %v479_v38, %v483_v39  ;;  %v9187_v45 = vcombine.high %v480_v40, %v484_v41  ;;  %v487_v46 = vld [vmem:[%s14624_s2 + $0x180] sm:$0xff]  ;;  %v488_v48 = vld [vmem:[%s14624_s2 + $0x188] sm:$0xff]  ;;  %v9184_v50 = vcombine.low %v479_v38, %v483_v39  ;;  %v9186_v51 = vcombine.low %v480_v40, %v484_v41  ;;  %s14834_s6 = sld [smem:[#allocation37_spill]]  ;;  %s14835_s11 = sld [smem:[#allocation36_spill]] }
  0x2d   : > { %2000 = vmatpush1.bf16.msra.mxu0 %v9160_v26  ;;  %2086 = vmatpush1.bf16.msra.mxu1 %v9162_v27  ;;  %v491_v47 = vld [vmem:[%s14624_s2 + $0x1a0] sm:$0xff]  ;;  %v492_v49 = vld [vmem:[%s14624_s2 + $0x1a8] sm:$0xff] }
  0x2e   : > { %2001 = vmatprep.subr.bf16.mxu0 %v9169_v28  ;;  %2087 = vmatprep.subr.bf16.mxu1 %v9171_v29  ;;  %v9193_v52 = vcombine.high %v487_v46, %v491_v47  ;;  %v9195_v53 = vcombine.high %v488_v48, %v492_v49  ;;  %v495_v54 = vld [vmem:[%s14624_s2 + $0x1c0] sm:$0xff]  ;;  %v496_v57 = vld [vmem:[%s14624_s2 + $0x1c8] sm:$0xff]  ;;  %v9192_v59 = vcombine.low %v487_v46, %v491_v47 }
  0x2f   : > { %v499_v55 = vld [vmem:[%s14624_s2 + $0x1e0] sm:$0xff]  ;;  %v500_v58 = vld [vmem:[%s14624_s2 + $0x1e8] sm:$0xff]  ;;  %v9194_v60 = vcombine.low %v488_v48, %v492_v49 }
  0x30   : > { %v10008_v56 = vld [vmem:[%s9999_s16 + $0x4] ss:$16 sps:$4 sm:$0xff]   ;;  %v9201_v61 = vcombine.high %v495_v54, %v499_v55  ;;  %v9203_v62 = vcombine.high %v496_v57, %v500_v58  ;;  %v504_v1 = vld [vmem:[%s14624_s2 + $0x208] sm:$0xff]  ;;  %v9200_v3 = vcombine.low %v495_v54, %v499_v55  ;;  %v9202_v4 = vcombine.low %v496_v57, %v500_v58 }
  0x31   : > { %2002 = vmatpush1.bf16.msra.mxu0 %v9168_v34  ;;  %2088 = vmatpush1.bf16.msra.mxu1 %v9170_v35  ;;  %v503_v63 = vld [vmem:[%s14624_s2 + $0x200] sm:$0xff]  ;;  %v508_v2 = vld [vmem:[%s14624_s2 + $0x228] sm:$0xff] }
  0x32   : > { %2003 = vmatprep.subr.bf16.mxu0 %v9177_v36  ;;  %2089 = vmatprep.subr.bf16.mxu1 %v9179_v37  ;;  %v507_v0 = vld [vmem:[%s14624_s2 + $0x220] sm:$0xff]  ;;  %v9211_v6 = vcombine.high %v504_v1, %v508_v2  ;;  %v512_v9 = vld [vmem:[%s14624_s2 + $0x248] sm:$0xff]  ;;  %v9210_v12 = vcombine.low %v504_v1, %v508_v2 }
  0x33   : > { %2027 = vmatprep.mubr.bf16.mxu0 %v10008_v56  ;;  %2113 = vmatprep.mubr.bf16.mxu1 %v10008_v56  ;;  %v9209_v5 = vcombine.high %v503_v63, %v507_v0  ;;  %v511_v7 = vld [vmem:[%s14624_s2 + $0x240] sm:$0xff]  ;;  %v516_v10 = vld [vmem:[%s14624_s2 + $0x268] sm:$0xff]  ;;  %v9208_v11 = vcombine.low %v503_v63, %v507_v0 }
  0x34   : > { %v515_v8 = vld [vmem:[%s14624_s2 + $0x260] sm:$0xff]  ;;  %v9219_v14 = vcombine.high %v512_v9, %v516_v10  ;;  %v520_v17 = vld [vmem:[%s14624_s2 + $0x288] sm:$0xff]  ;;  %v9218_v20 = vcombine.low %v512_v9, %v516_v10 }
  0x35   : > { %2004 = vmatpush1.bf16.msra.mxu0 %v9176_v42  ;;  %2090 = vmatpush1.bf16.msra.mxu1 %v9178_v43  ;;  %v9217_v13 = vcombine.high %v511_v7, %v515_v8  ;;  %v519_v15 = vld [vmem:[%s14624_s2 + $0x280] sm:$0xff]  ;;  %v524_v18 = vld [vmem:[%s14624_s2 + $0x2a8] sm:$0xff]  ;;  %v9216_v19 = vcombine.low %v511_v7, %v515_v8 }
  0x36   : > { %2005 = vmatprep.subr.bf16.mxu0 %v9185_v44  ;;  %2091 = vmatprep.subr.bf16.mxu1 %v9187_v45  ;;  %v523_v16 = vld [vmem:[%s14624_s2 + $0x2a0] sm:$0xff]  ;;  %v9227_v22 = vcombine.high %v520_v17, %v524_v18  ;;  %v528_v25 = vld [vmem:[%s14624_s2 + $0x2c8] sm:$0xff]  ;;  %v9226_v28 = vcombine.low %v520_v17, %v524_v18 }
  0x37   : > { %v9225_v21 = vcombine.high %v519_v15, %v523_v16  ;;  %v527_v23 = vld [vmem:[%s14624_s2 + $0x2c0] sm:$0xff]  ;;  %v532_v26 = vld [vmem:[%s14624_s2 + $0x2e8] sm:$0xff]  ;;  %v9224_v27 = vcombine.low %v519_v15, %v523_v16 }
  0x38   : > { %v531_v24 = vld [vmem:[%s14624_s2 + $0x2e0] sm:$0xff]  ;;  %v9235_v30 = vcombine.high %v528_v25, %v532_v26  ;;  %v536_v33 = vld [vmem:[%s14624_s2 + $0x308] sm:$0xff]  ;;  %v9234_v36 = vcombine.low %v528_v25, %v532_v26 }
  0x39   : > { %2006 = vmatpush1.bf16.msra.mxu0 %v9184_v50  ;;  %2092 = vmatpush1.bf16.msra.mxu1 %v9186_v51  ;;  %v9233_v29 = vcombine.high %v527_v23, %v531_v24  ;;  %v535_v31 = vld [vmem:[%s14624_s2 + $0x300] sm:$0xff]  ;;  %v540_v34 = vld [vmem:[%s14624_s2 + $0x328] sm:$0xff]  ;;  %v9232_v35 = vcombine.low %v527_v23, %v531_v24 }
  0x3a   : > { %2007 = vmatprep.subr.bf16.mxu0 %v9193_v52  ;;  %2093 = vmatprep.subr.bf16.mxu1 %v9195_v53  ;;  %v539_v32 = vld [vmem:[%s14624_s2 + $0x320] sm:$0xff]  ;;  %v9243_v38 = vcombine.high %v536_v33, %v540_v34  ;;  %v544_v41 = vld [vmem:[%s14624_s2 + $0x348] sm:$0xff]  ;;  %v9242_v44 = vcombine.low %v536_v33, %v540_v34 }
  0x3b   : > { %v9241_v37 = vcombine.high %v535_v31, %v539_v32  ;;  %v543_v39 = vld [vmem:[%s14624_s2 + $0x340] sm:$0xff]  ;;  %v548_v42 = vld [vmem:[%s14624_s2 + $0x368] sm:$0xff]  ;;  %v9240_v43 = vcombine.low %v535_v31, %v539_v32 }
  0x3c   : > { %v547_v40 = vld [vmem:[%s14624_s2 + $0x360] sm:$0xff]  ;;  %v9251_v46 = vcombine.high %v544_v41, %v548_v42  ;;  %v552_v49 = vld [vmem:[%s14624_s2 + $0x388] sm:$0xff]  ;;  %v9250_v52 = vcombine.low %v544_v41, %v548_v42 }
  0x3d   : > { %2008 = vmatpush1.bf16.msra.mxu0 %v9192_v59  ;;  %2094 = vmatpush1.bf16.msra.mxu1 %v9194_v60  ;;  %v9249_v45 = vcombine.high %v543_v39, %v547_v40  ;;  %v551_v47 = vld [vmem:[%s14624_s2 + $0x380] sm:$0xff]  ;;  %v556_v50 = vld [vmem:[%s14624_s2 + $0x3a8] sm:$0xff]  ;;  %v9248_v51 = vcombine.low %v543_v39, %v547_v40 }
  0x3e   : > { %2009 = vmatprep.subr.bf16.mxu0 %v9201_v61  ;;  %2095 = vmatprep.subr.bf16.mxu1 %v9203_v62  ;;  %v555_v48 = vld [vmem:[%s14624_s2 + $0x3a0] sm:$0xff]  ;;  %v9259_v54 = vcombine.high %v552_v49, %v556_v50  ;;  %v560_v58 = vld [vmem:[%s14624_s2 + $0x3c8] sm:$0xff]  ;;  %v9258_v61 = vcombine.low %v552_v49, %v556_v50 }
  0x3f   : > { %v9257_v53 = vcombine.high %v551_v47, %v555_v48  ;;  %v559_v55 = vld [vmem:[%s14624_s2 + $0x3c0] sm:$0xff]  ;;  %v564_v59 = vld [vmem:[%s14624_s2 + $0x3e8] sm:$0xff]  ;;  %v9256_v60 = vcombine.low %v551_v47, %v555_v48 }
  0x40   : > { %v563_v57 = vld [vmem:[%s14624_s2 + $0x3e0] sm:$0xff]  ;;  %v9267_v63 = vcombine.high %v560_v58, %v564_v59  ;;  %v568_v2 = vld [vmem:[%s14624_s2 + $0x408] sm:$0xff] }
  0x41   : > { %2010 = vmatpush1.bf16.msra.mxu0 %v9200_v3  ;;  %2096 = vmatpush1.bf16.msra.mxu1 %v9202_v4  ;;  %v9265_v62 = vcombine.high %v559_v55, %v563_v57  ;;  %v567_v0 = vld [vmem:[%s14624_s2 + $0x400] sm:$0xff]  ;;  %v572_v3 = vld [vmem:[%s14624_s2 + $0x428] sm:$0xff]  ;;  %v9264_v4 = vcombine.low %v559_v55, %v563_v57 }
  0x42   : > { %2011 = vmatprep.subr.bf16.mxu0 %v9209_v5  ;;  %2097 = vmatprep.subr.bf16.mxu1 %v9211_v6  ;;  %v571_v1 = vld [vmem:[%s14624_s2 + $0x420] sm:$0xff]  ;;  %v9266_v5 = vcombine.low %v560_v58, %v564_v59  ;;  %v9275_v7 = vcombine.high %v568_v2, %v572_v3 }
  0x43   : > { %v9273_v6 = vcombine.high %v567_v0, %v571_v1  ;;  %v575_v8 = vld [vmem:[%s14624_s2 + $0x440] sm:$0xff] }
  0x44   : > { %v579_v9 = vld [vmem:[%s14624_s2 + $0x460] sm:$0xff] }
  0x45   : > { %2012 = vmatpush1.bf16.msra.mxu0 %v9208_v11  ;;  %2098 = vmatpush1.bf16.msra.mxu1 %v9210_v12  ;;  %v10133_v10 = vld [vmem:[%s9999_s16] ss:$16 sps:$4 sm:$0xff]   ;;  %v576_v11 = vld [vmem:[%s14624_s2 + $0x448] sm:$0xff]  ;;  %v9281_v15 = vcombine.high %v575_v8, %v579_v9 }
  0x46   : > { %2013 = vmatprep.subr.bf16.mxu0 %v9217_v13  ;;  %2099 = vmatprep.subr.bf16.mxu1 %v9219_v14  ;;  %v580_v12 = vld [vmem:[%s14624_s2 + $0x468] sm:$0xff]  ;;  %v9272_v13 = vcombine.low %v567_v0, %v571_v1  ;;  %v9274_v14 = vcombine.low %v568_v2, %v572_v3  ;;  %v583_v17 = vld [vmem:[%s14624_s2 + $0x480] sm:$0xff] }
  0x47   : > { %v9283_v16 = vcombine.high %v576_v11, %v580_v12  ;;  %v587_v18 = vld [vmem:[%s14624_s2 + $0x4a0] sm:$0xff]  ;;  %v9282_v23 = vcombine.low %v576_v11, %v580_v12 }
  0x48   : > { %v9289_v24 = vcombine.high %v583_v17, %v587_v18  ;;  %v591_v25 = vld [vmem:[%s14624_s2 + $0x4c0] sm:$0xff] }
  0x49   : > { %2014 = vmatpush1.bf16.msra.mxu0 %v9216_v19  ;;  %2100 = vmatpush1.bf16.msra.mxu1 %v9218_v20  ;;  %v10148_v19 = vld [vmem:[%s9999_s16 + $0xc] ss:$16 sps:$4 sm:$0xff]   ;;  %v595_v26 = vld [vmem:[%s14624_s2 + $0x4e0] sm:$0xff] }
  0x4a   : > { %2015 = vmatprep.subr.bf16.mxu0 %v9225_v21  ;;  %2101 = vmatprep.subr.bf16.mxu1 %v9227_v22  ;;  %v584_v20 = vld [vmem:[%s14624_s2 + $0x488] sm:$0xff]  ;;  %v9280_v22 = vcombine.low %v575_v8, %v579_v9  ;;  %v9297_v32 = vcombine.high %v591_v25, %v595_v26  ;;  %v599_v34 = vld [vmem:[%s14624_s2 + $0x500] sm:$0xff] }
  0x4b   : > { %v588_v21 = vld [vmem:[%s14624_s2 + $0x4a8] sm:$0xff]  ;;  %v607_v42 = vld [vmem:[%s14624_s2 + $0x540] sm:$0xff] }
  0x4c   : > { %v9290_v31 = vcombine.low %v584_v20, %v588_v21  ;;  %v615_v50 = vld [vmem:[%s14624_s2 + $0x580] sm:$0xff] }
  0x4d   : > { %2016 = vmatpush1.bf16.msra.mxu0 %v9224_v27  ;;  %2102 = vmatpush1.bf16.msra.mxu1 %v9226_v28  ;;  %v592_v27 = vld [vmem:[%s14624_s2 + $0x4c8] sm:$0xff]  ;;  %v9291_v28 = vcombine.high %v584_v20, %v588_v21  ;;  %v623_v59 = vld [vmem:[%s14624_s2 + $0x5c0] sm:$0xff] }
  0x4e   : > { %2017 = vmatprep.subr.bf16.mxu0 %v9233_v29  ;;  %2103 = vmatprep.subr.bf16.mxu1 %v9235_v30  ;;  %v596_v29 = vld [vmem:[%s14624_s2 + $0x4e8] sm:$0xff]  ;;  %v9288_v30 = vcombine.low %v583_v17, %v587_v18  ;;  %v631_v3 = vld [vmem:[%s14624_s2 + $0x600] sm:$0xff] }
  0x4f   : > { %v9299_v33 = vcombine.high %v592_v27, %v596_v29  ;;  %v9298_v39 = vcombine.low %v592_v27, %v596_v29  ;;  %v639_v12 = vld [vmem:[%s14624_s2 + $0x640] sm:$0xff] }
  0x50   : > { %v647_v21 = vld [vmem:[%s14624_s2 + $0x680] sm:$0xff] }
  0x51   : > { %2018 = vmatpush1.bf16.msra.mxu0 %v9232_v35  ;;  %2104 = vmatpush1.bf16.msra.mxu1 %v9234_v36  ;;  %v603_v35 = vld [vmem:[%s14624_s2 + $0x520] sm:$0xff]  ;;  %v600_v36 = vld [vmem:[%s14624_s2 + $0x508] sm:$0xff] }
  0x52   : > { %2019 = vmatprep.subr.bf16.mxu0 %v9241_v37  ;;  %2105 = vmatprep.subr.bf16.mxu1 %v9243_v38  ;;  %v604_v37 = vld [vmem:[%s14624_s2 + $0x528] sm:$0xff]  ;;  %v9296_v38 = vcombine.low %v591_v25, %v595_v26  ;;  %v9305_v40 = vcombine.high %v599_v34, %v603_v35  ;;  %v655_v29 = vld [vmem:[%s14624_s2 + $0x6c0] sm:$0xff] }
  0x53   : > { %v9307_v41 = vcombine.high %v600_v36, %v604_v37  ;;  %v9306_v47 = vcombine.low %v600_v36, %v604_v37  ;;  %v663_v37 = vld [vmem:[%s14624_s2 + $0x700] sm:$0xff] }
  0x55   : > { %2020 = vmatpush1.bf16.msra.mxu0 %v9240_v43  ;;  %2106 = vmatpush1.bf16.msra.mxu1 %v9242_v44  ;;  %v611_v43 = vld [vmem:[%s14624_s2 + $0x560] sm:$0xff]  ;;  %v608_v44 = vld [vmem:[%s14624_s2 + $0x548] sm:$0xff] }
  0x56   : > { %2021 = vmatprep.subr.bf16.mxu0 %v9249_v45  ;;  %2107 = vmatprep.subr.bf16.mxu1 %v9251_v46  ;;  %v612_v45 = vld [vmem:[%s14624_s2 + $0x568] sm:$0xff]  ;;  %v9304_v46 = vcombine.low %v599_v34, %v603_v35  ;;  %v9313_v48 = vcombine.high %v607_v42, %v611_v43 }
  0x57   : > { %v9315_v49 = vcombine.high %v608_v44, %v612_v45  ;;  %v9314_v55 = vcombine.low %v608_v44, %v612_v45  ;;  %v671_v45 = vld [vmem:[%s14624_s2 + $0x740] sm:$0xff] }
  0x59   : > { %2022 = vmatpush1.bf16.msra.mxu0 %v9248_v51  ;;  %2108 = vmatpush1.bf16.msra.mxu1 %v9250_v52  ;;  %v619_v51 = vld [vmem:[%s14624_s2 + $0x5a0] sm:$0xff]  ;;  %v616_v52 = vld [vmem:[%s14624_s2 + $0x588] sm:$0xff] }
  0x5a   : > { %2023 = vmatprep.subr.bf16.mxu0 %v9257_v53  ;;  %2109 = vmatprep.subr.bf16.mxu1 %v9259_v54  ;;  %v620_v53 = vld [vmem:[%s14624_s2 + $0x5a8] sm:$0xff]  ;;  %v9312_v54 = vcombine.low %v607_v42, %v611_v43  ;;  %v9321_v57 = vcombine.high %v615_v50, %v619_v51 }
  0x5b   : > { %v9323_v58 = vcombine.high %v616_v52, %v620_v53  ;;  %v9322_v0 = vcombine.low %v616_v52, %v620_v53  ;;  %v679_v53 = vld [vmem:[%s14624_s2 + $0x780] sm:$0xff] }
  0x5d   : > { %2024 = vmatpush1.bf16.msra.mxu0 %v9256_v60  ;;  %2110 = vmatpush1.bf16.msra.mxu1 %v9258_v61  ;;  %v627_v60 = vld [vmem:[%s14624_s2 + $0x5e0] sm:$0xff]  ;;  %v624_v61 = vld [vmem:[%s14624_s2 + $0x5c8] sm:$0xff] }
  0x5e   : > { %2025 = vmatprep.subr.bf16.mxu0 %v9265_v62  ;;  %2111 = vmatprep.subr.bf16.mxu1 %v9267_v63  ;;  %v628_v62 = vld [vmem:[%s14624_s2 + $0x5e8] sm:$0xff]  ;;  %v9320_v63 = vcombine.low %v615_v50, %v619_v51  ;;  %v9329_v1 = vcombine.high %v623_v59, %v627_v60 }
  0x5f   : > { %v9331_v2 = vcombine.high %v624_v61, %v628_v62  ;;  %v9330_v8 = vcombine.low %v624_v61, %v628_v62  ;;  %v687_v62 = vld [vmem:[%s14624_s2 + $0x7c0] sm:$0xff] }
  0x61   : > { %2026 = vmatpush1.bf16.msra.mxu0 %v9264_v4  ;;  %2112 = vmatpush1.bf16.msra.mxu1 %v9266_v5  ;;  %v635_v4 = vld [vmem:[%s14624_s2 + $0x620] sm:$0xff]  ;;  %v632_v5 = vld [vmem:[%s14624_s2 + $0x608] sm:$0xff] }
  0x62   : > { %2038 = vmatprep.subr.bf16.mxu0 %v9273_v6  ;;  %2124 = vmatprep.subr.bf16.mxu1 %v9275_v7  ;;  %v636_v6 = vld [vmem:[%s14624_s2 + $0x628] sm:$0xff]  ;;  %v9328_v7 = vcombine.low %v623_v59, %v627_v60  ;;  %v9337_v9 = vcombine.high %v631_v3, %v635_v4 }
  0x63   : > { %v9339_v11 = vcombine.high %v632_v5, %v636_v6  ;;  %v9338_v17 = vcombine.low %v632_v5, %v636_v6  ;;  %v441_v6 = vld [vmem:[%s14624_s2 + $0x10] sm:$0xff] }
  0x64   : > { %2028 = vmatmul.mubr.bf16.vlgmr.msra.gmra.mrb[0].mxu0 %v10133_v10  ;;  %2114 = vmatmul.mubr.bf16.vlgmr.msra.gmra.mrb[0].mxu1 %v10133_v10 }
  0x65   : > { %2039 = vmatpush1.bf16.msra.mxu0 %v9272_v13  ;;  %2125 = vmatpush1.bf16.msra.mxu1 %v9274_v14  ;;  %v643_v13 = vld [vmem:[%s14624_s2 + $0x660] sm:$0xff]  ;;  %v640_v14 = vld [vmem:[%s14624_s2 + $0x648] sm:$0xff] }
  0x66   : > { %2040 = vmatprep.subr.bf16.mxu0 %v9281_v15  ;;  %2126 = vmatprep.subr.bf16.mxu1 %v9283_v16  ;;  %v644_v15 = vld [vmem:[%s14624_s2 + $0x668] sm:$0xff]  ;;  %v9336_v16 = vcombine.low %v631_v3, %v635_v4  ;;  %v9345_v18 = vcombine.high %v639_v12, %v643_v13  ;;  %v9344_v25 = vcombine.low %v639_v12, %v643_v13 }
  0x67   : > { %2070 = vmatprep.mubr.bf16.mxu0 %v10148_v19  ;;  %2156 = vmatprep.mubr.bf16.mxu1 %v10148_v19  ;;  %v9347_v20 = vcombine.high %v640_v14, %v644_v15  ;;  %v9346_v26 = vcombine.low %v640_v14, %v644_v15  ;;  %v449_v15 = vld [vmem:[%s14624_s2 + $0x50] sm:$0xff] }
  0x69   : > { %2041 = vmatpush1.bf16.msra.mxu0 %v9280_v22  ;;  %2127 = vmatpush1.bf16.msra.mxu1 %v9282_v23  ;;  %v651_v22 = vld [vmem:[%s14624_s2 + $0x6a0] sm:$0xff]  ;;  %v648_v23 = vld [vmem:[%s14624_s2 + $0x688] sm:$0xff] }
  0x6a   : > { %2042 = vmatprep.subr.bf16.mxu0 %v9289_v24  ;;  %2128 = vmatprep.subr.bf16.mxu1 %v9291_v28  ;;  %v652_v24 = vld [vmem:[%s14624_s2 + $0x6a8] sm:$0xff]  ;;  %v9353_v27 = vcombine.high %v647_v21, %v651_v22 }
  0x6b   : > { %v9355_v28 = vcombine.high %v648_v23, %v652_v24  ;;  %v9354_v34 = vcombine.low %v648_v23, %v652_v24 }
  0x6d   : > { %2043 = vmatpush1.bf16.msra.mxu0 %v9288_v30  ;;  %2129 = vmatpush1.bf16.msra.mxu1 %v9290_v31  ;;  %v659_v30 = vld [vmem:[%s14624_s2 + $0x6e0] sm:$0xff]  ;;  %v656_v31 = vld [vmem:[%s14624_s2 + $0x6c8] sm:$0xff] }
  0x6e   : > { %2044 = vmatprep.subr.bf16.mxu0 %v9297_v32  ;;  %2130 = vmatprep.subr.bf16.mxu1 %v9299_v33  ;;  %v660_v32 = vld [vmem:[%s14624_s2 + $0x6e8] sm:$0xff]  ;;  %v9352_v33 = vcombine.low %v647_v21, %v651_v22  ;;  %v9361_v35 = vcombine.high %v655_v29, %v659_v30 }
  0x6f   : > { %v9363_v36 = vcombine.high %v656_v31, %v660_v32  ;;  %v9362_v42 = vcombine.low %v656_v31, %v660_v32 }
  0x71   : > { %2045 = vmatpush1.bf16.msra.mxu0 %v9296_v38  ;;  %2131 = vmatpush1.bf16.msra.mxu1 %v9298_v39  ;;  %v667_v38 = vld [vmem:[%s14624_s2 + $0x720] sm:$0xff]  ;;  %v664_v39 = vld [vmem:[%s14624_s2 + $0x708] sm:$0xff] }
  0x72   : > { %2046 = vmatprep.subr.bf16.mxu0 %v9305_v40  ;;  %2132 = vmatprep.subr.bf16.mxu1 %v9307_v41  ;;  %v668_v40 = vld [vmem:[%s14624_s2 + $0x728] sm:$0xff]  ;;  %v9360_v41 = vcombine.low %v655_v29, %v659_v30  ;;  %v9369_v43 = vcombine.high %v663_v37, %v667_v38 }
  0x73   : > { %v9371_v44 = vcombine.high %v664_v39, %v668_v40  ;;  %v9370_v50 = vcombine.low %v664_v39, %v668_v40 }
  0x75   : > { %2047 = vmatpush1.bf16.msra.mxu0 %v9304_v46  ;;  %2133 = vmatpush1.bf16.msra.mxu1 %v9306_v47  ;;  %v675_v46 = vld [vmem:[%s14624_s2 + $0x760] sm:$0xff]  ;;  %v672_v47 = vld [vmem:[%s14624_s2 + $0x748] sm:$0xff] }
  0x76   : > { %2048 = vmatprep.subr.bf16.mxu0 %v9313_v48  ;;  %2134 = vmatprep.subr.bf16.mxu1 %v9315_v49  ;;  %v676_v48 = vld [vmem:[%s14624_s2 + $0x768] sm:$0xff]  ;;  %v9368_v49 = vcombine.low %v663_v37, %v667_v38  ;;  %v9377_v51 = vcombine.high %v671_v45, %v675_v46 }
  0x77   : > { %v9379_v52 = vcombine.high %v672_v47, %v676_v48  ;;  %v9378_v59 = vcombine.low %v672_v47, %v676_v48  ;;  %v481_v48 = vld [vmem:[%s14624_s2 + $0x150] sm:$0xff] }
  0x79   : > { %2049 = vmatpush1.bf16.msra.mxu0 %v9312_v54  ;;  %2135 = vmatpush1.bf16.msra.mxu1 %v9314_v55  ;;  %v683_v54 = vld [vmem:[%s14624_s2 + $0x7a0] sm:$0xff]  ;;  %v680_v55 = vld [vmem:[%s14624_s2 + $0x788] sm:$0xff] }
  0x7a   : > { %2050 = vmatprep.subr.bf16.mxu0 %v9321_v57  ;;  %2136 = vmatprep.subr.bf16.mxu1 %v9323_v58  ;;  %v684_v57 = vld [vmem:[%s14624_s2 + $0x7a8] sm:$0xff]  ;;  %v9376_v58 = vcombine.low %v671_v45, %v675_v46  ;;  %v9385_v60 = vcombine.high %v679_v53, %v683_v54 }
  0x7b   : > { %v9387_v61 = vcombine.high %v680_v55, %v684_v57  ;;  %v9386_v3 = vcombine.low %v680_v55, %v684_v57  ;;  %v9802_v55 = vmov 0  }
  0x7c   : > { %6807 = vst [vmem:[#allocation4] sm:$0xff] %v9802_v55  ;;  %6813 = vst [vmem:[#allocation4 + $0x30] sm:$0xff] %v9802_v55  ;;  %9743 = vset.pattern.permute.xlu1 %v9802_v55  ;;  %9742 = vset.pattern.permute.xlu0 %v9802_v55 }
  0x7d   : > { %2051 = vmatpush1.bf16.msra.mxu0 %v9320_v63  ;;  %2137 = vmatpush1.bf16.msra.mxu1 %v9322_v0  ;;  %v691_v63 = vld [vmem:[%s14624_s2 + $0x7e0] sm:$0xff]  ;;  %v688_v0 = vld [vmem:[%s14624_s2 + $0x7c8] sm:$0xff]  ;;  %6814 = vst.msk [vmem:[#allocation4 + $0x38] sm:$0xff] %vm2354_vm1, %v9802_v55 }
  0x7e   : > { %2052 = vmatprep.subr.bf16.mxu0 %v9329_v1  ;;  %2138 = vmatprep.subr.bf16.mxu1 %v9331_v2  ;;  %v692_v1 = vld [vmem:[%s14624_s2 + $0x7e8] sm:$0xff]  ;;  %v9384_v2 = vcombine.low %v679_v53, %v683_v54  ;;  %v9393_v4 = vcombine.high %v687_v62, %v691_v63 }
  0x7f   : > { %v9395_v5 = vcombine.high %v688_v0, %v692_v1  ;;  %v9394_v12 = vcombine.low %v688_v0, %v692_v1 }
  0x81   : > { %2053 = vmatpush1.bf16.msra.mxu0 %v9328_v7  ;;  %2139 = vmatpush1.bf16.msra.mxu1 %v9330_v8  ;;  %v445_v7 = vld [vmem:[%s14624_s2 + $0x30] sm:$0xff]  ;;  %v442_v8 = vld [vmem:[%s14624_s2 + $0x18] sm:$0xff] }
  0x82   : > { %2054 = vmatprep.subr.bf16.mxu0 %v9337_v9  ;;  %2140 = vmatprep.subr.bf16.mxu1 %v9339_v11  ;;  %v446_v9 = vld [vmem:[%s14624_s2 + $0x38] sm:$0xff]  ;;  %v9392_v11 = vcombine.low %v687_v62, %v691_v63  ;;  %v9149_v13 = vcombine.high %v441_v6, %v445_v7  ;;  %v9148_v21 = vcombine.low %v441_v6, %v445_v7 }
  0x83   : > { %v9151_v14 = vcombine.high %v442_v8, %v446_v9  ;;  %v9150_v22 = vcombine.low %v442_v8, %v446_v9 }
  0x85   : > { %2055 = vmatpush1.bf16.msra.mxu0 %v9336_v16  ;;  %2141 = vmatpush1.bf16.msra.mxu1 %v9338_v17  ;;  %v453_v16 = vld [vmem:[%s14624_s2 + $0x70] sm:$0xff]  ;;  %v10335_v17 = vld [vmem:[%s9999_s16 + $0x8] ss:$16 sps:$4 sm:$0xff]   ;;  %s14514_s16 = smov 7  }
  0x86   : > { %2056 = vmatprep.subr.bf16.mxu0 %v9345_v18  ;;  %2142 = vmatprep.subr.bf16.mxu1 %v9347_v20  ;;  %v450_v18 = vld [vmem:[%s14624_s2 + $0x58] sm:$0xff]  ;;  %v9157_v23 = vcombine.high %v449_v15, %v453_v16  ;;  %v9156_v29 = vcombine.low %v449_v15, %v453_v16 }
  0x87   : > { %v454_v20 = vld [vmem:[%s14624_s2 + $0x78] sm:$0xff] }
  0x88   : > { %v9159_v24 = vcombine.high %v450_v18, %v454_v20  ;;  %v9158_v30 = vcombine.low %v450_v18, %v454_v20 }
  0x89   : > { %2057 = vmatpush1.bf16.msra.mxu0 %v9344_v25  ;;  %2143 = vmatpush1.bf16.msra.mxu1 %v9346_v26  ;;  %v457_v25 = vld [vmem:[%s14624_s2 + $0x90] sm:$0xff] }
  0x8a   : > { %2058 = vmatprep.subr.bf16.mxu0 %v9353_v27  ;;  %2144 = vmatprep.subr.bf16.mxu1 %v9355_v28  ;;  %v461_v26 = vld [vmem:[%s14624_s2 + $0xb0] sm:$0xff]  ;;  %v458_v27 = vld [vmem:[%s14624_s2 + $0x98] sm:$0xff] }
  0x8b   : > { %v462_v28 = vld [vmem:[%s14624_s2 + $0xb8] sm:$0xff]  ;;  %v9165_v31 = vcombine.high %v457_v25, %v461_v26  ;;  %v9164_v37 = vcombine.low %v457_v25, %v461_v26 }
  0x8c   : > { %v9167_v32 = vcombine.high %v458_v27, %v462_v28  ;;  %v9166_v38 = vcombine.low %v458_v27, %v462_v28 }
  0x8d   : > { %2059 = vmatpush1.bf16.msra.mxu0 %v9352_v33  ;;  %2145 = vmatpush1.bf16.msra.mxu1 %v9354_v34  ;;  %v465_v33 = vld [vmem:[%s14624_s2 + $0xd0] sm:$0xff] }
  0x8e   : > { %2060 = vmatprep.subr.bf16.mxu0 %v9361_v35  ;;  %2146 = vmatprep.subr.bf16.mxu1 %v9363_v36  ;;  %v469_v34 = vld [vmem:[%s14624_s2 + $0xf0] sm:$0xff]  ;;  %v466_v35 = vld [vmem:[%s14624_s2 + $0xd8] sm:$0xff] }
  0x8f   : > { %v470_v36 = vld [vmem:[%s14624_s2 + $0xf8] sm:$0xff]  ;;  %v9173_v39 = vcombine.high %v465_v33, %v469_v34 }
  0x90   : > { %v9175_v40 = vcombine.high %v466_v35, %v470_v36  ;;  %v9174_v45 = vcombine.low %v466_v35, %v470_v36 }
  0x91   : > { %2061 = vmatpush1.bf16.msra.mxu0 %v9360_v41  ;;  %2147 = vmatpush1.bf16.msra.mxu1 %v9362_v42  ;;  %v473_v41 = vld [vmem:[%s14624_s2 + $0x110] sm:$0xff] }
  0x92   : > { %2062 = vmatprep.subr.bf16.mxu0 %v9369_v43  ;;  %2148 = vmatprep.subr.bf16.mxu1 %v9371_v44  ;;  %v477_v42 = vld [vmem:[%s14624_s2 + $0x130] sm:$0xff]  ;;  %v478_v43 = vld [vmem:[%s14624_s2 + $0x138] sm:$0xff]  ;;  %v9172_v44 = vcombine.low %v465_v33, %v469_v34 }
  0x93   : > { %v9181_v46 = vcombine.high %v473_v41, %v477_v42 }
  0x95   : > { %2063 = vmatpush1.bf16.msra.mxu0 %v9368_v49  ;;  %2149 = vmatpush1.bf16.msra.mxu1 %v9370_v50  ;;  %v485_v49 = vld [vmem:[%s14624_s2 + $0x170] sm:$0xff]  ;;  %v482_v50 = vld [vmem:[%s14624_s2 + $0x158] sm:$0xff] }
  0x96   : > { %2064 = vmatprep.subr.bf16.mxu0 %v9377_v51  ;;  %2150 = vmatprep.subr.bf16.mxu1 %v9379_v52  ;;  %v486_v51 = vld [vmem:[%s14624_s2 + $0x178] sm:$0xff]  ;;  %v9180_v52 = vcombine.low %v473_v41, %v477_v42  ;;  %v9189_v54 = vcombine.high %v481_v48, %v485_v49  ;;  %v9188_v62 = vcombine.low %v481_v48, %v485_v49 }
  0x97   : > { %v9191_v57 = vcombine.high %v482_v50, %v486_v51  ;;  %v9190_v63 = vcombine.low %v482_v50, %v486_v51 }
  0x99   : > { %2065 = vmatpush1.bf16.msra.mxu0 %v9376_v58  ;;  %2151 = vmatpush1.bf16.msra.mxu1 %v9378_v59  ;;  %v489_v58 = vld [vmem:[%s14624_s2 + $0x190] sm:$0xff] }
  0x9a   : > { %2066 = vmatprep.subr.bf16.mxu0 %v9385_v60  ;;  %2152 = vmatprep.subr.bf16.mxu1 %v9387_v61  ;;  %v493_v59 = vld [vmem:[%s14624_s2 + $0x1b0] sm:$0xff]  ;;  %v490_v60 = vld [vmem:[%s14624_s2 + $0x198] sm:$0xff] }
  0x9b   : > { %v494_v61 = vld [vmem:[%s14624_s2 + $0x1b8] sm:$0xff]  ;;  %v9197_v0 = vcombine.high %v489_v58, %v493_v59  ;;  %v9196_v6 = vcombine.low %v489_v58, %v493_v59 }
  0x9c   : > { %v9199_v1 = vcombine.high %v490_v60, %v494_v61  ;;  %v9198_v7 = vcombine.low %v490_v60, %v494_v61 }
  0x9d   : > { %2067 = vmatpush1.bf16.msra.mxu0 %v9384_v2  ;;  %2153 = vmatpush1.bf16.msra.mxu1 %v9386_v3  ;;  %v497_v2 = vld [vmem:[%s14624_s2 + $0x1d0] sm:$0xff] }
  0x9e   : > { %2068 = vmatprep.subr.bf16.mxu0 %v9393_v4  ;;  %2154 = vmatprep.subr.bf16.mxu1 %v9395_v5  ;;  %v501_v3 = vld [vmem:[%s14624_s2 + $0x1f0] sm:$0xff]  ;;  %v498_v4 = vld [vmem:[%s14624_s2 + $0x1d8] sm:$0xff] }
  0x9f   : > { %v502_v5 = vld [vmem:[%s14624_s2 + $0x1f8] sm:$0xff]  ;;  %v9205_v8 = vcombine.high %v497_v2, %v501_v3  ;;  %v9204_v15 = vcombine.low %v497_v2, %v501_v3 }
  0xa0   : > { %v9207_v9 = vcombine.high %v498_v4, %v502_v5  ;;  %v9206_v16 = vcombine.low %v498_v4, %v502_v5 }
  0xa1   : > { %2069 = vmatpush1.bf16.msra.mxu0 %v9392_v11  ;;  %2155 = vmatpush1.bf16.msra.mxu1 %v9394_v12  ;;  %v505_v11 = vld [vmem:[%s14624_s2 + $0x210] sm:$0xff] }
  0xa2   : > { %2167 = vmatprep.subr.bf16.mxu0 %v9149_v13  ;;  %2253 = vmatprep.subr.bf16.mxu1 %v9151_v14  ;;  %v509_v12 = vld [vmem:[%s14624_s2 + $0x230] sm:$0xff]  ;;  %v506_v13 = vld [vmem:[%s14624_s2 + $0x218] sm:$0xff] }
  0xa3   : > { %v510_v14 = vld [vmem:[%s14624_s2 + $0x238] sm:$0xff]  ;;  %v9213_v18 = vcombine.high %v505_v11, %v509_v12  ;;  %v9212_v25 = vcombine.low %v505_v11, %v509_v12 }
  0xa4   : > { %2071 = vmatmul.mubr.bf16.vlgmr.msra.gmra.mrb[0].mxu0 %v10335_v17  ;;  %2157 = vmatmul.mubr.bf16.vlgmr.msra.gmra.mrb[0].mxu1 %v10335_v17  ;;  %v9215_v20 = vcombine.high %v506_v13, %v510_v14  ;;  %v9214_v26 = vcombine.low %v506_v13, %v510_v14 }
  0xa5   : > { %2168 = vmatpush1.bf16.msra.mxu0 %v9148_v21  ;;  %2254 = vmatpush1.bf16.msra.mxu1 %v9150_v22  ;;  %v513_v21 = vld [vmem:[%s14624_s2 + $0x250] sm:$0xff] }
  0xa6   : > { %2169 = vmatprep.subr.bf16.mxu0 %v9157_v23  ;;  %2255 = vmatprep.subr.bf16.mxu1 %v9159_v24  ;;  %v517_v22 = vld [vmem:[%s14624_s2 + $0x270] sm:$0xff]  ;;  %v514_v23 = vld [vmem:[%s14624_s2 + $0x258] sm:$0xff] }
  0xa7   : > { %2199 = vmatprep.mubr.bf16.mxu0 %v10008_v56  ;;  %2285 = vmatprep.mubr.bf16.mxu1 %v10008_v56  ;;  %v474_v56 = vld [vmem:[%s14624_s2 + $0x118] sm:$0xff]  ;;  %v9221_v27 = vcombine.high %v513_v21, %v517_v22  ;;  %v9220_v33 = vcombine.low %v513_v21, %v517_v22 }
  0xa8   : > { %v9183_v47 = vcombine.high %v474_v56, %v478_v43  ;;  %v9182_v53 = vcombine.low %v474_v56, %v478_v43  ;;  %v518_v24 = vld [vmem:[%s14624_s2 + $0x278] sm:$0xff] }
  0xa9   : > { %2170 = vmatpush1.bf16.msra.mxu0 %v9156_v29  ;;  %2256 = vmatpush1.bf16.msra.mxu1 %v9158_v30  ;;  %v9223_v28 = vcombine.high %v514_v23, %v518_v24  ;;  %v521_v29 = vld [vmem:[%s14624_s2 + $0x290] sm:$0xff]  ;;  %v9222_v34 = vcombine.low %v514_v23, %v518_v24 }
  0xaa   : > { %2171 = vmatprep.subr.bf16.mxu0 %v9165_v31  ;;  %2257 = vmatprep.subr.bf16.mxu1 %v9167_v32  ;;  %v525_v30 = vld [vmem:[%s14624_s2 + $0x2b0] sm:$0xff]  ;;  %v522_v31 = vld [vmem:[%s14624_s2 + $0x298] sm:$0xff] }
  0xab   : > { %v526_v32 = vld [vmem:[%s14624_s2 + $0x2b8] sm:$0xff]  ;;  %v9229_v35 = vcombine.high %v521_v29, %v525_v30  ;;  %v9228_v41 = vcombine.low %v521_v29, %v525_v30 }
  0xac   : > { %v9231_v36 = vcombine.high %v522_v31, %v526_v32  ;;  %v9230_v42 = vcombine.low %v522_v31, %v526_v32 }
  0xad   : > { %2172 = vmatpush1.bf16.msra.mxu0 %v9164_v37  ;;  %2258 = vmatpush1.bf16.msra.mxu1 %v9166_v38  ;;  %v529_v37 = vld [vmem:[%s14624_s2 + $0x2d0] sm:$0xff] }
  0xae   : > { %2173 = vmatprep.subr.bf16.mxu0 %v9173_v39  ;;  %2259 = vmatprep.subr.bf16.mxu1 %v9175_v40  ;;  %v533_v38 = vld [vmem:[%s14624_s2 + $0x2f0] sm:$0xff]  ;;  %v530_v39 = vld [vmem:[%s14624_s2 + $0x2d8] sm:$0xff] }
  0xaf   : > { %v534_v40 = vld [vmem:[%s14624_s2 + $0x2f8] sm:$0xff]  ;;  %v9237_v56 = vcombine.high %v529_v37, %v533_v38  ;;  %v9236_v48 = vcombine.low %v529_v37, %v533_v38 }
  0xb0   : > { %v9239_v43 = vcombine.high %v530_v39, %v534_v40  ;;  %v9238_v49 = vcombine.low %v530_v39, %v534_v40 }
  0xb1   : > { %2174 = vmatpush1.bf16.msra.mxu0 %v9172_v44  ;;  %2260 = vmatpush1.bf16.msra.mxu1 %v9174_v45  ;;  %v537_v44 = vld [vmem:[%s14624_s2 + $0x310] sm:$0xff] }
  0xb2   : > { %2175 = vmatprep.subr.bf16.mxu0 %v9181_v46  ;;  %2261 = vmatprep.subr.bf16.mxu1 %v9183_v47  ;;  %v541_v45 = vld [vmem:[%s14624_s2 + $0x330] sm:$0xff]  ;;  %v538_v46 = vld [vmem:[%s14624_s2 + $0x318] sm:$0xff] }
  0xb3   : > { %v542_v47 = vld [vmem:[%s14624_s2 + $0x338] sm:$0xff]  ;;  %v9245_v50 = vcombine.high %v537_v44, %v541_v45  ;;  %v9244_v58 = vcombine.low %v537_v44, %v541_v45 }
  0xb4   : > { %v9247_v51 = vcombine.high %v538_v46, %v542_v47  ;;  %v9246_v59 = vcombine.low %v538_v46, %v542_v47  ;;  %v601_v47 = vld [vmem:[%s14624_s2 + $0x510] sm:$0xff] }
  0xb5   : > { %2176 = vmatpush1.bf16.msra.mxu0 %v9180_v52  ;;  %2262 = vmatpush1.bf16.msra.mxu1 %v9182_v53  ;;  %v545_v52 = vld [vmem:[%s14624_s2 + $0x350] sm:$0xff] }
  0xb6   : > { %2177 = vmatprep.subr.bf16.mxu0 %v9189_v54  ;;  %2263 = vmatprep.subr.bf16.mxu1 %v9191_v57  ;;  %v549_v53 = vld [vmem:[%s14624_s2 + $0x370] sm:$0xff]  ;;  %v546_v54 = vld [vmem:[%s14624_s2 + $0x358] sm:$0xff] }
  0xb7   : > { %v550_v57 = vld [vmem:[%s14624_s2 + $0x378] sm:$0xff]  ;;  %v9253_v60 = vcombine.high %v545_v52, %v549_v53  ;;  %v9252_v2 = vcombine.low %v545_v52, %v549_v53 }
  0xb8   : > { %v9255_v61 = vcombine.high %v546_v54, %v550_v57  ;;  %v9254_v3 = vcombine.low %v546_v54, %v550_v57  ;;  %v609_v54 = vld [vmem:[%s14624_s2 + $0x550] sm:$0xff] }
  0xb9   : > { %2178 = vmatpush1.bf16.msra.mxu0 %v9188_v62  ;;  %2264 = vmatpush1.bf16.msra.mxu1 %v9190_v63  ;;  %v553_v62 = vld [vmem:[%s14624_s2 + $0x390] sm:$0xff] }
  0xba   : > { %2179 = vmatprep.subr.bf16.mxu0 %v9197_v0  ;;  %2265 = vmatprep.subr.bf16.mxu1 %v9199_v1  ;;  %v557_v63 = vld [vmem:[%s14624_s2 + $0x3b0] sm:$0xff]  ;;  %v554_v0 = vld [vmem:[%s14624_s2 + $0x398] sm:$0xff] }
  0xbb   : > { %v558_v1 = vld [vmem:[%s14624_s2 + $0x3b8] sm:$0xff]  ;;  %v9261_v4 = vcombine.high %v553_v62, %v557_v63  ;;  %v9260_v11 = vcombine.low %v553_v62, %v557_v63  ;;  %v613_v57 = vld [vmem:[%s14624_s2 + $0x570] sm:$0xff] }
  0xbc   : > { %v9263_v5 = vcombine.high %v554_v0, %v558_v1  ;;  %v9262_v12 = vcombine.low %v554_v0, %v558_v1  ;;  %v9317_v62 = vcombine.high %v609_v54, %v613_v57  ;;  %v617_v0 = vld [vmem:[%s14624_s2 + $0x590] sm:$0xff] }
  0xbd   : > { %2180 = vmatpush1.bf16.msra.mxu0 %v9196_v6  ;;  %2266 = vmatpush1.bf16.msra.mxu1 %v9198_v7  ;;  %v561_v6 = vld [vmem:[%s14624_s2 + $0x3d0] sm:$0xff] }
  0xbe   : > { %2181 = vmatprep.subr.bf16.mxu0 %v9205_v8  ;;  %2267 = vmatprep.subr.bf16.mxu1 %v9207_v9  ;;  %v565_v7 = vld [vmem:[%s14624_s2 + $0x3f0] sm:$0xff]  ;;  %v562_v8 = vld [vmem:[%s14624_s2 + $0x3d8] sm:$0xff] }
  0xbf   : > { %v566_v9 = vld [vmem:[%s14624_s2 + $0x3f8] sm:$0xff]  ;;  %v9269_v13 = vcombine.high %v561_v6, %v565_v7  ;;  %v9268_v21 = vcombine.low %v561_v6, %v565_v7  ;;  %v621_v1 = vld [vmem:[%s14624_s2 + $0x5b0] sm:$0xff] }
  0xc0   : > { %v9271_v14 = vcombine.high %v562_v8, %v566_v9  ;;  %v9270_v22 = vcombine.low %v562_v8, %v566_v9  ;;  %v9325_v6 = vcombine.high %v617_v0, %v621_v1  ;;  %v625_v8 = vld [vmem:[%s14624_s2 + $0x5d0] sm:$0xff] }
  0xc1   : > { %2182 = vmatpush1.bf16.msra.mxu0 %v9204_v15  ;;  %2268 = vmatpush1.bf16.msra.mxu1 %v9206_v16  ;;  %v569_v15 = vld [vmem:[%s14624_s2 + $0x410] sm:$0xff] }
  0xc2   : > { %2183 = vmatprep.subr.bf16.mxu0 %v9213_v18  ;;  %2269 = vmatprep.subr.bf16.mxu1 %v9215_v20  ;;  %v573_v16 = vld [vmem:[%s14624_s2 + $0x430] sm:$0xff]  ;;  %v570_v18 = vld [vmem:[%s14624_s2 + $0x418] sm:$0xff] }
  0xc3   : > { %v574_v20 = vld [vmem:[%s14624_s2 + $0x438] sm:$0xff]  ;;  %v9277_v23 = vcombine.high %v569_v15, %v573_v16  ;;  %v9276_v29 = vcombine.low %v569_v15, %v573_v16  ;;  %v629_v9 = vld [vmem:[%s14624_s2 + $0x5f0] sm:$0xff] }
  0xc4   : > { %v9279_v24 = vcombine.high %v570_v18, %v574_v20  ;;  %v9278_v30 = vcombine.low %v570_v18, %v574_v20  ;;  %v9333_v15 = vcombine.high %v625_v8, %v629_v9  ;;  %v633_v18 = vld [vmem:[%s14624_s2 + $0x610] sm:$0xff] }
  0xc5   : > { %2184 = vmatpush1.bf16.msra.mxu0 %v9212_v25  ;;  %2270 = vmatpush1.bf16.msra.mxu1 %v9214_v26  ;;  %v577_v25 = vld [vmem:[%s14624_s2 + $0x450] sm:$0xff] }
  0xc6   : > { %2185 = vmatprep.subr.bf16.mxu0 %v9221_v27  ;;  %2271 = vmatprep.subr.bf16.mxu1 %v9223_v28  ;;  %v581_v26 = vld [vmem:[%s14624_s2 + $0x470] sm:$0xff]  ;;  %v578_v27 = vld [vmem:[%s14624_s2 + $0x458] sm:$0xff] }
  0xc7   : > { %v582_v28 = vld [vmem:[%s14624_s2 + $0x478] sm:$0xff]  ;;  %v9285_v31 = vcombine.high %v577_v25, %v581_v26  ;;  %v9284_v37 = vcombine.low %v577_v25, %v581_v26  ;;  %v637_v20 = vld [vmem:[%s14624_s2 + $0x630] sm:$0xff] }
  0xc8   : > { %v9287_v32 = vcombine.high %v578_v27, %v582_v28  ;;  %v9286_v38 = vcombine.low %v578_v27, %v582_v28  ;;  %v9341_v25 = vcombine.high %v633_v18, %v637_v20  ;;  %v641_v27 = vld [vmem:[%s14624_s2 + $0x650] sm:$0xff] }
  0xc9   : > { %2186 = vmatpush1.bf16.msra.mxu0 %v9220_v33  ;;  %2272 = vmatpush1.bf16.msra.mxu1 %v9222_v34  ;;  %v585_v33 = vld [vmem:[%s14624_s2 + $0x490] sm:$0xff] }
  0xca   : > { %2187 = vmatprep.subr.bf16.mxu0 %v9229_v35  ;;  %2273 = vmatprep.subr.bf16.mxu1 %v9231_v36  ;;  %v589_v34 = vld [vmem:[%s14624_s2 + $0x4b0] sm:$0xff]  ;;  %v586_v35 = vld [vmem:[%s14624_s2 + $0x498] sm:$0xff] }
  0xcb   : > { %v590_v36 = vld [vmem:[%s14624_s2 + $0x4b8] sm:$0xff]  ;;  %v9293_v39 = vcombine.high %v585_v33, %v589_v34  ;;  %v645_v28 = vld [vmem:[%s14624_s2 + $0x670] sm:$0xff] }
  0xcc   : > { %v9295_v40 = vcombine.high %v586_v35, %v590_v36  ;;  %v9294_v44 = vcombine.low %v586_v35, %v590_v36  ;;  %v649_v35 = vld [vmem:[%s14624_s2 + $0x690] sm:$0xff] }
  0xcd   : > { %2188 = vmatpush1.bf16.msra.mxu0 %v9228_v41  ;;  %2274 = vmatpush1.bf16.msra.mxu1 %v9230_v42  ;;  %v593_v41 = vld [vmem:[%s14624_s2 + $0x4d0] sm:$0xff] }
  0xce   : > { %2189 = vmatprep.subr.bf16.mxu0 %v9237_v56  ;;  %2275 = vmatprep.subr.bf16.mxu1 %v9239_v43  ;;  %v597_v42 = vld [vmem:[%s14624_s2 + $0x4f0] sm:$0xff]  ;;  %v598_v56 = vld [vmem:[%s14624_s2 + $0x4f8] sm:$0xff]  ;;  %v9292_v43 = vcombine.low %v585_v33, %v589_v34  ;;  %v9349_v33 = vcombine.high %v641_v27, %v645_v28 }
  0xcf   : > { %v9301_v45 = vcombine.high %v593_v41, %v597_v42  ;;  %v653_v36 = vld [vmem:[%s14624_s2 + $0x6b0] sm:$0xff] }
  0xd1   : > { %2190 = vmatpush1.bf16.msra.mxu0 %v9236_v48  ;;  %2276 = vmatpush1.bf16.msra.mxu1 %v9238_v49  ;;  %v605_v48 = vld [vmem:[%s14624_s2 + $0x530] sm:$0xff]  ;;  %v606_v49 = vld [vmem:[%s14624_s2 + $0x538] sm:$0xff] }
  0xd2   : > { %2191 = vmatprep.subr.bf16.mxu0 %v9245_v50  ;;  %2277 = vmatprep.subr.bf16.mxu1 %v9247_v51  ;;  %v9300_v50 = vcombine.low %v593_v41, %v597_v42  ;;  %v9309_v52 = vcombine.high %v601_v47, %v605_v48  ;;  %v9357_v41 = vcombine.high %v649_v35, %v653_v36 }
  0xd5   : > { %2192 = vmatpush1.bf16.msra.mxu0 %v9244_v58  ;;  %2278 = vmatpush1.bf16.msra.mxu1 %v9246_v59  ;;  %v610_v58 = vld [vmem:[%s14624_s2 + $0x558] sm:$0xff] }
  0xd6   : > { %2193 = vmatprep.subr.bf16.mxu0 %v9253_v60  ;;  %2279 = vmatprep.subr.bf16.mxu1 %v9255_v61  ;;  %v614_v59 = vld [vmem:[%s14624_s2 + $0x578] sm:$0xff]  ;;  %v9308_v60 = vcombine.low %v601_v47, %v605_v48 }
  0xd7   : > { %v9319_v63 = vcombine.high %v610_v58, %v614_v59 }
  0xd9   : > { %2194 = vmatpush1.bf16.msra.mxu0 %v9252_v2  ;;  %2280 = vmatpush1.bf16.msra.mxu1 %v9254_v3  ;;  %v618_v2 = vld [vmem:[%s14624_s2 + $0x598] sm:$0xff] }
  0xda   : > { %2195 = vmatprep.subr.bf16.mxu0 %v9261_v4  ;;  %2281 = vmatprep.subr.bf16.mxu1 %v9263_v5  ;;  %v622_v3 = vld [vmem:[%s14624_s2 + $0x5b8] sm:$0xff]  ;;  %v9316_v4 = vcombine.low %v609_v54, %v613_v57  ;;  %v9318_v5 = vcombine.low %v610_v58, %v614_v59  ;;  %v673_v58 = vld [vmem:[%s14624_s2 + $0x750] sm:$0xff] }
  0xdb   : > { %v9327_v7 = vcombine.high %v618_v2, %v622_v3  ;;  %v677_v59 = vld [vmem:[%s14624_s2 + $0x770] sm:$0xff] }
  0xdd   : > { %2196 = vmatpush1.bf16.msra.mxu0 %v9260_v11  ;;  %2282 = vmatpush1.bf16.msra.mxu1 %v9262_v12  ;;  %v626_v11 = vld [vmem:[%s14624_s2 + $0x5d8] sm:$0xff] }
  0xde   : > { %2197 = vmatprep.subr.bf16.mxu0 %v9269_v13  ;;  %2283 = vmatprep.subr.bf16.mxu1 %v9271_v14  ;;  %v630_v12 = vld [vmem:[%s14624_s2 + $0x5f8] sm:$0xff]  ;;  %v9324_v13 = vcombine.low %v617_v0, %v621_v1  ;;  %v9326_v14 = vcombine.low %v618_v2, %v622_v3  ;;  %v9381_v0 = vcombine.high %v673_v58, %v677_v59  ;;  %v681_v2 = vld [vmem:[%s14624_s2 + $0x790] sm:$0xff] }
  0xdf   : > { %v9335_v16 = vcombine.high %v626_v11, %v630_v12  ;;  %v685_v3 = vld [vmem:[%s14624_s2 + $0x7b0] sm:$0xff] }
  0xe1   : > { %2198 = vmatpush1.bf16.msra.mxu0 %v9268_v21  ;;  %2284 = vmatpush1.bf16.msra.mxu1 %v9270_v22  ;;  %v634_v21 = vld [vmem:[%s14624_s2 + $0x618] sm:$0xff] }
  0xe2   : > { %2210 = vmatprep.subr.bf16.mxu0 %v9277_v23  ;;  %2296 = vmatprep.subr.bf16.mxu1 %v9279_v24  ;;  %v638_v22 = vld [vmem:[%s14624_s2 + $0x638] sm:$0xff]  ;;  %v9332_v23 = vcombine.low %v625_v8, %v629_v9  ;;  %v9334_v24 = vcombine.low %v626_v11, %v630_v12  ;;  %v9389_v8 = vcombine.high %v681_v2, %v685_v3  ;;  %v689_v11 = vld [vmem:[%s14624_s2 + $0x7d0] sm:$0xff] }
  0xe3   : > { %v9343_v26 = vcombine.high %v634_v21, %v638_v22  ;;  %v693_v12 = vld [vmem:[%s14624_s2 + $0x7f0] sm:$0xff] }
  0xe4   : > { %2200 = vmatmul.mubr.bf16.vlgmr.msra.gmra.mrb[4].mxu0 %v10133_v10  ;;  %2286 = vmatmul.mubr.bf16.vlgmr.msra.gmra.mrb[4].mxu1 %v10133_v10  ;;  %v594_v10 = vld [vmem:[%s14624_s2 + $0x4d8] sm:$0xff] }
  0xe5   : > { %2211 = vmatpush1.bf16.msra.mxu0 %v9276_v29  ;;  %2297 = vmatpush1.bf16.msra.mxu1 %v9278_v30  ;;  %v9303_v46 = vcombine.high %v594_v10, %v598_v56  ;;  %v9302_v51 = vcombine.low %v594_v10, %v598_v56  ;;  %v642_v29 = vld [vmem:[%s14624_s2 + $0x658] sm:$0xff]  ;;  %v657_v10 = vld [vmem:[%s14624_s2 + $0x6d0] sm:$0xff] }
  0xe6   : > { %2212 = vmatprep.subr.bf16.mxu0 %v9285_v31  ;;  %2298 = vmatprep.subr.bf16.mxu1 %v9287_v32  ;;  %v646_v30 = vld [vmem:[%s14624_s2 + $0x678] sm:$0xff]  ;;  %v9340_v31 = vcombine.low %v633_v18, %v637_v20  ;;  %v9342_v32 = vcombine.low %v634_v21, %v638_v22  ;;  %v661_v56 = vld [vmem:[%s14624_s2 + $0x6f0] sm:$0xff]  ;;  %v9397_v18 = vcombine.high %v689_v11, %v693_v12  ;;  %v2358_v21 = vld [vmem:[%s14628_s3] sm:$0xff] }
  0xe7   : > { %2242 = vmatprep.mubr.bf16.mxu0 %v10148_v19  ;;  %2328 = vmatprep.mubr.bf16.mxu1 %v10148_v19  ;;  %v602_v19 = vld [vmem:[%s14624_s2 + $0x518] sm:$0xff]  ;;  %v9351_v34 = vcombine.high %v642_v29, %v646_v30  ;;  %v9365_v47 = vcombine.high %v657_v10, %v661_v56  ;;  %v2362_v22 = vld [vmem:[%s14628_s3 + $0x20] sm:$0xff] }
  0xe8   : > { %v9311_v53 = vcombine.high %v602_v19, %v606_v49  ;;  %v9310_v61 = vcombine.low %v602_v19, %v606_v49  ;;  %v665_v19 = vld [vmem:[%s14624_s2 + $0x710] sm:$0xff] }
  0xe9   : > { %2213 = vmatpush1.bf16.msra.mxu0 %v9284_v37  ;;  %2299 = vmatpush1.bf16.msra.mxu1 %v9286_v38  ;;  %v650_v37 = vld [vmem:[%s14624_s2 + $0x698] sm:$0xff]  ;;  %v669_v49 = vld [vmem:[%s14624_s2 + $0x730] sm:$0xff] }
  0xea   : > { %2214 = vmatprep.subr.bf16.mxu0 %v9293_v39  ;;  %2300 = vmatprep.subr.bf16.mxu1 %v9295_v40  ;;  %v654_v38 = vld [vmem:[%s14624_s2 + $0x6b8] sm:$0xff]  ;;  %v9348_v39 = vcombine.low %v641_v27, %v645_v28  ;;  %v9350_v40 = vcombine.low %v642_v29, %v646_v30  ;;  %v9373_v54 = vcombine.high %v665_v19, %v669_v49  ;;  %v2366_v28 = vld [vmem:[%s14628_s3 + $0x40] sm:$0xff] }
  0xeb   : > { %v9359_v42 = vcombine.high %v650_v37, %v654_v38  ;;  %v9402_v27 = vcombine.high %v2358_v21, %v2362_v22  ;;  %v2370_v29 = vld [vmem:[%s14628_s3 + $0x60] sm:$0xff] }
  0xed   : > { %2215 = vmatpush1.bf16.msra.mxu0 %v9292_v43  ;;  %2301 = vmatpush1.bf16.msra.mxu1 %v9294_v44  ;;  %v658_v43 = vld [vmem:[%s14624_s2 + $0x6d8] sm:$0xff] }
  0xee   : > { %2216 = vmatprep.subr.bf16.mxu0 %v9301_v45  ;;  %2302 = vmatprep.subr.bf16.mxu1 %v9303_v46  ;;  %v662_v44 = vld [vmem:[%s14624_s2 + $0x6f8] sm:$0xff]  ;;  %v9356_v45 = vcombine.low %v649_v35, %v653_v36  ;;  %v9358_v46 = vcombine.low %v650_v37, %v654_v38  ;;  %v2374_v35 = vld [vmem:[%s14628_s3 + $0x80] sm:$0xff] }
  0xef   : > { %v9367_v48 = vcombine.high %v658_v43, %v662_v44  ;;  %v2378_v36 = vld [vmem:[%s14628_s3 + $0xa0] sm:$0xff] }
  0xf1   : > { %2217 = vmatpush1.bf16.msra.mxu0 %v9300_v50  ;;  %2303 = vmatpush1.bf16.msra.mxu1 %v9302_v51  ;;  %v666_v50 = vld [vmem:[%s14624_s2 + $0x718] sm:$0xff] }
  0xf2   : > { %2218 = vmatprep.subr.bf16.mxu0 %v9309_v52  ;;  %2304 = vmatprep.subr.bf16.mxu1 %v9311_v53  ;;  %v670_v51 = vld [vmem:[%s14624_s2 + $0x738] sm:$0xff]  ;;  %v9364_v52 = vcombine.low %v657_v10, %v661_v56  ;;  %v9366_v53 = vcombine.low %v658_v43, %v662_v44  ;;  %v2382_v10 = vld [vmem:[%s14628_s3 + $0xc0] sm:$0xff]  ;;  %v9417_v44 = vcombine.low %v2374_v35, %v2378_v36 }
  0xf3   : > { %v9375_v57 = vcombine.high %v666_v50, %v670_v51 }
  0xf5   : > { %2219 = vmatpush1.bf16.msra.mxu0 %v9308_v60  ;;  %2305 = vmatpush1.bf16.msra.mxu1 %v9310_v61  ;;  %v674_v60 = vld [vmem:[%s14624_s2 + $0x758] sm:$0xff] }
  0xf6   : > { %2220 = vmatprep.subr.bf16.mxu0 %v9317_v62  ;;  %2306 = vmatprep.subr.bf16.mxu1 %v9319_v63  ;;  %v678_v61 = vld [vmem:[%s14624_s2 + $0x778] sm:$0xff]  ;;  %v9372_v62 = vcombine.low %v665_v19, %v669_v49  ;;  %v9374_v63 = vcombine.low %v666_v50, %v670_v51  ;;  %v2363_v19 = vld [vmem:[%s14628_s3 + $0x28] sm:$0xff] }
  0xf7   : > { %v9383_v1 = vcombine.high %v674_v60, %v678_v61 }
  0xf9   : > { %2221 = vmatpush1.bf16.msra.mxu0 %v9316_v4  ;;  %2307 = vmatpush1.bf16.msra.mxu1 %v9318_v5  ;;  %v682_v4 = vld [vmem:[%s14624_s2 + $0x798] sm:$0xff] }
  0xfa   : > { %2222 = vmatprep.subr.bf16.mxu0 %v9325_v6  ;;  %2308 = vmatprep.subr.bf16.mxu1 %v9327_v7  ;;  %v686_v5 = vld [vmem:[%s14624_s2 + $0x7b8] sm:$0xff]  ;;  %v9380_v6 = vcombine.low %v673_v58, %v677_v59  ;;  %v9382_v7 = vcombine.low %v674_v60, %v678_v61  ;;  %v9750_v58 = vld [vmem:[%s10410_s15] sm:$0xff]   ;;  %v2375_v61 = vld [vmem:[%s14628_s3 + $0x88] sm:$0xff]  ;;  %s14508_s15 = smov 17  }
  0xfb   : > { %v9391_v9 = vcombine.high %v682_v4, %v686_v5 }
  0xfd   : > { %2223 = vmatpush1.bf16.msra.mxu0 %v9324_v13  ;;  %2309 = vmatpush1.bf16.msra.mxu1 %v9326_v14  ;;  %v690_v13 = vld [vmem:[%s14624_s2 + $0x7d8] sm:$0xff] }
  0xfe   : > { %2224 = vmatprep.subr.bf16.mxu0 %v9333_v15  ;;  %2310 = vmatprep.subr.bf16.mxu1 %v9335_v16  ;;  %v694_v14 = vld [vmem:[%s14624_s2 + $0x7f8] sm:$0xff]  ;;  %v9388_v15 = vcombine.low %v681_v2, %v685_v3  ;;  %v9390_v16 = vcombine.low %v682_v4, %v686_v5  ;;  %v2387_v2 = vld [vmem:[%s14628_s3 + $0xe8] sm:$0xff]  ;;  %v2360_v5 = vld [vmem:[%s14628_s3 + $0x10] sm:$0xff]  ;;  %s14651_s2 = smov 35  }
  0xff   : > { %v9399_v20 = vcombine.high %v690_v13, %v694_v14 }
 0x101   : > { %2225 = vmatpush1.bf16.msra.mxu0 %v9332_v23  ;;  %2311 = vmatpush1.bf16.msra.mxu1 %v9334_v24  ;;  %v2361_v23 = vld [vmem:[%s14628_s3 + $0x18] sm:$0xff] }
 0x102   : > { %2226 = vmatprep.subr.bf16.mxu0 %v9341_v25  ;;  %2312 = vmatprep.subr.bf16.mxu1 %v9343_v26  ;;  %v2365_v24 = vld [vmem:[%s14628_s3 + $0x38] sm:$0xff]  ;;  %v9396_v25 = vcombine.low %v689_v11, %v693_v12  ;;  %v9398_v26 = vcombine.low %v690_v13, %v694_v14  ;;  %v2372_v11 = vld [vmem:[%s14628_s3 + $0x70] sm:$0xff] }
 0x103   : > { %v9408_v30 = vcombine.high %v2361_v23, %v2365_v24  ;;  %v9407_v37 = vcombine.low %v2361_v23, %v2365_v24  ;;  %v2376_v14 = vld [vmem:[%s14628_s3 + $0x90] sm:$0xff] }
 0x105   : > { %2227 = vmatpush1.bf16.msra.mxu0 %v9340_v31  ;;  %2313 = vmatpush1.bf16.msra.mxu1 %v9342_v32  ;;  %v9401_v31 = vcombine.low %v2358_v21, %v2362_v22  ;;  %v2369_v32 = vld [vmem:[%s14628_s3 + $0x58] sm:$0xff]  ;;  %v2388_v21 = vld [vmem:[%s14628_s3 + $0xf0] sm:$0xff] }
 0x106   : > { %2228 = vmatprep.subr.bf16.mxu0 %v9349_v33  ;;  %2314 = vmatprep.subr.bf16.mxu1 %v9351_v34  ;;  %v2373_v33 = vld [vmem:[%s14628_s3 + $0x78] sm:$0xff]  ;;  %v9410_v34 = vcombine.high %v2366_v28, %v2370_v29 }
 0x107   : > { %v9416_v38 = vcombine.high %v2369_v32, %v2373_v33  ;;  %v9415_v56 = vcombine.low %v2369_v32, %v2373_v33 }
 0x109   : > { %2229 = vmatpush1.bf16.msra.mxu0 %v9348_v39  ;;  %2315 = vmatpush1.bf16.msra.mxu1 %v9350_v40  ;;  %v9409_v39 = vcombine.low %v2366_v28, %v2370_v29  ;;  %v2377_v40 = vld [vmem:[%s14628_s3 + $0x98] sm:$0xff] }
 0x10a   : > { %2230 = vmatprep.subr.bf16.mxu0 %v9357_v41  ;;  %2316 = vmatprep.subr.bf16.mxu1 %v9359_v42  ;;  %v2381_v41 = vld [vmem:[%s14628_s3 + $0xb8] sm:$0xff]  ;;  %v9418_v42 = vcombine.high %v2374_v35, %v2378_v36 }
 0x10b   : > { %v9424_v43 = vcombine.high %v2377_v40, %v2381_v41  ;;  %v9423_v49 = vcombine.low %v2377_v40, %v2381_v41 }
 0x10d   : > { %2231 = vmatpush1.bf16.msra.mxu0 %v9356_v45  ;;  %2317 = vmatpush1.bf16.msra.mxu1 %v9358_v46  ;;  %v2385_v45 = vld [vmem:[%s14628_s3 + $0xd8] sm:$0xff] }
 0x10e   : > { %2232 = vmatprep.subr.bf16.mxu0 %v9365_v47  ;;  %2318 = vmatprep.subr.bf16.mxu1 %v9367_v48  ;;  %v2389_v46 = vld [vmem:[%s14628_s3 + $0xf8] sm:$0xff]  ;;  %v2359_v48 = vld [vmem:[%s14628_s3 + $0x8] sm:$0xff] }
 0x10f   : > { %v9432_v50 = vcombine.high %v2385_v45, %v2389_v46  ;;  %v9403_v59 = vcombine.low %v2359_v48, %v2363_v19 }
 0x111   : > { %2233 = vmatpush1.bf16.msra.mxu0 %v9364_v52  ;;  %2319 = vmatpush1.bf16.msra.mxu1 %v9366_v53  ;;  %v9404_v52 = vcombine.high %v2359_v48, %v2363_v19  ;;  %v2367_v53 = vld [vmem:[%s14628_s3 + $0x48] sm:$0xff] }
 0x112   : > { %2234 = vmatprep.subr.bf16.mxu0 %v9373_v54  ;;  %2320 = vmatprep.subr.bf16.mxu1 %v9375_v57  ;;  %v2371_v54 = vld [vmem:[%s14628_s3 + $0x68] sm:$0xff]  ;;  %v9431_v57 = vcombine.low %v2385_v45, %v2389_v46 }
 0x113   : > { %v9412_v60 = vcombine.high %v2367_v53, %v2371_v54 }
 0x115   : > { %2235 = vmatpush1.bf16.msra.mxu0 %v9372_v62  ;;  %2321 = vmatpush1.bf16.msra.mxu1 %v9374_v63  ;;  %v2379_v62 = vld [vmem:[%s14628_s3 + $0xa8] sm:$0xff]  ;;  %v9411_v63 = vcombine.low %v2367_v53, %v2371_v54 }
 0x116   : > { %2236 = vmatprep.subr.bf16.mxu0 %v9381_v0  ;;  %2322 = vmatprep.subr.bf16.mxu1 %v9383_v1  ;;  %v9420_v0 = vcombine.high %v2375_v61, %v2379_v62  ;;  %v2383_v1 = vld [vmem:[%s14628_s3 + $0xc8] sm:$0xff]  ;;  %v9419_v3 = vcombine.low %v2375_v61, %v2379_v62 }
 0x117   : > { %v9428_v4 = vcombine.high %v2383_v1, %v2387_v2 }
 0x119   : > { %2237 = vmatpush1.bf16.msra.mxu0 %v9380_v6  ;;  %2323 = vmatpush1.bf16.msra.mxu1 %v9382_v7  ;;  %v2364_v6 = vld [vmem:[%s14628_s3 + $0x30] sm:$0xff]  ;;  %v9427_v7 = vcombine.low %v2383_v1, %v2387_v2 }
 0x11a   : > { %2238 = vmatprep.subr.bf16.mxu0 %v9389_v8  ;;  %2324 = vmatprep.subr.bf16.mxu1 %v9391_v9  ;;  %v9406_v8 = vcombine.high %v2360_v5, %v2364_v6  ;;  %v2368_v9 = vld [vmem:[%s14628_s3 + $0x50] sm:$0xff]  ;;  %v9405_v12 = vcombine.low %v2360_v5, %v2364_v6 }
 0x11b   : > { %v9414_v13 = vcombine.high %v2368_v9, %v2372_v11 }
 0x11d   : > { %2239 = vmatpush1.bf16.msra.mxu0 %v9388_v15  ;;  %2325 = vmatpush1.bf16.msra.mxu1 %v9390_v16  ;;  %v2380_v15 = vld [vmem:[%s14628_s3 + $0xb0] sm:$0xff]  ;;  %v9413_v16 = vcombine.low %v2368_v9, %v2372_v11 }
 0x11e   : > { %2240 = vmatprep.subr.bf16.mxu0 %v9397_v18  ;;  %2326 = vmatprep.subr.bf16.mxu1 %v9399_v20  ;;  %v9422_v18 = vcombine.high %v2376_v14, %v2380_v15  ;;  %v2384_v20 = vld [vmem:[%s14628_s3 + $0xd0] sm:$0xff]  ;;  %v9421_v22 = vcombine.low %v2376_v14, %v2380_v15 }
 0x11f   : > { %v9430_v23 = vcombine.high %v2384_v20, %v2388_v21  ;;  %v9429_v24 = vcombine.low %v2384_v20, %v2388_v21 }
 0x121   : > { %2241 = vmatpush1.bf16.msra.mxu0 %v9396_v25  ;;  %2327 = vmatpush1.bf16.msra.mxu1 %v9398_v26 }
 0x122   : > { %2559 = vmatprep.subr.bf16.mxu0 %v9402_v27  ;;  %2688 = vmatprep.subr.bf16.mxu1 %v9408_v30 }
 0x124   : > { %2243 = vmatmul.mubr.bf16.vlgmr.msra.gmra.mrb[4].mxu0 %v10335_v17  ;;  %2329 = vmatmul.mubr.bf16.vlgmr.msra.gmra.mrb[4].mxu1 %v10335_v17  ;;  %v2386_v17 = vld [vmem:[%s14628_s3 + $0xe0] sm:$0xff]  ;;  %s14652_s3 = smov 27  }
 0x125   : > { %2560 = vmatpush1.bf16.msra.mxu0 %v9401_v31  ;;  %2591 = vmatprep.mubr.bf16.mxu0 %v9802_v55  ;;  %v9426_v47 = vcombine.high %v2382_v10, %v2386_v17  ;;  %v9425_v51 = vcombine.low %v2382_v10, %v2386_v17 }
 0x126   : > { %2561 = vmatprep.subr.bf16.mxu0 %v9410_v34  ;;  %2689 = vmatpush1.bf16.msra.mxu1 %v9407_v37 }
 0x127   : > { %2720 = vmatprep.mubr.bf16.mxu1 %v9802_v55  ;;  %2690 = vmatprep.subr.bf16.mxu1 %v9416_v38 }
 0x129   : > { %2562 = vmatpush1.bf16.msra.mxu0 %v9409_v39 }
 0x12a   : > { %2563 = vmatprep.subr.bf16.mxu0 %v9418_v42  ;;  %2691 = vmatpush1.bf16.msra.mxu1 %v9415_v56 }
 0x12b   : > { %2692 = vmatprep.subr.bf16.mxu1 %v9424_v43 }
 0x12d   : > { %2564 = vmatpush1.bf16.msra.mxu0 %v9417_v44 }
 0x12e   : > { %2565 = vmatprep.subr.bf16.mxu0 %v9426_v47  ;;  %2693 = vmatpush1.bf16.msra.mxu1 %v9423_v49 }
 0x12f   : > { %2694 = vmatprep.subr.bf16.mxu1 %v9432_v50 }
 0x131   : > { %2566 = vmatpush1.bf16.msra.mxu0 %v9425_v51 }
 0x132   : > { %2602 = vmatprep.subr.bf16.mxu0 %v9404_v52  ;;  %2695 = vmatpush1.bf16.msra.mxu1 %v9431_v57 }
 0x134   : > { %9433 = vmatmul.mubr.msk.bf16.vlgmr.msra.gmra.mrb[8].mxu0 %vm2555_vm0, %v9750_v58 }
 0x135   : > { %2603 = vmatpush1.bf16.msra.mxu0 %v9403_v59  ;;  %2634 = vmatprep.mubr.bf16.mxu0 %v9802_v55 }
 0x136   : > { %2604 = vmatprep.subr.bf16.mxu0 %v9412_v60  ;;  %9436 = vmatmul.mubr.msk.bf16.vlgmr.msra.gmra.mrb[8].mxu1 %vm2555_vm0, %v9750_v58 }
 0x139   : > { %2605 = vmatpush1.bf16.msra.mxu0 %v9411_v63 }
 0x13a   : > { %2606 = vmatprep.subr.bf16.mxu0 %v9420_v0 }
 0x13d   : > { %2607 = vmatpush1.bf16.msra.mxu0 %v9419_v3 }
 0x13e   : > { %2608 = vmatprep.subr.bf16.mxu0 %v9428_v4 }
 0x141   : > { %2609 = vmatpush1.bf16.msra.mxu0 %v9427_v7 }
 0x142   : > { %2645 = vmatprep.subr.bf16.mxu0 %v9406_v8 }
 0x144   : > { %9434 = vmatmul.mubr.msk.bf16.vlgmr.msra.gmra.mrb[12].mxu0 %vm2555_vm0, %v9750_v58 }
 0x145   : > { %2646 = vmatpush1.bf16.msra.mxu0 %v9405_v12  ;;  %2677 = vmatprep.mubr.bf16.mxu0 %v9802_v55 }
 0x146   : > { %2647 = vmatprep.subr.bf16.mxu0 %v9414_v13 }
 0x149   : > { %2648 = vmatpush1.bf16.msra.mxu0 %v9413_v16 }
 0x14a   : > { %2649 = vmatprep.subr.bf16.mxu0 %v9422_v18 }
 0x14d   : > { %2650 = vmatpush1.bf16.msra.mxu0 %v9421_v22 }
 0x14e   : > { %2651 = vmatprep.subr.bf16.mxu0 %v9430_v23 }
 0x151   : > { %2652 = vmatpush1.bf16.msra.mxu0 %v9429_v24 }
 0x154   : > { %9435 = vmatmul.mubr.msk.bf16.vlgmr.msra.gmra.mrb[16].mxu0 %vm2555_vm0, %v9750_v58  ;;  %vm3221_vm0 = vcmask 949248  }
 0x177   : > { %v2072_v25 = vpop.f32.mrb[0].mxu0  ;;  %v2158_v26 = vpop.f32.mrb[0].mxu1 }
 0x178   : > { %v2074_v27 = vpop.f32.mrb[1].mxu0  ;;  %v2160_v28 = vpop.f32.mrb[1].mxu1 }
 0x179   : > { %v2076_v29 = vpop.f32.mrb[2].mxu0  ;;  %v2162_v31 = vpop.f32.mrb[2].mxu1 }
 0x17a   : > { %v10828_v30 = vpack.c.bf16 %v2076_v29, %v2072_v25  ;;  %v2078_v32 = vpop.f32.mrb[3].mxu0  ;;  %v10830_v33 = vpack.c.bf16 %v2162_v31, %v2158_v26  ;;  %v2164_v35 = vpop.f32.mrb[3].mxu1 }
 0x17b   : > { %v10832_v34 = vpack.c.bf16 %v2078_v32, %v2074_v27  ;;  %v10834_v36 = vpack.c.bf16 %v2164_v35, %v2160_v28 }
 0x17c   : > { %2805 = vrot.lane.b32.xlu1 %v10828_v30, %s14549_s27  ;;  %2809 = vrot.lane.b32.xlu0 %v10830_v33, %s14549_s27 }
 0x17d   : > { %2348 = vst [vmem:[#allocation2 + $0x8] sm:$0xff] %v10832_v34  ;;  %5754 = vmatprep.subr.bf16.mxu0 %v10832_v34  ;;  %2350 = vst [vmem:[#allocation2 + $0x18] sm:$0xff] %v10834_v36  ;;  %5926 = vmatprep.subr.bf16.mxu1 %v10834_v36 }
 0x17e   : > { %5755 = vmatpush1.bf16.msra.mxu0 %v10828_v30  ;;  %5927 = vmatpush1.bf16.msra.mxu1 %v10830_v33 }
 0x180   : > { %2906 = vrot.lane.b32.xlu1 %v10830_v33, %s14553_s28  ;;  %2902 = vrot.lane.b32.xlu0 %v10828_v30, %s14553_s28 }
 0x184   : > { %3003 = vrot.lane.b32.xlu1 %v10830_v33, %s14551_s29  ;;  %2999 = vrot.lane.b32.xlu0 %v10828_v30, %s14551_s29 }
 0x188   : > { %3100 = vrot.lane.b32.xlu1 %v10830_v33, %s14555_s30  ;;  %3096 = vrot.lane.b32.xlu0 %v10828_v30, %s14555_s30 }
 0x18c   : > { %3197 = vrot.lane.b32.xlu1 %v10830_v33, %s14538_s13  ;;  %3193 = vrot.lane.b32.xlu0 %v10828_v30, %s14538_s13 }
 0x190   : > { %3294 = vrot.lane.b32.xlu1 %v10830_v33, %s14540_s14  ;;  %3290 = vrot.lane.b32.xlu0 %v10828_v30, %s14540_s14 }
 0x194   : > { %3391 = vrot.lane.b32.xlu1 %v10830_v33, %s14542_s17  ;;  %3387 = vrot.lane.b32.xlu0 %v10828_v30, %s14542_s17 }
 0x198   : > { %3488 = vrot.lane.b32.xlu1 %v10830_v33, %s14545_s18  ;;  %3484 = vrot.lane.b32.xlu0 %v10828_v30, %s14545_s18 }
 0x19c   : > { %3585 = vrot.lane.b32.xlu1 %v10830_v33, %s14562_s19  ;;  %3581 = vrot.lane.b32.xlu0 %v10828_v30, %s14562_s19 }
 0x1a0   : > { %3682 = vrot.lane.b32.xlu1 %v10830_v33, %s14560_s20  ;;  %3678 = vrot.lane.b32.xlu0 %v10828_v30, %s14560_s20 }
 0x1a4   : > { %3779 = vrot.lane.b32.xlu1 %v10830_v33, %s14557_s23  ;;  %3775 = vrot.lane.b32.xlu0 %v10828_v30, %s14557_s23 }
 0x1a8   : > { %3876 = vrot.lane.b32.xlu1 %v10830_v33, %s14536_s24  ;;  %3872 = vrot.lane.b32.xlu0 %v10828_v30, %s14536_s24 }
 0x1ac   : > { %3973 = vrot.lane.b32.xlu1 %v10830_v33, %s14508_s15  ;;  %3969 = vrot.lane.b32.xlu0 %v10828_v30, %s14508_s15  ;;  %s14516_s15 = smov 6  }
 0x1b0   : > { %4070 = vrot.lane.b32.xlu1 %v10830_v33, %s14510_s25  ;;  %4066 = vrot.lane.b32.xlu0 %v10828_v30, %s14510_s25  ;;  %s14518_s25 = smov 56  }
 0x1b4   : > { %4171 = vrot.lane.b32.xlu1 %v10830_v33, %s14512_s26  ;;  %4167 = vrot.lane.b32.xlu0 %v10828_v30, %s14512_s26  ;;  %s14520_s26 = smov 55  }
 0x1b8   : > { %4278 = vrot.lane.b32.xlu1 %v10830_v33, %s14514_s16  ;;  %4274 = vrot.lane.b32.xlu0 %v10828_v30, %s14514_s16  ;;  %s14522_s16 = smov 54  }
 0x1bc   : > { %4385 = vrot.lane.b32.xlu1 %v10830_v33, %s14516_s15  ;;  %4381 = vrot.lane.b32.xlu0 %v10828_v30, %s14516_s15  ;;  %s14524_s15 = smov 46  }
 0x1c0   : > { %4488 = vrot.lane.b32.xlu1 %v10834_v36, %s14518_s25  ;;  %4486 = vrot.lane.b32.xlu0 %v10830_v33, %s14518_s25  ;;  %s14526_s25 = smov 45  }
 0x1c4   : > { %4585 = vrot.lane.b32.xlu1 %v10834_v36, %s14520_s26  ;;  %4583 = vrot.lane.b32.xlu0 %v10830_v33, %s14520_s26  ;;  %s14534_s26 = smov 44  }
 0x1c8   : > { %4682 = vrot.lane.b32.xlu1 %v10834_v36, %s14522_s16  ;;  %4680 = vrot.lane.b32.xlu0 %v10830_v33, %s14522_s16  ;;  %s14532_s16 = smov 36  }
 0x1cc   : > { %4779 = vrot.lane.b32.xlu1 %v10834_v36, %s14524_s15  ;;  %4777 = vrot.lane.b32.xlu0 %v10830_v33, %s14524_s15  ;;  %s14530_s15 = smov 35  }
 0x1d0   : > { %4876 = vrot.lane.b32.xlu1 %v10834_v36, %s14526_s25  ;;  %4874 = vrot.lane.b32.xlu0 %v10830_v33, %s14526_s25  ;;  %s14528_s25 = smov 34  }
 0x1d4   : > { %4973 = vrot.lane.b32.xlu1 %v10834_v36, %s14534_s26  ;;  %4971 = vrot.lane.b32.xlu0 %v10830_v33, %s14534_s26  ;;  %s14632_s26 = smov 7  }
 0x1d8   : > { %5070 = vrot.lane.b32.xlu1 %v10834_v36, %s14532_s16  ;;  %5068 = vrot.lane.b32.xlu0 %v10830_v33, %s14532_s16  ;;  %s14631_s16 = smov 8  }
 0x1dc   : > { %5167 = vrot.lane.b32.xlu1 %v10834_v36, %s14530_s15  ;;  %5165 = vrot.lane.b32.xlu0 %v10830_v33, %s14530_s15  ;;  %s14630_s15 = smov 16  }
 0x1e0   : > { %5264 = vrot.lane.b32.xlu1 %v10834_v36, %s14528_s25  ;;  %5262 = vrot.lane.b32.xlu0 %v10830_v33, %s14528_s25  ;;  %s14629_s25 = smov 17  }
 0x1e4   : > { %2807 = vrot.lane.b32.xlu0 %v10832_v34, %s14549_s27 }
 0x1e8   : > { %2904 = vrot.lane.b32.xlu0 %v10832_v34, %s14553_s28 }
 0x1ec   : > { %3001 = vrot.lane.b32.xlu0 %v10832_v34, %s14551_s29 }
 0x1ee   : > { %v10954_v55 = vpop.permute.xlu1 %2805  ;;  %v10956_v37 = vpop.permute.xlu0 %2809 }
 0x1f0   : > { %3098 = vrot.lane.b32.xlu0 %v10832_v34, %s14555_s30 }
 0x1f2   : > { %v10960_v38 = vpop.permute.xlu1 %2906  ;;  %v10962_v39 = vpop.permute.xlu0 %2902 }
 0x1f4   : > { %3195 = vrot.lane.b32.xlu0 %v10832_v34, %s14538_s13 }
 0x1f6   : > { %v10966_v40 = vpop.permute.xlu1 %3003  ;;  %v10968_v42 = vpop.permute.xlu0 %2999 }
 0x1f7   : > { %v2244_v41 = vpop.f32.mrb[4].mxu0  ;;  %v2330_v10 = vpop.f32.mrb[4].mxu1 }
 0x1f8   : > { %v2246_v17 = vpop.f32.mrb[5].mxu0  ;;  %v2332_v56 = vpop.f32.mrb[5].mxu1  ;;  %3292 = vrot.lane.b32.xlu0 %v10832_v34, %s14540_s14 }
 0x1f9   : > { %v2248_v43 = vpop.f32.mrb[6].mxu0  ;;  %v2334_v45 = vpop.f32.mrb[6].mxu1 }
 0x1fa   : > { %v10972_v44 = vpack.c.bf16 %v2248_v43, %v2244_v41  ;;  %v2250_v46 = vpop.f32.mrb[7].mxu0  ;;  %v10974_v47 = vpack.c.bf16 %v2334_v45, %v2330_v10  ;;  %v2336_v48 = vpop.f32.mrb[7].mxu1 }
 0x1fb   : > { %v10976_v19 = vpack.c.bf16 %v2250_v46, %v2246_v17  ;;  %v10978_v49 = vpop.permute.xlu0 %3096  ;;  %v2346_v50 = vpack.c.bf16 %v2336_v48, %v2332_v56  ;;  %v10982_v51 = vpop.permute.xlu1 %3100 }
 0x1fc   : > { %2351 = vst [vmem:[#allocation2 + $0x20] sm:$0xff] %v10972_v44  ;;  %2766 = vst [vmem:[#allocation3 + $0x20] sm:$0xff] %v10972_v44  ;;  %2813 = vrot.lane.b32.xlu1 %v10972_v44, %s14549_s27  ;;  %3389 = vrot.lane.b32.xlu0 %v10832_v34, %s14542_s17 }
 0x1fd   : > { %2353 = vst [vmem:[#allocation2 + $0x30] sm:$0xff] %v10974_v47  ;;  %2769 = vst.msk [vmem:[#allocation3 + $0x30] sm:$0xff] %vm14608_vm2, %v10974_v47 }
 0x1fe   : > { %2352 = vst [vmem:[#allocation2 + $0x28] sm:$0xff] %v10976_v19  ;;  %2767 = vst [vmem:[#allocation3 + $0x28] sm:$0xff] %v10976_v19 }
 0x1ff   : > { %2355 = vst.msk [vmem:[#allocation2 + $0x38] sm:$0xff] %vm2354_vm1, %v2346_v50  ;;  %v10994_v52 = vpop.permute.xlu0 %3193  ;;  %v10996_v53 = vpop.permute.xlu1 %3197 }
 0x200   : > { %2910 = vrot.lane.b32.xlu1 %v10972_v44, %s14553_s28  ;;  %3486 = vrot.lane.b32.xlu0 %v10832_v34, %s14545_s18 }
 0x203   : > { %v11002_v54 = vpop.permute.xlu0 %3290  ;;  %v11004_v57 = vpop.permute.xlu1 %3294 }
 0x204   : > { %3007 = vrot.lane.b32.xlu1 %v10972_v44, %s14551_s29  ;;  %3583 = vrot.lane.b32.xlu0 %v10832_v34, %s14562_s19 }
 0x207   : > { %v11010_v58 = vpop.permute.xlu0 %3387  ;;  %v2593_v59 = vpop.f32.mrb[8].mxu0 }
 0x208   : > { %v11012_v60 = vpop.permute.xlu1 %3391  ;;  %3104 = vrot.lane.b32.xlu1 %v10972_v44, %s14555_s30  ;;  %v2595_v61 = vpop.f32.mrb[9].mxu0  ;;  %3680 = vrot.lane.b32.xlu0 %v10832_v34, %s14560_s20 }
 0x209   : > { %v2597_v62 = vpop.f32.mrb[10].mxu0  ;;  %v2722_v4 = vpop.f32.mrb[8].mxu1 }
 0x20a   : > { %v11018_v63 = vpack.c.bf16 %v2597_v62, %v2593_v59  ;;  %v2599_v0 = vpop.f32.mrb[11].mxu0  ;;  %v2724_v5 = vpop.f32.mrb[9].mxu1 }
 0x20b   : > { %v11020_v1 = vpop.permute.xlu0 %3484  ;;  %v11022_v2 = vpack.c.bf16 %v2599_v0, %v2595_v61  ;;  %v2726_v7 = vpop.f32.mrb[10].mxu1 }
 0x20c   : > { %v11024_v3 = vpop.permute.xlu1 %3488  ;;  %3201 = vrot.lane.b32.xlu1 %v10972_v44, %s14538_s13  ;;  %3777 = vrot.lane.b32.xlu0 %v10832_v34, %s14557_s23  ;;  %v11039_v9 = vpack.c.bf16 %v2726_v7, %v2722_v4  ;;  %v2728_v11 = vpop.f32.mrb[11].mxu1 }
 0x20d   : > { %2740 = vst [vmem:[#allocation2 + $0x48] sm:$0xff] %v11022_v2  ;;  %5756 = vmatprep.subr.bf16.mxu0 %v11022_v2  ;;  %v2738_v12 = vpack.c.bf16 %v2728_v11, %v2724_v5 }
 0x20e   : > { %5757 = vmatpush1.bf16.msra.mxu0 %v11018_v63  ;;  %2745 = vst [vmem:[#allocation2 + $0x70] sm:$0xff] %v11039_v9  ;;  %2776 = vst.msk [vmem:[#allocation3 + $0x68] sm:$0xff] %vm14608_vm2, %v11039_v9 }
 0x20f   : > { %v11033_v6 = vpop.permute.xlu0 %3581  ;;  %2746 = vst.msk [vmem:[#allocation2 + $0x78] sm:$0xff] %vm2354_vm1, %v2738_v12  ;;  %vm3318_vm1 = vcmask 883712  }
 0x210   : > { %v11035_v8 = vpop.permute.xlu1 %3585  ;;  %3298 = vrot.lane.b32.xlu1 %v10972_v44, %s14540_s14  ;;  %3874 = vrot.lane.b32.xlu0 %v10832_v34, %s14536_s24 }
 0x213   : > { %v11046_v13 = vpop.permute.xlu0 %3678 }
 0x214   : > { %v11048_v14 = vpop.permute.xlu1 %3682  ;;  %3395 = vrot.lane.b32.xlu1 %v10972_v44, %s14542_s17  ;;  %3971 = vrot.lane.b32.xlu0 %v10832_v34, %s14629_s25 }
 0x217   : > { %v11055_v15 = vpop.permute.xlu0 %3775  ;;  %v2636_v16 = vpop.f32.mrb[12].mxu0 }
 0x218   : > { %v11057_v18 = vpop.permute.xlu1 %3779  ;;  %3492 = vrot.lane.b32.xlu1 %v10972_v44, %s14545_s18  ;;  %v2638_v20 = vpop.f32.mrb[13].mxu0  ;;  %2811 = vrot.lane.b32.xlu0 %v10834_v36, %s14549_s27 }
 0x219   : > { %v2640_v21 = vpop.f32.mrb[14].mxu0 }
 0x21a   : > { %v11063_v22 = vpack.c.bf16 %v2640_v21, %v2636_v16  ;;  %v2642_v23 = vpop.f32.mrb[15].mxu0 }
 0x21b   : > { %v11065_v24 = vpop.permute.xlu0 %3872  ;;  %v11067_v25 = vpack.c.bf16 %v2642_v23, %v2638_v20 }
 0x21c   : > { %v11069_v26 = vpop.permute.xlu1 %3876  ;;  %3589 = vrot.lane.b32.xlu1 %v10972_v44, %s14562_s19  ;;  %2741 = vst [vmem:[#allocation2 + $0x50] sm:$0xff] %v11063_v22  ;;  %4068 = vrot.lane.b32.xlu0 %v10832_v34, %s14630_s15 }
 0x21d   : > { %2742 = vst [vmem:[#allocation2 + $0x58] sm:$0xff] %v11067_v25  ;;  %5928 = vmatprep.subr.bf16.mxu1 %v11067_v25 }
 0x21e   : > { %5929 = vmatpush1.bf16.msra.mxu1 %v11063_v22 }
 0x21f   : > { %v11079_v27 = vpop.permute.xlu0 %3969 }
 0x220   : > { %v11081_v28 = vpop.permute.xlu1 %3973  ;;  %3686 = vrot.lane.b32.xlu1 %v10972_v44, %s14560_s20  ;;  %2908 = vrot.lane.b32.xlu0 %v10834_v36, %s14553_s28 }
 0x223   : > { %v11087_v29 = vpop.permute.xlu0 %4066 }
 0x224   : > { %v11089_v30 = vpop.permute.xlu1 %4070  ;;  %3783 = vrot.lane.b32.xlu1 %v10972_v44, %s14557_s23  ;;  %4169 = vrot.lane.b32.xlu0 %v10832_v34, %s14631_s16 }
 0x227   : > { %v11095_v31 = vpop.permute.xlu0 %4167 }
 0x228   : > { %v11097_v32 = vpop.permute.xlu1 %4171  ;;  %3880 = vrot.lane.b32.xlu1 %v10972_v44, %s14536_s24  ;;  %3005 = vrot.lane.b32.xlu0 %v10834_v36, %s14551_s29  ;;  %s14633_s24 = smov 6  }
 0x22b   : > { %v11103_v33 = vpop.permute.xlu0 %4274 }
 0x22c   : > { %v11105_v35 = vpop.permute.xlu1 %4278  ;;  %3977 = vrot.lane.b32.xlu1 %v10972_v44, %s14629_s25  ;;  %4276 = vrot.lane.b32.xlu0 %v10832_v34, %s14632_s26 }
 0x22f   : > { %v11111_v41 = vpop.permute.xlu0 %4381 }
 0x230   : > { %v11113_v10 = vpop.permute.xlu1 %4385  ;;  %4074 = vrot.lane.b32.xlu1 %v10972_v44, %s14630_s15  ;;  %3102 = vrot.lane.b32.xlu0 %v10834_v36, %s14555_s30 }
 0x233   : > { %v11119_v17 = vpop.permute.xlu0 %4486 }
 0x234   : > { %v11121_v56 = vpop.permute.xlu1 %4488  ;;  %4175 = vrot.lane.b32.xlu1 %v10972_v44, %s14631_s16  ;;  %4383 = vrot.lane.b32.xlu0 %v10832_v34, %s14633_s24 }
 0x235   : > { %v4514_v43 = vsel %vm14609_vm3, %v11119_v17, %v11121_v56 }
 0x236   : > { %4540 = vst [vmem:[#allocation3 + $0x7e8] sm:$0xff] %v4514_v43 }
 0x237   : > { %v11130_v45 = vpop.permute.xlu0 %4583 }
 0x238   : > { %v11132_v46 = vpop.permute.xlu1 %4585  ;;  %2817 = vrot.lane.b32.xlu1 %v10974_v47, %s14549_s27  ;;  %3199 = vrot.lane.b32.xlu0 %v10834_v36, %s14538_s13  ;;  %s14634_s13 = smov 56  }
 0x239   : > { %v4611_v48 = vsel %vm14605_vm4, %v11130_v45, %v11132_v46 }
 0x23a   : > { %4637 = vst [vmem:[#allocation3 + $0x858] sm:$0xff] %v4611_v48 }
 0x23b   : > { %v11141_v50 = vpop.permute.xlu0 %4680 }
 0x23c   : > { %v11143_v59 = vpop.permute.xlu1 %4682  ;;  %4282 = vrot.lane.b32.xlu1 %v10972_v44, %s14632_s26  ;;  %3296 = vrot.lane.b32.xlu0 %v10834_v36, %s14540_s14  ;;  %s14636_s14 = smov 55  }
 0x23d   : > { %v4708_v61 = vsel %vm14579_vm5, %v11141_v50, %v11143_v59 }
 0x23e   : > { %4734 = vst [vmem:[#allocation3 + $0x8c8] sm:$0xff] %v4708_v61 }
 0x23f   : > { %v11152_v62 = vpop.permute.xlu0 %4777 }
 0x240   : > { %v11154_v0 = vpop.permute.xlu1 %4779  ;;  %2914 = vrot.lane.b32.xlu1 %v10974_v47, %s14553_s28  ;;  %4484 = vrot.lane.b32.xlu0 %v10832_v34, %s14634_s13 }
 0x241   : > { %v4805_v4 = vsel %vm14583_vm6, %v11152_v62, %v11154_v0 }
 0x242   : > { %4831 = vst [vmem:[#allocation3 + $0x938] sm:$0xff] %v4805_v4 }
 0x243   : > { %v11163_v5 = vpop.permute.xlu0 %4874 }
 0x244   : > { %v11165_v7 = vpop.permute.xlu1 %4876  ;;  %4389 = vrot.lane.b32.xlu1 %v10972_v44, %s14633_s24  ;;  %3393 = vrot.lane.b32.xlu0 %v10834_v36, %s14542_s17  ;;  %s14639_s17 = smov 54  }
 0x245   : > { %v4902_v11 = vsel %vm14567_vm7, %v11163_v5, %v11165_v7  ;;  %vm14570_vm7 = vcmask 211968  }
 0x246   : > { %4928 = vst [vmem:[#allocation3 + $0x9a8] sm:$0xff] %v4902_v11 }
 0x247   : > { %v11174_v12 = vpop.permute.xlu0 %4971 }
 0x248   : > { %v11176_v16 = vpop.permute.xlu1 %4973  ;;  %3011 = vrot.lane.b32.xlu1 %v10974_v47, %s14551_s29  ;;  %4581 = vrot.lane.b32.xlu0 %v10832_v34, %s14636_s14 }
 0x249   : > { %14635 = vst [vmem:[#allocation8_spill] sm:$0xff] %v11176_v16  ;;  %v4999_v20 = vsel %vm14566_vm8, %v11174_v12, %v11176_v16  ;;  %vm14569_vm8 = vcmask 220160  }
 0x24a   : > { %5025 = vst [vmem:[#allocation3 + $0xa18] sm:$0xff] %v4999_v20 }
 0x24b   : > { %v11185_v21 = vpop.permute.xlu0 %5068 }
 0x24c   : > { %v11187_v23 = vpop.permute.xlu1 %5070  ;;  %3108 = vrot.lane.b32.xlu1 %v10974_v47, %s14555_s30  ;;  %3490 = vrot.lane.b32.xlu0 %v10834_v36, %s14545_s18  ;;  %s14641_s18 = smov 46  }
 0x24d   : > { %14637 = vst [vmem:[#allocation9_spill] sm:$0xff] %v11187_v23  ;;  %v5096_v43 = vsel %vm14565_vm9, %v11185_v21, %v11187_v23  ;;  %vm14580_vm9 = vcmask 228352  }
 0x24e   : > { %5122 = vst [vmem:[#allocation3 + $0xa88] sm:$0xff] %v5096_v43 }
 0x24f   : > { %v11196_v48 = vpop.permute.xlu0 %5165 }
 0x250   : > { %v11198_v61 = vpop.permute.xlu1 %5167  ;;  %4492 = vrot.lane.b32.xlu1 %v10976_v19, %s14634_s13  ;;  %4678 = vrot.lane.b32.xlu0 %v10832_v34, %s14639_s17 }
 0x251   : > { %14638 = vst [vmem:[#allocation10_spill] sm:$0xff] %v11198_v61  ;;  %v5193_v47 = vsel %vm14564_vm10, %v11196_v48, %v11198_v61  ;;  %vm3512_vm10 = vcmask 867328  }
 0x252   : > { %5219 = vst [vmem:[#allocation3 + $0xaf8] sm:$0xff] %v5193_v47 }
 0x253   : > { %v11207_v4 = vpop.permute.xlu0 %5262 }
 0x254   : > { %v11209_v11 = vpop.permute.xlu1 %5264  ;;  %4589 = vrot.lane.b32.xlu1 %v10976_v19, %s14636_s14  ;;  %3587 = vrot.lane.b32.xlu0 %v10834_v36, %s14562_s19  ;;  %s14648_s19 = smov 36  }
 0x255   : > { %14640 = vst [vmem:[#allocation11_spill] sm:$0xff] %v11209_v11  ;;  %v5290_v20 = vsel %vm14559_vm11, %v11207_v4, %v11209_v11  ;;  %vm3415_vm11 = vcmask 875520  }
 0x256   : > { %5316 = vst [vmem:[#allocation3 + $0xb68] sm:$0xff] %v5290_v20 }
 0x257   : > { %v2808_v43 = vpop.permute.xlu0 %2807 }
 0x258   : > { %v2834_v47 = vsel %vm14572_vm12, %v10954_v55, %v2808_v43  ;;  %v2835_v61 = vsel %vm14572_vm12, %v2808_v43, %v10956_v37  ;;  %2819 = vrot.lane.b32.xlu1 %v11018_v63, %s14549_s27  ;;  %4775 = vrot.lane.b32.xlu0 %v10832_v34, %s14641_s18  ;;  %s14642_s27 = smov 45  }
 0x259   : > { %5758 = vmatprep.subr.bf16.mxu0 %v2835_v61 }
 0x25a   : > { %5759 = vmatpush1.bf16.msra.mxu0 %v2834_v47 }
 0x25b   : > { %v2905_v11 = vpop.permute.xlu0 %2904 }
 0x25c   : > { %v2931_v20 = vsel %vm14575_vm13, %v10962_v39, %v2905_v11  ;;  %v2932_v23 = vsel %vm14575_vm13, %v2905_v11, %v10960_v38  ;;  %2916 = vrot.lane.b32.xlu1 %v11018_v63, %s14553_s28  ;;  %3684 = vrot.lane.b32.xlu0 %v10834_v36, %s14560_s20  ;;  %s14644_s28 = smov 44   ;;  %s14647_s20 = smov 107  }
 0x25d   : > { %2957 = vst [vmem:[#allocation3 + $0xe0] sm:$0xff] %v2931_v20  ;;  %2958 = vst [vmem:[#allocation3 + $0xe8] sm:$0xff] %v2932_v23 }
 0x25f   : > { %v3002_v55 = vpop.permute.xlu0 %3001 }
 0x260   : > { %v3028_v61 = vsel %vm14578_vm14, %v10968_v42, %v3002_v55  ;;  %v3029_v43 = vsel %vm14578_vm14, %v3002_v55, %v10966_v40  ;;  %3013 = vrot.lane.b32.xlu1 %v11018_v63, %s14551_s29  ;;  %4872 = vrot.lane.b32.xlu0 %v10832_v34, %s14642_s27  ;;  %s14643_s29 = smov 116  }
 0x261   : > { %3054 = vst [vmem:[#allocation3 + $0x150] sm:$0xff] %v3028_v61  ;;  %3055 = vst [vmem:[#allocation3 + $0x158] sm:$0xff] %v3029_v43 }
 0x263   : > { %v3099_v39 = vpop.permute.xlu0 %3098 }
 0x264   : > { %v3125_v23 = vsel %vm3124_vm15, %v10978_v49, %v3099_v39  ;;  %v3126_v11 = vsel %vm3124_vm15, %v3099_v39, %v10982_v51  ;;  %3110 = vrot.lane.b32.xlu1 %v11018_v63, %s14555_s30  ;;  %3781 = vrot.lane.b32.xlu0 %v10834_v36, %s14557_s23  ;;  %s14645_s30 = smov 108   ;;  %s14646_s23 = smov 18  }
 0x265   : > { %3151 = vst [vmem:[#allocation3 + $0x1c0] sm:$0xff] %v3125_v23  ;;  %3152 = vst [vmem:[#allocation3 + $0x1c8] sm:$0xff] %v3126_v11 }
 0x267   : > { %v3196_v42 = vpop.permute.xlu0 %3195 }
 0x268   : > { %v3222_v47 = vsel %vm3221_vm0, %v10994_v52, %v3196_v42  ;;  %v3223_v20 = vsel %vm3221_vm0, %v3196_v42, %v10996_v53  ;;  %3207 = vrot.lane.b32.xlu1 %v11018_v63, %s14643_s29  ;;  %4969 = vrot.lane.b32.xlu0 %v10832_v34, %s14644_s28 }
 0x269   : > { %3248 = vst [vmem:[#allocation3 + $0x230] sm:$0xff] %v3222_v47  ;;  %3249 = vst [vmem:[#allocation3 + $0x238] sm:$0xff] %v3223_v20 }
 0x26b   : > { %v3293_v49 = vpop.permute.xlu0 %3292 }
 0x26c   : > { %v3319_v55 = vsel %vm3318_vm1, %v11002_v54, %v3293_v49  ;;  %v3320_v61 = vsel %vm3318_vm1, %v3293_v49, %v11004_v57  ;;  %3304 = vrot.lane.b32.xlu1 %v11018_v63, %s14645_s30  ;;  %3878 = vrot.lane.b32.xlu0 %v10834_v36, %s14646_s23  ;;  %v5135_v49 = vld [vmem:[#allocation2 + $0x8] sm:$0xff] }
 0x26d   : > { %3345 = vst [vmem:[#allocation3 + $0x2a0] sm:$0xff] %v3319_v55  ;;  %3346 = vst [vmem:[#allocation3 + $0x2a8] sm:$0xff] %v3320_v61 }
 0x26e   : > { %v11266_v52 = vpop.permute.xlu1 %2813 }
 0x26f   : > { %v3390_v43 = vpop.permute.xlu0 %3389 }
 0x270   : > { %v3416_v39 = vsel %vm3415_vm11, %v11010_v58, %v3390_v43  ;;  %v3417_v54 = vsel %vm3415_vm11, %v3390_v43, %v11012_v60  ;;  %3401 = vrot.lane.b32.xlu1 %v11018_v63, %s14647_s20  ;;  %5066 = vrot.lane.b32.xlu0 %v10832_v34, %s14648_s19  ;;  %v4041_v43 = vld [vmem:[#allocation2 + $0x18] sm:$0xff] }
 0x271   : > { %3442 = vst [vmem:[#allocation3 + $0x310] sm:$0xff] %v3416_v39  ;;  %3443 = vst [vmem:[#allocation3 + $0x318] sm:$0xff] %v3417_v54 }
 0x272   : > { %v11276_v23 = vpop.permute.xlu1 %2910 }
 0x273   : > { %v3487_v11 = vpop.permute.xlu0 %3486 }
 0x274   : > { %v3513_v42 = vsel %vm3512_vm10, %v11020_v1, %v3487_v11  ;;  %v3514_v58 = vsel %vm3512_vm10, %v3487_v11, %v11024_v3  ;;  %3498 = vrot.lane.b32.xlu1 %v11018_v63, %s14649_s0  ;;  %3975 = vrot.lane.b32.xlu0 %v10834_v36, %s14629_s25 }
 0x275   : > { %3539 = vst [vmem:[#allocation3 + $0x380] sm:$0xff] %v3513_v42  ;;  %3540 = vst [vmem:[#allocation3 + $0x388] sm:$0xff] %v3514_v58 }
 0x276   : > { %v11286_v34 = vpop.permute.xlu1 %3007 }
 0x277   : > { %v3584_v47 = vpop.permute.xlu0 %3583 }
 0x278   : > { %v3610_v20 = vsel %vm14580_vm9, %v11033_v6, %v3584_v47  ;;  %v3611_v1 = vsel %vm14580_vm9, %v3584_v47, %v11035_v8  ;;  %3595 = vrot.lane.b32.xlu1 %v11018_v63, %s14650_s1  ;;  %5163 = vrot.lane.b32.xlu0 %v5135_v49, %s14651_s2 }
 0x279   : > { %3636 = vst [vmem:[#allocation3 + $0x3f0] sm:$0xff] %v3610_v20  ;;  %3637 = vst [vmem:[#allocation3 + $0x3f8] sm:$0xff] %v3611_v1 }
 0x27a   : > { %v11295_v36 = vpop.permute.xlu1 %3104 }
 0x27b   : > { %v3681_v55 = vpop.permute.xlu0 %3680 }
 0x27c   : > { %v3707_v61 = vsel %vm14569_vm8, %v11046_v13, %v3681_v55  ;;  %v3708_v6 = vsel %vm14569_vm8, %v3681_v55, %v11048_v14  ;;  %3692 = vrot.lane.b32.xlu1 %v11018_v63, %s14652_s3  ;;  %4072 = vrot.lane.b32.xlu0 %v4041_v43, %s14630_s15  ;;  %vm3900_vm8 = vcmask 146432  }
 0x27d   : > { %3733 = vst [vmem:[#allocation3 + $0x460] sm:$0xff] %v3707_v61  ;;  %3734 = vst [vmem:[#allocation3 + $0x468] sm:$0xff] %v3708_v6 }
 0x27e   : > { %v11304_v39 = vpop.permute.xlu1 %3201 }
 0x27f   : > { %v3778_v54 = vpop.permute.xlu0 %3777 }
 0x280   : > { %v3804_v11 = vsel %vm14570_vm7, %v11055_v15, %v3778_v54  ;;  %v3805_v13 = vsel %vm14570_vm7, %v3778_v54, %v11057_v18  ;;  %3789 = vrot.lane.b32.xlu1 %v11018_v63, %s14653_s21  ;;  %5260 = vrot.lane.b32.xlu0 %v5135_v49, %s14654_s12  ;;  %vm14571_vm7 = vcmask 138240  }
 0x281   : > { %3830 = vst [vmem:[#allocation3 + $0x4d0] sm:$0xff] %v3804_v11  ;;  %3831 = vst [vmem:[#allocation3 + $0x4d8] sm:$0xff] %v3805_v13 }
 0x282   : > { %v11313_v42 = vpop.permute.xlu1 %3298 }
 0x283   : > { %v3875_v58 = vpop.permute.xlu0 %3874 }
 0x284   : > { %v3901_v47 = vsel %vm3900_vm8, %v11065_v24, %v3875_v58  ;;  %v3902_v15 = vsel %vm3900_vm8, %v3875_v58, %v11069_v26  ;;  %3886 = vrot.lane.b32.xlu1 %v11018_v63, %s14646_s23  ;;  %4173 = vrot.lane.b32.xlu0 %v4041_v43, %s14631_s16 }
 0x285   : > { %3927 = vst [vmem:[#allocation3 + $0x540] sm:$0xff] %v3901_v47  ;;  %3928 = vst [vmem:[#allocation3 + $0x548] sm:$0xff] %v3902_v15 }
 0x286   : > { %v11322_v20 = vpop.permute.xlu1 %3395 }
 0x287   : > { %v3972_v1 = vpop.permute.xlu0 %3971 }
 0x288   : > { %v3998_v49 = vsel %vm14571_vm7, %v11079_v27, %v3972_v1  ;;  %v3999_v24 = vsel %vm14571_vm7, %v3972_v1, %v11081_v28  ;;  %3983 = vrot.lane.b32.xlu1 %v11018_v63, %s14629_s25  ;;  %4280 = vrot.lane.b32.xlu0 %v4041_v43, %s14632_s26  ;;  %vm4094_vm7 = vcmask 130048  }
 0x289   : > { %4024 = vst [vmem:[#allocation3 + $0x5b0] sm:$0xff] %v3998_v49  ;;  %4025 = vst [vmem:[#allocation3 + $0x5b8] sm:$0xff] %v3999_v24 }
 0x28a   : > { %v11331_v55 = vpop.permute.xlu1 %3492 }
 0x28b   : > { %14655 = vst [vmem:[#allocation12_spill] sm:$0xff] %v11331_v55  ;;  %v2812_v61 = vpop.permute.xlu0 %2811 }
 0x28c   : > { %v2836_v6 = vsel %vm14572_vm12, %v10956_v37, %v2812_v61  ;;  %v2837_v54 = vsel %vm14572_vm12, %v2812_v61, %v11266_v52  ;;  %4080 = vrot.lane.b32.xlu1 %v11018_v63, %s14630_s15  ;;  %4387 = vrot.lane.b32.xlu0 %v4041_v43, %s14633_s24  ;;  %v2679_v43 = vpop.f32.mrb[16].mxu0  ;;  %vm4199_vm12 = vcmask 64512  }
 0x28d   : > { %5930 = vmatprep.subr.bf16.mxu1 %v2837_v54  ;;  %v2681_v47 = vpop.f32.mrb[17].mxu0 }
 0x28e   : > { %v11340_v27 = vpop.permute.xlu1 %3589  ;;  %5931 = vmatpush1.bf16.msra.mxu1 %v2836_v6  ;;  %v2683_v1 = vpop.f32.mrb[18].mxu0 }
 0x28f   : > { %14656 = vst [vmem:[#allocation13_spill] sm:$0xff] %v11340_v27  ;;  %v4069_v11 = vpop.permute.xlu0 %4068  ;;  %v11358_v24 = vpack.c.bf16 %v2683_v1, %v2679_v43 }
 0x290   : > { %v4095_v13 = vsel %vm4094_vm7, %v11087_v29, %v4069_v11  ;;  %v4096_v37 = vsel %vm4094_vm7, %v4069_v11, %v11089_v30  ;;  %4183 = vrot.lane.b32.xlu1 %v11018_v63, %s14631_s16  ;;  %4490 = vrot.lane.b32.xlu0 %v10972_v44, %s14634_s13 }
 0x291   : > { %4121 = vst [vmem:[#allocation3 + $0x620] sm:$0xff] %v4095_v13  ;;  %4122 = vst [vmem:[#allocation3 + $0x628] sm:$0xff] %v4096_v37 }
 0x292   : > { %v11350_v58 = vpop.permute.xlu1 %3686  ;;  %2743 = vst [vmem:[#allocation2 + $0x60] sm:$0xff] %v11358_v24  ;;  %2774 = vst [vmem:[#allocation3 + $0x58] sm:$0xff] %v11358_v24 }
 0x293   : > { %14657 = vst [vmem:[#allocation14_spill] sm:$0xff] %v11350_v58  ;;  %v2909_v15 = vpop.permute.xlu0 %2908 }
 0x294   : > { %v2933_v29 = vsel %vm14575_vm13, %v10960_v38, %v2909_v15  ;;  %v2934_v49 = vsel %vm14575_vm13, %v2909_v15, %v11276_v23  ;;  %4290 = vrot.lane.b32.xlu1 %v11018_v63, %s14632_s26  ;;  %4587 = vrot.lane.b32.xlu0 %v10972_v44, %s14636_s14  ;;  %vm4306_vm13 = vcmask 56320  }
 0x295   : > { %2959 = vst [vmem:[#allocation3 + $0xf0] sm:$0xff] %v2933_v29  ;;  %2960 = vst [vmem:[#allocation3 + $0xf8] sm:$0xff] %v2934_v49 }
 0x296   : > { %v11362_v61 = vpop.permute.xlu1 %3783 }
 0x297   : > { %14658 = vst [vmem:[#allocation15_spill] sm:$0xff] %v11362_v61  ;;  %v4170_v38 = vpop.permute.xlu0 %4169 }
 0x298   : > { %v4200_v6 = vsel %vm4199_vm12, %v11095_v31, %v4170_v38  ;;  %v4201_v54 = vsel %vm4199_vm12, %v4170_v38, %v11097_v32  ;;  %4397 = vrot.lane.b32.xlu1 %v11018_v63, %s14633_s24  ;;  %2815 = vrot.lane.b32.xlu0 %v10976_v19, %s14659_s10 }
 0x299   : > { %4228 = vst [vmem:[#allocation3 + $0x690] sm:$0xff] %v4200_v6  ;;  %4229 = vst [vmem:[#allocation3 + $0x698] sm:$0xff] %v4201_v54 }
 0x29a   : > { %v11374_v44 = vpop.permute.xlu1 %3880 }
 0x29b   : > { %14660 = vst [vmem:[#allocation16_spill] sm:$0xff] %v11374_v44  ;;  %v3006_v11 = vpop.permute.xlu0 %3005 }
 0x29c   : > { %v3030_v13 = vsel %vm14578_vm14, %v10966_v40, %v3006_v11  ;;  %v3031_v31 = vsel %vm14578_vm14, %v3006_v11, %v11286_v34  ;;  %2831 = vrot.lane.b32.xlu1 %v11039_v9, %s14659_s10  ;;  %2912 = vrot.lane.b32.xlu0 %v10976_v19, %s14661_s9  ;;  %vm4413_vm14 = vcmask 48128  }
 0x29d   : > { %3056 = vst [vmem:[#allocation3 + $0x160] sm:$0xff] %v3030_v13  ;;  %3057 = vst [vmem:[#allocation3 + $0x168] sm:$0xff] %v3031_v31 }
 0x29e   : > { %v11384_v63 = vpop.permute.xlu1 %3977 }
 0x29f   : > { %14662 = vst [vmem:[#allocation17_spill] sm:$0xff] %v11384_v63  ;;  %v4277_v37 = vpop.permute.xlu0 %4276 }
 0x2a0   : > { %v4307_v43 = vsel %vm4306_vm13, %v11103_v33, %v4277_v37  ;;  %v4308_v40 = vsel %vm4306_vm13, %v4277_v37, %v11105_v35  ;;  %2928 = vrot.lane.b32.xlu1 %v11039_v9, %s14661_s9  ;;  %3009 = vrot.lane.b32.xlu0 %v10976_v19, %s14663_s22 }
 0x2a1   : > { %4335 = vst [vmem:[#allocation3 + $0x700] sm:$0xff] %v4307_v43  ;;  %4336 = vst [vmem:[#allocation3 + $0x708] sm:$0xff] %v4308_v40 }
 0x2a2   : > { %v11394_v15 = vpop.permute.xlu1 %4074 }
 0x2a3   : > { %14664 = vst [vmem:[#allocation18_spill] sm:$0xff] %v11394_v15  ;;  %v3103_v1 = vpop.permute.xlu0 %3102 }
 0x2a4   : > { %v3127_v29 = vsel %vm3124_vm15, %v10982_v51, %v3103_v1  ;;  %v3128_v33 = vsel %vm3124_vm15, %v3103_v1, %v11295_v36  ;;  %3025 = vrot.lane.b32.xlu1 %v11039_v9, %s14663_s22  ;;  %3106 = vrot.lane.b32.xlu0 %v10976_v19, %s14665_s8  ;;  %v2685_v9 = vpop.f32.mrb[19].mxu0 }
 0x2a5   : > { %3153 = vst [vmem:[#allocation3 + $0x1d0] sm:$0xff] %v3127_v29  ;;  %3154 = vst [vmem:[#allocation3 + $0x1d8] sm:$0xff] %v3128_v33  ;;  %v11416_v54 = vpack.c.bf16 %v2685_v9, %v2681_v47 }
 0x2a6   : > { %v11404_v49 = vpop.permute.xlu1 %4175 }
 0x2a7   : > { %14666 = vst [vmem:[#allocation19_spill] sm:$0xff] %v11404_v49  ;;  %v4384_v38 = vpop.permute.xlu0 %4383  ;;  %2744 = vst [vmem:[#allocation2 + $0x68] sm:$0xff] %v11416_v54 }
 0x2a8   : > { %v4414_v6 = vsel %vm4413_vm14, %v11111_v41, %v4384_v38  ;;  %v4415_v51 = vsel %vm4413_vm14, %v4384_v38, %v11113_v10  ;;  %2821 = vrot.lane.b32.xlu1 %v11022_v2, %s14659_s10  ;;  %2823 = vrot.lane.b32.xlu0 %v11063_v22, %s14659_s10  ;;  %2775 = vst [vmem:[#allocation3 + $0x60] sm:$0xff] %v11416_v54 }
 0x2a9   : > { %4442 = vst [vmem:[#allocation3 + $0x770] sm:$0xff] %v4414_v6  ;;  %4443 = vst [vmem:[#allocation3 + $0x778] sm:$0xff] %v4415_v51 }
 0x2aa   : > { %v11414_v19 = vpop.permute.xlu1 %2817 }
 0x2ab   : > { %v3200_v11 = vpop.permute.xlu0 %3199  ;;  %2866 = vst.msk [vmem:[#allocation3 + $0xa0] sm:$0xff] %vm14608_vm2, %v11414_v19 }
 0x2ac   : > { %v3224_v41 = vsel %vm3221_vm0, %v10996_v53, %v3200_v11  ;;  %v3225_v13 = vsel %vm3221_vm0, %v3200_v11, %v11304_v39  ;;  %2918 = vrot.lane.b32.xlu1 %v11022_v2, %s14661_s9  ;;  %2920 = vrot.lane.b32.xlu0 %v11063_v22, %s14661_s9 }
 0x2ad   : > { %3250 = vst [vmem:[#allocation3 + $0x240] sm:$0xff] %v3224_v41  ;;  %3251 = vst [vmem:[#allocation3 + $0x248] sm:$0xff] %v3225_v13 }
 0x2ae   : > { %v11430_v47 = vpop.permute.xlu1 %4282 }
 0x2af   : > { %14667 = vst [vmem:[#allocation20_spill] sm:$0xff] %v11430_v47  ;;  %v3297_v31 = vpop.permute.xlu0 %3296 }
 0x2b0   : > { %v3321_v53 = vsel %vm3318_vm1, %v11004_v57, %v3297_v31  ;;  %v3322_v37 = vsel %vm3318_vm1, %v3297_v31, %v11313_v42  ;;  %3015 = vrot.lane.b32.xlu1 %v11022_v2, %s14663_s22  ;;  %3017 = vrot.lane.b32.xlu0 %v11063_v22, %s14663_s22 }
 0x2b1   : > { %3347 = vst [vmem:[#allocation3 + $0x2b0] sm:$0xff] %v3321_v53  ;;  %3348 = vst [vmem:[#allocation3 + $0x2b8] sm:$0xff] %v3322_v37 }
 0x2b2   : > { %v11440_v43 = vpop.permute.xlu1 %2914 }
 0x2b3   : > { %v4485_v40 = vpop.permute.xlu0 %4484  ;;  %2963 = vst.msk [vmem:[#allocation3 + $0x110] sm:$0xff] %vm14608_vm2, %v11440_v43 }
 0x2b4   : > { %v4513_v57 = vsel %vm14609_vm3, %v4485_v40, %v11119_v17  ;;  %3112 = vrot.lane.b32.xlu1 %v11022_v2, %s14665_s8  ;;  %3114 = vrot.lane.b32.xlu0 %v11063_v22, %s14665_s8 }
 0x2b5   : > { %4539 = vst [vmem:[#allocation3 + $0x7e0] sm:$0xff] %v4513_v57 }
 0x2b6   : > { %v11450_v1 = vpop.permute.xlu1 %4389 }
 0x2b7   : > { %14668 = vst [vmem:[#allocation21_spill] sm:$0xff] %v11450_v1  ;;  %v3394_v29 = vpop.permute.xlu0 %3393 }
 0x2b8   : > { %v3418_v33 = vsel %vm3415_vm11, %v11012_v60, %v3394_v29  ;;  %v3419_v38 = vsel %vm3415_vm11, %v3394_v29, %v11322_v20  ;;  %3209 = vrot.lane.b32.xlu1 %v11022_v2, %s14643_s29  ;;  %3211 = vrot.lane.b32.xlu0 %v11063_v22, %s14643_s29 }
 0x2b9   : > { %3444 = vst [vmem:[#allocation3 + $0x320] sm:$0xff] %v3418_v33  ;;  %3445 = vst [vmem:[#allocation3 + $0x328] sm:$0xff] %v3419_v38 }
 0x2ba   : > { %v11460_v17 = vpop.permute.xlu1 %3011 }
 0x2bb   : > { %v4582_v6 = vpop.permute.xlu0 %4581  ;;  %3060 = vst.msk [vmem:[#allocation3 + $0x180] sm:$0xff] %vm14608_vm2, %v11460_v17 }
 0x2bc   : > { %v4610_v60 = vsel %vm14605_vm4, %v4582_v6, %v11130_v45  ;;  %3306 = vrot.lane.b32.xlu1 %v11022_v2, %s14645_s30  ;;  %3308 = vrot.lane.b32.xlu0 %v11063_v22, %s14645_s30 }
 0x2bd   : > { %4636 = vst [vmem:[#allocation3 + $0x850] sm:$0xff] %v4610_v60 }
 0x2be   : > { %v11470_v51 = vpop.permute.xlu1 %3108 }
 0x2bf   : > { %v3491_v9 = vpop.permute.xlu0 %3490  ;;  %3157 = vst.msk [vmem:[#allocation3 + $0x1f0] sm:$0xff] %vm14608_vm2, %v11470_v51 }
 0x2c0   : > { %v3515_v11 = vsel %vm3512_vm10, %v11024_v3, %v3491_v9  ;;  %v3516_v41 = vsel %vm3512_vm10, %v3491_v9, %v11331_v55  ;;  %3403 = vrot.lane.b32.xlu1 %v11022_v2, %s14647_s20  ;;  %3405 = vrot.lane.b32.xlu0 %v11063_v22, %s14647_s20 }
 0x2c1   : > { %3541 = vst [vmem:[#allocation3 + $0x390] sm:$0xff] %v3515_v11  ;;  %3542 = vst [vmem:[#allocation3 + $0x398] sm:$0xff] %v3516_v41 }
 0x2c2   : > { %v11482_v45 = vpop.permute.xlu1 %4492 }
 0x2c3   : > { %14669 = vst [vmem:[#allocation22_spill] sm:$0xff] %v11482_v45  ;;  %v4679_v13 = vpop.permute.xlu0 %4678 }
 0x2c4   : > { %v4707_v31 = vsel %vm14579_vm5, %v4679_v13, %v11141_v50  ;;  %3500 = vrot.lane.b32.xlu1 %v11022_v2, %s14649_s0  ;;  %3502 = vrot.lane.b32.xlu0 %v11063_v22, %s14649_s0  ;;  %vm14671_vm5 = vcmask 220160  }
 0x2c5   : > { %4733 = vst [vmem:[#allocation3 + $0x8c0] sm:$0xff] %v4707_v31 }
 0x2c6   : > { %v11490_v3 = vpop.permute.xlu1 %4589 }
 0x2c7   : > { %14670 = vst [vmem:[#allocation23_spill] sm:$0xff] %v11490_v3  ;;  %v3588_v53 = vpop.permute.xlu0 %3587 }
 0x2c8   : > { %v3612_v37 = vsel %vm14580_vm9, %v11035_v8, %v3588_v53  ;;  %v3613_v40 = vsel %vm14580_vm9, %v3588_v53, %v11340_v27  ;;  %3597 = vrot.lane.b32.xlu1 %v11022_v2, %s14650_s1  ;;  %3599 = vrot.lane.b32.xlu0 %v11063_v22, %s14650_s1  ;;  %vm14672_vm9 = vmmov %vm14671_vm5  ;;  %v11984_v27 = vld [vmem:[#allocation2 + $0x70] sm:$0xff] }
 0x2c9   : > { %3638 = vst [vmem:[#allocation3 + $0x400] sm:$0xff] %v3612_v37  ;;  %3639 = vst [vmem:[#allocation3 + $0x408] sm:$0xff] %v3613_v40 }
 0x2ca   : > { %v11500_v50 = vpop.permute.xlu1 %2819 }
 0x2cb   : > { %v4776_v57 = vpop.permute.xlu0 %4775 }
 0x2cc   : > { %v4804_v29 = vsel %vm14583_vm6, %v4776_v57, %v11152_v62  ;;  %3694 = vrot.lane.b32.xlu1 %v11022_v2, %s14652_s3  ;;  %3696 = vrot.lane.b32.xlu0 %v11063_v22, %s14652_s3  ;;  %v9751_v62 = vld [vmem:[%s14673_s5 + $0x4] ss:$28 sps:$4 sm:$0xff]  }
 0x2cd   : > { %4830 = vst [vmem:[#allocation3 + $0x930] sm:$0xff] %v4804_v29  ;;  %5786 = vmatprep.mubr.bf16.mxu0 %v9751_v62  ;;  %5958 = vmatprep.mubr.bf16.mxu1 %v9751_v62 }
 0x2ce   : > { %v11508_v8 = vpop.permute.xlu1 %2916 }
 0x2cf   : > { %v3685_v33 = vpop.permute.xlu0 %3684 }
 0x2d0   : > { %v3709_v38 = vsel %vm14671_vm5, %v11048_v14, %v3685_v33  ;;  %v3710_v6 = vsel %vm14672_vm9, %v3685_v33, %v11350_v58  ;;  %3791 = vrot.lane.b32.xlu1 %v11022_v2, %s14653_s21  ;;  %3793 = vrot.lane.b32.xlu0 %v11063_v22, %s14653_s21  ;;  %vm14674_vm5 = vcmask 367616   ;;  %vm14675_vm9 = vcmask 211968  }
 0x2d1   : > { %3735 = vst [vmem:[#allocation3 + $0x470] sm:$0xff] %v3709_v38  ;;  %3736 = vst [vmem:[#allocation3 + $0x478] sm:$0xff] %v3710_v6 }
 0x2d2   : > { %v11521_v60 = vpop.permute.xlu1 %3013  ;;  %vm14676_vm6 = vmmov %vm14675_vm9 }
 0x2d3   : > { %v4873_v14 = vpop.permute.xlu0 %4872 }
 0x2d4   : > { %v4901_v9 = vsel %vm14674_vm5, %v4873_v14, %v11163_v5  ;;  %3888 = vrot.lane.b32.xlu1 %v11022_v2, %s14646_s23  ;;  %3890 = vrot.lane.b32.xlu0 %v11063_v22, %s14646_s23  ;;  %vm14677_vm5 = vcmask 359424  }
 0x2d5   : > { %4927 = vst [vmem:[#allocation3 + $0x9a0] sm:$0xff] %v4901_v9 }
 0x2d6   : > { %v11529_v11 = vpop.permute.xlu1 %3110 }
 0x2d7   : > { %v3782_v41 = vpop.permute.xlu0 %3781 }
 0x2d8   : > { %v3806_v13 = vsel %vm14675_vm9, %v11057_v18, %v3782_v41  ;;  %v3807_v31 = vsel %vm14676_vm6, %v3782_v41, %v11362_v61  ;;  %3985 = vrot.lane.b32.xlu1 %v11022_v2, %s14629_s25  ;;  %3987 = vrot.lane.b32.xlu0 %v11063_v22, %s14629_s25  ;;  %vm14678_vm6 = vcmask 293888   ;;  %vm14679_vm9 = vcmask 138240   ;;  %v11964_v61 = vld [vmem:[#allocation2 + $0x30] sm:$0xff] }
 0x2d9   : > { %3832 = vst [vmem:[#allocation3 + $0x4e0] sm:$0xff] %v3806_v13  ;;  %3833 = vst [vmem:[#allocation3 + $0x4e8] sm:$0xff] %v3807_v31 }
 0x2da   : > { %v11539_v5 = vpop.permute.xlu1 %3207 }
 0x2db   : > { %v4970_v53 = vpop.permute.xlu0 %4969 }
 0x2dc   : > { %v4998_v37 = vsel %vm14677_vm5, %v4970_v53, %v11174_v12  ;;  %4082 = vrot.lane.b32.xlu1 %v11022_v2, %s14630_s15  ;;  %4084 = vrot.lane.b32.xlu0 %v11063_v22, %s14630_s15  ;;  %vm14680_vm5 = vmmov %vm14679_vm9 }
 0x2dd   : > { %5024 = vst [vmem:[#allocation3 + $0xa10] sm:$0xff] %v4998_v37 }
 0x2de   : > { %v11547_v18 = vpop.permute.xlu1 %3304 }
 0x2df   : > { %v3879_v40 = vpop.permute.xlu0 %3878 }
 0x2e0   : > { %v3903_v57 = vsel %vm3900_vm8, %v11069_v26, %v3879_v40  ;;  %v3904_v29 = vsel %vm3900_vm8, %v3879_v40, %v11374_v44  ;;  %4185 = vrot.lane.b32.xlu1 %v11022_v2, %s14631_s16  ;;  %4187 = vrot.lane.b32.xlu0 %v11063_v22, %s14631_s16 }
 0x2e1   : > { %3929 = vst [vmem:[#allocation3 + $0x550] sm:$0xff] %v3903_v57  ;;  %3930 = vst [vmem:[#allocation3 + $0x558] sm:$0xff] %v3904_v29 }
 0x2e2   : > { %v11557_v12 = vpop.permute.xlu1 %3401 }
 0x2e3   : > { %v5067_v33 = vpop.permute.xlu0 %5066 }
 0x2e4   : > { %v5095_v38 = vsel %vm14678_vm6, %v5067_v33, %v11185_v21  ;;  %4292 = vrot.lane.b32.xlu1 %v11022_v2, %s14632_s26  ;;  %4294 = vrot.lane.b32.xlu0 %v11063_v22, %s14632_s26  ;;  %vm14681_vm6 = vcmask 285696  }
 0x2e5   : > { %5121 = vst [vmem:[#allocation3 + $0xa80] sm:$0xff] %v5095_v38 }
 0x2e6   : > { %v11565_v26 = vpop.permute.xlu1 %3498 }
 0x2e7   : > { %v3976_v6 = vpop.permute.xlu0 %3975 }
 0x2e8   : > { %v4000_v62 = vsel %vm14679_vm9, %v11081_v28, %v3976_v6  ;;  %v4001_v14 = vsel %vm14680_vm5, %v3976_v6, %v11384_v63  ;;  %4399 = vrot.lane.b32.xlu1 %v11022_v2, %s14633_s24  ;;  %4401 = vrot.lane.b32.xlu0 %v11063_v22, %s14633_s24  ;;  %vm14682_vm9 = vcmask 277504   ;;  %vm14683_vm5 = vcmask 1039360  }
 0x2e9   : > { %4026 = vst [vmem:[#allocation3 + $0x5c0] sm:$0xff] %v4000_v62  ;;  %4027 = vst [vmem:[#allocation3 + $0x5c8] sm:$0xff] %v4001_v14 }
 0x2ea   : > { %v11575_v21 = vpop.permute.xlu1 %3595 }
 0x2eb   : > { %v5164_v9 = vpop.permute.xlu0 %5163 }
 0x2ec   : > { %v5192_v41 = vsel %vm14681_vm6, %v5164_v9, %v11196_v48  ;;  %4498 = vrot.lane.b32.xlu1 %v11022_v2, %s14634_s13  ;;  %4502 = vrot.lane.b32.xlu0 %v11067_v25, %s14634_s13  ;;  %vm14684_vm6 = vmmov %vm14683_vm5 }
 0x2ed   : > { %5218 = vst [vmem:[#allocation3 + $0xaf0] sm:$0xff] %v5192_v41 }
 0x2ee   : > { %v11583_v28 = vpop.permute.xlu1 %3692 }
 0x2ef   : > { %v4073_v13 = vpop.permute.xlu0 %4072 }
 0x2f0   : > { %v4097_v31 = vsel %vm4094_vm7, %v11089_v30, %v4073_v13  ;;  %v4098_v53 = vsel %vm4094_vm7, %v4073_v13, %v11394_v15  ;;  %4595 = vrot.lane.b32.xlu1 %v11022_v2, %s14636_s14  ;;  %4599 = vrot.lane.b32.xlu0 %v11067_v25, %s14636_s14 }
 0x2f1   : > { %4123 = vst [vmem:[#allocation3 + $0x630] sm:$0xff] %v4097_v31  ;;  %4124 = vst [vmem:[#allocation3 + $0x638] sm:$0xff] %v4098_v53 }
 0x2f2   : > { %v11593_v48 = vpop.permute.xlu1 %3789 }
 0x2f3   : > { %v5261_v37 = vpop.permute.xlu0 %5260 }
 0x2f4   : > { %v5289_v40 = vsel %vm14682_vm9, %v5261_v37, %v11207_v4  ;;  %4692 = vrot.lane.b32.xlu1 %v11022_v2, %s14639_s17  ;;  %4696 = vrot.lane.b32.xlu0 %v11067_v25, %s14639_s17  ;;  %vm14685_vm9 = vcmask 1031168  }
 0x2f5   : > { %5315 = vst [vmem:[#allocation3 + $0xb60] sm:$0xff] %v5289_v40 }
 0x2f6   : > { %v11601_v30 = vpop.permute.xlu1 %3886 }
 0x2f7   : > { %v4174_v57 = vpop.permute.xlu0 %4173 }
 0x2f8   : > { %v4202_v29 = vsel %vm4199_vm12, %v11097_v32, %v4174_v57  ;;  %v4203_v33 = vsel %vm4199_vm12, %v4174_v57, %v11404_v49  ;;  %4789 = vrot.lane.b32.xlu1 %v11022_v2, %s14641_s18  ;;  %4793 = vrot.lane.b32.xlu0 %v11067_v25, %s14641_s18 }
 0x2f9   : > { %4230 = vst [vmem:[#allocation3 + $0x6a0] sm:$0xff] %v4202_v29  ;;  %4231 = vst [vmem:[#allocation3 + $0x6a8] sm:$0xff] %v4203_v33  ;;  %v5239_v33 = vld [vmem:[#allocation2 + $0x48] sm:$0xff] }
 0x2fa   : > { %v11611_v4 = vpop.permute.xlu1 %3983 }
 0x2fb   : > { %v4281_v38 = vpop.permute.xlu0 %4280 }
 0x2fc   : > { %v4309_v6 = vsel %vm4306_vm13, %v11105_v35, %v4281_v38  ;;  %v4310_v32 = vsel %vm4306_vm13, %v4281_v38, %v11430_v47  ;;  %4886 = vrot.lane.b32.xlu1 %v11022_v2, %s14642_s27  ;;  %4890 = vrot.lane.b32.xlu0 %v11067_v25, %s14642_s27 }
 0x2fd   : > { %4337 = vst [vmem:[#allocation3 + $0x710] sm:$0xff] %v4309_v6  ;;  %4338 = vst [vmem:[#allocation3 + $0x718] sm:$0xff] %v4310_v32 }
 0x2fe   : > { %v11621_v62 = vpop.permute.xlu1 %4080 }
 0x2ff   : > { %v4388_v14 = vpop.permute.xlu0 %4387 }
 0x300   : > { %v4416_v9 = vsel %vm4413_vm14, %v11113_v10, %v4388_v14  ;;  %v4417_v35 = vsel %vm4413_vm14, %v4388_v14, %v11450_v1  ;;  %4983 = vrot.lane.b32.xlu1 %v11022_v2, %s14644_s28  ;;  %4987 = vrot.lane.b32.xlu0 %v11067_v25, %s14644_s28 }
 0x301   : > { %4444 = vst [vmem:[#allocation3 + $0x780] sm:$0xff] %v4416_v9  ;;  %4445 = vst [vmem:[#allocation3 + $0x788] sm:$0xff] %v4417_v35 }
 0x302   : > { %v11631_v41 = vpop.permute.xlu1 %4183 }
 0x303   : > { %v4491_v13 = vpop.permute.xlu0 %4490 }
 0x304   : > { %v4515_v31 = vsel %vm14609_vm3, %v11121_v56, %v4491_v13  ;;  %v4516_v10 = vsel %vm14609_vm3, %v4491_v13, %v11482_v45  ;;  %5080 = vrot.lane.b32.xlu1 %v11022_v2, %s14648_s19  ;;  %5084 = vrot.lane.b32.xlu0 %v11067_v25, %s14648_s19  ;;  %v5464_v45 = vld [vmem:[#allocation3 + $0x3f8] sm:$0xff] }
 0x305   : > { %4541 = vst [vmem:[#allocation3 + $0x7f0] sm:$0xff] %v4515_v31  ;;  %4542 = vst [vmem:[#allocation3 + $0x7f8] sm:$0xff] %v4516_v10 }
 0x306   : > { %v11641_v53 = vpop.permute.xlu1 %4290 }
 0x307   : > { %v4588_v37 = vpop.permute.xlu0 %4587 }
 0x308   : > { %v4612_v40 = vsel %vm14605_vm4, %v11132_v46, %v4588_v37  ;;  %v4613_v56 = vsel %vm14605_vm4, %v4588_v37, %v11490_v3  ;;  %5177 = vrot.lane.b32.xlu1 %v11022_v2, %s14651_s2  ;;  %5181 = vrot.lane.b32.xlu0 %v11067_v25, %s14651_s2  ;;  %v5366_v37 = vld [vmem:[#allocation3 + $0xe8] sm:$0xff] }
 0x309   : > { %4638 = vst [vmem:[#allocation3 + $0x860] sm:$0xff] %v4612_v40  ;;  %4639 = vst [vmem:[#allocation3 + $0x868] sm:$0xff] %v4613_v56  ;;  %v9775_v56 = vld [vmem:[#allocation2 + $0x50] sm:$0xff] }
 0x30a   : > { %v11651_v57 = vpop.permute.xlu1 %4397 }
 0x30b   : > { %v2816_v29 = vpop.permute.xlu0 %2815 }
 0x30c   : > { %v2838_v38 = vsel %vm14683_vm5, %v11266_v52, %v2816_v29  ;;  %v2839_v46 = vsel %vm14684_vm6, %v2816_v29, %v11414_v19  ;;  %5274 = vrot.lane.b32.xlu1 %v5239_v33, %s14654_s12  ;;  %5278 = vrot.lane.b32.xlu0 %v11067_v25, %s14654_s12  ;;  %vm14686_vm5 = vmmov %vm14685_vm9  ;;  %vm14687_vm6 = vcmask 965632   ;;  %v5365_v29 = vld [vmem:[#allocation3 + $0xe0] sm:$0xff] }
 0x30d   : > { %2864 = vst [vmem:[#allocation3 + $0x90] sm:$0xff] %v2838_v38  ;;  %2865 = vst [vmem:[#allocation3 + $0x98] sm:$0xff] %v2839_v46 }
 0x30e   : > { %v11660_v2 = vpop.permute.xlu1 %2831 }
 0x30f   : > { %2873 = vst.msk [vmem:[#allocation3 + $0xd8] sm:$0xff] %vm14608_vm2, %v11660_v2  ;;  %v2913_v6 = vpop.permute.xlu0 %2912 }
 0x310   : > { %v2935_v32 = vsel %vm14685_vm9, %v11276_v23, %v2913_v6  ;;  %v2936_v52 = vsel %vm14686_vm5, %v2913_v6, %v11440_v43  ;;  %4500 = vrot.lane.b32.xlu1 %v11063_v22, %s14634_s13  ;;  %4189 = vrot.lane.b32.xlu0 %v11067_v25, %s14631_s16  ;;  %vm14688_vm9 = vmmov %vm14687_vm6  ;;  %vm14690_vm5 = vcmask 1039360  }
 0x311   : > { %2961 = vst [vmem:[#allocation3 + $0x100] sm:$0xff] %v2935_v32  ;;  %2962 = vst [vmem:[#allocation3 + $0x108] sm:$0xff] %v2936_v52  ;;  %v5380_v32 = vld [vmem:[#allocation3 + $0x158] sm:$0xff] }
 0x312   : > { %v11672_v19 = vpop.permute.xlu1 %2928 }
 0x313   : > { %2970 = vst.msk [vmem:[#allocation3 + $0x148] sm:$0xff] %vm14608_vm2, %v11672_v19  ;;  %v3010_v14 = vpop.permute.xlu0 %3009 }
 0x314   : > { %v3032_v23 = vsel %vm14687_vm6, %v11286_v34, %v3010_v14  ;;  %v3033_v43 = vsel %vm14688_vm9, %v3010_v14, %v11460_v17  ;;  %4597 = vrot.lane.b32.xlu1 %v11063_v22, %s14636_s14  ;;  %4296 = vrot.lane.b32.xlu0 %v11067_v25, %s14632_s26  ;;  %vm14691_vm6 = vmmov %vm14690_vm5  ;;  %vm14692_vm9 = vcmask 1031168  }
 0x315   : > { %3058 = vst [vmem:[#allocation3 + $0x170] sm:$0xff] %v3032_v23  ;;  %3059 = vst [vmem:[#allocation3 + $0x178] sm:$0xff] %v3033_v43  ;;  %v11733_v23 = vld [vmem:[#allocation2 + $0x20] sm:$0xff]  ;;  %v5379_v43 = vld [vmem:[#allocation3 + $0x150] sm:$0xff] }
 0x316   : > { %v11684_v9 = vpop.permute.xlu1 %3025 }
 0x317   : > { %14689 = vst [vmem:[#allocation24_spill] sm:$0xff] %v11684_v9  ;;  %3067 = vst.msk [vmem:[#allocation3 + $0x1b8] sm:$0xff] %vm14608_vm2, %v11684_v9  ;;  %v3107_v35 = vpop.permute.xlu0 %3106 }
 0x318   : > { %v3129_v34 = vsel %vm3124_vm15, %v11295_v36, %v3107_v35  ;;  %v3130_v17 = vsel %vm3124_vm15, %v3107_v35, %v11470_v51  ;;  %4694 = vrot.lane.b32.xlu1 %v11063_v22, %s14639_s17  ;;  %4403 = vrot.lane.b32.xlu0 %v11067_v25, %s14633_s24 }
 0x319   : > { %3155 = vst [vmem:[#allocation3 + $0x1e0] sm:$0xff] %v3129_v34  ;;  %3156 = vst [vmem:[#allocation3 + $0x1e8] sm:$0xff] %v3130_v17 }
 0x31a   : > { %v2822_v13 = vpop.permute.xlu1 %2821 }
 0x31b   : > { %v2840_v31 = vsel %vm14690_vm5, %v11500_v50, %v2822_v13  ;;  %v11698_v10 = vpop.permute.xlu0 %2823  ;;  %vm14693_vm5 = vmmov %vm14692_vm9 }
 0x31c   : > { %v2841_v36 = vsel %vm14691_vm6, %v2822_v13, %v11698_v10  ;;  %4791 = vrot.lane.b32.xlu1 %v11063_v22, %s14641_s18  ;;  %2827 = vrot.lane.b32.xlu0 %v11358_v24, %s14659_s10  ;;  %v11713_v22 = vld [vmem:[#allocation2 + $0x28] sm:$0xff]  ;;  %vm14694_vm6 = vcmask 965632  }
 0x31d   : > { %5760 = vmatprep.subr.bf16.mxu0 %v2841_v36 }
 0x31e   : > { %v2919_v51 = vpop.permute.xlu1 %2918  ;;  %5761 = vmatpush1.bf16.msra.mxu0 %v2840_v31  ;;  %v5394_v31 = vld [vmem:[#allocation3 + $0x1c8] sm:$0xff] }
 0x31f   : > { %v2937_v25 = vsel %vm14692_vm9, %v11508_v8, %v2919_v51  ;;  %v11708_v40 = vpop.permute.xlu0 %2920  ;;  %5762 = vmatprep.subr.bf16.mxu0 %v5366_v37  ;;  %vm14695_vm9 = vmmov %vm14694_vm6  ;;  %v5393_v37 = vld [vmem:[#allocation3 + $0x1c0] sm:$0xff] }
 0x320   : > { %v2938_v50 = vsel %vm14693_vm5, %v2919_v51, %v11708_v40  ;;  %4888 = vrot.lane.b32.xlu1 %v9775_v56, %s14642_s27  ;;  %3203 = vrot.lane.b32.xlu0 %v11713_v22, %s14643_s29  ;;  %vm14696_vm5 = vcmask 228352  }
 0x322   : > { %v3016_v33 = vpop.permute.xlu1 %3015  ;;  %5763 = vmatpush1.bf16.msra.mxu0 %v5365_v29 }
 0x323   : > { %v3034_v8 = vsel %vm14694_vm6, %v11521_v60, %v3016_v33  ;;  %v11719_v38 = vpop.permute.xlu0 %3017  ;;  %5764 = vmatprep.subr.bf16.mxu0 %v2938_v50  ;;  %vm14697_vm6 = vmmov %vm14696_vm5 }
 0x324   : > { %v3035_v46 = vsel %vm14695_vm9, %v3016_v33, %v11719_v38  ;;  %4985 = vrot.lane.b32.xlu1 %v9775_v56, %s14644_s28  ;;  %2924 = vrot.lane.b32.xlu0 %v11358_v24, %s14661_s9  ;;  %v9776_v33 = vld [vmem:[#allocation2 + $0x58] sm:$0xff]  ;;  %vm14698_vm9 = vcmask 220160  }
 0x326   : > { %v3113_v6 = vpop.permute.xlu1 %3112  ;;  %5765 = vmatpush1.bf16.msra.mxu0 %v2937_v25 }
 0x327   : > { %v3131_v52 = vsel %vm3124_vm15, %v11529_v11, %v3113_v6  ;;  %v11728_v14 = vpop.permute.xlu0 %3114  ;;  %5766 = vmatprep.subr.bf16.mxu0 %v5380_v32  ;;  %v9777_v32 = vld [vmem:[#allocation2 + $0x70] sm:$0xff] }
 0x328   : > { %v3132_v60 = vsel %vm3124_vm15, %v3113_v6, %v11728_v14  ;;  %5082 = vrot.lane.b32.xlu1 %v9775_v56, %s14648_s19  ;;  %4684 = vrot.lane.b32.xlu0 %v11733_v23, %s14639_s17 }
 0x32a   : > { %v3210_v35 = vpop.permute.xlu1 %3209  ;;  %5767 = vmatpush1.bf16.msra.mxu0 %v5379_v43 }
 0x32b   : > { %v3228_v34 = vsel %vm3221_vm0, %v11539_v5, %v3210_v35  ;;  %v11739_v11 = vpop.permute.xlu0 %3211  ;;  %5768 = vmatprep.subr.bf16.mxu0 %v3035_v46 }
 0x32c   : > { %v3229_v17 = vsel %vm3221_vm0, %v3210_v35, %v11739_v11  ;;  %5179 = vrot.lane.b32.xlu1 %v9775_v56, %s14651_s2  ;;  %3021 = vrot.lane.b32.xlu0 %v11358_v24, %s14663_s22  ;;  %v11785_v35 = vld [vmem:[#allocation2 + $0x58] sm:$0xff] }
 0x32e   : > { %v3307_v13 = vpop.permute.xlu1 %3306  ;;  %5769 = vmatpush1.bf16.msra.mxu0 %v3034_v8  ;;  %v5408_v8 = vld [vmem:[#allocation3 + $0x238] sm:$0xff] }
 0x32f   : > { %v3325_v36 = vsel %vm3318_vm1, %v11547_v18, %v3307_v13  ;;  %v11748_v51 = vpop.permute.xlu0 %3308  ;;  %5770 = vmatprep.subr.bf16.mxu0 %v5394_v31 }
 0x330   : > { %v3326_v5 = vsel %vm3318_vm1, %v3307_v13, %v11748_v51  ;;  %5276 = vrot.lane.b32.xlu1 %v9775_v56, %s14654_s12  ;;  %3300 = vrot.lane.b32.xlu0 %v11713_v22, %s14645_s30 }
 0x332   : > { %v3404_v25 = vpop.permute.xlu1 %3403  ;;  %5771 = vmatpush1.bf16.msra.mxu0 %v5393_v37  ;;  %v5422_v37 = vld [vmem:[#allocation3 + $0x2a8] sm:$0xff] }
 0x333   : > { %v11757_v50 = vsel %vm3415_vm11, %v11557_v12, %v3404_v25  ;;  %v11759_v29 = vpop.permute.xlu0 %3405  ;;  %5772 = vmatprep.subr.bf16.mxu0 %v3132_v60  ;;  %v5407_v60 = vld [vmem:[#allocation3 + $0x230] sm:$0xff] }
 0x334   : > { %v3423_v18 = vsel %vm3415_vm11, %v3404_v25, %v11759_v29  ;;  %2825 = vrot.lane.b32.xlu1 %v9776_v33, %s14659_s10  ;;  %3118 = vrot.lane.b32.xlu0 %v11358_v24, %s14665_s8  ;;  %v5421_v33 = vld [vmem:[#allocation3 + $0x2a0] sm:$0xff] }
 0x336   : > { %v3501_v56 = vpop.permute.xlu1 %3500  ;;  %5773 = vmatpush1.bf16.msra.mxu0 %v3131_v52 }
 0x337   : > { %v11768_v46 = vsel %vm3512_vm10, %v11565_v26, %v3501_v56  ;;  %v11770_v12 = vpop.permute.xlu0 %3502  ;;  %5774 = vmatprep.subr.bf16.mxu0 %v5408_v8 }
 0x338   : > { %v11774_v6 = vsel %vm3512_vm10, %v3501_v56, %v11770_v12  ;;  %3122 = vrot.lane.b32.xlu1 %v9777_v32, %s14665_s8  ;;  %4781 = vrot.lane.b32.xlu0 %v11733_v23, %s14641_s18 }
 0x33a   : > { %v3598_v52 = vpop.permute.xlu1 %3597  ;;  %5775 = vmatpush1.bf16.msra.mxu0 %v5407_v60  ;;  %v5436_v60 = vld [vmem:[#allocation3 + $0x318] sm:$0xff] }
 0x33b   : > { %v11781_v26 = vsel %vm14696_vm5, %v11575_v21, %v3598_v52  ;;  %v11783_v43 = vpop.permute.xlu0 %3599  ;;  %5776 = vmatprep.subr.bf16.mxu0 %v3229_v17  ;;  %vm14699_vm5 = vmmov %vm14698_vm9 }
 0x33c   : > { %v11789_v13 = vsel %vm14697_vm6, %v3598_v52, %v11783_v43  ;;  %2922 = vrot.lane.b32.xlu1 %v11785_v35, %s14661_s9  ;;  %3215 = vrot.lane.b32.xlu0 %v11358_v24, %s14643_s29  ;;  %vm14700_vm6 = vcmask 211968  }
 0x33e   : > { %v3695_v31 = vpop.permute.xlu1 %3694  ;;  %5777 = vmatpush1.bf16.msra.mxu0 %v3228_v34 }
 0x33f   : > { %v11797_v21 = vsel %vm14698_vm9, %v11583_v28, %v3695_v31  ;;  %v11799_v25 = vpop.permute.xlu0 %3696  ;;  %5778 = vmatprep.subr.bf16.mxu0 %v5422_v37  ;;  %vm14701_vm9 = vmmov %vm14700_vm6 }
 0x340   : > { %v11803_v17 = vsel %vm14699_vm5, %v3695_v31, %v11799_v25  ;;  %3019 = vrot.lane.b32.xlu1 %v11785_v35, %s14663_s22  ;;  %3397 = vrot.lane.b32.xlu0 %v11713_v22, %s14647_s20  ;;  %v5435_v31 = vld [vmem:[#allocation3 + $0x310] sm:$0xff]  ;;  %vm14702_vm5 = vcmask 138240  }
 0x342   : > { %v3792_v34 = vpop.permute.xlu1 %3791  ;;  %5779 = vmatpush1.bf16.msra.mxu0 %v5421_v33 }
 0x343   : > { %v11811_v28 = vsel %vm14700_vm6, %v11593_v48, %v3792_v34  ;;  %v11813_v56 = vpop.permute.xlu0 %3793  ;;  %5780 = vmatprep.subr.bf16.mxu0 %v3326_v5  ;;  %vm14703_vm6 = vmmov %vm14702_vm5 }
 0x344   : > { %v11817_v8 = vsel %vm14701_vm9, %v3792_v34, %v11813_v56  ;;  %3116 = vrot.lane.b32.xlu1 %v11785_v35, %s14665_s8  ;;  %3312 = vrot.lane.b32.xlu0 %v11358_v24, %s14645_s30  ;;  %v11854_v34 = vld [vmem:[%s14673_s5] ss:$28 sps:$4 sm:$0xff]   ;;  %vm14708_vm9 = vcmask 441344  }
 0x346   : > { %v3889_v32 = vpop.permute.xlu1 %3888  ;;  %5781 = vmatpush1.bf16.msra.mxu0 %v3325_v36 }
 0x347   : > { %v11825_v48 = vsel %vm3900_vm8, %v11601_v30, %v3889_v32  ;;  %v11827_v52 = vpop.permute.xlu0 %3890  ;;  %5782 = vmatprep.subr.bf16.mxu0 %v5436_v60 }
 0x348   : > { %v11831_v5 = vsel %vm3900_vm8, %v3889_v32, %v11827_v52  ;;  %3213 = vrot.lane.b32.xlu1 %v11785_v35, %s14643_s29  ;;  %4878 = vrot.lane.b32.xlu0 %v11733_v23, %s14642_s27  ;;  %v5450_v32 = vld [vmem:[#allocation3 + $0x388] sm:$0xff] }
 0x34a   : > { %v3986_v36 = vpop.permute.xlu1 %3985  ;;  %5783 = vmatpush1.bf16.msra.mxu0 %v5435_v31 }
 0x34b   : > { %v11839_v30 = vsel %vm14702_vm5, %v11611_v4, %v3986_v36  ;;  %v11841_v37 = vpop.permute.xlu0 %3987  ;;  %5784 = vmatprep.subr.bf16.mxu0 %v3423_v18  ;;  %v11860_v18 = vld [vmem:[%s14673_s5 + $0xc] ss:$28 sps:$4 sm:$0xff]   ;;  %vm14709_vm5 = vmmov %vm14708_vm9 }
 0x34c   : > { %v11845_v33 = vsel %vm14703_vm6, %v3986_v36, %v11841_v37  ;;  %3310 = vrot.lane.b32.xlu1 %v11785_v35, %s14645_s30  ;;  %3409 = vrot.lane.b32.xlu0 %v11358_v24, %s14647_s20  ;;  %vm14711_vm6 = vcmask 375808  }
 0x34e   : > { %v4083_v4 = vpop.permute.xlu1 %4082  ;;  %5785 = vmatpush1.bf16.msra.mxu0 %v11757_v50  ;;  %v5449_v50 = vld [vmem:[#allocation3 + $0x380] sm:$0xff] }
 0x34f   : > { %v11864_v60 = vsel %vm4094_vm7, %v11621_v62, %v4083_v4  ;;  %v11866_v31 = vpop.permute.xlu0 %4084  ;;  %5797 = vmatprep.subr.bf16.mxu0 %v5450_v32 }
 0x350   : > { %v11870_v36 = vsel %vm4094_vm7, %v4083_v4, %v11866_v31  ;;  %3407 = vrot.lane.b32.xlu1 %v11785_v35, %s14647_s20  ;;  %3506 = vrot.lane.b32.xlu0 %v11358_v24, %s14649_s0 }
 0x351   : > { %5787 = vmatmul.mubr.bf16.vlgmr.msra.gmra.mrb[20].mxu0 %v11854_v34 }
 0x352   : > { %v4186_v3 = vpop.permute.xlu1 %4185  ;;  %5798 = vmatpush1.bf16.msra.mxu0 %v5449_v50  ;;  %5829 = vmatprep.mubr.bf16.mxu0 %v11860_v18 }
 0x353   : > { %v11880_v62 = vsel %vm4199_vm12, %v11631_v41, %v4186_v3  ;;  %v11882_v32 = vpop.permute.xlu0 %4187  ;;  %5799 = vmatprep.subr.bf16.mxu0 %v11774_v6  ;;  %v5463_v6 = vld [vmem:[#allocation3 + $0x3f0] sm:$0xff] }
 0x354   : > { %v11887_v4 = vsel %vm4199_vm12, %v4186_v3, %v11882_v32  ;;  %3504 = vrot.lane.b32.xlu1 %v11785_v35, %s14649_s0  ;;  %3603 = vrot.lane.b32.xlu0 %v11358_v24, %s14650_s1 }
 0x356   : > { %v4293_v50 = vpop.permute.xlu1 %4292  ;;  %5800 = vmatpush1.bf16.msra.mxu0 %v11768_v46 }
 0x357   : > { %v11896_v41 = vsel %vm4306_vm13, %v11641_v53, %v4293_v50  ;;  %v11898_v1 = vpop.permute.xlu0 %4294  ;;  %5801 = vmatprep.subr.bf16.mxu0 %v5464_v45 }
 0x358   : > { %v11902_v3 = vsel %vm4306_vm13, %v4293_v50, %v11898_v1  ;;  %3601 = vrot.lane.b32.xlu1 %v11785_v35, %s14650_s1  ;;  %3700 = vrot.lane.b32.xlu0 %v11358_v24, %s14652_s3 }
 0x35a   : > { %v4400_v46 = vpop.permute.xlu1 %4399  ;;  %5802 = vmatpush1.bf16.msra.mxu0 %v5463_v6 }
 0x35b   : > { %v11910_v53 = vsel %vm4413_vm14, %v11651_v57, %v4400_v46  ;;  %v11912_v47 = vpop.permute.xlu0 %4401  ;;  %5803 = vmatprep.subr.bf16.mxu0 %v11789_v13  ;;  %v5478_v57 = vld [vmem:[#allocation3 + $0x468] sm:$0xff]  ;;  %v5477_v13 = vld [vmem:[#allocation3 + $0x460] sm:$0xff] }
 0x35c   : > { %v11917_v45 = vsel %vm4413_vm14, %v4400_v46, %v11912_v47  ;;  %3698 = vrot.lane.b32.xlu1 %v11785_v35, %s14652_s3  ;;  %3797 = vrot.lane.b32.xlu0 %v11358_v24, %s14653_s21 }
 0x35e   : > { %v11923_v50 = vpop.permute.xlu1 %4498  ;;  %5804 = vmatpush1.bf16.msra.mxu0 %v11781_v26 }
 0x35f   : > { %v11926_v6 = vpop.permute.xlu0 %4502  ;;  %5805 = vmatprep.subr.bf16.mxu0 %v5478_v57  ;;  %v5492_v57 = vld [vmem:[#allocation3 + $0x4d8] sm:$0xff] }
 0x360   : > { %3795 = vrot.lane.b32.xlu1 %v11785_v35, %s14653_s21  ;;  %3894 = vrot.lane.b32.xlu0 %v11358_v24, %s14646_s23 }
 0x362   : > { %v11932_v46 = vpop.permute.xlu1 %4595  ;;  %5806 = vmatpush1.bf16.msra.mxu0 %v5477_v13 }
 0x363   : > { %v11934_v49 = vpop.permute.xlu0 %4599  ;;  %5807 = vmatprep.subr.bf16.mxu0 %v11803_v17  ;;  %v5491_v17 = vld [vmem:[#allocation3 + $0x4d0] sm:$0xff] }
 0x364   : > { %3892 = vrot.lane.b32.xlu1 %v11785_v35, %s14646_s23  ;;  %3991 = vrot.lane.b32.xlu0 %v11358_v24, %s14629_s25 }
 0x366   : > { %v11941_v26 = vpop.permute.xlu1 %4692  ;;  %5808 = vmatpush1.bf16.msra.mxu0 %v11797_v21 }
 0x367   : > { %v11944_v15 = vpop.permute.xlu0 %4696  ;;  %5809 = vmatprep.subr.bf16.mxu0 %v5492_v57  ;;  %v5506_v57 = vld [vmem:[#allocation3 + $0x548] sm:$0xff] }
 0x368   : > { %3989 = vrot.lane.b32.xlu1 %v11785_v35, %s14629_s25  ;;  %4088 = vrot.lane.b32.xlu0 %v11358_v24, %s14630_s15 }
 0x36a   : > { %v11950_v13 = vpop.permute.xlu1 %4789  ;;  %5810 = vmatpush1.bf16.msra.mxu0 %v5491_v17 }
 0x36b   : > { %v11952_v63 = vpop.permute.xlu0 %4793  ;;  %5811 = vmatprep.subr.bf16.mxu0 %v11817_v8 }
 0x36c   : > { %4086 = vrot.lane.b32.xlu1 %v11785_v35, %s14630_s15  ;;  %4504 = vrot.lane.b32.xlu0 %v11358_v24, %s14634_s13  ;;  %v5505_v35 = vld [vmem:[#allocation3 + $0x540] sm:$0xff] }
 0x36e   : > { %v11959_v21 = vpop.permute.xlu1 %4886  ;;  %5812 = vmatpush1.bf16.msra.mxu0 %v11811_v28 }
 0x36f   : > { %v11962_v44 = vpop.permute.xlu0 %4890  ;;  %5813 = vmatprep.subr.bf16.mxu0 %v5506_v57  ;;  %v5520_v57 = vld [vmem:[#allocation3 + $0x5b8] sm:$0xff] }
 0x370   : > { %3205 = vrot.lane.b32.xlu1 %v11964_v61, %s14643_s29  ;;  %4601 = vrot.lane.b32.xlu0 %v11358_v24, %s14636_s14 }
 0x372   : > { %v11970_v8 = vpop.permute.xlu1 %4983  ;;  %5814 = vmatpush1.bf16.msra.mxu0 %v5505_v35 }
 0x373   : > { %v11972_v17 = vpop.permute.xlu0 %4987  ;;  %5815 = vmatprep.subr.bf16.mxu0 %v11831_v5  ;;  %v5519_v5 = vld [vmem:[#allocation3 + $0x5b0] sm:$0xff] }
 0x374   : > { %4686 = vrot.lane.b32.xlu1 %v11713_v22, %s14639_s17  ;;  %4698 = vrot.lane.b32.xlu0 %v11358_v24, %s14639_s17 }
 0x376   : > { %v11979_v28 = vpop.permute.xlu1 %5080  ;;  %5816 = vmatpush1.bf16.msra.mxu0 %v11825_v48 }
 0x377   : > { %v11982_v58 = vpop.permute.xlu0 %5084  ;;  %5817 = vmatprep.subr.bf16.mxu0 %v5520_v57  ;;  %v5534_v57 = vld [vmem:[#allocation3 + $0x628] sm:$0xff] }
 0x378   : > { %3219 = vrot.lane.b32.xlu1 %v11984_v27, %s14643_s29  ;;  %4795 = vrot.lane.b32.xlu0 %v11358_v24, %s14641_s18 }
 0x37a   : > { %v11990_v35 = vpop.permute.xlu1 %5177  ;;  %5818 = vmatpush1.bf16.msra.mxu0 %v5519_v5 }
 0x37b   : > { %v11992_v16 = vpop.permute.xlu0 %5181  ;;  %5819 = vmatprep.subr.bf16.mxu0 %v11845_v33  ;;  %v5533_v33 = vld [vmem:[#allocation3 + $0x620] sm:$0xff] }
 0x37c   : > { %14704 = vst [vmem:[#allocation25_spill] sm:$0xff] %v11992_v16  ;;  %3302 = vrot.lane.b32.xlu1 %v11964_v61, %s14645_s30  ;;  %2829 = vrot.lane.b32.xlu0 %v11416_v54, %s14659_s10 }
 0x37e   : > { %v11999_v48 = vpop.permute.xlu1 %5274  ;;  %5820 = vmatpush1.bf16.msra.mxu0 %v11839_v30 }
 0x37f   : > { %v12002_v24 = vpop.permute.xlu0 %5278  ;;  %5821 = vmatprep.subr.bf16.mxu0 %v5534_v57 }
 0x380   : > { %14705 = vst [vmem:[#allocation26_spill] sm:$0xff] %v12002_v24  ;;  %4783 = vrot.lane.b32.xlu1 %v11713_v22, %s14641_s18  ;;  %2926 = vrot.lane.b32.xlu0 %v11416_v54, %s14661_s9 }
 0x382   : > { %v4501_v5 = vpop.permute.xlu1 %4500  ;;  %5822 = vmatpush1.bf16.msra.mxu0 %v5533_v33  ;;  %v5548_v33 = vld [vmem:[#allocation3 + $0x698] sm:$0xff] }
 0x383   : > { %v12010_v55 = vsel %vm14609_vm3, %v11923_v50, %v4501_v5  ;;  %v12014_v30 = vsel %vm14609_vm3, %v4501_v5, %v11926_v6  ;;  %v12016_v9 = vpop.permute.xlu0 %4189  ;;  %5823 = vmatprep.subr.bf16.mxu0 %v11870_v36 }
 0x384   : > { %14706 = vst [vmem:[#allocation27_spill] sm:$0xff] %v12016_v9  ;;  %v4209_v57 = vsel %vm4199_vm12, %v11882_v32, %v12016_v9  ;;  %3316 = vrot.lane.b32.xlu1 %v11984_v27, %s14645_s30  ;;  %3023 = vrot.lane.b32.xlu0 %v11416_v54, %s14663_s22 }
 0x385   : > { %4237 = vst [vmem:[#allocation3 + $0x6d8] sm:$0xff] %v4209_v57 }
 0x386   : > { %v4598_v50 = vpop.permute.xlu1 %4597  ;;  %5824 = vmatpush1.bf16.msra.mxu0 %v11864_v60  ;;  %v5547_v60 = vld [vmem:[#allocation3 + $0x690] sm:$0xff] }
 0x387   : > { %v12029_v5 = vsel %vm14605_vm4, %v11932_v46, %v4598_v50  ;;  %v12033_v36 = vsel %vm14605_vm4, %v4598_v50, %v11934_v49  ;;  %v12035_v32 = vpop.permute.xlu0 %4296  ;;  %5825 = vmatprep.subr.bf16.mxu0 %v5548_v33 }
 0x388   : > { %14707 = vst [vmem:[#allocation28_spill] sm:$0xff] %v12035_v32  ;;  %v4316_v57 = vsel %vm4306_vm13, %v11898_v1, %v12035_v32  ;;  %3399 = vrot.lane.b32.xlu1 %v11964_v61, %s14647_s20  ;;  %3120 = vrot.lane.b32.xlu0 %v11416_v54, %s14665_s8 }
 0x389   : > { %4344 = vst [vmem:[#allocation3 + $0x748] sm:$0xff] %v4316_v57 }
 0x38a   : > { %v4695_v46 = vpop.permute.xlu1 %4694  ;;  %5826 = vmatpush1.bf16.msra.mxu0 %v5547_v60  ;;  %v5562_v60 = vld [vmem:[#allocation3 + $0x708] sm:$0xff] }
 0x38b   : > { %v12046_v50 = vsel %vm14708_vm9, %v11941_v26, %v4695_v46  ;;  %v12050_v33 = vsel %vm14709_vm5, %v4695_v46, %v11944_v15  ;;  %v12052_v9 = vpop.permute.xlu0 %4403  ;;  %5827 = vmatprep.subr.bf16.mxu0 %v11887_v4  ;;  %v9756_v26 = vld [vmem:[%s14673_s5 + $0x8] ss:$28 sps:$4 sm:$0xff]   ;;  %v9757_v4 = vld [vmem:[%s14673_s5 + $0x14] ss:$28 sps:$4 sm:$0xff]   ;;  %vm14712_vm9 = vmmov %vm14711_vm6  ;;  %vm14713_vm5 = vcmask 367616  }
 0x38c   : > { %14710 = vst [vmem:[#allocation29_spill] sm:$0xff] %v12052_v9  ;;  %v4423_v1 = vsel %vm4413_vm14, %v11912_v47, %v12052_v9  ;;  %4880 = vrot.lane.b32.xlu1 %v11713_v22, %s14642_s27  ;;  %3217 = vrot.lane.b32.xlu0 %v11416_v54, %s14643_s29 }
 0x38d   : > { %4451 = vst [vmem:[#allocation3 + $0x7b8] sm:$0xff] %v4423_v1  ;;  %v12079_v1 = vld [vmem:[#allocation2 + $0x60] sm:$0xff] }
 0x38e   : > { %v4792_v57 = vpop.permute.xlu1 %4791  ;;  %5828 = vmatpush1.bf16.msra.mxu0 %v11880_v62  ;;  %v12083_v62 = vld [vmem:[#allocation2 + $0x68] sm:$0xff] }
 0x38f   : > { %v12071_v47 = vsel %vm14711_vm6, %v11950_v13, %v4792_v57  ;;  %v12075_v46 = vsel %vm14712_vm9, %v4792_v57, %v11952_v63  ;;  %v12077_v54 = vpop.permute.xlu0 %2827  ;;  %5840 = vmatprep.subr.bf16.mxu0 %v5562_v60  ;;  %v5561_v13 = vld [vmem:[#allocation3 + $0x700] sm:$0xff]  ;;  %vm14714_vm6 = vmmov %vm14713_vm5  ;;  %vm14715_vm9 = vcmask 359424  }
 0x390   : > { %4191 = vrot.lane.b32.xlu1 %v12079_v1, %s14631_s16  ;;  %3314 = vrot.lane.b32.xlu0 %v12083_v62, %s14645_s30 }
 0x391   : > { %5830 = vmatmul.mubr.bf16.vlgmr.msra.gmra.mrb[20].mxu0 %v9756_v26 }
 0x392   : > { %v4889_v9 = vpop.permute.xlu1 %4888  ;;  %5841 = vmatpush1.bf16.msra.mxu0 %v5561_v13  ;;  %5872 = vmatprep.mubr.bf16.mxu0 %v9757_v4  ;;  %v5575_v13 = vld [vmem:[#allocation3 + $0x770] sm:$0xff] }
 0x393   : > { %v12089_v57 = vsel %vm14713_vm5, %v11959_v21, %v4889_v9  ;;  %v12093_v60 = vsel %vm14714_vm6, %v4889_v9, %v11962_v44  ;;  %v12095_v32 = vpop.permute.xlu0 %3203  ;;  %5842 = vmatprep.subr.bf16.mxu0 %v11902_v3  ;;  %v5576_v9 = vld [vmem:[#allocation3 + $0x778] sm:$0xff]  ;;  %vm14716_vm5 = vmmov %vm14715_vm9  ;;  %vm14717_vm6 = vcmask 293888  }
 0x394   : > { %v3226_v26 = vsel %vm3221_vm0, %v11304_v39, %v12095_v32  ;;  %4298 = vrot.lane.b32.xlu1 %v12079_v1, %s14632_s26  ;;  %3411 = vrot.lane.b32.xlu0 %v12083_v62, %s14647_s20 }
 0x395   : > { %3252 = vst [vmem:[#allocation3 + $0x250] sm:$0xff] %v3226_v26 }
 0x396   : > { %v4986_v21 = vpop.permute.xlu1 %4985  ;;  %5843 = vmatpush1.bf16.msra.mxu0 %v11896_v41 }
 0x397   : > { %v12108_v4 = vsel %vm14715_vm9, %v11970_v8, %v4986_v21  ;;  %v12112_v3 = vsel %vm14716_vm5, %v4986_v21, %v11972_v17  ;;  %v12114_v39 = vpop.permute.xlu0 %2924  ;;  %5844 = vmatprep.subr.bf16.mxu0 %v5576_v9  ;;  %vm14718_vm9 = vmmov %vm14717_vm6  ;;  %vm14719_vm5 = vcmask 441344  }
 0x398   : > { %4405 = vrot.lane.b32.xlu1 %v12079_v1, %s14633_s24  ;;  %4892 = vrot.lane.b32.xlu0 %v12079_v1, %s14642_s27 }
 0x39a   : > { %v5083_v41 = vpop.permute.xlu1 %5082  ;;  %5845 = vmatpush1.bf16.msra.mxu0 %v5575_v13  ;;  %v5590_v13 = vld [vmem:[#allocation3 + $0x7e8] sm:$0xff] }
 0x39b   : > { %v12122_v8 = vsel %vm14717_vm6, %v11979_v28, %v5083_v41  ;;  %v12126_v26 = vsel %vm14718_vm9, %v5083_v41, %v11982_v58  ;;  %v12128_v21 = vpop.permute.xlu0 %4684  ;;  %5846 = vmatprep.subr.bf16.mxu0 %v11917_v45  ;;  %vm14720_vm6 = vcmask 285696  }
 0x39c   : > { %v4709_v9 = vsel %vm14719_vm5, %v11143_v59, %v12128_v21  ;;  %4506 = vrot.lane.b32.xlu1 %v12083_v62, %s14634_s13  ;;  %3494 = vrot.lane.b32.xlu0 %v11713_v22, %s14649_s0  ;;  %vm14721_vm9 = vmmov %vm14720_vm6  ;;  %vm14722_vm5 = vcmask 277504  }
 0x39d   : > { %4735 = vst [vmem:[#allocation3 + $0x8d0] sm:$0xff] %v4709_v9  ;;  %v5589_v9 = vld [vmem:[#allocation3 + $0x7e0] sm:$0xff] }
 0x39e   : > { %v5180_v28 = vpop.permute.xlu1 %5179  ;;  %5847 = vmatpush1.bf16.msra.mxu0 %v11910_v53 }
 0x39f   : > { %v12141_v41 = vsel %vm14720_vm6, %v11990_v35, %v5180_v28  ;;  %v12145_v45 = vsel %vm14721_vm9, %v5180_v28, %v11992_v16  ;;  %v12147_v59 = vpop.permute.xlu0 %3021  ;;  %5848 = vmatprep.subr.bf16.mxu0 %v5590_v13  ;;  %vm14723_vm6 = vmmov %vm14722_vm5  ;;  %vm14724_vm9 = vcmask 1039360  }
 0x3a0   : > { %4603 = vrot.lane.b32.xlu1 %v12083_v62, %s14636_s14  ;;  %4975 = vrot.lane.b32.xlu0 %v11733_v23, %s14644_s28 }
 0x3a2   : > { %v5277_v53 = vpop.permute.xlu1 %5276  ;;  %5849 = vmatpush1.bf16.msra.mxu0 %v5589_v9  ;;  %v5604_v9 = vld [vmem:[#allocation3 + $0x858] sm:$0xff] }
 0x3a3   : > { %v12155_v35 = vsel %vm14722_vm5, %v11999_v48, %v5277_v53  ;;  %v12159_v28 = vsel %vm14723_vm6, %v5277_v53, %v12002_v24  ;;  %v12161_v16 = vpop.permute.xlu0 %3300  ;;  %5850 = vmatprep.subr.bf16.mxu0 %v12014_v30  ;;  %vm14725_vm5 = vmmov %vm14724_vm9  ;;  %vm14726_vm6 = vcmask 375808  }
 0x3a4   : > { %v3323_v13 = vsel %vm3318_vm1, %v11313_v42, %v12161_v16  ;;  %4700 = vrot.lane.b32.xlu1 %v12083_v62, %s14639_s17  ;;  %3508 = vrot.lane.b32.xlu0 %v12083_v62, %s14649_s0  ;;  %v5603_v42 = vld [vmem:[#allocation3 + $0x850] sm:$0xff] }
 0x3a5   : > { %3349 = vst [vmem:[#allocation3 + $0x2c0] sm:$0xff] %v3323_v13 }
 0x3a6   : > { %v2826_v48 = vpop.permute.xlu1 %2825  ;;  %5851 = vmatpush1.bf16.msra.mxu0 %v12010_v55  ;;  %v5368_v55 = vld [vmem:[#allocation3 + $0xf8] sm:$0xff] }
 0x3a7   : > { %v2842_v53 = vsel %vm14724_vm9, %v11698_v10, %v2826_v48  ;;  %v2843_v30 = vsel %vm14725_vm5, %v2826_v48, %v12077_v54  ;;  %v12176_v24 = vpop.permute.xlu0 %3118  ;;  %5852 = vmatprep.subr.bf16.mxu0 %v5604_v9  ;;  %vm14727_vm9 = vcmask 1031168  }
 0x3a8   : > { %4797 = vrot.lane.b32.xlu1 %v12083_v62, %s14641_s18  ;;  %5932 = vmatprep.subr.bf16.mxu1 %v2843_v30  ;;  %vm14728_vm5 = vmmov %vm14727_vm9 }
 0x3a9   : > { %4989 = vrot.lane.b32.xlu0 %v12079_v1, %s14644_s28  ;;  %5933 = vmatpush1.bf16.msra.mxu1 %v2842_v53  ;;  %v5367_v1 = vld [vmem:[#allocation3 + $0xf0] sm:$0xff]  ;;  %v5618_v53 = vld [vmem:[#allocation3 + $0x8c8] sm:$0xff] }
 0x3aa   : > { %v12182_v13 = vpop.permute.xlu1 %3122  ;;  %5853 = vmatpush1.bf16.msra.mxu0 %v5603_v42  ;;  %5934 = vmatprep.subr.bf16.mxu1 %v5368_v55 }
 0x3ab   : > { %3164 = vst.msk [vmem:[#allocation3 + $0x228] sm:$0xff] %vm14608_vm2, %v12182_v13  ;;  %v12186_v10 = vpop.permute.xlu0 %4781  ;;  %5854 = vmatprep.subr.bf16.mxu0 %v12033_v36 }
 0x3ac   : > { %v4806_v48 = vsel %vm14726_vm6, %v11154_v0, %v12186_v10  ;;  %3413 = vrot.lane.b32.xlu1 %v11984_v27, %s14647_s20  ;;  %vm14729_vm6 = vcmask 965632  }
 0x3ad   : > { %4832 = vst [vmem:[#allocation3 + $0x940] sm:$0xff] %v4806_v48  ;;  %3591 = vrot.lane.b32.xlu0 %v11713_v22, %s14650_s1  ;;  %5935 = vmatpush1.bf16.msra.mxu1 %v5367_v1  ;;  %v5617_v22 = vld [vmem:[#allocation3 + $0x8c0] sm:$0xff] }
 0x3ae   : > { %v2923_v9 = vpop.permute.xlu1 %2922  ;;  %5855 = vmatpush1.bf16.msra.mxu0 %v12029_v5  ;;  %v5382_v5 = vld [vmem:[#allocation3 + $0x168] sm:$0xff]  ;;  %v5381_v1 = vld [vmem:[#allocation3 + $0x160] sm:$0xff] }
 0x3af   : > { %v2939_v36 = vsel %vm14727_vm9, %v11708_v40, %v2923_v9  ;;  %v2940_v30 = vsel %vm14728_vm5, %v2923_v9, %v12114_v39  ;;  %v12201_v0 = vpop.permute.xlu0 %3215  ;;  %5856 = vmatprep.subr.bf16.mxu0 %v5618_v53  ;;  %vm14730_vm9 = vmmov %vm14729_vm6  ;;  %v5632_v9 = vld [vmem:[#allocation3 + $0x938] sm:$0xff]  ;;  %vm14731_vm5 = vcmask 367616  }
 0x3b0   : > { %4894 = vrot.lane.b32.xlu1 %v12083_v62, %s14642_s27  ;;  %5936 = vmatprep.subr.bf16.mxu1 %v2940_v30  ;;  %v5396_v30 = vld [vmem:[#allocation3 + $0x1d8] sm:$0xff] }
 0x3b1   : > { %5072 = vrot.lane.b32.xlu0 %v11733_v23, %s14648_s19  ;;  %5937 = vmatpush1.bf16.msra.mxu1 %v2939_v36  ;;  %v12228_v36 = vld [vmem:[#allocation2 + $0x28] sm:$0xff] }
 0x3b2   : > { %v3020_v42 = vpop.permute.xlu1 %3019  ;;  %5857 = vmatpush1.bf16.msra.mxu0 %v5617_v22  ;;  %5938 = vmatprep.subr.bf16.mxu1 %v5382_v5 }
 0x3b3   : > { %v3036_v40 = vsel %vm14729_vm6, %v11719_v38, %v3020_v42  ;;  %v3037_v55 = vsel %vm14730_vm9, %v3020_v42, %v12147_v59  ;;  %v12211_v48 = vpop.permute.xlu0 %3397  ;;  %5858 = vmatprep.subr.bf16.mxu0 %v12050_v33  ;;  %vm14732_vm6 = vcmask 228352  }
 0x3b4   : > { %v3420_v23 = vsel %vm3415_vm11, %v11322_v20, %v12211_v48  ;;  %3496 = vrot.lane.b32.xlu1 %v11964_v61, %s14649_s0  ;;  %vm14733_vm9 = vmmov %vm14732_vm6 }
 0x3b5   : > { %3446 = vst [vmem:[#allocation3 + $0x330] sm:$0xff] %v3420_v23  ;;  %3605 = vrot.lane.b32.xlu0 %v12083_v62, %s14650_s1  ;;  %5939 = vmatpush1.bf16.msra.mxu1 %v5381_v1  ;;  %v12232_v62 = vld [vmem:[#allocation2 + $0x60] sm:$0xff]  ;;  %v5646_v23 = vld [vmem:[#allocation3 + $0x9a8] sm:$0xff] }
 0x3b6   : > { %v3117_v38 = vpop.permute.xlu1 %3116  ;;  %5859 = vmatpush1.bf16.msra.mxu0 %v12046_v50  ;;  %5940 = vmatprep.subr.bf16.mxu1 %v3037_v55  ;;  %v5631_v50 = vld [vmem:[#allocation3 + $0x930] sm:$0xff] }
 0x3b7   : > { %v3133_v33 = vsel %vm3124_vm15, %v11728_v14, %v3117_v38  ;;  %v3134_v20 = vsel %vm3124_vm15, %v3117_v38, %v12176_v24  ;;  %v12226_v53 = vpop.permute.xlu0 %3312  ;;  %5860 = vmatprep.subr.bf16.mxu0 %v5632_v9  ;;  %v12257_v38 = vld [vmem:[#allocation2 + $0x68] sm:$0xff]  ;;  %v5138_v9 = vld [vmem:[#allocation2 + $0x20] sm:$0xff] }
 0x3b8   : > { %4977 = vrot.lane.b32.xlu1 %v12228_v36, %s14644_s28 }
 0x3b9   : > { %5086 = vrot.lane.b32.xlu0 %v12232_v62, %s14648_s19  ;;  %5941 = vmatpush1.bf16.msra.mxu1 %v3036_v40  ;;  %v5395_v40 = vld [vmem:[#allocation3 + $0x1d0] sm:$0xff] }
 0x3ba   : > { %v3214_v14 = vpop.permute.xlu1 %3213  ;;  %5861 = vmatpush1.bf16.msra.mxu0 %v5631_v50  ;;  %5942 = vmatprep.subr.bf16.mxu1 %v5396_v30 }
 0x3bb   : > { %v3230_v22 = vsel %vm3221_vm0, %v11739_v11, %v3214_v14  ;;  %v3231_v5 = vsel %vm3221_vm0, %v3214_v14, %v12201_v0  ;;  %v12240_v42 = vpop.permute.xlu0 %4878  ;;  %5862 = vmatprep.subr.bf16.mxu0 %v12075_v46 }
 0x3bc   : > { %v4903_v55 = vsel %vm14731_vm5, %v11165_v7, %v12240_v42  ;;  %3510 = vrot.lane.b32.xlu1 %v11984_v27, %s14649_s0  ;;  %vm14734_vm5 = vcmask 220160  }
 0x3bd   : > { %4929 = vst [vmem:[#allocation3 + $0x9b0] sm:$0xff] %v4903_v55  ;;  %3688 = vrot.lane.b32.xlu0 %v12228_v36, %s14652_s3  ;;  %5943 = vmatpush1.bf16.msra.mxu1 %v5395_v40 }
 0x3be   : > { %v3311_v11 = vpop.permute.xlu1 %3310  ;;  %5863 = vmatpush1.bf16.msra.mxu0 %v12071_v47  ;;  %5944 = vmatprep.subr.bf16.mxu1 %v3134_v20  ;;  %v5645_v47 = vld [vmem:[#allocation3 + $0x9a0] sm:$0xff]  ;;  %v5410_v20 = vld [vmem:[#allocation3 + $0x248] sm:$0xff] }
 0x3bf   : > { %v3327_v46 = vsel %vm3318_vm1, %v11748_v51, %v3311_v11  ;;  %v3328_v7 = vsel %vm3318_vm1, %v3311_v11, %v12226_v53  ;;  %v12255_v1 = vpop.permute.xlu0 %3409  ;;  %5864 = vmatprep.subr.bf16.mxu0 %v5646_v23 }
 0x3c0   : > { %4991 = vrot.lane.b32.xlu1 %v12257_v38, %s14644_s28 }
 0x3c1   : > { %5169 = vrot.lane.b32.xlu0 %v5138_v9, %s14651_s2  ;;  %5945 = vmatpush1.bf16.msra.mxu1 %v3133_v33  ;;  %v5409_v33 = vld [vmem:[#allocation3 + $0x240] sm:$0xff] }
 0x3c2   : > { %v3408_v50 = vpop.permute.xlu1 %3407  ;;  %5865 = vmatpush1.bf16.msra.mxu0 %v5645_v47  ;;  %5946 = vmatprep.subr.bf16.mxu1 %v5410_v20 }
 0x3c3   : > { %v12264_v51 = vsel %vm3415_vm11, %v11759_v29, %v3408_v50  ;;  %v12268_v30 = vsel %vm3415_vm11, %v3408_v50, %v12255_v1  ;;  %v12270_v14 = vpop.permute.xlu0 %3506  ;;  %5866 = vmatprep.subr.bf16.mxu0 %v12093_v60  ;;  %v5660_v29 = vld [vmem:[#allocation3 + $0xa18] sm:$0xff] }
 0x3c4   : > { %3593 = vrot.lane.b32.xlu1 %v11964_v61, %s14650_s1 }
 0x3c5   : > { %3702 = vrot.lane.b32.xlu0 %v12257_v38, %s14652_s3  ;;  %5947 = vmatpush1.bf16.msra.mxu1 %v5409_v33  ;;  %v5674_v33 = vld [vmem:[#allocation3 + $0xa88] sm:$0xff] }
 0x3c6   : > { %v3505_v55 = vpop.permute.xlu1 %3504  ;;  %5867 = vmatpush1.bf16.msra.mxu0 %v12089_v57  ;;  %5948 = vmatprep.subr.bf16.mxu1 %v3231_v5  ;;  %v5659_v57 = vld [vmem:[#allocation3 + $0xa10] sm:$0xff]  ;;  %v5424_v5 = vld [vmem:[#allocation3 + $0x2b8] sm:$0xff] }
 0x3c7   : > { %v12280_v40 = vsel %vm3512_vm10, %v11770_v12, %v3505_v55  ;;  %v12284_v60 = vsel %vm3512_vm10, %v3505_v55, %v12270_v14  ;;  %v12286_v11 = vpop.permute.xlu0 %3603  ;;  %5868 = vmatprep.subr.bf16.mxu0 %v5660_v29 }
 0x3c8   : > { %5074 = vrot.lane.b32.xlu1 %v12228_v36, %s14648_s19 }
 0x3c9   : > { %5183 = vrot.lane.b32.xlu0 %v12232_v62, %s14651_s2  ;;  %5949 = vmatpush1.bf16.msra.mxu1 %v3230_v22  ;;  %v5423_v22 = vld [vmem:[#allocation3 + $0x2b0] sm:$0xff] }
 0x3ca   : > { %v3602_v23 = vpop.permute.xlu1 %3601  ;;  %5869 = vmatpush1.bf16.msra.mxu0 %v5659_v57  ;;  %5950 = vmatprep.subr.bf16.mxu1 %v5424_v5 }
 0x3cb   : > { %v12294_v12 = vsel %vm14732_vm6, %v11783_v43, %v3602_v23  ;;  %v12298_v47 = vsel %vm14733_vm9, %v3602_v23, %v12286_v11  ;;  %v12300_v20 = vpop.permute.xlu0 %3700  ;;  %5870 = vmatprep.subr.bf16.mxu0 %v12112_v3  ;;  %v12310_v43 = vld [vmem:[%s14673_s5 + $0x10] ss:$28 sps:$4 sm:$0xff]   ;;  %vm14735_vm6 = vmmov %vm14734_vm5  ;;  %vm14736_vm9 = vcmask 211968  }
 0x3cc   : > { %3607 = vrot.lane.b32.xlu1 %v11984_v27, %s14650_s1 }
 0x3cd   : > { %3785 = vrot.lane.b32.xlu0 %v12228_v36, %s14653_s21  ;;  %5951 = vmatpush1.bf16.msra.mxu1 %v5423_v22  ;;  %v5688_v22 = vld [vmem:[#allocation3 + $0xaf8] sm:$0xff] }
 0x3ce   : > { %v3699_v50 = vpop.permute.xlu1 %3698  ;;  %5871 = vmatpush1.bf16.msra.mxu0 %v12108_v4  ;;  %5952 = vmatprep.subr.bf16.mxu1 %v3328_v7  ;;  %v5673_v4 = vld [vmem:[#allocation3 + $0xa80] sm:$0xff] }
 0x3cf   : > { %v12315_v3 = vsel %vm14734_vm5, %v11799_v25, %v3699_v50  ;;  %v12319_v55 = vsel %vm14735_vm6, %v3699_v50, %v12300_v20  ;;  %v12321_v29 = vpop.permute.xlu0 %3797  ;;  %5883 = vmatprep.subr.bf16.mxu0 %v5674_v33  ;;  %v5438_v25 = vld [vmem:[#allocation3 + $0x328] sm:$0xff]  ;;  %vm14737_vm5 = vmmov %vm14736_vm9  ;;  %vm14738_vm6 = vcmask 138240  }
 0x3d0   : > { %5088 = vrot.lane.b32.xlu1 %v12257_v38, %s14648_s19 }
 0x3d1   : > { %5266 = vrot.lane.b32.xlu0 %v5138_v9, %s14654_s12  ;;  %5873 = vmatmul.mubr.bf16.vlgmr.msra.gmra.mrb[20].mxu0 %v12310_v43  ;;  %v12340_v9 = vld [vmem:[#allocation4] sm:$0xff] }
 0x3d2   : > { %v3796_v7 = vpop.permute.xlu1 %3795  ;;  %5884 = vmatpush1.bf16.msra.mxu0 %v5673_v4  ;;  %5953 = vmatpush1.bf16.msra.mxu1 %v3327_v46 }
 0x3d3   : > { %v12329_v57 = vsel %vm14736_vm9, %v11813_v56, %v3796_v7  ;;  %v12333_v5 = vsel %vm14737_vm5, %v3796_v7, %v12321_v29  ;;  %v12335_v23 = vpop.permute.xlu0 %3894  ;;  %5885 = vmatprep.subr.bf16.mxu0 %v12126_v26  ;;  %5954 = vmatprep.subr.bf16.mxu1 %v5438_v25  ;;  %v5437_v56 = vld [vmem:[#allocation3 + $0x320] sm:$0xff]  ;;  %vm14739_vm9 = vmmov %vm14738_vm6  ;;  %vm14604_vm5 = vcmask 785408  }
 0x3d4   : > { %3690 = vrot.lane.b32.xlu1 %v11964_v61, %s14652_s3  ;;  %5915 = vmatprep.mubr.bf16.mxu0 %v12340_v9 }
 0x3d5   : > { %3799 = vrot.lane.b32.xlu0 %v12257_v38, %s14653_s21 }
 0x3d6   : > { %v3893_v46 = vpop.permute.xlu1 %3892  ;;  %5886 = vmatpush1.bf16.msra.mxu0 %v12122_v8  ;;  %5955 = vmatpush1.bf16.msra.mxu1 %v5437_v56  ;;  %v5687_v8 = vld [vmem:[#allocation3 + $0xaf0] sm:$0xff] }
 0x3d7   : > { %v12348_v26 = vsel %vm3900_vm8, %v11827_v52, %v3893_v46  ;;  %v12352_v50 = vsel %vm3900_vm8, %v3893_v46, %v12335_v23  ;;  %v12354_v33 = vpop.permute.xlu0 %3991  ;;  %5887 = vmatprep.subr.bf16.mxu0 %v5688_v22  ;;  %5956 = vmatprep.subr.bf16.mxu1 %v12268_v30  ;;  %v5452_v52 = vld [vmem:[#allocation3 + $0x398] sm:$0xff]  ;;  %v5466_v22 = vld [vmem:[#allocation3 + $0x408] sm:$0xff] }
 0x3d8   : > { %5171 = vrot.lane.b32.xlu1 %v12228_v36, %s14651_s2 }
 0x3d9   : > { %5280 = vrot.lane.b32.xlu0 %v12232_v62, %s14654_s12  ;;  %v5451_v62 = vld [vmem:[#allocation3 + $0x390] sm:$0xff] }
 0x3da   : > { %v3990_v4 = vpop.permute.xlu1 %3989  ;;  %5888 = vmatpush1.bf16.msra.mxu0 %v5687_v8  ;;  %5957 = vmatpush1.bf16.msra.mxu1 %v12264_v51  ;;  %v5702_v51 = vld [vmem:[#allocation3 + $0xb68] sm:$0xff] }
 0x3db   : > { %v12364_v7 = vsel %vm14738_vm6, %v11841_v37, %v3990_v4  ;;  %v12368_v25 = vsel %vm14739_vm9, %v3990_v4, %v12354_v33  ;;  %v12370_v30 = vpop.permute.xlu0 %4088  ;;  %5889 = vmatprep.subr.bf16.mxu0 %v12145_v45  ;;  %5969 = vmatprep.subr.bf16.mxu1 %v5452_v52  ;;  %vm14740_vm6 = vcmask 441344   ;;  %v5349_v52 = vld [vmem:[#allocation3 + $0x60] sm:$0xff] }
 0x3dc   : > { %3704 = vrot.lane.b32.xlu1 %v11984_v27, %s14652_s3  ;;  %vm14741_vm9 = vmmov %vm14740_vm6 }
 0x3dd   : > { %3882 = vrot.lane.b32.xlu0 %v12228_v36, %s14646_s23  ;;  %5959 = vmatmul.mubr.bf16.vlgmr.msra.gmra.mrb[12].mxu1 %v11854_v34 }
 0x3de   : > { %v4087_v37 = vpop.permute.xlu1 %4086  ;;  %5890 = vmatpush1.bf16.msra.mxu0 %v12141_v41  ;;  %5970 = vmatpush1.bf16.msra.mxu1 %v5451_v62 }
 0x3df   : > { %v12381_v56 = vsel %vm4094_vm7, %v11866_v31, %v4087_v37  ;;  %v12385_v45 = vsel %vm4094_vm7, %v4087_v37, %v12370_v30  ;;  %v12387_v46 = vpop.permute.xlu0 %4504  ;;  %5891 = vmatprep.subr.bf16.mxu0 %v5702_v51  ;;  %5971 = vmatprep.subr.bf16.mxu1 %v12284_v60  ;;  %v5701_v31 = vld [vmem:[#allocation3 + $0xb60] sm:$0xff]  ;;  %v5479_v37 = vld [vmem:[#allocation3 + $0x470] sm:$0xff]  ;;  %v5348_v51 = vld [vmem:[#allocation3 + $0x58] sm:$0xff] }
 0x3e0   : > { %v12393_v34 = vsel %vm14609_vm3, %v11926_v6, %v12387_v46  ;;  %5185 = vrot.lane.b32.xlu1 %v12257_v38, %s14651_s2  ;;  %6001 = vmatprep.mubr.bf16.mxu1 %v11860_v18 }
 0x3e1   : > { %3896 = vrot.lane.b32.xlu0 %v12257_v38, %s14646_s23 }
 0x3e2   : > { %v3206_v41 = vpop.permute.xlu1 %3205  ;;  %5892 = vmatpush1.bf16.msra.mxu0 %v5701_v31  ;;  %5972 = vmatpush1.bf16.msra.mxu1 %v12280_v40  ;;  %v12421_v40 = vld [vmem:[%s14673_s5 + $0x18] ss:$28 sps:$4 sm:$0xff]  }
 0x3e3   : > { %v12403_v60 = vsel %vm3221_vm0, %v12095_v32, %v3206_v41  ;;  %3254 = vst.msk [vmem:[#allocation3 + $0x260] sm:$0xff] %vm14608_vm2, %v3206_v41  ;;  %v12406_v6 = vpop.permute.xlu0 %4601  ;;  %5893 = vmatprep.subr.bf16.mxu0 %v12159_v28  ;;  %5973 = vmatprep.subr.bf16.mxu1 %v5466_v22  ;;  %v5465_v32 = vld [vmem:[#allocation3 + $0x400] sm:$0xff]  ;;  %v5342_v28 = vld [vmem:[#allocation3 + $0x28] sm:$0xff] }
 0x3e4   : > { %v12412_v18 = vsel %vm14605_vm4, %v11934_v49, %v12406_v6  ;;  %3787 = vrot.lane.b32.xlu1 %v11964_v61, %s14653_s21 }
 0x3e5   : > { %3979 = vrot.lane.b32.xlu0 %v12228_v36, %s14629_s25 }
 0x3e6   : > { %v12423_v8 = vpop.permute.xlu1 %4686  ;;  %5894 = vmatpush1.bf16.msra.mxu0 %v12155_v35  ;;  %5974 = vmatpush1.bf16.msra.mxu1 %v5465_v32 }
 0x3e7   : > { %v12429_v61 = vsel %vm14740_vm6, %v12128_v21, %v12423_v8  ;;  %v12431_v49 = vpop.permute.xlu0 %4698  ;;  %5975 = vmatprep.subr.bf16.mxu1 %v12298_v47  ;;  %6098 = vmatprep.subr.bf16.mxu0 %v5342_v28  ;;  %v5341_v21 = vld [vmem:[#allocation3 + $0x20] sm:$0xff]  ;;  %v5480_v47 = vld [vmem:[#allocation3 + $0x478] sm:$0xff]  ;;  %vm14742_vm6 = vcmask 375808  }
 0x3e8   : > { %v12437_v4 = vsel %vm14741_vm9, %v11944_v15, %v12431_v49  ;;  %5268 = vrot.lane.b32.xlu1 %v12228_v36, %s14654_s12  ;;  %vm14743_vm9 = vcmask 1039360  }
 0x3e9   : > { %3993 = vrot.lane.b32.xlu0 %v12257_v38, %s14629_s25  ;;  %9444 = vmatmul.mubr.msk.bf16.vlgmr.msra.gmra.mrb[20].mxu0 %vm14604_vm5, %v12421_v40  ;;  %vm14745_vm5 = vcmask 375808  }
 0x3ea   : > { %v12445_v35 = vpop.permute.xlu1 %3219  ;;  %5976 = vmatpush1.bf16.msra.mxu1 %v12294_v12  ;;  %6099 = vmatpush1.bf16.msra.mxu0 %v5341_v21  ;;  %v12462_v12 = vld [vmem:[%s14673_s5 + $0x4] ss:$28 sps:$4 sm:$0xff]  }
 0x3eb   : > { %3261 = vst.msk [vmem:[#allocation3 + $0x298] sm:$0xff] %vm14608_vm2, %v12445_v35  ;;  %v12450_v15 = vpop.permute.xlu0 %4795  ;;  %5977 = vmatprep.subr.bf16.mxu1 %v5480_v47  ;;  %6100 = vmatprep.subr.bf16.mxu0 %v5349_v52 }
 0x3ec   : > { %v12455_v62 = vsel %vm14742_vm6, %v11952_v63, %v12450_v15  ;;  %3801 = vrot.lane.b32.xlu1 %v11984_v27, %s14653_s21  ;;  %6130 = vmatprep.mubr.bf16.mxu0 %v12462_v12  ;;  %v5356_v63 = vld [vmem:[#allocation3 + $0x98] sm:$0xff]  ;;  %vm14744_vm6 = vmmov %vm14743_vm9 }
 0x3ed   : > { %4076 = vrot.lane.b32.xlu0 %v12228_v36, %s14630_s15 }
 0x3ee   : > { %v3303_v31 = vpop.permute.xlu1 %3302  ;;  %5978 = vmatpush1.bf16.msra.mxu1 %v5479_v37  ;;  %6101 = vmatpush1.bf16.msra.mxu0 %v5348_v51  ;;  %v5370_v37 = vld [vmem:[#allocation3 + $0x108] sm:$0xff] }
 0x3ef   : > { %v12469_v41 = vsel %vm3318_vm1, %v12161_v16, %v3303_v31  ;;  %3351 = vst.msk [vmem:[#allocation3 + $0x2d0] sm:$0xff] %vm14608_vm2, %v3303_v31  ;;  %v2830_v27 = vpop.permute.xlu0 %2829  ;;  %5979 = vmatprep.subr.bf16.mxu1 %v12319_v55  ;;  %6102 = vmatprep.subr.bf16.mxu0 %v5356_v63  ;;  %v5355_v16 = vld [vmem:[#allocation3 + $0x90] sm:$0xff]  ;;  %v5494_v55 = vld [vmem:[#allocation3 + $0x4e8] sm:$0xff] }
 0x3f0   : > { %v2844_v22 = vsel %vm14743_vm9, %v12077_v54, %v2830_v27  ;;  %v2845_v32 = vsel %vm14744_vm6, %v2830_v27, %v11660_v2  ;;  %5282 = vrot.lane.b32.xlu1 %v12257_v38, %s14654_s12  ;;  %v12489_v2 = vld [vmem:[#allocation2 + $0x30] sm:$0xff]  ;;  %vm14746_vm9 = vcmask 1031168   ;;  %v5369_v27 = vld [vmem:[#allocation3 + $0x100] sm:$0xff] }
 0x3f1   : > { %4090 = vrot.lane.b32.xlu0 %v12257_v38, %s14630_s15  ;;  %vm14747_vm6 = vmmov %vm14746_vm9  ;;  %v12500_v31 = vld [vmem:[#allocation2 + $0x70] sm:$0xff] }
 0x3f2   : > { %v12481_v28 = vpop.permute.xlu1 %4783  ;;  %5980 = vmatpush1.bf16.msra.mxu1 %v12315_v3  ;;  %6103 = vmatpush1.bf16.msra.mxu0 %v5355_v16  ;;  %v5493_v3 = vld [vmem:[#allocation3 + $0x4e0] sm:$0xff] }
 0x3f3   : > { %v12487_v54 = vsel %vm14745_vm5, %v12186_v10, %v12481_v28  ;;  %v2927_v21 = vpop.permute.xlu0 %2926  ;;  %5981 = vmatprep.subr.bf16.mxu1 %v5494_v55  ;;  %6104 = vmatprep.subr.bf16.mxu0 %v2845_v32  ;;  %vm14748_vm5 = vcmask 965632   ;;  %v5508_v32 = vld [vmem:[#allocation3 + $0x558] sm:$0xff] }
 0x3f4   : > { %v2941_v47 = vsel %vm14746_vm9, %v12114_v39, %v2927_v21  ;;  %v2942_v52 = vsel %vm14747_vm6, %v2927_v21, %v11672_v19  ;;  %3884 = vrot.lane.b32.xlu1 %v12489_v2, %s14646_s23  ;;  %v14749_v39 = vld [vmem:[#allocation24_spill] sm:$0xff]  ;;  %vm14750_vm9 = vmmov %vm14748_vm5  ;;  %vm14751_vm6 = vcmask 367616  }
 0x3f5   : > { %4177 = vrot.lane.b32.xlu0 %v12228_v36, %s14631_s16  ;;  %v5384_v21 = vld [vmem:[#allocation3 + $0x178] sm:$0xff] }
 0x3f6   : > { %v3317_v10 = vpop.permute.xlu1 %3316  ;;  %5982 = vmatpush1.bf16.msra.mxu1 %v5493_v3  ;;  %6105 = vmatpush1.bf16.msra.mxu0 %v2844_v22 }
 0x3f7   : > { %3358 = vst.msk [vmem:[#allocation3 + $0x308] sm:$0xff] %vm14608_vm2, %v3317_v10  ;;  %v3024_v51 = vpop.permute.xlu0 %3023  ;;  %5983 = vmatprep.subr.bf16.mxu1 %v12333_v5  ;;  %6106 = vmatprep.subr.bf16.mxu0 %v5370_v37  ;;  %v14752_v37 = vld [vmem:[#allocation27_spill] sm:$0xff] }
 0x3f8   : > { %v3038_v19 = vsel %vm14748_vm5, %v12147_v59, %v3024_v51  ;;  %v3039_v63 = vsel %vm14750_vm9, %v3024_v51, %v14749_v39  ;;  %3898 = vrot.lane.b32.xlu1 %v12500_v31, %s14646_s23  ;;  %vm14755_vm5 = vmmov %vm14751_vm6  ;;  %vm14758_vm9 = vcmask 359424  }
 0x3f9   : > { %4193 = vrot.lane.b32.xlu0 %v12257_v38, %s14631_s16 }
 0x3fa   : > { %v3400_v22 = vpop.permute.xlu1 %3399  ;;  %5984 = vmatpush1.bf16.msra.mxu1 %v12329_v57  ;;  %6107 = vmatpush1.bf16.msra.mxu0 %v5369_v27  ;;  %v5507_v57 = vld [vmem:[#allocation3 + $0x550] sm:$0xff] }
 0x3fb   : > { %v12514_v5 = vsel %vm3415_vm11, %v12211_v48, %v3400_v22  ;;  %3448 = vst.msk [vmem:[#allocation3 + $0x340] sm:$0xff] %vm14608_vm2, %v3400_v22  ;;  %v3121_v59 = vpop.permute.xlu0 %3120  ;;  %5985 = vmatprep.subr.bf16.mxu1 %v5508_v32  ;;  %6108 = vmatprep.subr.bf16.mxu0 %v2942_v52  ;;  %v5398_v22 = vld [vmem:[#allocation3 + $0x1e8] sm:$0xff] }
 0x3fc   : > { %v3135_v16 = vsel %vm3124_vm15, %v12176_v24, %v3121_v59  ;;  %v3136_v55 = vsel %vm3124_vm15, %v3121_v59, %v12182_v13  ;;  %3981 = vrot.lane.b32.xlu1 %v12489_v2, %s14629_s25  ;;  %v5536_v59 = vld [vmem:[#allocation3 + $0x638] sm:$0xff] }
 0x3fd   : > { %4284 = vrot.lane.b32.xlu0 %v12228_v36, %s14632_s26 }
 0x3fe   : > { %v12525_v48 = vpop.permute.xlu1 %4880  ;;  %5986 = vmatpush1.bf16.msra.mxu1 %v5507_v57  ;;  %6109 = vmatpush1.bf16.msra.mxu0 %v2941_v47  ;;  %v5383_v47 = vld [vmem:[#allocation3 + $0x170] sm:$0xff] }
 0x3ff   : > { %v12530_v52 = vsel %vm14751_vm6, %v12240_v42, %v12525_v48  ;;  %v3218_v24 = vpop.permute.xlu0 %3217  ;;  %5987 = vmatprep.subr.bf16.mxu1 %v12352_v50  ;;  %6110 = vmatprep.subr.bf16.mxu0 %v5384_v21  ;;  %v5522_v50 = vld [vmem:[#allocation3 + $0x5c8] sm:$0xff]  ;;  %vm14759_vm6 = vcmask 441344  }
 0x400   : > { %v12535_v13 = vsel %vm3221_vm0, %v12201_v0, %v3218_v24  ;;  %v3233_v3 = vsel %vm3221_vm0, %v3218_v24, %v12445_v35  ;;  %3995 = vrot.lane.b32.xlu1 %v12500_v31, %s14629_s25 }
 0x401   : > { %4300 = vrot.lane.b32.xlu0 %v12257_v38, %s14632_s26 }
 0x402   : > { %v12543_v42 = vpop.permute.xlu1 %4191  ;;  %5988 = vmatpush1.bf16.msra.mxu1 %v12348_v26  ;;  %6111 = vmatpush1.bf16.msra.mxu0 %v5383_v47  ;;  %v5521_v26 = vld [vmem:[#allocation3 + $0x5c0] sm:$0xff] }
 0x403   : > { %v4210_v0 = vsel %vm4199_vm12, %v14752_v37, %v12543_v42  ;;  %v3315_v51 = vpop.permute.xlu0 %3314  ;;  %5989 = vmatprep.subr.bf16.mxu1 %v5522_v50  ;;  %6112 = vmatprep.subr.bf16.mxu0 %v3039_v63  ;;  %v14753_v63 = vld [vmem:[#allocation28_spill] sm:$0xff] }
 0x404   : > { %v12551_v35 = vsel %vm3318_vm1, %v12226_v53, %v3315_v51  ;;  %v12554_v39 = vsel %vm3318_vm1, %v3315_v51, %v3317_v10  ;;  %4078 = vrot.lane.b32.xlu1 %v12489_v2, %s14630_s15  ;;  %v5397_v10 = vld [vmem:[#allocation3 + $0x1e0] sm:$0xff]  ;;  %v14757_v37 = vld [vmem:[#allocation8_spill] sm:$0xff] }
 0x405   : > { %4391 = vrot.lane.b32.xlu0 %v12228_v36, %s14633_s24 }
 0x406   : > { %v12560_v27 = vpop.permute.xlu1 %4298  ;;  %5990 = vmatpush1.bf16.msra.mxu1 %v5521_v26  ;;  %6113 = vmatpush1.bf16.msra.mxu0 %v3038_v19 }
 0x407   : > { %v12565_v53 = vsel %vm4306_vm13, %v14753_v63, %v12560_v27  ;;  %v12567_v32 = vpop.permute.xlu0 %3411  ;;  %5991 = vmatprep.subr.bf16.mxu1 %v12368_v25  ;;  %6114 = vmatprep.subr.bf16.mxu0 %v5398_v22  ;;  %v14754_v25 = vld [vmem:[#allocation29_spill] sm:$0xff]  ;;  %v12655_v63 = vld [vmem:[#allocation2 + $0x38] sm:$0xff] }
 0x408   : > { %v12573_v36 = vsel %vm3415_vm11, %v12255_v1, %v12567_v32  ;;  %4092 = vrot.lane.b32.xlu1 %v12500_v31, %s14630_s15 }
 0x409   : > { %4407 = vrot.lane.b32.xlu0 %v12257_v38, %s14633_s24 }
 0x40a   : > { %v12579_v19 = vpop.permute.xlu1 %4405  ;;  %5992 = vmatpush1.bf16.msra.mxu1 %v12364_v7  ;;  %6115 = vmatpush1.bf16.msra.mxu0 %v5397_v10  ;;  %v5535_v7 = vld [vmem:[#allocation3 + $0x630] sm:$0xff] }
 0x40b   : > { %v12585_v57 = vsel %vm4413_vm14, %v14754_v25, %v12579_v19  ;;  %v12587_v1 = vpop.permute.xlu0 %4892  ;;  %5993 = vmatprep.subr.bf16.mxu1 %v5536_v59  ;;  %6116 = vmatprep.subr.bf16.mxu0 %v3136_v55  ;;  %v12676_v25 = vld [vmem:[#allocation2 + $0x78] sm:$0xff] }
 0x40c   : > { %v12592_v38 = vsel %vm14755_vm5, %v11962_v44, %v12587_v1  ;;  %4179 = vrot.lane.b32.xlu1 %v12489_v2, %s14631_s16  ;;  %v14756_v44 = vld [vmem:[#allocation12_spill] sm:$0xff]  ;;  %vm14760_vm5 = vcmask 375808  }
 0x40d   : > { %4494 = vrot.lane.b32.xlu0 %v12489_v2, %s14634_s13 }
 0x40e   : > { %v12598_v21 = vpop.permute.xlu1 %4506  ;;  %5994 = vmatpush1.bf16.msra.mxu1 %v5535_v7  ;;  %6117 = vmatpush1.bf16.msra.mxu0 %v3135_v16  ;;  %v5411_v16 = vld [vmem:[#allocation3 + $0x250] sm:$0xff] }
 0x40f   : > { %v12603_v55 = vsel %vm14609_vm3, %v12387_v46, %v12598_v21  ;;  %v12605_v24 = vpop.permute.xlu0 %3494  ;;  %5995 = vmatprep.subr.bf16.mxu1 %v12385_v45  ;;  %6118 = vmatprep.subr.bf16.mxu0 %v12403_v60  ;;  %v5550_v45 = vld [vmem:[#allocation3 + $0x6a8] sm:$0xff] }
 0x410   : > { %v12612_v47 = vsel %vm3512_vm10, %v14756_v44, %v12605_v24  ;;  %4195 = vrot.lane.b32.xlu1 %v12500_v31, %s14631_s16 }
 0x411   : > { %4508 = vrot.lane.b32.xlu0 %v12500_v31, %s14634_s13 }
 0x412   : > { %v12618_v46 = vpop.permute.xlu1 %4603  ;;  %5996 = vmatpush1.bf16.msra.mxu1 %v12381_v56  ;;  %6119 = vmatpush1.bf16.msra.mxu0 %v5411_v16  ;;  %v5549_v56 = vld [vmem:[#allocation3 + $0x6a0] sm:$0xff] }
 0x413   : > { %v12624_v60 = vsel %vm14605_vm4, %v12406_v6, %v12618_v46  ;;  %v12626_v50 = vpop.permute.xlu0 %4975  ;;  %5997 = vmatprep.subr.bf16.mxu1 %v5550_v45  ;;  %6120 = vmatprep.subr.bf16.mxu0 %v3233_v3  ;;  %v14761_v16 = vld [vmem:[#allocation13_spill] sm:$0xff] }
 0x414   : > { %v12631_v51 = vsel %vm14758_vm9, %v14757_v37, %v12626_v50  ;;  %4286 = vrot.lane.b32.xlu1 %v12489_v2, %s14632_s26  ;;  %v5578_v37 = vld [vmem:[#allocation3 + $0x788] sm:$0xff] }
 0x415   : > { %4591 = vrot.lane.b32.xlu0 %v12489_v2, %s14636_s14 }
 0x416   : > { %v12637_v26 = vpop.permute.xlu1 %4700  ;;  %5998 = vmatpush1.bf16.msra.mxu1 %v5549_v56  ;;  %6121 = vmatpush1.bf16.msra.mxu0 %v12535_v13  ;;  %v5425_v13 = vld [vmem:[#allocation3 + $0x2c0] sm:$0xff] }
 0x417   : > { %v12643_v6 = vsel %vm14759_vm6, %v12431_v49, %v12637_v26  ;;  %v12645_v3 = vpop.permute.xlu0 %3508  ;;  %5999 = vmatprep.subr.bf16.mxu1 %v4210_v0  ;;  %6122 = vmatprep.subr.bf16.mxu0 %v12469_v41  ;;  %v5556_v49 = vld [vmem:[#allocation3 + $0x6d8] sm:$0xff]  ;;  %vm14762_vm6 = vcmask 228352  }
 0x418   : > { %v12651_v22 = vsel %vm3512_vm10, %v12270_v14, %v12645_v3  ;;  %4302 = vrot.lane.b32.xlu1 %v12500_v31, %s14632_s26  ;;  %v5564_v41 = vld [vmem:[#allocation3 + $0x718] sm:$0xff] }
 0x419   : > { %4181 = vrot.lane.b32.xlu0 %v12655_v63, %s14631_s16 }
 0x41a   : > { %v12659_v10 = vpop.permute.xlu1 %4797  ;;  %6000 = vmatpush1.bf16.msra.mxu1 %v5556_v49  ;;  %6123 = vmatpush1.bf16.msra.mxu0 %v5425_v13  ;;  %v14764_v13 = vld [vmem:[#allocation9_spill] sm:$0xff] }
 0x41b   : > { %v12664_v14 = vsel %vm14760_vm5, %v12450_v15, %v12659_v10  ;;  %v12666_v0 = vpop.permute.xlu0 %4989  ;;  %6012 = vmatprep.subr.bf16.mxu1 %v5564_v41  ;;  %6124 = vmatprep.subr.bf16.mxu0 %v12554_v39  ;;  %v12683_v15 = vld [vmem:[%s14673_s5 + $0x8] ss:$28 sps:$4 sm:$0xff]   ;;  %v5563_v39 = vld [vmem:[#allocation3 + $0x710] sm:$0xff]  ;;  %vm14763_vm5 = vcmask 367616  }
 0x41c   : > { %v12672_v59 = vsel %vm14758_vm9, %v11972_v17, %v12666_v0  ;;  %4393 = vrot.lane.b32.xlu1 %v12489_v2, %s14633_s24  ;;  %vm14765_vm9 = vcmask 293888  }
 0x41d   : > { %4607 = vrot.lane.b32.xlu0 %v12676_v25, %s14636_s14  ;;  %6002 = vmatmul.mubr.bf16.vlgmr.msra.gmra.mrb[12].mxu1 %v12683_v15 }
 0x41e   : > { %v3414_v7 = vpop.permute.xlu1 %3413  ;;  %6013 = vmatpush1.bf16.msra.mxu1 %v5563_v39  ;;  %6125 = vmatpush1.bf16.msra.mxu0 %v12551_v35  ;;  %v12704_v35 = vld [vmem:[%s14673_s5 + $0x14] ss:$28 sps:$4 sm:$0xff]   ;;  %v5577_v39 = vld [vmem:[#allocation3 + $0x780] sm:$0xff] }
 0x41f   : > { %v3427_v17 = vsel %vm3415_vm11, %v12567_v32, %v3414_v7  ;;  %3455 = vst.msk [vmem:[#allocation3 + $0x378] sm:$0xff] %vm14608_vm2, %v3414_v7  ;;  %v12690_v44 = vpop.permute.xlu0 %3591  ;;  %6014 = vmatprep.subr.bf16.mxu1 %v12565_v53  ;;  %6126 = vmatprep.subr.bf16.mxu0 %v12514_v5  ;;  %v5570_v53 = vld [vmem:[#allocation3 + $0x748] sm:$0xff]  ;;  %v5439_v5 = vld [vmem:[#allocation3 + $0x330] sm:$0xff] }
 0x420   : > { %v12697_v45 = vsel %vm14762_vm6, %v14761_v16, %v12690_v44  ;;  %4409 = vrot.lane.b32.xlu1 %v12500_v31, %s14633_s24  ;;  %6044 = vmatprep.mubr.bf16.mxu1 %v12704_v35 }
 0x421   : > { %4688 = vrot.lane.b32.xlu0 %v12489_v2, %s14639_s17 }
 0x422   : > { %v12709_v32 = vpop.permute.xlu1 %4894  ;;  %6015 = vmatpush1.bf16.msra.mxu1 %v5570_v53  ;;  %6127 = vmatpush1.bf16.msra.mxu0 %v5439_v5 }
 0x423   : > { %v12714_v56 = vsel %vm14763_vm5, %v12587_v1, %v12709_v32  ;;  %v12716_v49 = vpop.permute.xlu0 %5072  ;;  %6016 = vmatprep.subr.bf16.mxu1 %v5578_v37  ;;  %6128 = vmatprep.subr.bf16.mxu0 %v3427_v17  ;;  %vm14766_vm5 = vcmask 359424   ;;  %v12762_v37 = vld [vmem:[%s14673_s5 + $0xc] ss:$28 sps:$4 sm:$0xff]  }
 0x424   : > { %v12721_v41 = vsel %vm14765_vm9, %v14764_v13, %v12716_v49  ;;  %4496 = vrot.lane.b32.xlu1 %v12655_v63, %s14634_s13 }
 0x425   : > { %4288 = vrot.lane.b32.xlu0 %v12655_v63, %s14632_s26 }
 0x426   : > { %v3497_v7 = vpop.permute.xlu1 %3496  ;;  %6017 = vmatpush1.bf16.msra.mxu1 %v5577_v39  ;;  %6129 = vmatpush1.bf16.msra.mxu0 %v12573_v36  ;;  %v5584_v36 = vld [vmem:[#allocation3 + $0x7b8] sm:$0xff] }
 0x427   : > { %v3518_v1 = vsel %vm3512_vm10, %v12605_v24, %v3497_v7  ;;  %3545 = vst.msk [vmem:[#allocation3 + $0x3b0] sm:$0xff] %vm14608_vm2, %v3497_v7  ;;  %v12731_v17 = vpop.permute.xlu0 %3605  ;;  %6018 = vmatprep.subr.bf16.mxu1 %v12585_v57  ;;  %v12746_v24 = vld [vmem:[%s14673_s5] ss:$28 sps:$4 sm:$0xff]  }
 0x428   : > { %v12737_v16 = vsel %vm14762_vm6, %v12286_v11, %v12731_v17  ;;  %4510 = vrot.lane.b32.xlu1 %v12676_v25, %s14634_s13  ;;  %6141 = vmatprep.subr.bf16.mxu0 %v3518_v1  ;;  %v5592_v11 = vld [vmem:[#allocation3 + $0x7f8] sm:$0xff]  ;;  %v14767_v1 = vld [vmem:[#allocation14_spill] sm:$0xff]  ;;  %vm14768_vm6 = vcmask 220160  }
 0x429   : > { %4704 = vrot.lane.b32.xlu0 %v12676_v25, %s14639_s17  ;;  %6131 = vmatmul.mubr.bf16.vlgmr.msra.gmra.mrb[24].mxu0 %v12746_v24 }
 0x42a   : > { %v12749_v57 = vpop.permute.xlu1 %4977  ;;  %6019 = vmatpush1.bf16.msra.mxu1 %v5584_v36  ;;  %6142 = vmatpush1.bf16.msra.mxu0 %v12612_v47 }
 0x42b   : > { %v12755_v53 = vsel %vm14766_vm5, %v12626_v50, %v12749_v57  ;;  %v12757_v5 = vpop.permute.xlu0 %5086  ;;  %6020 = vmatprep.subr.bf16.mxu1 %v5592_v11  ;;  %6173 = vmatprep.mubr.bf16.mxu0 %v12762_v37  ;;  %v5591_v50 = vld [vmem:[#allocation3 + $0x7f0] sm:$0xff] }
 0x42c   : > { %v12768_v47 = vsel %vm14765_vm9, %v11982_v58, %v12757_v5  ;;  %4593 = vrot.lane.b32.xlu1 %v12655_v63, %s14636_s14  ;;  %vm14770_vm9 = vcmask 285696  }
 0x42d   : > { %4785 = vrot.lane.b32.xlu0 %v12489_v2, %s14641_s18 }
 0x42e   : > { %v3511_v13 = vpop.permute.xlu1 %3510  ;;  %6021 = vmatpush1.bf16.msra.mxu1 %v5591_v50  ;;  %v14769_v50 = vld [vmem:[#allocation10_spill] sm:$0xff] }
 0x42f   : > { %v3524_v39 = vsel %vm3512_vm10, %v12645_v3, %v3511_v13  ;;  %3552 = vst.msk [vmem:[#allocation3 + $0x3e8] sm:$0xff] %vm14608_vm2, %v3511_v13  ;;  %v3689_v7 = vpop.permute.xlu0 %3688  ;;  %6022 = vmatprep.subr.bf16.mxu1 %v12603_v55  ;;  %v5606_v3 = vld [vmem:[#allocation3 + $0x868] sm:$0xff] }
 0x430   : > { %v12780_v58 = vsel %vm14768_vm6, %v14767_v1, %v3689_v7  ;;  %4605 = vrot.lane.b32.xlu1 %v12500_v31, %s14636_s14  ;;  %6143 = vmatprep.subr.bf16.mxu0 %v3524_v39  ;;  %vm14771_vm6 = vcmask 228352  }
 0x431   : > { %4395 = vrot.lane.b32.xlu0 %v12655_v63, %s14633_s24  ;;  %6144 = vmatpush1.bf16.msra.mxu0 %v12651_v22  ;;  %v5605_v22 = vld [vmem:[#allocation3 + $0x860] sm:$0xff] }
 0x432   : > { %v12787_v36 = vpop.permute.xlu1 %4991  ;;  %6023 = vmatpush1.bf16.msra.mxu1 %v12393_v34 }
 0x433   : > { %v12793_v55 = vsel %vm14766_vm5, %v12666_v0, %v12787_v36  ;;  %v5170_v11 = vpop.permute.xlu0 %5169  ;;  %6024 = vmatprep.subr.bf16.mxu1 %v5606_v3  ;;  %vm14772_vm5 = vcmask 220160  }
 0x434   : > { %v12797_v13 = vsel %vm14770_vm9, %v14769_v50, %v5170_v11  ;;  %4197 = vrot.lane.b32.xlu1 %v12676_v25, %s14631_s16  ;;  %vm14773_vm9 = vcmask 293888  }
 0x435   : > { %4801 = vrot.lane.b32.xlu0 %v12676_v25, %s14641_s18 }
 0x436   : > { %v3594_v34 = vpop.permute.xlu1 %3593  ;;  %6025 = vmatpush1.bf16.msra.mxu1 %v5605_v22 }
 0x437   : > { %v3615_v39 = vsel %vm14771_vm6, %v12690_v44, %v3594_v34  ;;  %3642 = vst.msk [vmem:[#allocation3 + $0x420] sm:$0xff] %vm14608_vm2, %v3594_v34  ;;  %v3703_v0 = vpop.permute.xlu0 %3702  ;;  %6026 = vmatprep.subr.bf16.mxu1 %v12624_v60  ;;  %v14774_v44 = vld [vmem:[#allocation25_spill] sm:$0xff]  ;;  %vm14775_vm6 = vcmask 285696  }
 0x438   : > { %v12809_v1 = vsel %vm14772_vm5, %v12300_v20, %v3703_v0  ;;  %4690 = vrot.lane.b32.xlu1 %v12655_v63, %s14639_s17  ;;  %6145 = vmatprep.subr.bf16.mxu0 %v3615_v39  ;;  %vm14776_vm5 = vcmask 228352  }
 0x439   : > { %4882 = vrot.lane.b32.xlu0 %v12489_v2, %s14642_s27  ;;  %6146 = vmatpush1.bf16.msra.mxu0 %v12697_v45  ;;  %v5619_v45 = vld [vmem:[#allocation3 + $0x8d0] sm:$0xff] }
 0x43a   : > { %v12816_v3 = vpop.permute.xlu1 %5074  ;;  %6027 = vmatpush1.bf16.msra.mxu1 %v12412_v18 }
 0x43b   : > { %v12822_v60 = vsel %vm14773_vm9, %v12716_v49, %v12816_v3  ;;  %v5184_v20 = vpop.permute.xlu0 %5183  ;;  %6028 = vmatprep.subr.bf16.mxu1 %v12429_v61  ;;  %v14777_v61 = vld [vmem:[#allocation15_spill] sm:$0xff]  ;;  %vm14778_vm9 = vcmask 211968  }
 0x43c   : > { %v12827_v50 = vsel %vm14775_vm6, %v14774_v44, %v5184_v20  ;;  %4702 = vrot.lane.b32.xlu1 %v12500_v31, %s14639_s17  ;;  %vm14779_vm6 = vcmask 293888   ;;  %v14780_v44 = vld [vmem:[#allocation11_spill] sm:$0xff] }
 0x43d   : > { %4896 = vrot.lane.b32.xlu0 %v12500_v31, %s14642_s27 }
 0x43e   : > { %v3608_v18 = vpop.permute.xlu1 %3607  ;;  %6029 = vmatpush1.bf16.msra.mxu1 %v5619_v45 }
 0x43f   : > { %v3621_v49 = vsel %vm14776_vm5, %v12731_v17, %v3608_v18  ;;  %3649 = vst.msk [vmem:[#allocation3 + $0x458] sm:$0xff] %vm14608_vm2, %v3608_v18  ;;  %v3786_v22 = vpop.permute.xlu0 %3785  ;;  %6030 = vmatprep.subr.bf16.mxu1 %v12643_v6  ;;  %vm14781_vm5 = vcmask 277504  }
 0x440   : > { %v3808_v34 = vsel %vm14778_vm9, %v14777_v61, %v3786_v22  ;;  %4304 = vrot.lane.b32.xlu1 %v12676_v25, %s14632_s26  ;;  %6147 = vmatprep.subr.bf16.mxu0 %v3621_v49  ;;  %vm14782_vm9 = vcmask 220160  }
 0x441   : > { %4979 = vrot.lane.b32.xlu0 %v12489_v2, %s14644_s28  ;;  %6148 = vmatpush1.bf16.msra.mxu0 %v12737_v16  ;;  %v5633_v16 = vld [vmem:[#allocation3 + $0x940] sm:$0xff] }
 0x442   : > { %v12844_v39 = vpop.permute.xlu1 %5088  ;;  %6031 = vmatpush1.bf16.msra.mxu1 %v12437_v4 }
 0x443   : > { %v12850_v6 = vsel %vm14779_vm6, %v12757_v5, %v12844_v39  ;;  %v5267_v17 = vpop.permute.xlu0 %5266  ;;  %6032 = vmatprep.subr.bf16.mxu1 %v12487_v54  ;;  %vm14783_vm6 = vcmask 211968  }
 0x444   : > { %v12855_v45 = vsel %vm14781_vm5, %v14780_v44, %v5267_v17  ;;  %4787 = vrot.lane.b32.xlu1 %v12655_v63, %s14641_s18  ;;  %vm14784_vm5 = vcmask 285696  }
 0x445   : > { %4993 = vrot.lane.b32.xlu0 %v12500_v31, %s14644_s28 }
 0x446   : > { %v3691_v4 = vpop.permute.xlu1 %3690  ;;  %6033 = vmatpush1.bf16.msra.mxu1 %v5633_v16 }
 0x447   : > { %v3712_v18 = vsel %vm14782_vm9, %v3689_v7, %v3691_v4  ;;  %3739 = vst.msk [vmem:[#allocation3 + $0x490] sm:$0xff] %vm14608_vm2, %v3691_v4  ;;  %v3800_v5 = vpop.permute.xlu0 %3799  ;;  %6034 = vmatprep.subr.bf16.mxu1 %v12664_v14  ;;  %vm14786_vm9 = vcmask 277504  }
 0x448   : > { %v3814_v54 = vsel %vm14783_vm6, %v12321_v29, %v3800_v5  ;;  %4799 = vrot.lane.b32.xlu1 %v12500_v31, %s14641_s18  ;;  %6149 = vmatprep.subr.bf16.mxu0 %v3712_v18  ;;  %v14785_v29 = vld [vmem:[#allocation26_spill] sm:$0xff]  ;;  %vm14787_vm6 = vcmask 220160  }
 0x449   : > { %5076 = vrot.lane.b32.xlu0 %v12489_v2, %s14648_s19  ;;  %6150 = vmatpush1.bf16.msra.mxu0 %v12780_v58  ;;  %v5647_v58 = vld [vmem:[#allocation3 + $0x9b0] sm:$0xff] }
 0x44a   : > { %v12871_v49 = vpop.permute.xlu1 %5171  ;;  %6035 = vmatpush1.bf16.msra.mxu1 %v12455_v62 }
 0x44b   : > { %v5195_v7 = vsel %vm14784_vm5, %v5170_v11, %v12871_v49  ;;  %v5281_v14 = vpop.permute.xlu0 %5280  ;;  %6036 = vmatprep.subr.bf16.mxu1 %v12530_v52  ;;  %v14788_v52 = vld [vmem:[#allocation16_spill] sm:$0xff] }
 0x44c   : > { %v12879_v61 = vsel %vm14786_vm9, %v14785_v29, %v5281_v14  ;;  %4411 = vrot.lane.b32.xlu1 %v12676_v25, %s14633_s24  ;;  %vm14789_vm9 = vcmask 211968  }
 0x44d   : > { %5090 = vrot.lane.b32.xlu0 %v12500_v31, %s14648_s19 }
 0x44e   : > { %v3705_v44 = vpop.permute.xlu1 %3704  ;;  %6037 = vmatpush1.bf16.msra.mxu1 %v5647_v58 }
 0x44f   : > { %v3718_v62 = vsel %vm14787_vm6, %v3703_v0, %v3705_v44  ;;  %3746 = vst.msk [vmem:[#allocation3 + $0x4c8] sm:$0xff] %vm14608_vm2, %v3705_v44  ;;  %v3883_v11 = vpop.permute.xlu0 %3882  ;;  %6038 = vmatprep.subr.bf16.mxu1 %v12714_v56  ;;  %vm14791_vm6 = vcmask 138240  }
 0x450   : > { %v3905_v16 = vsel %vm3900_vm8, %v14788_v52, %v3883_v11  ;;  %4884 = vrot.lane.b32.xlu1 %v12655_v63, %s14642_s27  ;;  %6151 = vmatprep.subr.bf16.mxu0 %v3718_v62  ;;  %v14797_v62 = vld [vmem:[#allocation20_spill] sm:$0xff] }
 0x451   : > { %5173 = vrot.lane.b32.xlu0 %v12489_v2, %s14651_s2  ;;  %6152 = vmatpush1.bf16.msra.mxu0 %v12809_v1 }
 0x452   : > { %v12895_v4 = vpop.permute.xlu1 %5185  ;;  %6039 = vmatpush1.bf16.msra.mxu1 %v12592_v38 }
 0x453   : > { %v5201_v0 = vsel %vm14784_vm5, %v5184_v20, %v12895_v4  ;;  %v3897_v56 = vpop.permute.xlu0 %3896  ;;  %6040 = vmatprep.subr.bf16.mxu1 %v12755_v53  ;;  %v14790_v53 = vld [vmem:[#allocation17_spill] sm:$0xff]  ;;  %vm14792_vm5 = vcmask 277504  }
 0x454   : > { %v3911_v18 = vsel %vm3900_vm8, %v12335_v23, %v3897_v56  ;;  %4898 = vrot.lane.b32.xlu1 %v12676_v25, %s14642_s27 }
 0x455   : > { %5187 = vrot.lane.b32.xlu0 %v12500_v31, %s14651_s2 }
 0x456   : > { %v3788_v1 = vpop.permute.xlu1 %3787  ;;  %6041 = vmatpush1.bf16.msra.mxu1 %v12631_v51 }
 0x457   : > { %v3809_v38 = vsel %vm14789_vm9, %v3786_v22, %v3788_v1  ;;  %3836 = vst.msk [vmem:[#allocation3 + $0x500] sm:$0xff] %vm14608_vm2, %v3788_v1  ;;  %v3980_v20 = vpop.permute.xlu0 %3979  ;;  %6042 = vmatprep.subr.bf16.mxu1 %v12793_v55  ;;  %vm14793_vm9 = vmmov %vm14791_vm6 }
 0x458   : > { %v4002_v29 = vsel %vm14791_vm6, %v14790_v53, %v3980_v20  ;;  %4981 = vrot.lane.b32.xlu1 %v12655_v63, %s14644_s28  ;;  %6153 = vmatprep.subr.bf16.mxu0 %v3809_v38  ;;  %vm14794_vm6 = vcmask 211968  }
 0x459   : > { %5270 = vrot.lane.b32.xlu0 %v12489_v2, %s14654_s12  ;;  %6154 = vmatpush1.bf16.msra.mxu0 %v3808_v34 }
 0x45a   : > { %v12917_v23 = vpop.permute.xlu1 %5268  ;;  %6043 = vmatpush1.bf16.msra.mxu1 %v12672_v59 }
 0x45b   : > { %v5292_v51 = vsel %vm14792_vm5, %v5267_v17, %v12917_v23  ;;  %v3994_v22 = vpop.permute.xlu0 %3993  ;;  %6055 = vmatprep.subr.bf16.mxu1 %v12822_v60 }
 0x45c   : > { %v12925_v55 = vsel %vm14793_vm9, %v12354_v33, %v3994_v22  ;;  %4995 = vrot.lane.b32.xlu1 %v12676_v25, %s14644_s28  ;;  %v14795_v33 = vld [vmem:[#allocation18_spill] sm:$0xff] }
 0x45d   : > { %5284 = vrot.lane.b32.xlu0 %v12500_v31, %s14654_s12  ;;  %6045 = vmatmul.mubr.bf16.vlgmr.msra.gmra.mrb[12].mxu1 %v12310_v43 }
 0x45e   : > { %v3802_v2 = vpop.permute.xlu1 %3801  ;;  %6056 = vmatpush1.bf16.msra.mxu1 %v12721_v41  ;;  %6087 = vmatprep.mubr.bf16.mxu1 %v12340_v9 }
 0x45f   : > { %v3815_v59 = vsel %vm14794_vm6, %v3800_v5, %v3802_v2  ;;  %3843 = vst.msk [vmem:[#allocation3 + $0x538] sm:$0xff] %vm14608_vm2, %v3802_v2  ;;  %v4077_v60 = vpop.permute.xlu0 %4076  ;;  %6057 = vmatprep.subr.bf16.mxu1 %v12850_v6  ;;  %v14796_v5 = vld [vmem:[#allocation19_spill] sm:$0xff]  ;;  %vm14798_vm6 = vmmov %vm14793_vm9 }
 0x460   : > { %v12939_v34 = vsel %vm4094_vm7, %v14795_v33, %v4077_v60  ;;  %5078 = vrot.lane.b32.xlu1 %v12655_v63, %s14648_s19  ;;  %6155 = vmatprep.subr.bf16.mxu0 %v3815_v59 }
 0x461   : > { %6156 = vmatpush1.bf16.msra.mxu0 %v3814_v54 }
 0x462   : > { %v12943_v43 = vpop.permute.xlu1 %5282  ;;  %6058 = vmatpush1.bf16.msra.mxu1 %v12768_v47 }
 0x463   : > { %v5298_v9 = vsel %vm14792_vm5, %v5281_v14, %v12943_v43  ;;  %v12948_v31 = vpop.permute.xlu0 %4090  ;;  %6059 = vmatprep.subr.bf16.mxu1 %v5195_v7  ;;  %vm14799_vm5 = vcmask 785408  }
 0x464   : > { %v12953_v41 = vsel %vm4094_vm7, %v12370_v30, %v12948_v31  ;;  %5092 = vrot.lane.b32.xlu1 %v12676_v25, %s14648_s19 }
 0x466   : > { %v3885_v6 = vpop.permute.xlu1 %3884  ;;  %6060 = vmatpush1.bf16.msra.mxu1 %v12797_v13 }
 0x467   : > { %v3906_v17 = vsel %vm3900_vm8, %v3883_v11, %v3885_v6  ;;  %3933 = vst.msk [vmem:[#allocation3 + $0x570] sm:$0xff] %vm14608_vm2, %v3885_v6  ;;  %v12960_v47 = vpop.permute.xlu0 %4177  ;;  %6061 = vmatprep.subr.bf16.mxu1 %v5201_v0 }
 0x468   : > { %v12965_v54 = vsel %vm4199_vm12, %v14796_v5, %v12960_v47  ;;  %5175 = vrot.lane.b32.xlu1 %v12655_v63, %s14651_s2  ;;  %6157 = vmatprep.subr.bf16.mxu0 %v3906_v17  ;;  %v5371_v17 = vld [vmem:[#allocation3 + $0x110] sm:$0xff]  ;;  %v5434_v5 = vld [vmem:[#allocation3 + $0x308] sm:$0xff] }
 0x469   : > { %6158 = vmatpush1.bf16.msra.mxu0 %v3905_v16 }
 0x46a   : > { %v3899_v30 = vpop.permute.xlu1 %3898  ;;  %6062 = vmatpush1.bf16.msra.mxu1 %v12827_v50 }
 0x46b   : > { %v3912_v13 = vsel %vm3900_vm8, %v3897_v56, %v3899_v30  ;;  %3940 = vst.msk [vmem:[#allocation3 + $0x5a8] sm:$0xff] %vm14608_vm2, %v3899_v30  ;;  %v12972_v7 = vpop.permute.xlu0 %4193  ;;  %6063 = vmatprep.subr.bf16.mxu1 %v5292_v51  ;;  %v5406_v56 = vld [vmem:[#allocation3 + $0x228] sm:$0xff]  ;;  %v5357_v51 = vld [vmem:[#allocation3 + $0xa0] sm:$0xff] }
 0x46c   : > { %v12977_v14 = vsel %vm4199_vm12, %v12543_v42, %v12972_v7  ;;  %5189 = vrot.lane.b32.xlu1 %v12676_v25, %s14651_s2  ;;  %6159 = vmatprep.subr.bf16.mxu0 %v3912_v13  ;;  %v14802_v13 = vld [vmem:[#allocation23_spill] sm:$0xff] }
 0x46d   : > { %6160 = vmatpush1.bf16.msra.mxu0 %v3911_v18 }
 0x46e   : > { %v3982_v58 = vpop.permute.xlu1 %3981  ;;  %6064 = vmatpush1.bf16.msra.mxu1 %v12855_v45  ;;  %v5399_v45 = vld [vmem:[#allocation3 + $0x1f0] sm:$0xff] }
 0x46f   : > { %v4003_v50 = vsel %vm14793_vm9, %v3980_v20, %v3982_v58  ;;  %4030 = vst.msk [vmem:[#allocation3 + $0x5e0] sm:$0xff] %vm14608_vm2, %v3982_v58  ;;  %v12984_v44 = vpop.permute.xlu0 %4284  ;;  %6065 = vmatprep.subr.bf16.mxu1 %v5298_v9  ;;  %v5413_v20 = vld [vmem:[#allocation3 + $0x260] sm:$0xff]  ;;  %v5427_v9 = vld [vmem:[#allocation3 + $0x2d0] sm:$0xff]  ;;  %vm14803_vm9 = vcmask 441344  }
 0x470   : > { %v12989_v42 = vsel %vm4306_vm13, %v14797_v62, %v12984_v44  ;;  %5272 = vrot.lane.b32.xlu1 %v12655_v63, %s14654_s12  ;;  %6161 = vmatprep.subr.bf16.mxu0 %v4003_v50  ;;  %v5343_v63 = vld [vmem:[#allocation3 + $0x30] sm:$0xff]  ;;  %v5441_v58 = vld [vmem:[#allocation3 + $0x340] sm:$0xff] }
 0x471   : > { %6162 = vmatpush1.bf16.msra.mxu0 %v4002_v29 }
 0x472   : > { %v3996_v11 = vpop.permute.xlu1 %3995  ;;  %6066 = vmatpush1.bf16.msra.mxu1 %v12879_v61 }
 0x473   : > { %v4009_v52 = vsel %vm14798_vm6, %v3994_v22, %v3996_v11  ;;  %4037 = vst.msk [vmem:[#allocation3 + $0x618] sm:$0xff] %vm14608_vm2, %v3996_v11  ;;  %v12996_v16 = vpop.permute.xlu0 %4300  ;;  %9468 = vmatprep.subr.bf16.mxu1 %v5399_v45  ;;  %v5448_v45 = vld [vmem:[#allocation3 + $0x378] sm:$0xff]  ;;  %vm14804_vm6 = vcmask 375808  }
 0x474   : > { %v13001_v0 = vsel %vm4306_vm13, %v12560_v27, %v12996_v16  ;;  %5286 = vrot.lane.b32.xlu1 %v12676_v25, %s14654_s12  ;;  %6163 = vmatprep.subr.bf16.mxu0 %v4009_v52  ;;  %v14800_v25 = vld [vmem:[#allocation21_spill] sm:$0xff] }
 0x475   : > { %9445 = vmatmul.mubr.msk.bf16.vlgmr.msra.gmra.mrb[12].mxu1 %vm14799_vm5, %v12421_v40  ;;  %6164 = vmatpush1.bf16.msra.mxu0 %v12925_v55  ;;  %v5350_v40 = vld [vmem:[#allocation3 + $0x68] sm:$0xff]  ;;  %v5420_v55 = vld [vmem:[#allocation3 + $0x298] sm:$0xff]  ;;  %vm14805_vm5 = vmmov %vm14803_vm9 }
 0x476   : > { %v4079_v61 = vpop.permute.xlu1 %4078  ;;  %9469 = vmatpush3.bf16.msra.mxu1 %v5343_v63  ;;  %6302 = vmatprep.mubr.bf16.mxu1 %v12462_v12 }
 0x477   : > { %v4100_v18 = vsel %vm4094_vm7, %v4077_v60, %v4079_v61  ;;  %4127 = vst.msk [vmem:[#allocation3 + $0x650] sm:$0xff] %vm14608_vm2, %v4079_v61  ;;  %v13011_v27 = vpop.permute.xlu0 %4391  ;;  %9470 = vmatprep.subr.bf16.mxu1 %v5406_v56  ;;  %v14801_v60 = vld [vmem:[#allocation22_spill] sm:$0xff] }
 0x478   : > { %v13016_v1 = vsel %vm4413_vm14, %v14800_v25, %v13011_v27  ;;  %6165 = vmatprep.subr.bf16.mxu0 %v4100_v18  ;;  %v5455_v25 = vld [vmem:[#allocation3 + $0x3b0] sm:$0xff] }
 0x479   : > { %6166 = vmatpush1.bf16.msra.mxu0 %v12939_v34 }
 0x47a   : > { %v4093_v38 = vpop.permute.xlu1 %4092  ;;  %9471 = vmatpush3.bf16.msra.mxu1 %v5350_v40  ;;  %v5518_v40 = vld [vmem:[#allocation3 + $0x5a8] sm:$0xff] }
 0x47b   : > { %v4106_v12 = vsel %vm4094_vm7, %v12948_v31, %v4093_v38  ;;  %4134 = vst.msk [vmem:[#allocation3 + $0x688] sm:$0xff] %vm14608_vm2, %v4093_v38  ;;  %v13022_v53 = vpop.permute.xlu0 %4407  ;;  %9472 = vmatprep.subr.bf16.mxu1 %v5413_v20 }
 0x47c   : > { %v13027_v29 = vsel %vm4413_vm14, %v12579_v19, %v13022_v53  ;;  %6167 = vmatprep.subr.bf16.mxu0 %v4106_v12  ;;  %v5364_v19 = vld [vmem:[#allocation3 + $0xd8] sm:$0xff] }
 0x47d   : > { %6168 = vmatpush1.bf16.msra.mxu0 %v12953_v41 }
 0x47e   : > { %v4180_v22 = vpop.permute.xlu1 %4179  ;;  %9473 = vmatpush3.bf16.msra.mxu1 %v5357_v51  ;;  %v5469_v51 = vld [vmem:[#allocation3 + $0x420] sm:$0xff] }
 0x47f   : > { %v4205_v2 = vsel %vm4199_vm12, %v12960_v47, %v4180_v22  ;;  %v13032_v59 = vpop.permute.xlu0 %4494  ;;  %9474 = vmatprep.subr.bf16.mxu1 %v5420_v55  ;;  %v5532_v55 = vld [vmem:[#allocation3 + $0x618] sm:$0xff] }
 0x480   : > { %v13037_v33 = vsel %vm14609_vm3, %v14801_v60, %v13032_v59  ;;  %6169 = vmatprep.subr.bf16.mxu0 %v4205_v2 }
 0x481   : > { %6170 = vmatpush1.bf16.msra.mxu0 %v12965_v54 }
 0x482   : > { %v13040_v34 = vpop.permute.xlu1 %4195  ;;  %9475 = vmatpush3.bf16.msra.mxu1 %v5364_v19 }
 0x483   : > { %v4212_v31 = vsel %vm4199_vm12, %v12972_v7, %v13040_v34  ;;  %v13045_v41 = vpop.permute.xlu0 %4508  ;;  %9476 = vmatprep.subr.bf16.mxu1 %v5427_v9  ;;  %v5539_v9 = vld [vmem:[#allocation3 + $0x650] sm:$0xff] }
 0x484   : > { %v13050_v6 = vsel %vm14609_vm3, %v12598_v21, %v13045_v41  ;;  %6171 = vmatprep.subr.bf16.mxu0 %v4212_v31  ;;  %v5378_v21 = vld [vmem:[#allocation3 + $0x148] sm:$0xff] }
 0x485   : > { %6172 = vmatpush1.bf16.msra.mxu0 %v12977_v14 }
 0x486   : > { %v4287_v47 = vpop.permute.xlu1 %4286  ;;  %9477 = vmatpush3.bf16.msra.mxu1 %v5371_v17 }
 0x487   : > { %v4312_v54 = vsel %vm4306_vm13, %v12984_v44, %v4287_v47  ;;  %v13055_v30 = vpop.permute.xlu0 %4591  ;;  %9478 = vmatprep.subr.bf16.mxu1 %v5434_v5  ;;  %v5546_v5 = vld [vmem:[#allocation3 + $0x688] sm:$0xff] }
 0x488   : > { %v13060_v7 = vsel %vm14605_vm4, %v14802_v13, %v13055_v30  ;;  %6184 = vmatprep.subr.bf16.mxu0 %v4312_v54  ;;  %6174 = vmatmul.mubr.bf16.vlgmr.msra.gmra.mrb[24].mxu0 %v12683_v15 }
 0x489   : > { %6185 = vmatpush1.bf16.msra.mxu0 %v12989_v42  ;;  %6216 = vmatprep.mubr.bf16.mxu0 %v12704_v35  ;;  %v5385_v42 = vld [vmem:[#allocation3 + $0x180] sm:$0xff] }
 0x48a   : > { %v13065_v14 = vpop.permute.xlu1 %4302  ;;  %9479 = vmatpush3.bf16.msra.mxu1 %v5378_v21 }
 0x48b   : > { %v4319_v50 = vsel %vm4306_vm13, %v12996_v16, %v13065_v14  ;;  %v4182_v44 = vpop.permute.xlu0 %4181  ;;  %9480 = vmatprep.subr.bf16.mxu1 %v5441_v58  ;;  %v5392_v16 = vld [vmem:[#allocation3 + $0x1b8] sm:$0xff] }
 0x48c   : > { %v4206_v62 = vsel %vm4199_vm12, %v4180_v22, %v4182_v44  ;;  %6186 = vmatprep.subr.bf16.mxu0 %v4319_v50  ;;  %v5497_v50 = vld [vmem:[#allocation3 + $0x500] sm:$0xff] }
 0x48d   : > { %4234 = vst.msk [vmem:[#allocation3 + $0x6c0] sm:$0xff] %vm14608_vm2, %v4206_v62  ;;  %6187 = vmatpush1.bf16.msra.mxu0 %v13001_v0  ;;  %v5511_v0 = vld [vmem:[#allocation3 + $0x570] sm:$0xff] }
 0x48e   : > { %v13073_v11 = vpop.permute.xlu1 %4393  ;;  %9481 = vmatpush3.bf16.msra.mxu1 %v5385_v42 }
 0x48f   : > { %v4419_v52 = vsel %vm4413_vm14, %v13011_v27, %v13073_v11  ;;  %v4608_v63 = vpop.permute.xlu0 %4607  ;;  %9482 = vmatprep.subr.bf16.mxu1 %v5448_v45 }
 0x490   : > { %4649 = vst.msk [vmem:[#allocation3 + $0x8b8] sm:$0xff] %vm14608_vm2, %v4608_v63  ;;  %6188 = vmatprep.subr.bf16.mxu0 %v4419_v52 }
 0x491   : > { %6189 = vmatpush1.bf16.msra.mxu0 %v13016_v1 }
 0x492   : > { %v13080_v61 = vpop.permute.xlu1 %4409  ;;  %9483 = vmatpush3.bf16.msra.mxu1 %v5392_v16 }
 0x493   : > { %v4426_v56 = vsel %vm4413_vm14, %v13022_v53, %v13080_v61  ;;  %v13085_v18 = vpop.permute.xlu0 %4688  ;;  %9490 = vmatprep.subr.bf16.mxu1 %v5511_v0  ;;  %v5525_v53 = vld [vmem:[#allocation3 + $0x5e0] sm:$0xff] }
 0x494   : > { %v13090_v27 = vsel %vm14803_vm9, %v12423_v8, %v13085_v18  ;;  %6190 = vmatprep.subr.bf16.mxu0 %v4426_v56  ;;  %vm14806_vm9 = vcmask 367616  }
 0x495   : > { %6303 = vmatmul.mubr.bf16.vlgmr.msra.gmra.mrb[16].mxu1 %v12746_v24  ;;  %6191 = vmatpush1.bf16.msra.mxu0 %v13027_v29  ;;  %v5462_v24 = vld [vmem:[#allocation3 + $0x3e8] sm:$0xff] }
 0x496   : > { %v4497_v1 = vpop.permute.xlu1 %4496  ;;  %9491 = vmatpush3.bf16.msra.mxu1 %v5455_v25  ;;  %6343 = vmatprep.mubr.bf16.mxu1 %v12762_v37 }
 0x497   : > { %v4518_v38 = vsel %vm14609_vm3, %v13032_v59, %v4497_v1  ;;  %4545 = vst.msk [vmem:[#allocation3 + $0x810] sm:$0xff] %vm14608_vm2, %v4497_v1  ;;  %v4289_v20 = vpop.permute.xlu0 %4288  ;;  %9492 = vmatprep.subr.bf16.mxu1 %v5518_v40 }
 0x498   : > { %v4313_v8 = vsel %vm4306_vm13, %v4287_v47, %v4289_v20  ;;  %6192 = vmatprep.subr.bf16.mxu0 %v4518_v38 }
 0x499   : > { %4341 = vst.msk [vmem:[#allocation3 + $0x730] sm:$0xff] %vm14608_vm2, %v4313_v8  ;;  %6193 = vmatpush1.bf16.msra.mxu0 %v13037_v33  ;;  %v5476_v33 = vld [vmem:[#allocation3 + $0x458] sm:$0xff] }
 0x49a   : > { %v4511_v12 = vpop.permute.xlu1 %4510  ;;  %9493 = vmatpush3.bf16.msra.mxu1 %v5462_v24 }
 0x49b   : > { %v4524_v37 = vsel %vm14609_vm3, %v13045_v41, %v4511_v12  ;;  %4552 = vst.msk [vmem:[#allocation3 + $0x848] sm:$0xff] %vm14608_vm2, %v4511_v12  ;;  %v4705_v29 = vpop.permute.xlu0 %4704  ;;  %9494 = vmatprep.subr.bf16.mxu1 %v5525_v53 }
 0x49c   : > { %4746 = vst.msk [vmem:[#allocation3 + $0x928] sm:$0xff] %vm14608_vm2, %v4705_v29  ;;  %6194 = vmatprep.subr.bf16.mxu0 %v4524_v37 }
 0x49d   : > { %6195 = vmatpush1.bf16.msra.mxu0 %v13050_v6 }
 0x49e   : > { %v4594_v22 = vpop.permute.xlu1 %4593  ;;  %9495 = vmatpush3.bf16.msra.mxu1 %v5469_v51 }
 0x49f   : > { %v4615_v2 = vsel %vm14605_vm4, %v13055_v30, %v4594_v22  ;;  %4642 = vst.msk [vmem:[#allocation3 + $0x880] sm:$0xff] %vm14608_vm2, %v4594_v22  ;;  %v13109_v59 = vpop.permute.xlu0 %4785  ;;  %9496 = vmatprep.subr.bf16.mxu1 %v5532_v55 }
 0x4a0   : > { %v13114_v60 = vsel %vm14804_vm6, %v12481_v28, %v13109_v59  ;;  %6196 = vmatprep.subr.bf16.mxu0 %v4615_v2  ;;  %v5483_v28 = vld [vmem:[#allocation3 + $0x490] sm:$0xff]  ;;  %vm14807_vm6 = vmmov %vm14805_vm5 }
 0x4a1   : > { %6197 = vmatpush1.bf16.msra.mxu0 %v13060_v7  ;;  %v5553_v7 = vld [vmem:[#allocation3 + $0x6c0] sm:$0xff] }
 0x4a2   : > { %v4606_v19 = vpop.permute.xlu1 %4605  ;;  %9497 = vmatpush3.bf16.msra.mxu1 %v5476_v33 }
 0x4a3   : > { %v4620_v31 = vsel %vm14605_vm4, %v12618_v46, %v4606_v19  ;;  %v4621_v41 = vsel %vm14605_vm4, %v4606_v19, %v4608_v63  ;;  %v4396_v6 = vpop.permute.xlu0 %4395  ;;  %9498 = vmatprep.subr.bf16.mxu1 %v5539_v9  ;;  %v5490_v46 = vld [vmem:[#allocation3 + $0x4c8] sm:$0xff]  ;;  %vm14808_vm4 = vmmov %vm14806_vm9 }
 0x4a4   : > { %v4420_v17 = vsel %vm4413_vm14, %v13073_v11, %v4396_v6  ;;  %6198 = vmatprep.subr.bf16.mxu0 %v4621_v41 }
 0x4a5   : > { %4448 = vst.msk [vmem:[#allocation3 + $0x7a0] sm:$0xff] %vm14608_vm2, %v4420_v17  ;;  %6199 = vmatpush1.bf16.msra.mxu0 %v4620_v31  ;;  %v5595_v17 = vld [vmem:[#allocation3 + $0x810] sm:$0xff] }
 0x4a6   : > { %v4198_v47 = vpop.permute.xlu1 %4197  ;;  %9499 = vmatpush3.bf16.msra.mxu1 %v5483_v28 }
 0x4a7   : > { %v4213_v54 = vsel %vm4199_vm12, %v13040_v34, %v4198_v47  ;;  %v4802_v30 = vpop.permute.xlu0 %4801  ;;  %9500 = vmatprep.subr.bf16.mxu1 %v5546_v5 }
 0x4a8   : > { %4241 = vst.msk [vmem:[#allocation3 + $0x6f8] sm:$0xff] %vm14608_vm2, %v4213_v54  ;;  %4843 = vst.msk [vmem:[#allocation3 + $0x998] sm:$0xff] %vm14608_vm2, %v4802_v30 }
 0x4aa   : > { %v4691_v13 = vpop.permute.xlu1 %4690  ;;  %9501 = vmatpush3.bf16.msra.mxu1 %v5490_v46 }
 0x4ab   : > { %v4712_v21 = vsel %vm14805_vm5, %v13085_v18, %v4691_v13  ;;  %4739 = vst.msk [vmem:[#allocation3 + $0x8f0] sm:$0xff] %vm14608_vm2, %v4691_v13  ;;  %v13130_v58 = vpop.permute.xlu0 %4882  ;;  %9502 = vmatprep.subr.bf16.mxu1 %v5553_v7 }
 0x4ac   : > { %v13135_v34 = vsel %vm14806_vm9, %v12525_v48, %v13130_v58  ;;  %6200 = vmatprep.subr.bf16.mxu0 %v4712_v21  ;;  %v5504_v48 = vld [vmem:[#allocation3 + $0x538] sm:$0xff]  ;;  %vm14809_vm9 = vcmask 359424   ;;  %v5609_v21 = vld [vmem:[#allocation3 + $0x880] sm:$0xff] }
 0x4ad   : > { %6201 = vmatpush1.bf16.msra.mxu0 %v13090_v27  ;;  %v5630_v27 = vld [vmem:[#allocation3 + $0x928] sm:$0xff] }
 0x4ae   : > { %v4703_v44 = vpop.permute.xlu1 %4702  ;;  %9503 = vmatpush3.bf16.msra.mxu1 %v5497_v50  ;;  %v13226_v50 = vld [vmem:[#allocation4] sm:$0xff] }
 0x4af   : > { %v4717_v62 = vsel %vm14807_vm6, %v12637_v26, %v4703_v44  ;;  %v4718_v42 = vsel %vm14805_vm5, %v4703_v44, %v4705_v29  ;;  %v4897_v11 = vpop.permute.xlu0 %4896  ;;  %v5560_v45 = vld [vmem:[#allocation3 + $0x6f8] sm:$0xff]  ;;  %vm14811_vm6 = vmmov %vm14809_vm9  ;;  %v5581_v29 = vld [vmem:[#allocation3 + $0x7a0] sm:$0xff] }
 0x4b0   : > { %v13143_v52 = vsel %vm14808_vm4, %v12709_v32, %v4897_v11  ;;  %9504 = vmatprep.subr.bf16.mxu1 %v5560_v45  ;;  %6202 = vmatprep.subr.bf16.mxu0 %v4718_v42  ;;  %v5567_v32 = vld [vmem:[#allocation3 + $0x730] sm:$0xff]  ;;  %vm14810_vm4 = vcmask 375808   ;;  %v5644_v22 = vld [vmem:[#allocation3 + $0x998] sm:$0xff]  ;;  %v9829_v42 = vmov 0.0  }
 0x4b1   : > { %6203 = vmatpush1.bf16.msra.mxu0 %v4717_v62  ;;  %vm14812_vm5 = vmmov %vm14810_vm4  ;;  %v5616_v62 = vld [vmem:[#allocation3 + $0x8b8] sm:$0xff] }
 0x4b2   : > { %v4305_v63 = vpop.permute.xlu1 %4304  ;;  %9505 = vmatpush3.bf16.msra.mxu1 %v5504_v48  ;;  %v5623_v16 = vld [vmem:[#allocation3 + $0x8f0] sm:$0xff] }
 0x4b3   : > { %v4320_v0 = vsel %vm4306_vm13, %v13065_v14, %v4305_v63  ;;  %v4980_v56 = vpop.permute.xlu0 %4979  ;;  %9512 = vmatprep.subr.bf16.mxu1 %v5623_v16 }
 0x4b4   : > { %4348 = vst.msk [vmem:[#allocation3 + $0x768] sm:$0xff] %vm14608_vm2, %v4320_v0  ;;  %v13150_v26 = vsel %vm14809_vm9, %v12749_v57, %v4980_v56  ;;  %vm14813_vm9 = vmmov %vm14810_vm4 }
 0x4b5   : > { %6344 = vmatmul.mubr.bf16.vlgmr.msra.gmra.mrb[20].mxu1 %v12683_v15 }
 0x4b6   : > { %v4788_v18 = vpop.permute.xlu1 %4787  ;;  %9513 = vmatpush3.bf16.msra.mxu1 %v5567_v32  ;;  %6384 = vmatprep.mubr.bf16.mxu1 %v12704_v35 }
 0x4b7   : > { %v4809_v25 = vsel %vm14810_vm4, %v13109_v59, %v4788_v18  ;;  %4836 = vst.msk [vmem:[#allocation3 + $0x960] sm:$0xff] %vm14608_vm2, %v4788_v18  ;;  %v4994_v14 = vpop.permute.xlu0 %4993  ;;  %9514 = vmatprep.subr.bf16.mxu1 %v5630_v27  ;;  %vm14814_vm4 = vcmask 293888  }
 0x4b8   : > { %v13159_v1 = vsel %vm14811_vm6, %v12787_v36, %v4994_v14  ;;  %6204 = vmatprep.subr.bf16.mxu0 %v4809_v25  ;;  %vm14815_vm6 = vmmov %vm14814_vm4 }
 0x4b9   : > { %6205 = vmatpush1.bf16.msra.mxu0 %v13114_v60 }
 0x4ba   : > { %v4800_v15 = vpop.permute.xlu1 %4799 }
 0x4bb   : > { %v4814_v57 = vsel %vm14812_vm5, %v12659_v10, %v4800_v15  ;;  %v4815_v35 = vsel %vm14813_vm9, %v4800_v15, %v4802_v30  ;;  %v5077_v40 = vpop.permute.xlu0 %5076  ;;  %v5574_v38 = vld [vmem:[#allocation3 + $0x768] sm:$0xff]  ;;  %vm14816_vm5 = vcmask 367616   ;;  %vm14817_vm9 = vcmask 285696  }
 0x4bc   : > { %v13167_v20 = vsel %vm14814_vm4, %v12816_v3, %v5077_v40  ;;  %9515 = vmatpush3.bf16.msra.mxu1 %v5574_v38  ;;  %v13169_v8 = vpop.f32.mrb[20].mxu0  ;;  %6206 = vmatprep.subr.bf16.mxu0 %v4815_v35  ;;  %vm14818_vm4 = vmmov %vm14816_vm5  ;;  %v5602_v30 = vld [vmem:[#allocation3 + $0x848] sm:$0xff] }
 0x4bd   : > { %v13171_v36 = vpop.f32.mrb[21].mxu0  ;;  %6207 = vmatpush1.bf16.msra.mxu0 %v4814_v57 }
 0x4be   : > { %v4412_v24 = vpop.permute.xlu1 %4411  ;;  %v5637_v12 = vld [vmem:[#allocation3 + $0x960] sm:$0xff]  ;;  %v13173_v53 = vpop.f32.mrb[22].mxu0 }
 0x4bf   : > { %v4427_v10 = vsel %vm4413_vm14, %v13080_v61, %v4412_v24  ;;  %v13177_v37 = vpop.permute.xlu0 %5090  ;;  %9516 = vmatprep.subr.bf16.mxu1 %v5637_v12  ;;  %v13179_v3 = vpop.f32.mrb[23].mxu0 }
 0x4c0   : > { %4455 = vst.msk [vmem:[#allocation3 + $0x7d8] sm:$0xff] %vm14608_vm2, %v4427_v10  ;;  %v13185_v51 = vsel %vm14815_vm6, %v12844_v39, %v13177_v37  ;;  %9517 = vmatpush3.bf16.msra.mxu1 %v5581_v29  ;;  %vm14819_vm6 = vmmov %vm14817_vm9 }
 0x4c1   : > { %9518 = vmatprep.subr.bf16.mxu1 %v5644_v22 }
 0x4c2   : > { %v4885_v55 = vpop.permute.xlu1 %4884 }
 0x4c3   : > { %v4906_v61 = vsel %vm14816_vm5, %v13130_v58, %v4885_v55  ;;  %4933 = vst.msk [vmem:[#allocation3 + $0x9d0] sm:$0xff] %vm14608_vm2, %v4885_v55  ;;  %v5174_v2 = vpop.permute.xlu0 %5173  ;;  %vm14820_vm5 = vcmask 359424   ;;  %v9786_v58 = vld [vmem:[%s14673_s5 + $0x10] ss:$28 sps:$4 sm:$0xff]  }
 0x4c4   : > { %v13192_v59 = vsel %vm14817_vm9, %v12871_v49, %v5174_v2  ;;  %6208 = vmatprep.subr.bf16.mxu0 %v4906_v61  ;;  %vm14821_vm9 = vcmask 277504  }
 0x4c5   : > { %6209 = vmatpush1.bf16.msra.mxu0 %v13135_v34 }
 0x4c6   : > { %v4899_v60 = vpop.permute.xlu1 %4898 }
 0x4c7   : > { %v4912_v39 = vsel %vm14818_vm4, %v4897_v11, %v4899_v60  ;;  %4940 = vst.msk [vmem:[#allocation3 + $0xa08] sm:$0xff] %vm14608_vm2, %v4899_v60  ;;  %v13197_v33 = vpop.permute.xlu0 %5187  ;;  %v5588_v19 = vld [vmem:[#allocation3 + $0x7d8] sm:$0xff]  ;;  %vm14822_vm4 = vmmov %vm14820_vm5 }
 0x4c8   : > { %v13202_v9 = vsel %vm14819_vm6, %v12895_v4, %v13197_v33  ;;  %9519 = vmatpush3.bf16.msra.mxu1 %v5588_v19  ;;  %6210 = vmatprep.subr.bf16.mxu0 %v4912_v39  ;;  %vm14823_vm6 = vmmov %vm14821_vm9  ;;  %v6449_v39 = vlaneseq }
 0x4c9   : > { %6211 = vmatpush1.bf16.msra.mxu0 %v13143_v52 }
 0x4ca   : > { %v4982_v49 = vpop.permute.xlu1 %4981  ;;  %v5651_v31 = vld [vmem:[#allocation3 + $0x9d0] sm:$0xff] }
 0x4cb   : > { %v5003_v41 = vsel %vm14820_vm5, %v4980_v56, %v4982_v49  ;;  %5030 = vst.msk [vmem:[#allocation3 + $0xa40] sm:$0xff] %vm14608_vm2, %v4982_v49  ;;  %v13207_v6 = vpop.permute.xlu0 %5270  ;;  %9520 = vmatprep.subr.bf16.mxu1 %v5651_v31  ;;  %vm14824_vm5 = vcmask 293888  }
 0x4cc   : > { %v13212_v28 = vsel %vm14821_vm9, %v12917_v23, %v13207_v6  ;;  %9521 = vmatpush3.bf16.msra.mxu1 %v5595_v17  ;;  %6212 = vmatprep.subr.bf16.mxu0 %v5003_v41  ;;  %vm14825_vm9 = vmmov %vm14824_vm5 }
 0x4cd   : > { %6213 = vmatpush1.bf16.msra.mxu0 %v13150_v26 }
 0x4ce   : > { %v4996_v4 = vpop.permute.xlu1 %4995  ;;  %v5658_v47 = vld [vmem:[#allocation3 + $0xa08] sm:$0xff] }
 0x4cf   : > { %v5009_v5 = vsel %vm14822_vm4, %v4994_v14, %v4996_v4  ;;  %5037 = vst.msk [vmem:[#allocation3 + $0xa78] sm:$0xff] %vm14608_vm2, %v4996_v4  ;;  %v5285_v54 = vpop.permute.xlu0 %5284  ;;  %9522 = vmatprep.subr.bf16.mxu1 %v5658_v47  ;;  %vm14826_vm4 = vcmask 285696   ;;  %v9788_v14 = vld [vmem:[%s14673_s5 + $0x18] ss:$28 sps:$4 sm:$0xff]  }
 0x4d0   : > { %v5299_v46 = vsel %vm14823_vm6, %v12943_v43, %v5285_v54  ;;  %9523 = vmatpush3.bf16.msra.mxu1 %v5602_v30  ;;  %6214 = vmatprep.subr.bf16.mxu0 %v5009_v5  ;;  %vm9830_vm6 = vmmov 0   ;;  %v2747_v5 = vld [vmem:[%s14832_s4] sm:$0x7f]  ;;  %v6434_v30 = vmax.f32 %v13169_v8, 0.0  ;;  %s14836_s4 = sld [smem:[#allocation38_spill]] }
 0x4d1   : > { %6215 = vmatpush1.bf16.msra.mxu0 %v13159_v1 }
 0x4d2   : > { %v5079_v23 = vpop.permute.xlu1 %5078  ;;  %v5665_v13 = vld [vmem:[#allocation3 + $0xa40] sm:$0xff] }
 0x4d3   : > { %v5100_v7 = vsel %vm14824_vm5, %v5077_v40, %v5079_v23  ;;  %5127 = vst.msk [vmem:[#allocation3 + $0xab0] sm:$0xff] %vm14608_vm2, %v5079_v23  ;;  %9524 = vmatprep.subr.bf16.mxu1 %v5665_v13  ;;  %vm14827_vm5 = vmmov %vm14826_vm4  ;;  %v6435_v23 = vmax.f32 %v13171_v36, 0.0 }
 0x4d4   : > { %9525 = vmatpush3.bf16.msra.mxu1 %v5609_v21  ;;  %6227 = vmatprep.subr.bf16.mxu0 %v5100_v7  ;;  %v6441_v7 = vmax.f32 %v13173_v53, 0.0  ;;  %v6442_v21 = vmax.f32 %v13179_v3, 0.0 }
 0x4d5   : > { %6217 = vmatmul.mubr.bf16.vlgmr.msra.gmra.mrb[24].mxu0 %v9786_v58 }
 0x4d6   : > { %v5093_v43 = vpop.permute.xlu1 %5092  ;;  %v5672_v34 = vld [vmem:[#allocation3 + $0xa78] sm:$0xff]  ;;  %6228 = vmatpush1.bf16.msra.mxu0 %v13167_v20  ;;  %6259 = vmatprep.mubr.bf16.mxu0 %v13226_v50 }
 0x4d7   : > { %v5106_v44 = vsel %vm14825_vm9, %v13177_v37, %v5093_v43  ;;  %5134 = vst.msk [vmem:[#allocation3 + $0xae8] sm:$0xff] %vm14608_vm2, %v5093_v43  ;;  %9526 = vmatprep.subr.bf16.mxu1 %v5672_v34  ;;  %vm14828_vm9 = vcmask 277504  }
 0x4d8   : > { %9527 = vmatpush3.bf16.msra.mxu1 %v5616_v62  ;;  %6229 = vmatprep.subr.bf16.mxu0 %v5106_v44 }
 0x4d9   : > { %9579 = vmatprep.subr.bf16.mxu1 %v9829_v42 }
 0x4da   : > { %v5176_v11 = vpop.permute.xlu1 %5175  ;;  %v5679_v45 = vld [vmem:[#allocation3 + $0xab0] sm:$0xff]  ;;  %6230 = vmatpush1.bf16.msra.mxu0 %v13185_v51 }
 0x4db   : > { %v5197_v52 = vsel %vm14826_vm4, %v5174_v2, %v5176_v11  ;;  %5224 = vst.msk [vmem:[#allocation3 + $0xb20] sm:$0xff] %vm14608_vm2, %v5176_v11  ;;  %6385 = vmatmul.mubr.bf16.vlgmr.msra.gmra.mrb[24].mxu1 %v9786_v58  ;;  %vm14829_vm4 = vmmov %vm14828_vm9 }
 0x4dc   : > { %9580 = vmatpush3.bf16.msra.mxu1 %v5679_v45  ;;  %6231 = vmatprep.subr.bf16.mxu0 %v5197_v52 }
 0x4dd   : > { %9581 = vmatprep.subr.bf16.mxu1 %v9829_v42  ;;  %9591 = vmatprep.mubr.msk.bf16.mxu1 %vm9830_vm6, %v9829_v42  ;;  %vm14830_vm6 = vcmask 785408  }
 0x4de   : > { %v5190_v48 = vpop.permute.xlu1 %5189  ;;  %v5686_v63 = vld [vmem:[#allocation3 + $0xae8] sm:$0xff]  ;;  %6232 = vmatpush1.bf16.msra.mxu0 %v13192_v59 }
 0x4df   : > { %v5203_v16 = vsel %vm14827_vm5, %v13197_v33, %v5190_v48  ;;  %5231 = vst.msk [vmem:[#allocation3 + $0xb58] sm:$0xff] %vm14608_vm2, %v5190_v48  ;;  %vm14831_vm5 = vmmov %vm14830_vm6 }
 0x4e0   : > { %9582 = vmatpush3.bf16.msra.mxu1 %v5686_v63  ;;  %6233 = vmatprep.subr.bf16.mxu0 %v5203_v16 }
 0x4e1   : > { %9583 = vmatprep.subr.bf16.mxu1 %v9829_v42 }
 0x4e2   : > { %v5273_v0 = vpop.permute.xlu1 %5272  ;;  %v5693_v56 = vld [vmem:[#allocation3 + $0xb20] sm:$0xff]  ;;  %6234 = vmatpush1.bf16.msra.mxu0 %v13202_v9  ;;  %v6450_v9 = vshrl.u32 %v6449_v39, 7 }
 0x4e3   : > { %v5294_v26 = vsel %vm14828_vm9, %v13207_v6, %v5273_v0  ;;  %5321 = vst.msk [vmem:[#allocation3 + $0xb90] sm:$0xff] %vm14608_vm2, %v5273_v0  ;;  %vm6871_vm9 = vcmask 1048440  }
 0x4e4   : > { %9584 = vmatpush3.bf16.msra.mxu1 %v5693_v56  ;;  %6235 = vmatprep.subr.bf16.mxu0 %v5294_v26  ;;  %v6455_v4 = vsub.s32 1, %v6450_v9  ;;  %v6463_v34 = vsub.s32 3, %v6450_v9  ;;  %v6467_v11 = vsub.s32 4, %v6450_v9  ;;  %v6471_v0 = vsub.s32 5, %v6450_v9 }
 0x4e5   : > { %9585 = vmatprep.subr.bf16.mxu1 %v9829_v42 }
 0x4e6   : > { %v5287_v32 = vpop.permute.xlu1 %5286  ;;  %v5700_v18 = vld [vmem:[#allocation3 + $0xb58] sm:$0xff]  ;;  %6236 = vmatpush1.bf16.msra.mxu0 %v13212_v28  ;;  %v6451_v28 = vsub.s32 0, %v6450_v9  ;;  %v13266_v13 = vrot.slane %v2747_v5, %v6455_v4  ;;  %v13290_v16 = vrot.slane %v2747_v5, %v6463_v34 }
 0x4e7   : > { %v5300_v27 = vsel %vm14829_vm4, %v5285_v54, %v5287_v32  ;;  %5328 = vst.msk [vmem:[#allocation3 + $0xbc8] sm:$0xff] %vm14608_vm2, %v5287_v32  ;;  %v6459_v54 = vsub.s32 2, %v6450_v9  ;;  %vm6857_vm4 = vcmask 908288  }
 0x4e8   : > { %9586 = vmatpush3.bf16.msra.mxu1 %v5700_v18  ;;  %6237 = vmatprep.subr.bf16.mxu0 %v5300_v27  ;;  %v6485_v62 = vmul.f32 %v13266_v13, %v6435_v23  ;;  %v6492_v52 = vmul.f32 %v13266_v13, %v6442_v21  ;;  %v13298_v27 = vrot.slane %v2747_v5, %v6467_v11 }
 0x4e9   : > { %9587 = vmatprep.subr.bf16.mxu1 %v9829_v42  ;;  %v13271_v43 = vrot.slane %v2747_v5, %v6459_v54 }
 0x4ea   : > { %v5707_v25 = vld [vmem:[#allocation3 + $0xb90] sm:$0xff]  ;;  %6238 = vmatpush1.bf16.msra.mxu0 %v5299_v46  ;;  %v13263_v46 = vrot.slane %v2747_v5, %v6451_v28 }
 0x4ec   : > { %9588 = vmatpush3.bf16.msra.mxu1 %v5707_v25  ;;  %v6484_v44 = vmul.f32 %v13263_v46, %v6434_v30  ;;  %v6491_v45 = vmul.f32 %v13263_v46, %v6441_v7 }
 0x4ed   : > { %9589 = vmatprep.subr.bf16.mxu1 %v9829_v42  ;;  %9446 = vmatmul.mubr.msk.bf16.vlgmr.msra.gmra.mrb[24].mxu0 %vm14830_vm6, %v9788_v14  ;;  %vm6878_vm6 = vcmask 990208  }
 0x4ee   : > { %v5714_v1 = vld [vmem:[#allocation3 + $0xbc8] sm:$0xff]  ;;  %v6498_v56 = vadd.f32 %v6485_v62, %v6484_v44 }
 0x4f0   : > { %9590 = vmatpush3.bf16.msra.mxu1 %v5714_v1  ;;  %v6507_v1 = vadd.f32 %v6492_v52, %v6491_v45 }
 0x4f3   : > { %9592 = vmatmul.mubr.msk.bf16.vlgmr.msra.gmra.mrb[28].mxu1 %vm14831_vm5, %v9788_v14  ;;  %vm14837_vm5 = vcmask 1039360  }
 0x548   : > { %v13251_v15 = vpop.f32.mrb[12].mxu1 }
 0x549   : > { %v13253_v57 = vpop.f32.mrb[13].mxu1  ;;  %v6436_v58 = vmax.f32 %v13251_v15, 0.0 }
 0x54a   : > { %v13255_v35 = vpop.f32.mrb[14].mxu1  ;;  %v6437_v63 = vmax.f32 %v13253_v57, 0.0 }
 0x54b   : > { %v13257_v40 = vpop.f32.mrb[15].mxu1  ;;  %v6443_v42 = vmax.f32 %v13255_v35, 0.0  ;;  %v6486_v48 = vmul.f32 %v13271_v43, %v6436_v58 }
 0x54c   : > { %v6444_v32 = vmax.f32 %v13257_v40, 0.0 }
 0x54d   : > { %v6493_v26 = vmul.f32 %v13271_v43, %v6443_v42 }
 0x568   : > { %v9484_v38 = vpop.f32.mrb[16].mxu1 }
 0x569   : > { %v9485_v20 = vpop.f32.mrb[17].mxu1 }
 0x56a   : > { %v9486_v24 = vadd.f32 %v9485_v20, %v9484_v38  ;;  %v9487_v12 = vpop.f32.mrb[18].mxu1  ;;  %v6499_v38 = vadd.f32 %v6498_v56, %v6486_v48  ;;  %v6487_v20 = vmul.f32 %v13290_v16, %v6437_v63 }
 0x56b   : > { %v9488_v10 = vpop.f32.mrb[19].mxu1 }
 0x56c   : > { %v9489_v37 = vadd.f32 %v9488_v10, %v9487_v12  ;;  %v6475_v12 = vsub.s32 6, %v6450_v9  ;;  %v13306_v10 = vrot.slane %v2747_v5, %v6471_v0 }
 0x588   : > { %v9506_v29 = vpop.f32.mrb[20].mxu1 }
 0x589   : > { %v9507_v51 = vpop.f32.mrb[21].mxu1 }
 0x58a   : > { %v9508_v22 = vadd.f32 %v9507_v51, %v9506_v29  ;;  %v9509_v55 = vpop.f32.mrb[22].mxu1  ;;  %v6508_v51 = vadd.f32 %v6507_v1, %v6493_v26 }
 0x58b   : > { %v9510_v61 = vpop.f32.mrb[23].mxu1 }
 0x58c   : > { %v6346_v2 = vadd.f32 %v9508_v22, %v9486_v24  ;;  %v9511_v59 = vadd.f32 %v9510_v61, %v9509_v55  ;;  %v6494_v22 = vmul.f32 %v13290_v16, %v6444_v32 }
 0x58e   : > { %v6349_v60 = vadd.f32 %v9511_v59, %v9489_v37 }
 0x5ae   : > { %v9528_v33 = vpop.f32.mrb[24].mxu1 }
 0x5af   : > { %v9529_v19 = vpop.f32.mrb[25].mxu1 }
 0x5b0   : > { %v9530_v49 = vadd.f32 %v9529_v19, %v9528_v33  ;;  %v9531_v31 = vpop.f32.mrb[26].mxu1  ;;  %v13318_v19 = vrot.slane %v2747_v5, %v6475_v12 }
 0x5b1   : > { %v9532_v41 = vpop.f32.mrb[27].mxu1 }
 0x5b2   : > { %v9533_v6 = vadd.f32 %v9532_v41, %v9531_v31  ;;  %v6387_v17 = vadd.f32 %v9530_v49, %v6346_v2  ;;  %v6500_v2 = vadd.f32 %v6499_v38, %v6487_v20  ;;  %v6509_v49 = vadd.f32 %v6508_v51, %v6494_v22  ;;  %v13336_v20 = vld [vmem:[%s14833_s7 + $0x8] sm:$0xff] }
 0x5b4   : > { %v6390_v47 = vadd.f32 %v9533_v6, %v6349_v60 }
 0x5c0   : > { %v13296_v18 = vpop.f32.mrb[24].mxu0 }
 0x5c1   : > { %v6438_v25 = vmax.f32 %v13296_v18, 0.0  ;;  %v13301_v14 = vpop.f32.mrb[25].mxu0 }
 0x5c2   : > { %v6265_v24 = vpop.f32.mrb[26].mxu0  ;;  %v6439_v61 = vmax.f32 %v13301_v14, 0.0 }
 0x5c3   : > { %v6445_v37 = vmax.f32 %v6265_v24, 0.0  ;;  %v6267_v29 = vpop.f32.mrb[27].mxu0  ;;  %v6488_v55 = vmul.f32 %v13298_v27, %v6438_v25 }
 0x5c4   : > { %v6446_v39 = vmax.f32 %v6267_v29, 0.0  ;;  %v6489_v41 = vmul.f32 %v13306_v10, %v6439_v61 }
 0x5c5   : > { %v6495_v60 = vmul.f32 %v13298_v27, %v6445_v37  ;;  %v6501_v31 = vadd.f32 %v6500_v2, %v6488_v55 }
 0x5c6   : > { %v6427_v59 = vpop.f32.mrb[28].mxu1  ;;  %v6496_v44 = vmul.f32 %v13306_v10, %v6446_v39 }
 0x5c7   : > { %v13316_v33 = vadd.f32 %v6427_v59, %v6387_v17  ;;  %v9593_v9 = vpop.f32.mrb[29].mxu1  ;;  %v6510_v34 = vadd.f32 %v6509_v49, %v6495_v60  ;;  %v6502_v5 = vadd.f32 %v6501_v31, %v6489_v41 }
 0x5c8   : > { %v6430_v6 = vpop.f32.mrb[30].mxu1 }
 0x5c9   : > { %v6440_v28 = vmax.f32 %v13316_v33, 0.0  ;;  %v6431_v4 = vadd.f32 %v6430_v6, %v6390_v47  ;;  %v9594_v54 = vpop.f32.mrb[31].mxu1  ;;  %v6511_v52 = vadd.f32 %v6510_v34, %v6496_v44  ;;  %v6516_v47 = vld [vmem:[%s14833_s7] sm:$0xff]  ;;  %s14950_s7 = sld [smem:[#allocation40_spill]] }
 0x5ca   : > { %9599 = vmatprep.mubr.msk.f32.mxu1 %vm4094_vm7, %v6516_v47 }
 0x5cb   : > { %v6490_v17 = vmul.f32 %v13318_v19, %v6440_v28  ;;  %v6447_v62 = vmax.f32 %v6431_v4, 0.0 }
 0x5cd   : > { %v6497_v11 = vmul.f32 %v13318_v19, %v6447_v62  ;;  %v6503_v45 = vsel %vm14608_vm2, %v6490_v17, 0.0 }
 0x5ce   : > { %v6504_v48 = vadd.f32 %v6503_v45, %v6502_v5 }
 0x5cf   : > { %v6512_v0 = vsel %vm14608_vm2, %v6497_v11, 0.0 }
 0x5d0   : > { %6505 = vadd.xlane.f32.xlu0 %v6504_v48  ;;  %v6513_v56 = vadd.f32 %v6512_v0, %v6511_v52 }
 0x5d2   : > { %6514 = vadd.xlane.f32.xlu1 %v6513_v56 }
 0x65d   : > { %v6506_v26 = vpop.xlane.xlu0 %6505 }
 0x65f   : > { %v6515_v1 = vpop.xlane.xlu1 %6514 }
 0x660   : > { %v9623_v38 = vpack.c.bf16 %v6515_v1, %v6506_v26 }
 0x662   : > { %9624 = vmatprep.subr.bf16.mxu1 %v9623_v38 }
 0x663   : > { %9626 = vmatpush3.bf16.msra.mxu1 %v9623_v38 }
 0x666   : > { %9600 = vmatmul.mubr.msk.f32.vlgmr.msra.gmra.mrb[32].mxu1 %vm4094_vm7, %v13336_v20 }
 0x667   : > { %9606 = vmatprep.mubr.msk.f32.mxu1 %vm4094_vm7, %v6516_v47 }
 0x739   : > { %v9601_v24 = vpop.f32.mrb[32].mxu1 }
 0x73a   : > { %v6601_v12 = vmul.f32 0.001953125, %v9601_v24  ;;  %v6591_v29 = vpop.f32.mrb[33].mxu1 }
 0x73b   : > { %v6600_v51 = vmul.f32 0.001953125, %v6591_v29 }
 0x73c   : > { %6609 = vperm.xlu1 %9743, %v6601_v12  }
 0x73d   : > { %6604 = vperm.xlu0 %9742, %v6600_v51  }
 0x7bb   : > { %v6610_v22 = vpop.permute.xlu1 %6609 }
 0x7bc   : > { %v6605_v55 = vpop.permute.xlu0 %6604  ;;  %v13343_v2 = vsub.f32 %v6441_v7, %v6610_v22  ;;  %v13347_v59 = vsub.f32 %v6442_v21, %v6610_v22  ;;  %v13351_v60 = vsub.f32 %v6443_v42, %v6610_v22  ;;  %v13355_v33 = vsub.f32 %v6444_v32, %v6610_v22 }
 0x7bd   : > { %v13357_v9 = vsub.f32 %v6445_v37, %v6610_v22  ;;  %v13359_v49 = vsub.f32 %v6446_v39, %v6610_v22  ;;  %v13367_v35 = vsub.f32 %v6447_v62, %v6610_v22  ;;  %v13371_v40 = vsub.f32 %v6434_v30, %v6605_v55 }
 0x7be   : > { %v6633_v53 = vmul.f32 %v13343_v2, %v13263_v46  ;;  %v6634_v3 = vmul.f32 %v13347_v59, %v13266_v13  ;;  %v6635_v7 = vmul.f32 %v13351_v60, %v13271_v43  ;;  %v13375_v21 = vsub.f32 %v6435_v23, %v6605_v55 }
 0x7bf   : > { %v6636_v42 = vmul.f32 %v13355_v33, %v13290_v16  ;;  %v6637_v39 = vmul.f32 %v13357_v9, %v13298_v27  ;;  %v13383_v31 = vsub.f32 %v6436_v58, %v6605_v55  ;;  %v6638_v8 = vmul.f32 %v13359_v49, %v13306_v10 }
 0x7c0   : > { %v6647_v32 = vmul.f32 %v6633_v53, %v6633_v53  ;;  %v6648_v37 = vmul.f32 %v6634_v3, %v6634_v3  ;;  %v6649_v30 = vmul.f32 %v6635_v7, %v6635_v7  ;;  %v13389_v36 = vsub.f32 %v6437_v63, %v6605_v55  ;;  %v6781_v3 = vld [vmem:[%s14834_s6] sm:$0xff]  ;;  %v6782_v7 = vld [vmem:[%s14834_s6 + $0x8] sm:$0xff]  ;;  %s9831_s6 = smov 111  }
 0x7c1   : > { %v6639_v23 = vmul.f32 %v13367_v35, %v13318_v19  ;;  %v13395_v6 = vsub.f32 %v6438_v25, %v6605_v55  ;;  %v6626_v15 = vmul.f32 %v13371_v40, %v13263_v46  ;;  %v6627_v58 = vmul.f32 %v13375_v21, %v13266_v13 }
 0x7c2   : > { %v6663_v41 = vadd.f32 %v6648_v37, %v6647_v32  ;;  %v6650_v4 = vmul.f32 %v6636_v42, %v6636_v42  ;;  %v13401_v34 = vsub.f32 %v6440_v28, %v6605_v55  ;;  %v6628_v57 = vmul.f32 %v13383_v31, %v13271_v43 }
 0x7c3   : > { %v13407_v63 = vsub.f32 %v6439_v61, %v6605_v55  ;;  %v6629_v18 = vmul.f32 %v13389_v36, %v13290_v16  ;;  %v6640_v25 = vmul.f32 %v6626_v15, %v6626_v15  ;;  %v6641_v44 = vmul.f32 %v6627_v58, %v6627_v58 }
 0x7c4   : > { %v6664_v54 = vadd.f32 %v6663_v41, %v6649_v30  ;;  %v6651_v17 = vmul.f32 %v6637_v39, %v6637_v39  ;;  %v6653_v5 = vmul.f32 %v6639_v23, %v6639_v23  ;;  %v6630_v11 = vmul.f32 %v13395_v6, %v13298_v27  ;;  %v7731_v39 = vld [vmem:[#allocation4 + $0x38] sm:$0xff] }
 0x7c5   : > { %v6642_v28 = vmul.f32 %v6628_v57, %v6628_v57  ;;  %v6654_v45 = vadd.f32 %v6641_v44, %v6640_v25  ;;  %v6652_v52 = vmul.f32 %v6638_v8, %v6638_v8  ;;  %v6632_v14 = vmul.f32 %v13401_v34, %v13318_v19  ;;  %v6753_v25 = vld [vmem:[%s14835_s11] sm:$0xff] }
 0x7c6   : > { %v6665_v62 = vadd.f32 %v6664_v54, %v6650_v4  ;;  %v6631_v61 = vmul.f32 %v13407_v63, %v13306_v10  ;;  %v6643_v0 = vmul.f32 %v6629_v18, %v6629_v18  ;;  %v6668_v26 = vsel %vm14608_vm2, %v6653_v5, 0.0  ;;  %v6754_v18 = vld [vmem:[%s14835_s11 + $0x8] sm:$0xff] }
 0x7c7   : > { %v6655_v56 = vadd.f32 %v6654_v45, %v6642_v28  ;;  %v6644_v1 = vmul.f32 %v6630_v11, %v6630_v11  ;;  %v6646_v12 = vmul.f32 %v6632_v14, %v6632_v14 }
 0x7c8   : > { %v6666_v48 = vadd.f32 %v6665_v62, %v6651_v17  ;;  %v6645_v29 = vmul.f32 %v6631_v61, %v6631_v61 }
 0x7c9   : > { %v6656_v38 = vadd.f32 %v6655_v56, %v6643_v0  ;;  %v6659_v55 = vsel %vm14608_vm2, %v6646_v12, 0.0 }
 0x7ca   : > { %v6667_v47 = vadd.f32 %v6666_v48, %v6652_v52 }
 0x7cb   : > { %v6657_v51 = vadd.f32 %v6656_v38, %v6644_v1 }
 0x7cc   : > { %v6669_v24 = vadd.f32 %v6668_v26, %v6667_v47 }
 0x7cd   : > { %v6658_v22 = vadd.f32 %v6657_v51, %v6645_v29 }
 0x7ce   : > { %6670 = vadd.xlane.f32.xlu0 %v6669_v24 }
 0x7cf   : > { %v6660_v53 = vadd.f32 %v6659_v55, %v6658_v22 }
 0x7d1   : > { %6661 = vadd.xlane.f32.xlu1 %v6660_v53 }
 0x7e2   : > { %6785 = vperm.xlu1 %9743, %v6781_v3  }
 0x7e4   : > { %7751 = vrot.lane.b32.xlu0 %v7731_v39, %s14634_s13 }
 0x7e6   : > { %6790 = vperm.xlu1 %9743, %v6782_v7  }
 0x7e8   : > { %7799 = vrot.lane.b32.xlu0 %v7731_v39, %s14636_s14 }
 0x7ec   : > { %7847 = vrot.lane.b32.xlu0 %v7731_v39, %s14639_s17 }
 0x7f0   : > { %7895 = vrot.lane.b32.xlu0 %v7731_v39, %s14641_s18 }
 0x85b   : > { %v6671_v42 = vpop.xlane.xlu0 %6670 }
 0x85e   : > { %v6662_v32 = vpop.xlane.xlu1 %6661 }
 0x85f   : > { %v9627_v37 = vpack.c.bf16 %v6671_v42, %v6662_v32  ;;  %v13431_v8 = vpop.permute.xlu0 %7751 }
 0x860   : > { %7772 = vst.msk [vmem:[#allocation5 + $0x420] sm:$0xff] %vm14608_vm2, %v13431_v8 }
 0x861   : > { %9628 = vmatprep.subr.bf16.mxu1 %v9627_v37 }
 0x862   : > { %9630 = vmatpush3.bf16.msra.mxu1 %v9627_v37  ;;  %v6786_v11 = vpop.permute.xlu1 %6785 }
 0x863   : > { %v13435_v30 = vpop.permute.xlu0 %7799 }
 0x864   : > { %7820 = vst.msk [vmem:[#allocation5 + $0x458] sm:$0xff] %vm14608_vm2, %v13435_v30 }
 0x865   : > { %9607 = vmatmul.mubr.msk.f32.vlgmr.msra.gmra.mrb[34].mxu1 %vm4094_vm7, %v13336_v20 }
 0x866   : > { %v6791_v28 = vpop.permute.xlu1 %6790 }
 0x867   : > { %v13439_v20 = vpop.permute.xlu0 %7847 }
 0x868   : > { %7868 = vst.msk [vmem:[#allocation5 + $0x490] sm:$0xff] %vm14608_vm2, %v13439_v20 }
 0x86b   : > { %v13443_v4 = vpop.permute.xlu0 %7895 }
 0x86c   : > { %7916 = vst.msk [vmem:[#allocation5 + $0x4c8] sm:$0xff] %vm14608_vm2, %v13443_v4 }
 0x938   : > { %v9608_v41 = vpop.f32.mrb[34].mxu1 }
 0x939   : > { %v6748_v23 = vmul.f32 0.001953125, %v9608_v41  ;;  %v6738_v15 = vpop.f32.mrb[35].mxu1 }
 0x93a   : > { %v6747_v58 = vmul.f32 0.001953125, %v6738_v15 }
 0x93b   : > { %v6750_v54 = vadd.f32 1e-05, %v6748_v23 }
 0x93c   : > { %v6749_v57 = vadd.f32 1e-05, %v6747_v58 }
 0x93d   : > { %9767 = vrsqrt.f32 %v6750_v54 }
 0x93e   : > { %9769 = vrsqrt.f32 %v6749_v57 }
 0x947   : > { %v9768_v44 = vpop.eup %9767 }
 0x948   : > { %v9770_v17 = vpop.eup %9769  ;;  %v6756_v62 = vmul.f32 %v9768_v44, %v6754_v18 }
 0x949   : > { %v6755_v5 = vmul.f32 %v9770_v17, %v6753_v25 }
 0x94a   : > { %6764 = vperm.xlu0 %9742, %v6756_v62  }
 0x94b   : > { %6759 = vperm.xlu1 %9743, %v6755_v5  }
 0x94e   : > { %7943 = vrot.lane.b32.xlu0 %v7731_v39, %s14642_s27 }
 0x952   : > { %7991 = vrot.lane.b32.xlu0 %v7731_v39, %s14644_s28 }
 0x956   : > { %8039 = vrot.lane.b32.xlu0 %v7731_v39, %s14648_s19 }
 0x95a   : > { %8087 = vrot.lane.b32.xlu0 %v7731_v39, %s14651_s2 }
 0x95e   : > { %8135 = vrot.lane.b32.xlu0 %v7731_v39, %s14654_s12 }
 0x9c9   : > { %v6765_v45 = vpop.permute.xlu0 %6764 }
 0x9ca   : > { %v6760_v52 = vpop.permute.xlu1 %6759  ;;  %v6778_v48 = vmul.f32 %v6765_v45, %v13357_v9  ;;  %v6774_v14 = vmul.f32 %v6765_v45, %v13343_v2  ;;  %v6780_v61 = vmul.f32 %v6765_v45, %v13367_v35  ;;  %v6775_v0 = vmul.f32 %v6765_v45, %v13347_v59 }
 0x9cb   : > { %v6771_v56 = vmul.f32 %v6760_v52, %v13395_v6  ;;  %v6767_v47 = vmul.f32 %v6760_v52, %v13371_v40  ;;  %v6773_v26 = vmul.f32 %v6760_v52, %v13401_v34  ;;  %v6768_v1 = vmul.f32 %v6760_v52, %v13375_v21 }
 0x9cc   : > { %v6804_v38 = vadd.f32 %v6791_v28, %v6778_v48  ;;  %v6800_v24 = vadd.f32 %v6791_v28, %v6774_v14  ;;  %v6806_v12 = vadd.f32 %v6791_v28, %v6780_v61  ;;  %v6801_v29 = vadd.f32 %v6791_v28, %v6775_v0 }
 0x9cd   : > { %v6797_v51 = vadd.f32 %v6786_v11, %v6771_v56  ;;  %v6793_v9 = vadd.f32 %v6786_v11, %v6767_v47  ;;  %v6799_v22 = vadd.f32 %v6786_v11, %v6773_v26  ;;  %v6794_v2 = vadd.f32 %v6786_v11, %v6768_v1  ;;  %v13466_v55 = vpop.permute.xlu0 %7943 }
 0x9ce   : > { %v6826_v59 = vmul.f32 %v6804_v38, %v13298_v27  ;;  %v6822_v35 = vmul.f32 %v6800_v24, %v13263_v46  ;;  %v6828_v40 = vmul.f32 %v6806_v12, %v13318_v19  ;;  %v6823_v6 = vmul.f32 %v6801_v29, %v13266_v13  ;;  %7964 = vst.msk [vmem:[#allocation5 + $0x500] sm:$0xff] %vm14608_vm2, %v13466_v55 }
 0x9cf   : > { %v6819_v21 = vmul.f32 %v6797_v51, %v13298_v27  ;;  %v6815_v34 = vmul.f32 %v6793_v9, %v13263_v46  ;;  %v6821_v53 = vmul.f32 %v6799_v22, %v13318_v19  ;;  %v6816_v3 = vmul.f32 %v6794_v2, %v13266_v13 }
 0x9d0   : > { %v6769_v7 = vmul.f32 %v6760_v52, %v13383_v31  ;;  %v6776_v42 = vmul.f32 %v6765_v45, %v13351_v60  ;;  %v6770_v32 = vmul.f32 %v6760_v52, %v13389_v36  ;;  %v6777_v37 = vmul.f32 %v6765_v45, %v13355_v33 }
 0x9d1   : > { %v6833_v39 = vpack.c.bf16 %v6826_v59, %v6819_v21  ;;  %v6829_v41 = vpack.c.bf16 %v6822_v35, %v6815_v34  ;;  %v13482_v23 = vpop.permute.xlu0 %7991  ;;  %v6835_v54 = vpack.c.bf16 %v6828_v40, %v6821_v53  ;;  %v6830_v31 = vpack.c.bf16 %v6823_v6, %v6816_v3  ;;  %v13615_v6 = vld [vmem:[%s14836_s4 + $0x4] ss:$16 sps:$4 sm:$0xff]  }
 0x9d2   : > { %v6795_v15 = vadd.f32 %v6786_v11, %v6769_v7  ;;  %v6802_v58 = vadd.f32 %v6791_v28, %v6776_v42  ;;  %8012 = vst.msk [vmem:[#allocation5 + $0x538] sm:$0xff] %vm14608_vm2, %v13482_v23  ;;  %v6796_v57 = vadd.f32 %v6786_v11, %v6770_v32  ;;  %v6803_v60 = vadd.f32 %v6791_v28, %v6777_v37 }
 0x9d3   : > { %6851 = vrot.lane.b32.xlu0 %v6833_v39, %s9831_s6  ;;  %6843 = vrot.lane.b32.xlu1 %v6829_v41, %s9831_s6  ;;  %v6772_v18 = vmul.f32 %v6760_v52, %v13407_v63  ;;  %v6779_v25 = vmul.f32 %v6765_v45, %v13359_v49 }
 0x9d4   : > { %v6817_v36 = vmul.f32 %v6795_v15, %v13271_v43  ;;  %v6824_v33 = vmul.f32 %v6802_v58, %v13271_v43  ;;  %v6818_v17 = vmul.f32 %v6796_v57, %v13290_v16  ;;  %v6825_v5 = vmul.f32 %v6803_v60, %v13290_v16  ;;  %8405 = vmatprep.mubr.bf16.mxu1 %v13615_v6 }
 0x9d5   : > { %v13490_v44 = vpop.permute.xlu0 %8039  ;;  %v6798_v48 = vadd.f32 %v6786_v11, %v6772_v18  ;;  %v6805_v14 = vadd.f32 %v6791_v28, %v6779_v25  ;;  %8491 = vmatprep.mubr.bf16.mxu0 %v13615_v6 }
 0x9d6   : > { %8060 = vst.msk [vmem:[#allocation5 + $0x570] sm:$0xff] %vm14608_vm2, %v13490_v44  ;;  %v6831_v62 = vpack.c.bf16 %v6824_v33, %v6817_v36  ;;  %v6832_v49 = vpack.c.bf16 %v6825_v5, %v6818_v17 }
 0x9d7   : > { %6855 = vrot.lane.b32.xlu0 %v6835_v54, %s9831_s6  ;;  %6845 = vrot.lane.b32.xlu1 %v6830_v31, %s9831_s6  ;;  %v6820_v63 = vmul.f32 %v6798_v48, %v13306_v10  ;;  %v6827_v45 = vmul.f32 %v6805_v14, %v13306_v10 }
 0x9d9   : > { %v13496_v61 = vpop.permute.xlu0 %8087  ;;  %v6834_v0 = vpack.c.bf16 %v6827_v45, %v6820_v63 }
 0x9da   : > { %8108 = vst.msk [vmem:[#allocation5 + $0x5a8] sm:$0xff] %vm14608_vm2, %v13496_v61 }
 0x9db   : > { %6847 = vrot.lane.b32.xlu1 %v6831_v62, %s9831_s6 }
 0x9dd   : > { %v13502_v52 = vpop.permute.xlu0 %8135 }
 0x9de   : > { %8156 = vst.msk [vmem:[#allocation5 + $0x5e0] sm:$0xff] %vm14608_vm2, %v13502_v52 }
 0x9df   : > { %6849 = vrot.lane.b32.xlu1 %v6832_v49, %s9831_s6 }
 0x9e3   : > { %6853 = vrot.lane.b32.xlu1 %v6834_v0, %s9831_s6 }
 0xa45   : > { %v6844_v11 = vpop.permute.xlu1 %6843  ;;  %v6852_v38 = vpop.permute.xlu0 %6851 }
 0xa46   : > { %6872 = vst.msk [vmem:[#allocation4] sm:$0xff] %vm6871_vm9, %v6844_v11  ;;  %vm14838_vm9 = vmmov %vm14837_vm5 }
 0xa49   : > { %v6846_v28 = vpop.permute.xlu1 %6845  ;;  %v6856_v51 = vpop.permute.xlu0 %6855 }
 0xa4a   : > { %v13507_v56 = vsel %vm6857_vm4, %v6844_v11, %v6846_v28 }
 0xa4b   : > { %8373 = vmatprep.subr.bf16.mxu1 %v13507_v56 }
 0xa4d   : > { %v6880_v47 = vld [vmem:[#allocation4] sm:$0xff]  ;;  %v6848_v26 = vpop.permute.xlu1 %6847 }
 0xa4e   : > { %v13511_v1 = vsel %vm6857_vm4, %v6846_v28, %v6848_v26  ;;  %6956 = vrot.lane.b32.xlu1 %v6880_v47, %s14661_s9  ;;  %6908 = vrot.lane.b32.xlu0 %v6880_v47, %s14659_s10 }
 0xa4f   : > { %8374 = vmatpush1.bf16.msra.mxu1 %v6880_v47 }
 0xa51   : > { %v6850_v24 = vpop.permute.xlu1 %6849 }
 0xa52   : > { %v13516_v12 = vsel %vm6857_vm4, %v6848_v26, %v6850_v24  ;;  %v13519_v29 = vsel %vm6857_vm4, %v6850_v24, %v6852_v38  ;;  %7052 = vrot.lane.b32.xlu1 %v6880_v47, %s14665_s8  ;;  %7004 = vrot.lane.b32.xlu0 %v6880_v47, %s14663_s22 }
 0xa53   : > { %6875 = vst [vmem:[#allocation4 + $0x18] sm:$0xff] %v13516_v12  ;;  %6876 = vst [vmem:[#allocation4 + $0x20] sm:$0xff] %v13519_v29  ;;  %8459 = vmatprep.subr.bf16.mxu0 %v13516_v12 }
 0xa54   : > { %8460 = vmatpush1.bf16.msra.mxu0 %v13511_v1 }
 0xa55   : > { %v6854_v9 = vpop.permute.xlu1 %6853 }
 0xa56   : > { %v13528_v22 = vsel %vm6857_vm4, %v6852_v38, %v6854_v9  ;;  %v6863_v2 = vsel %vm6857_vm4, %v6854_v9, %v6856_v51  ;;  %7148 = vrot.lane.b32.xlu1 %v6880_v47, %s14645_s30  ;;  %7100 = vrot.lane.b32.xlu0 %v6880_v47, %s14643_s29  ;;  %vm14839_vm4 = vcmask 1031168  }
 0xa57   : > { %6877 = vst [vmem:[#allocation4 + $0x28] sm:$0xff] %v13528_v22  ;;  %6879 = vst.msk [vmem:[#allocation4 + $0x30] sm:$0xff] %vm6878_vm6, %v6863_v2 }
 0xa58   : > { %vm14840_vm6 = vmmov %vm14839_vm4 }
 0xa5a   : > { %7244 = vrot.lane.b32.xlu1 %v6880_v47, %s14649_s0  ;;  %7196 = vrot.lane.b32.xlu0 %v6880_v47, %s14647_s20  ;;  %v13536_v59 = vld [vmem:[#allocation4 + $0x20] sm:$0xff] }
 0xa5b   : > { %6891 = vst [vmem:[#allocation5 + $0x20] sm:$0xff] %v13536_v59 }
 0xa5e   : > { %7340 = vrot.lane.b32.xlu1 %v6880_v47, %s14652_s3  ;;  %7292 = vrot.lane.b32.xlu0 %v6880_v47, %s14650_s1  ;;  %v13541_v35 = vld [vmem:[#allocation4 + $0x28] sm:$0xff]  ;;  %v13543_v40 = vld [vmem:[#allocation4 + $0x30] sm:$0xff] }
 0xa5f   : > { %6893 = vst.msk [vmem:[#allocation5 + $0x30] sm:$0xff] %vm14608_vm2, %v13543_v40  ;;  %vm14841_vm2 = vcmask 965632   ;;  %v13718_v45 = vld [vmem:[#allocation4 + $0x30] sm:$0xff] }
 0xa62   : > { %7388 = vrot.lane.b32.xlu1 %v6880_v47, %s14653_s21  ;;  %7436 = vrot.lane.b32.xlu0 %v6880_v47, %s14646_s23 }
 0xa66   : > { %7484 = vrot.lane.b32.xlu1 %v6880_v47, %s14629_s25  ;;  %7532 = vrot.lane.b32.xlu0 %v6880_v47, %s14630_s15 }
 0xa6a   : > { %7582 = vrot.lane.b32.xlu1 %v6880_v47, %s14631_s16  ;;  %7635 = vrot.lane.b32.xlu0 %v6880_v47, %s14632_s26 }
 0xa6e   : > { %7688 = vrot.lane.b32.xlu1 %v6880_v47, %s14633_s24  ;;  %6912 = vrot.lane.b32.xlu0 %v13511_v1, %s14659_s10 }
 0xa72   : > { %6910 = vrot.lane.b32.xlu1 %v13507_v56, %s14659_s10  ;;  %6960 = vrot.lane.b32.xlu0 %v13511_v1, %s14661_s9 }
 0xa76   : > { %6958 = vrot.lane.b32.xlu1 %v13507_v56, %s14661_s9  ;;  %7006 = vrot.lane.b32.xlu0 %v13507_v56, %s14663_s22 }
 0xa7a   : > { %7008 = vrot.lane.b32.xlu1 %v13511_v1, %s14663_s22  ;;  %7056 = vrot.lane.b32.xlu0 %v13511_v1, %s14665_s8 }
 0xa7e   : > { %7054 = vrot.lane.b32.xlu1 %v13507_v56, %s14665_s8  ;;  %7102 = vrot.lane.b32.xlu0 %v13507_v56, %s14643_s29 }
 0xa82   : > { %7104 = vrot.lane.b32.xlu1 %v13511_v1, %s14643_s29  ;;  %7152 = vrot.lane.b32.xlu0 %v13511_v1, %s14645_s30 }
 0xa86   : > { %7150 = vrot.lane.b32.xlu1 %v13507_v56, %s14645_s30  ;;  %7198 = vrot.lane.b32.xlu0 %v13507_v56, %s14647_s20 }
 0xa8a   : > { %7200 = vrot.lane.b32.xlu1 %v13511_v1, %s14647_s20  ;;  %7248 = vrot.lane.b32.xlu0 %v13511_v1, %s14649_s0 }
 0xa8e   : > { %7246 = vrot.lane.b32.xlu1 %v13507_v56, %s14649_s0  ;;  %7294 = vrot.lane.b32.xlu0 %v13507_v56, %s14650_s1 }
 0xa92   : > { %7296 = vrot.lane.b32.xlu1 %v13511_v1, %s14650_s1  ;;  %7344 = vrot.lane.b32.xlu0 %v13511_v1, %s14652_s3 }
 0xa96   : > { %7342 = vrot.lane.b32.xlu1 %v13507_v56, %s14652_s3  ;;  %7390 = vrot.lane.b32.xlu0 %v13507_v56, %s14653_s21 }
 0xa9a   : > { %7392 = vrot.lane.b32.xlu1 %v13511_v1, %s14653_s21  ;;  %7438 = vrot.lane.b32.xlu0 %v13507_v56, %s14646_s23 }
 0xa9e   : > { %7440 = vrot.lane.b32.xlu1 %v13511_v1, %s14646_s23  ;;  %7488 = vrot.lane.b32.xlu0 %v13511_v1, %s14629_s25 }
 0xaa2   : > { %7486 = vrot.lane.b32.xlu1 %v13507_v56, %s14629_s25  ;;  %7534 = vrot.lane.b32.xlu0 %v13507_v56, %s14630_s15 }
 0xaa6   : > { %7536 = vrot.lane.b32.xlu1 %v13511_v1, %s14630_s15  ;;  %7586 = vrot.lane.b32.xlu0 %v13511_v1, %s14631_s16 }
 0xaaa   : > { %7584 = vrot.lane.b32.xlu1 %v13507_v56, %s14631_s16  ;;  %7637 = vrot.lane.b32.xlu0 %v13507_v56, %s14632_s26 }
 0xaae   : > { %7639 = vrot.lane.b32.xlu1 %v13511_v1, %s14632_s26  ;;  %7692 = vrot.lane.b32.xlu0 %v13511_v1, %s14633_s24 }
 0xab2   : > { %7690 = vrot.lane.b32.xlu1 %v13507_v56, %s14633_s24  ;;  %7741 = vrot.lane.b32.xlu0 %v13511_v1, %s14634_s13 }
 0xab6   : > { %7739 = vrot.lane.b32.xlu0 %v13507_v56, %s14634_s13  ;;  %7743 = vrot.lane.b32.xlu1 %v13516_v12, %s14634_s13 }
 0xaba   : > { %7791 = vrot.lane.b32.xlu0 %v13516_v12, %s14636_s14  ;;  %7789 = vrot.lane.b32.xlu1 %v13511_v1, %s14636_s14 }
 0xabe   : > { %7837 = vrot.lane.b32.xlu0 %v13511_v1, %s14639_s17  ;;  %7787 = vrot.lane.b32.xlu1 %v13507_v56, %s14636_s14 }
 0xac0   : > { %v6957_v21 = vpop.permute.xlu1 %6956  ;;  %v6909_v34 = vpop.permute.xlu0 %6908 }
 0xac2   : > { %7835 = vrot.lane.b32.xlu0 %v13507_v56, %s14639_s17  ;;  %7839 = vrot.lane.b32.xlu1 %v13516_v12, %s14639_s17 }
 0xac4   : > { %v7053_v53 = vpop.permute.xlu1 %7052  ;;  %v7005_v3 = vpop.permute.xlu0 %7004 }
 0xac6   : > { %7887 = vrot.lane.b32.xlu0 %v13516_v12, %s14641_s18  ;;  %7885 = vrot.lane.b32.xlu1 %v13511_v1, %s14641_s18 }
 0xac8   : > { %v13651_v7 = vpop.permute.xlu1 %7148  ;;  %v7101_v42 = vpop.permute.xlu0 %7100 }
 0xaca   : > { %7933 = vrot.lane.b32.xlu0 %v13511_v1, %s14642_s27  ;;  %7883 = vrot.lane.b32.xlu1 %v13507_v56, %s14641_s18 }
 0xacc   : > { %v13657_v32 = vpop.permute.xlu1 %7244  ;;  %v13659_v37 = vpop.permute.xlu0 %7196 }
 0xace   : > { %7931 = vrot.lane.b32.xlu0 %v13507_v56, %s14642_s27  ;;  %7935 = vrot.lane.b32.xlu1 %v13516_v12, %s14642_s27 }
 0xad0   : > { %v13665_v39 = vpop.permute.xlu1 %7340  ;;  %v13667_v41 = vpop.permute.xlu0 %7292 }
 0xad2   : > { %7983 = vrot.lane.b32.xlu0 %v13516_v12, %s14644_s28  ;;  %7981 = vrot.lane.b32.xlu1 %v13511_v1, %s14644_s28 }
 0xad4   : > { %v13673_v15 = vpop.permute.xlu1 %7388  ;;  %v13675_v58 = vpop.permute.xlu0 %7436 }
 0xad6   : > { %8029 = vrot.lane.b32.xlu0 %v13511_v1, %s14648_s19  ;;  %7979 = vrot.lane.b32.xlu1 %v13507_v56, %s14644_s28 }
 0xad8   : > { %v13681_v54 = vpop.permute.xlu1 %7484  ;;  %v13683_v31 = vpop.permute.xlu0 %7532 }
 0xada   : > { %8027 = vrot.lane.b32.xlu0 %v13507_v56, %s14648_s19  ;;  %8031 = vrot.lane.b32.xlu1 %v13516_v12, %s14648_s19 }
 0xadc   : > { %v13689_v57 = vpop.permute.xlu1 %7582  ;;  %v13691_v60 = vpop.permute.xlu0 %7635 }
 0xade   : > { %8079 = vrot.lane.b32.xlu0 %v13516_v12, %s14651_s2  ;;  %8077 = vrot.lane.b32.xlu1 %v13511_v1, %s14651_s2 }
 0xae0   : > { %v13697_v36 = vpop.permute.xlu1 %7688  ;;  %v13699_v33 = vpop.permute.xlu0 %6912 }
 0xae2   : > { %8125 = vrot.lane.b32.xlu0 %v13511_v1, %s14654_s12  ;;  %8075 = vrot.lane.b32.xlu1 %v13507_v56, %s14651_s2 }
 0xae4   : > { %v6911_v18 = vpop.permute.xlu1 %6910  ;;  %v13705_v25 = vpop.permute.xlu0 %6960 }
 0xae5   : > { %v6922_v17 = vsel %vm14837_vm5, %v6909_v34, %v6911_v18  ;;  %v6923_v62 = vsel %vm14838_vm9, %v6911_v18, %v13699_v33  ;;  %vm14842_vm5 = vmmov %vm14841_vm2 }
 0xae6   : > { %8123 = vrot.lane.b32.xlu0 %v13507_v56, %s14654_s12  ;;  %8127 = vrot.lane.b32.xlu1 %v13516_v12, %s14654_s12 }
 0xae7   : > { %8375 = vmatprep.subr.bf16.mxu1 %v6923_v62 }
 0xae8   : > { %v6959_v5 = vpop.permute.xlu1 %6958  ;;  %v7007_v48 = vpop.permute.xlu0 %7006  ;;  %8376 = vmatpush1.bf16.msra.mxu1 %v6922_v17 }
 0xae9   : > { %v6970_v14 = vsel %vm14839_vm4, %v6957_v21, %v6959_v5  ;;  %v6971_v49 = vsel %vm14840_vm6, %v6959_v5, %v13705_v25  ;;  %v7018_v63 = vsel %vm14841_vm2, %v7005_v3, %v7007_v48  ;;  %vm14843_vm2 = vcmask 228352  }
 0xaea   : > { %6918 = vrot.lane.b32.xlu1 %v13528_v22, %s14659_s10  ;;  %6920 = vrot.lane.b32.xlu0 %v13718_v45, %s14659_s10  ;;  %vm14844_vm9 = vmmov %vm14843_vm2  ;;  %vm14845_vm4 = vcmask 220160  }
 0xaeb   : > { %8377 = vmatprep.subr.bf16.mxu1 %v6971_v49  ;;  %vm14846_vm6 = vmmov %vm14845_vm4 }
 0xaec   : > { %v13724_v0 = vpop.permute.xlu1 %7008  ;;  %v13726_v11 = vpop.permute.xlu0 %7056  ;;  %8378 = vmatpush1.bf16.msra.mxu1 %v6970_v14 }
 0xaed   : > { %v7019_v28 = vsel %vm14842_vm5, %v7007_v48, %v13724_v0  ;;  %vm14847_vm5 = vcmask 211968  }
 0xaee   : > { %6916 = vrot.lane.b32.xlu1 %v13519_v29, %s14659_s10  ;;  %6966 = vrot.lane.b32.xlu0 %v13528_v22, %s14661_s9 }
 0xaef   : > { %8379 = vmatprep.subr.bf16.mxu1 %v7019_v28 }
 0xaf0   : > { %v7055_v56 = vpop.permute.xlu1 %7054  ;;  %v7103_v47 = vpop.permute.xlu0 %7102  ;;  %8380 = vmatpush1.bf16.msra.mxu1 %v7018_v63 }
 0xaf1   : > { %v7066_v26 = vsel %vm3124_vm15, %v7053_v53, %v7055_v56  ;;  %v7067_v1 = vsel %vm3124_vm15, %v7055_v56, %v13726_v11  ;;  %v7114_v38 = vsel %vm3221_vm0, %v7101_v42, %v7103_v47 }
 0xaf2   : > { %6968 = vrot.lane.b32.xlu1 %v13718_v45, %s14661_s9  ;;  %6964 = vrot.lane.b32.xlu0 %v13519_v29, %s14661_s9 }
 0xaf3   : > { %8381 = vmatprep.subr.bf16.mxu1 %v7067_v1 }
 0xaf4   : > { %v13742_v24 = vpop.permute.xlu1 %7104  ;;  %v13744_v51 = vpop.permute.xlu0 %7152  ;;  %8382 = vmatpush1.bf16.msra.mxu1 %v7066_v26 }
 0xaf5   : > { %v7115_v9 = vsel %vm3221_vm0, %v7103_v47, %v13742_v24 }
 0xaf6   : > { %7014 = vrot.lane.b32.xlu1 %v13528_v22, %s14663_s22  ;;  %7016 = vrot.lane.b32.xlu0 %v13718_v45, %s14663_s22 }
 0xaf7   : > { %8383 = vmatprep.subr.bf16.mxu1 %v7115_v9 }
 0xaf8   : > { %v7151_v2 = vpop.permute.xlu1 %7150  ;;  %v7199_v21 = vpop.permute.xlu0 %7198  ;;  %8384 = vmatpush1.bf16.msra.mxu1 %v7114_v38 }
 0xaf9   : > { %v7162_v34 = vsel %vm3318_vm1, %v13651_v7, %v7151_v2  ;;  %v7163_v53 = vsel %vm3318_vm1, %v7151_v2, %v13744_v51  ;;  %v7210_v3 = vsel %vm3415_vm11, %v13659_v37, %v7199_v21 }
 0xafa   : > { %6914 = vrot.lane.b32.xlu1 %v13516_v12, %s14659_s10  ;;  %7012 = vrot.lane.b32.xlu0 %v13519_v29, %s14663_s22 }
 0xafb   : > { %8385 = vmatprep.subr.bf16.mxu1 %v7163_v53 }
 0xafc   : > { %v13762_v42 = vpop.permute.xlu1 %7200  ;;  %v13764_v18 = vpop.permute.xlu0 %7248  ;;  %8386 = vmatpush1.bf16.msra.mxu1 %v7162_v34 }
 0xafd   : > { %v7211_v7 = vsel %vm3415_vm11, %v7199_v21, %v13762_v42 }
 0xafe   : > { %7062 = vrot.lane.b32.xlu1 %v13528_v22, %s14665_s8  ;;  %7064 = vrot.lane.b32.xlu0 %v13718_v45, %s14665_s8 }
 0xaff   : > { %8387 = vmatprep.subr.bf16.mxu1 %v7211_v7 }
 0xb00   : > { %v7247_v37 = vpop.permute.xlu1 %7246  ;;  %v7295_v17 = vpop.permute.xlu0 %7294  ;;  %8388 = vmatpush1.bf16.msra.mxu1 %v7210_v3 }
 0xb01   : > { %v7258_v62 = vsel %vm3512_vm10, %v13657_v32, %v7247_v37  ;;  %v7259_v5 = vsel %vm3512_vm10, %v7247_v37, %v13764_v18  ;;  %v7306_v48 = vsel %vm14843_vm2, %v13667_v41, %v7295_v17  ;;  %vm14848_vm2 = vmmov %vm14847_vm5 }
 0xb02   : > { %6962 = vrot.lane.b32.xlu1 %v13516_v12, %s14661_s9  ;;  %7060 = vrot.lane.b32.xlu0 %v13519_v29, %s14665_s8 }
 0xb03   : > { %8389 = vmatprep.subr.bf16.mxu1 %v7259_v5 }
 0xb04   : > { %v13782_v14 = vpop.permute.xlu1 %7296  ;;  %v13784_v49 = vpop.permute.xlu0 %7344  ;;  %8390 = vmatpush1.bf16.msra.mxu1 %v7258_v62 }
 0xb05   : > { %v7307_v32 = vsel %vm14844_vm9, %v7295_v17, %v13782_v14  ;;  %vm14849_vm9 = vcmask 138240  }
 0xb06   : > { %7110 = vrot.lane.b32.xlu1 %v13528_v22, %s14643_s29  ;;  %7112 = vrot.lane.b32.xlu0 %v13718_v45, %s14643_s29 }
 0xb07   : > { %8391 = vmatprep.subr.bf16.mxu1 %v7307_v32  ;;  %v13855_v32 = vld [vmem:[%s14836_s4] ss:$16 sps:$4 sm:$0xff]  }
 0xb08   : > { %v7343_v41 = vpop.permute.xlu1 %7342  ;;  %v7391_v63 = vpop.permute.xlu0 %7390  ;;  %8392 = vmatpush1.bf16.msra.mxu1 %v7306_v48 }
 0xb09   : > { %v7354_v28 = vsel %vm14845_vm4, %v13665_v39, %v7343_v41  ;;  %v7355_v56 = vsel %vm14846_vm6, %v7343_v41, %v13784_v49  ;;  %v7402_v47 = vsel %vm14847_vm5, %v13673_v15, %v7391_v63  ;;  %vm14850_vm4 = vmmov %vm14849_vm9  ;;  %vm8369_vm6 = vcmask 392192  }
 0xb0a   : > { %7010 = vrot.lane.b32.xlu1 %v13516_v12, %s14663_s22  ;;  %7108 = vrot.lane.b32.xlu0 %v13519_v29, %s14643_s29  ;;  %vm14851_vm5 = vcmask 449536  }
 0xb0b   : > { %8393 = vmatprep.subr.bf16.mxu1 %v7355_v56 }
 0xb0c   : > { %v13802_v26 = vpop.permute.xlu1 %7392  ;;  %v7439_v1 = vpop.permute.xlu0 %7438  ;;  %8394 = vmatpush1.bf16.msra.mxu1 %v7354_v28 }
 0xb0d   : > { %v7403_v39 = vsel %vm14848_vm2, %v7391_v63, %v13802_v26  ;;  %v7450_v38 = vsel %vm3900_vm8, %v13675_v58, %v7439_v1  ;;  %vm14852_vm2 = vmmov %vm14851_vm5 }
 0xb0e   : > { %7158 = vrot.lane.b32.xlu1 %v13528_v22, %s14645_s30  ;;  %7160 = vrot.lane.b32.xlu0 %v13718_v45, %s14645_s30 }
 0xb0f   : > { %8395 = vmatprep.subr.bf16.mxu1 %v7403_v39 }
 0xb10   : > { %v13812_v15 = vpop.permute.xlu1 %7440  ;;  %v13814_v9 = vpop.permute.xlu0 %7488  ;;  %8396 = vmatpush1.bf16.msra.mxu1 %v7402_v47 }
 0xb11   : > { %v7451_v2 = vsel %vm3900_vm8, %v7439_v1, %v13812_v15 }
 0xb12   : > { %7058 = vrot.lane.b32.xlu1 %v13516_v12, %s14665_s8  ;;  %7156 = vrot.lane.b32.xlu0 %v13519_v29, %s14645_s30 }
 0xb13   : > { %8397 = vmatprep.subr.bf16.mxu1 %v7451_v2 }
 0xb14   : > { %v7487_v58 = vpop.permute.xlu1 %7486  ;;  %v7535_v21 = vpop.permute.xlu0 %7534  ;;  %8398 = vmatpush1.bf16.msra.mxu1 %v7450_v38 }
 0xb15   : > { %v7498_v34 = vsel %vm14849_vm9, %v13681_v54, %v7487_v58  ;;  %v7499_v53 = vsel %vm14850_vm4, %v7487_v58, %v13814_v9  ;;  %v7546_v3 = vsel %vm4094_vm7, %v13683_v31, %v7535_v21  ;;  %vm14853_vm9 = vcmask 441344  }
 0xb16   : > { %7206 = vrot.lane.b32.xlu1 %v13528_v22, %s14647_s20  ;;  %7208 = vrot.lane.b32.xlu0 %v13718_v45, %s14647_s20  ;;  %vm14854_vm4 = vmmov %vm14853_vm9 }
 0xb17   : > { %8399 = vmatprep.subr.bf16.mxu1 %v7499_v53 }
 0xb18   : > { %v13832_v7 = vpop.permute.xlu1 %7536  ;;  %v13834_v37 = vpop.permute.xlu0 %7586  ;;  %8400 = vmatpush1.bf16.msra.mxu1 %v7498_v34 }
 0xb19   : > { %v7547_v54 = vsel %vm4094_vm7, %v7535_v21, %v13832_v7 }
 0xb1a   : > { %7106 = vrot.lane.b32.xlu1 %v13516_v12, %s14643_s29  ;;  %7204 = vrot.lane.b32.xlu0 %v13519_v29, %s14647_s20 }
 0xb1b   : > { %8401 = vmatprep.subr.bf16.mxu1 %v7547_v54 }
 0xb1c   : > { %v7585_v31 = vpop.permute.xlu1 %7584  ;;  %v7638_v17 = vpop.permute.xlu0 %7637  ;;  %8402 = vmatpush1.bf16.msra.mxu1 %v7546_v3 }
 0xb1d   : > { %v7598_v62 = vsel %vm4199_vm12, %v13689_v57, %v7585_v31  ;;  %v7599_v5 = vsel %vm4199_vm12, %v7585_v31, %v13834_v37  ;;  %v7651_v48 = vsel %vm4306_vm13, %v13691_v60, %v7638_v17  ;;  %v13864_v60 = vld [vmem:[%s14836_s4 + $0xc] ss:$16 sps:$4 sm:$0xff]  }
 0xb1e   : > { %7254 = vrot.lane.b32.xlu1 %v13528_v22, %s14649_s0  ;;  %7256 = vrot.lane.b32.xlu0 %v13718_v45, %s14649_s0 }
 0xb1f   : > { %8403 = vmatprep.subr.bf16.mxu1 %v7599_v5 }
 0xb20   : > { %v13857_v41 = vpop.permute.xlu1 %7639  ;;  %v13859_v57 = vpop.permute.xlu0 %7692  ;;  %8404 = vmatpush1.bf16.msra.mxu1 %v7598_v62 }
 0xb21   : > { %v7652_v63 = vsel %vm4306_vm13, %v7638_v17, %v13857_v41 }
 0xb22   : > { %7154 = vrot.lane.b32.xlu1 %v13516_v12, %s14645_s30  ;;  %7252 = vrot.lane.b32.xlu0 %v13519_v29, %s14649_s0 }
 0xb23   : > { %8416 = vmatprep.subr.bf16.mxu1 %v7652_v63  ;;  %8406 = vmatmul.mubr.bf16.vlgmr.msra.gmra.mrb[36].mxu1 %v13855_v32 }
 0xb24   : > { %v7691_v28 = vpop.permute.xlu1 %7690  ;;  %v7742_v56 = vpop.permute.xlu0 %7741  ;;  %8417 = vmatpush1.bf16.msra.mxu1 %v7651_v48  ;;  %9456 = vmatprep.mubr.msk.bf16.mxu1 %vm8369_vm6, %v13864_v60 }
 0xb25   : > { %v7704_v47 = vsel %vm4413_vm14, %v13697_v36, %v7691_v28  ;;  %v7705_v1 = vsel %vm4413_vm14, %v7691_v28, %v13859_v57 }
 0xb26   : > { %7302 = vrot.lane.b32.xlu1 %v13528_v22, %s14650_s1  ;;  %7304 = vrot.lane.b32.xlu0 %v13718_v45, %s14650_s1 }
 0xb27   : > { %8418 = vmatprep.subr.bf16.mxu1 %v7705_v1 }
 0xb28   : > { %v13883_v39 = vpop.permute.xlu1 %7743  ;;  %v7740_v38 = vpop.permute.xlu0 %7739  ;;  %8419 = vmatpush1.bf16.msra.mxu1 %v7704_v47 }
 0xb29   : > { %v7754_v2 = vsel %vm14609_vm3, %v7742_v56, %v13883_v39  ;;  %v7753_v58 = vsel %vm14609_vm3, %v7740_v38, %v7742_v56 }
 0xb2a   : > { %7202 = vrot.lane.b32.xlu1 %v13516_v12, %s14647_s20  ;;  %7300 = vrot.lane.b32.xlu0 %v13519_v29, %s14650_s1  ;;  %s14948_s20 = sld [smem:[#allocation7_spill]] }
 0xb2b   : > { %8420 = vmatprep.subr.bf16.mxu1 %v7754_v2 }
 0xb2c   : > { %v7790_v36 = vpop.permute.xlu1 %7789  ;;  %v13892_v21 = vpop.permute.xlu0 %7791  ;;  %8421 = vmatpush1.bf16.msra.mxu1 %v7753_v58 }
 0xb2d   : > { %v7802_v34 = vsel %vm14851_vm5, %v7790_v36, %v13892_v21  ;;  %vm14855_vm5 = vcmask 375808  }
 0xb2e   : > { %7350 = vrot.lane.b32.xlu1 %v13528_v22, %s14652_s3  ;;  %7352 = vrot.lane.b32.xlu0 %v13718_v45, %s14652_s3 }
 0xb2f   : > { %8422 = vmatprep.subr.bf16.mxu1 %v7802_v34 }
 0xb30   : > { %v7788_v53 = vpop.permute.xlu1 %7787  ;;  %v7838_v3 = vpop.permute.xlu0 %7837  ;;  %s9703_s9 = smul.u32 112, %s14948_s20 }
 0xb31   : > { %v7801_v54 = vsel %vm14852_vm2, %v7788_v53, %v7790_v36  ;;  %vm14856_vm2 = vmmov %vm14855_vm5 }
 0xb32   : > { %7250 = vrot.lane.b32.xlu1 %v13516_v12, %s14649_s0  ;;  %7348 = vrot.lane.b32.xlu0 %v13519_v29, %s14652_s3  ;;  %s14951_s0 = sld [smem:[#allocation42_spill]] }
 0xb33   : > { %8423 = vmatpush1.bf16.msra.mxu1 %v7801_v54 }
 0xb34   : > { %v13905_v31 = vpop.permute.xlu1 %7839  ;;  %v7836_v17 = vpop.permute.xlu0 %7835 }
 0xb35   : > { %v7850_v62 = vsel %vm14853_vm9, %v7838_v3, %v13905_v31  ;;  %v7849_v5 = vsel %vm14854_vm4, %v7836_v17, %v7838_v3  ;;  %vm14857_vm9 = vcmask 367616  }
 0xb36   : > { %7398 = vrot.lane.b32.xlu1 %v13528_v22, %s14653_s21  ;;  %7400 = vrot.lane.b32.xlu0 %v13718_v45, %s14653_s21  ;;  %vm14858_vm4 = vmmov %vm14857_vm9 }
 0xb37   : > { %8424 = vmatprep.subr.bf16.mxu1 %v7850_v62 }
 0xb38   : > { %v7886_v48 = vpop.permute.xlu1 %7885  ;;  %v13914_v63 = vpop.permute.xlu0 %7887  ;;  %8425 = vmatpush1.bf16.msra.mxu1 %v7849_v5 }
 0xb39   : > { %v7898_v28 = vsel %vm14855_vm5, %v7886_v48, %v13914_v63  ;;  %vm14859_vm5 = vcmask 359424  }
 0xb3a   : > { %7298 = vrot.lane.b32.xlu1 %v13516_v12, %s14650_s1  ;;  %7396 = vrot.lane.b32.xlu0 %v13519_v29, %s14653_s21  ;;  %s14470_s1 = scalar_lea.vmem %s14951_s0, %s9703_s9 }
 0xb3b   : > { %8426 = vmatprep.subr.bf16.mxu1 %v7898_v28 }
 0xb3c   : > { %v7884_v56 = vpop.permute.xlu1 %7883  ;;  %v7934_v47 = vpop.permute.xlu0 %7933 }
 0xb3d   : > { %v7897_v1 = vsel %vm14856_vm2, %v7884_v56, %v7886_v48  ;;  %vm14860_vm2 = vmmov %vm14859_vm5 }
 0xb3e   : > { %7446 = vrot.lane.b32.xlu1 %v13528_v22, %s14646_s23  ;;  %7448 = vrot.lane.b32.xlu0 %v13718_v45, %s14646_s23 }
 0xb3f   : > { %8427 = vmatpush1.bf16.msra.mxu1 %v7897_v1 }
 0xb40   : > { %v13927_v38 = vpop.permute.xlu1 %7935  ;;  %v7932_v2 = vpop.permute.xlu0 %7931 }
 0xb41   : > { %v7946_v58 = vsel %vm14857_vm9, %v7934_v47, %v13927_v38  ;;  %v7945_v36 = vsel %vm14858_vm4, %v7932_v2, %v7934_v47  ;;  %vm14861_vm9 = vcmask 293888  }
 0xb42   : > { %7346 = vrot.lane.b32.xlu1 %v13516_v12, %s14652_s3  ;;  %7444 = vrot.lane.b32.xlu0 %v13519_v29, %s14646_s23  ;;  %v13945_v29 = vld [vmem:[#allocation4 + $0x18] sm:$0xff]  ;;  %vm14862_vm4 = vmmov %vm14861_vm9 }
 0xb43   : > { %8428 = vmatprep.subr.bf16.mxu1 %v7946_v58 }
 0xb44   : > { %v7982_v34 = vpop.permute.xlu1 %7981  ;;  %v13936_v53 = vpop.permute.xlu0 %7983  ;;  %8429 = vmatpush1.bf16.msra.mxu1 %v7945_v36 }
 0xb45   : > { %v7994_v3 = vsel %vm14859_vm5, %v7982_v34, %v13936_v53  ;;  %vm14863_vm5 = vcmask 285696  }
 0xb46   : > { %7494 = vrot.lane.b32.xlu1 %v13528_v22, %s14629_s25  ;;  %7496 = vrot.lane.b32.xlu0 %v13718_v45, %s14629_s25 }
 0xb47   : > { %8430 = vmatprep.subr.bf16.mxu1 %v7994_v3 }
 0xb48   : > { %v7980_v54 = vpop.permute.xlu1 %7979  ;;  %v8030_v12 = vpop.permute.xlu0 %8029 }
 0xb49   : > { %v7993_v17 = vsel %vm14860_vm2, %v7980_v54, %v7982_v34  ;;  %vm14864_vm2 = vmmov %vm14863_vm5 }
 0xb4a   : > { %7394 = vrot.lane.b32.xlu1 %v13945_v29, %s14653_s21  ;;  %7492 = vrot.lane.b32.xlu0 %v13536_v59, %s14629_s25 }
 0xb4b   : > { %8431 = vmatpush1.bf16.msra.mxu1 %v7993_v17 }
 0xb4c   : > { %v13951_v62 = vpop.permute.xlu1 %8031  ;;  %v8028_v22 = vpop.permute.xlu0 %8027 }
 0xb4d   : > { %v8042_v5 = vsel %vm14861_vm9, %v8030_v12, %v13951_v62  ;;  %v8041_v48 = vsel %vm14862_vm4, %v8028_v22, %v8030_v12  ;;  %vm14865_vm9 = vcmask 277504   ;;  %v13985_v12 = vld [vmem:[%s14836_s4 + $0x8] ss:$16 sps:$4 sm:$0xff]  }
 0xb4e   : > { %7542 = vrot.lane.b32.xlu1 %v13541_v35, %s14630_s15  ;;  %7544 = vrot.lane.b32.xlu0 %v13718_v45, %s14630_s15  ;;  %vm14866_vm4 = vmmov %vm14865_vm9 }
 0xb4f   : > { %8432 = vmatprep.subr.bf16.mxu1 %v8042_v5 }
 0xb50   : > { %v8078_v28 = vpop.permute.xlu1 %8077  ;;  %v13960_v56 = vpop.permute.xlu0 %8079  ;;  %8433 = vmatpush1.bf16.msra.mxu1 %v8041_v48 }
 0xb51   : > { %v8090_v47 = vsel %vm14863_vm5, %v8078_v28, %v13960_v56  ;;  %vm14867_vm5 = vcmask 1039360  }
 0xb52   : > { %7442 = vrot.lane.b32.xlu1 %v13945_v29, %s14646_s23  ;;  %7540 = vrot.lane.b32.xlu0 %v13536_v59, %s14630_s15 }
 0xb53   : > { %8434 = vmatprep.subr.bf16.mxu1 %v8090_v47 }
 0xb54   : > { %v8076_v1 = vpop.permute.xlu1 %8075  ;;  %v8126_v2 = vpop.permute.xlu0 %8125 }
 0xb55   : > { %v8089_v58 = vsel %vm14864_vm2, %v8076_v1, %v8078_v28  ;;  %vm14868_vm2 = vcmask 80896  }
 0xb56   : > { %7592 = vrot.lane.b32.xlu1 %v13541_v35, %s14631_s16  ;;  %7594 = vrot.lane.b32.xlu0 %v13718_v45, %s14631_s16 }
 0xb57   : > { %8435 = vmatpush1.bf16.msra.mxu1 %v8089_v58 }
 0xb58   : > { %v13973_v36 = vpop.permute.xlu1 %8127  ;;  %v8124_v34 = vpop.permute.xlu0 %8123 }
 0xb59   : > { %v8138_v3 = vsel %vm14865_vm9, %v8126_v2, %v13973_v36  ;;  %v8137_v54 = vsel %vm14866_vm4, %v8124_v34, %v8126_v2  ;;  %vm14869_vm9 = vmmov %vm14867_vm5  ;;  %vm14870_vm4 = vcmask 1031168  }
 0xb5a   : > { %7490 = vrot.lane.b32.xlu1 %v13945_v29, %s14629_s25  ;;  %7590 = vrot.lane.b32.xlu0 %v13536_v59, %s14631_s16 }
 0xb5b   : > { %8436 = vmatprep.subr.bf16.mxu1 %v8138_v3 }
 0xb5c   : > { %v6919_v17 = vpop.permute.xlu1 %6918  ;;  %v6921_v22 = vpop.permute.xlu0 %6920  ;;  %8437 = vmatpush1.bf16.msra.mxu1 %v8137_v54 }
 0xb5d   : > { %v6927_v5 = vsel %vm14867_vm5, %v6919_v17, %v6921_v22  ;;  %6941 = vst.msk [vmem:[#allocation5 + $0x68] sm:$0xff] %vm14868_vm2, %v6921_v22  ;;  %8545 = vmatprep.subr.bf16.mxu1 %v13541_v35  ;;  %vm14871_vm5 = vmmov %vm14868_vm2 }
 0xb5e   : > { %7645 = vrot.lane.b32.xlu1 %v13541_v35, %s14632_s26  ;;  %7647 = vrot.lane.b32.xlu0 %v13718_v45, %s14632_s26  ;;  %vm14872_vm2 = vmmov %vm14870_vm4 }
 0xb5f   : > { %8449 = vmatmul.mubr.bf16.vlgmr.msra.gmra.mrb[36].mxu1 %v13985_v12  ;;  %vm14874_vm3 = vmmov %vm14871_vm5 }
 0xb60   : > { %v6917_v48 = vpop.permute.xlu1 %6916  ;;  %v6967_v28 = vpop.permute.xlu0 %6966  ;;  %8546 = vmatpush1.bf16.msra.mxu1 %v13536_v59  ;;  %8577 = vmatprep.mubr.bf16.mxu1 %v13615_v6 }
 0xb61   : > { %v6926_v47 = vsel %vm14869_vm9, %v6917_v48, %v6919_v17  ;;  %8547 = vmatprep.subr.bf16.mxu1 %v6927_v5  ;;  %vm14873_vm9 = vcmask 965632  }
 0xb62   : > { %7538 = vrot.lane.b32.xlu1 %v13945_v29, %s14630_s15  ;;  %7643 = vrot.lane.b32.xlu0 %v13536_v59, %s14632_s26  ;;  %s14949_s15 = sld [smem:[#allocation39_spill]] }
 0xb64   : > { %v6969_v1 = vpop.permute.xlu1 %6968  ;;  %v6965_v2 = vpop.permute.xlu0 %6964  ;;  %8548 = vmatpush1.bf16.msra.mxu1 %v6926_v47 }
 0xb65   : > { %v6975_v58 = vsel %vm14870_vm4, %v6967_v28, %v6969_v1  ;;  %6989 = vst.msk [vmem:[#allocation5 + $0xa0] sm:$0xff] %vm14871_vm5, %v6969_v1  ;;  %v6974_v34 = vsel %vm14872_vm2, %v6965_v2, %v6967_v28  ;;  %vm14875_vm4 = vcmask 1039360   ;;  %vm14877_vm2 = vmmov %vm14873_vm9 }
 0xb66   : > { %7698 = vrot.lane.b32.xlu1 %v13541_v35, %s14633_s24  ;;  %7700 = vrot.lane.b32.xlu0 %v13718_v45, %s14633_s24  ;;  %vm14876_vm5 = vmmov %vm14875_vm4 }
 0xb67   : > { %8549 = vmatprep.subr.bf16.mxu1 %v6975_v58 }
 0xb68   : > { %v7015_v6 = vpop.permute.xlu1 %7014  ;;  %v7017_v3 = vpop.permute.xlu0 %7016  ;;  %8550 = vmatpush1.bf16.msra.mxu1 %v6974_v34 }
 0xb69   : > { %v7023_v54 = vsel %vm14873_vm9, %v7015_v6, %v7017_v3  ;;  %7037 = vst.msk [vmem:[#allocation5 + $0xd8] sm:$0xff] %vm14874_vm3, %v7017_v3  ;;  %vm14878_vm9 = vcmask 1031168  }
 0xb6a   : > { %7588 = vrot.lane.b32.xlu1 %v13945_v29, %s14631_s16  ;;  %7696 = vrot.lane.b32.xlu0 %v13536_v59, %s14633_s24 }
 0xb6b   : > { %8551 = vmatprep.subr.bf16.mxu1 %v7023_v54 }
 0xb6c   : > { %v6915_v17 = vpop.permute.xlu1 %6914  ;;  %v7013_v22 = vpop.permute.xlu0 %7012 }
 0xb6d   : > { %v6924_v5 = vsel %vm14875_vm4, %v13699_v33, %v6915_v17  ;;  %v6925_v28 = vsel %vm14876_vm5, %v6915_v17, %v6917_v48  ;;  %v7022_v47 = vsel %vm14877_vm2, %v7013_v22, %v7015_v6  ;;  %vm14879_vm4 = vmmov %vm14878_vm9 }
 0xb6e   : > { %7749 = vrot.lane.b32.xlu1 %v13718_v45, %s14634_s13  ;;  %7747 = vrot.lane.b32.xlu0 %v13541_v35, %s14634_s13  ;;  %vm14880_vm5 = vmmov %vm14874_vm3 }
 0xb6f   : > { %8461 = vmatprep.subr.bf16.mxu0 %v6925_v28  ;;  %8552 = vmatpush1.bf16.msra.mxu1 %v7022_v47 }
 0xb70   : > { %v7063_v1 = vpop.permute.xlu1 %7062  ;;  %v7065_v58 = vpop.permute.xlu0 %7064  ;;  %8462 = vmatpush1.bf16.msra.mxu0 %v6924_v5 }
 0xb71   : > { %v7071_v34 = vsel %vm3124_vm15, %v7063_v1, %v7065_v58  ;;  %7085 = vst.msk [vmem:[#allocation5 + $0x110] sm:$0xff] %vm14874_vm3, %v7065_v58  ;;  %vm14881_vm3 = vmmov %vm14877_vm2 }
 0xb72   : > { %7641 = vrot.lane.b32.xlu1 %v13945_v29, %s14632_s26  ;;  %7795 = vrot.lane.b32.xlu0 %v13541_v35, %s14636_s14 }
 0xb73   : > { %8553 = vmatprep.subr.bf16.mxu1 %v7071_v34 }
 0xb74   : > { %v6963_v33 = vpop.permute.xlu1 %6962  ;;  %v7061_v48 = vpop.permute.xlu0 %7060 }
 0xb75   : > { %v6972_v6 = vsel %vm14878_vm9, %v13705_v25, %v6963_v33  ;;  %v6973_v3 = vsel %vm14879_vm4, %v6963_v33, %v6965_v2  ;;  %v7070_v54 = vsel %vm3124_vm15, %v7061_v48, %v7063_v1  ;;  %vm14882_vm9 = vmmov %vm14880_vm5 }
 0xb76   : > { %7797 = vrot.lane.b32.xlu1 %v13718_v45, %s14636_s14  ;;  %7843 = vrot.lane.b32.xlu0 %v13541_v35, %s14639_s17  ;;  %vm14883_vm4 = vmmov %vm14880_vm5 }
 0xb77   : > { %8463 = vmatprep.subr.bf16.mxu0 %v6973_v3  ;;  %8554 = vmatpush1.bf16.msra.mxu1 %v7070_v54 }
 0xb78   : > { %v7111_v17 = vpop.permute.xlu1 %7110  ;;  %v7113_v5 = vpop.permute.xlu0 %7112  ;;  %8464 = vmatpush1.bf16.msra.mxu0 %v6972_v6 }
 0xb79   : > { %v7119_v28 = vsel %vm3221_vm0, %v7111_v17, %v7113_v5  ;;  %7133 = vst.msk [vmem:[#allocation5 + $0x148] sm:$0xff] %vm14880_vm5, %v7113_v5  ;;  %vm14886_vm5 = vmmov %vm14883_vm4 }
 0xb7a   : > { %7694 = vrot.lane.b32.xlu1 %v13945_v29, %s14633_s24  ;;  %7891 = vrot.lane.b32.xlu0 %v13541_v35, %s14641_s18 }
 0xb7b   : > { %8555 = vmatprep.subr.bf16.mxu1 %v7119_v28 }
 0xb7c   : > { %v7011_v25 = vpop.permute.xlu1 %7010  ;;  %v7109_v2 = vpop.permute.xlu0 %7108 }
 0xb7d   : > { %v7020_v47 = vsel %vm14877_vm2, %v13724_v0, %v7011_v25  ;;  %v7021_v1 = vsel %vm14881_vm3, %v7011_v25, %v7013_v22  ;;  %v7118_v58 = vsel %vm3221_vm0, %v7109_v2, %v7111_v17  ;;  %vm14888_vm2 = vcmask 220160   ;;  %vm14889_vm3 = vmmov %vm14883_vm4 }
 0xb7e   : > { %7845 = vrot.lane.b32.xlu1 %v13718_v45, %s14639_s17  ;;  %7939 = vrot.lane.b32.xlu0 %v13541_v35, %s14642_s27 }
 0xb7f   : > { %8465 = vmatprep.subr.bf16.mxu0 %v7021_v1  ;;  %8556 = vmatpush1.bf16.msra.mxu1 %v7118_v58 }
 0xb80   : > { %v7159_v29 = vpop.permute.xlu1 %7158  ;;  %v7161_v34 = vpop.permute.xlu0 %7160  ;;  %8466 = vmatpush1.bf16.msra.mxu0 %v7020_v47 }
 0xb81   : > { %v7167_v33 = vsel %vm3318_vm1, %v7159_v29, %v7161_v34  ;;  %7181 = vst.msk [vmem:[#allocation5 + $0x180] sm:$0xff] %vm14882_vm9, %v7161_v34  ;;  %vm14891_vm9 = vcmask 211968  }
 0xb82   : > { %7745 = vrot.lane.b32.xlu1 %v13536_v59, %s14634_s13  ;;  %7987 = vrot.lane.b32.xlu0 %v13541_v35, %s14644_s28 }
 0xb83   : > { %8557 = vmatprep.subr.bf16.mxu1 %v7167_v33 }
 0xb84   : > { %v7059_v45 = vpop.permute.xlu1 %7058  ;;  %v7157_v0 = vpop.permute.xlu0 %7156 }
 0xb85   : > { %v7068_v22 = vsel %vm3124_vm15, %v13726_v11, %v7059_v45  ;;  %v7069_v6 = vsel %vm3124_vm15, %v7059_v45, %v7061_v48  ;;  %v7166_v3 = vsel %vm3318_vm1, %v7157_v0, %v7159_v29  ;;  %vm14884_vm15 = vmmov %vm14883_vm4 }
 0xb86   : > { %7893 = vrot.lane.b32.xlu1 %v13543_v40, %s14641_s18  ;;  %8035 = vrot.lane.b32.xlu0 %v13541_v35, %s14648_s19 }
 0xb87   : > { %8467 = vmatprep.subr.bf16.mxu0 %v7069_v6  ;;  %8558 = vmatpush1.bf16.msra.mxu1 %v7166_v3 }
 0xb88   : > { %v7207_v54 = vpop.permute.xlu1 %7206  ;;  %v7209_v17 = vpop.permute.xlu0 %7208  ;;  %8468 = vmatpush1.bf16.msra.mxu0 %v7068_v22 }
 0xb89   : > { %v7215_v5 = vsel %vm3415_vm11, %v7207_v54, %v7209_v17  ;;  %7229 = vst.msk [vmem:[#allocation5 + $0x1b8] sm:$0xff] %vm14883_vm4, %v7209_v17  ;;  %vm14892_vm4 = vmmov %vm14889_vm3 }
 0xb8a   : > { %7793 = vrot.lane.b32.xlu1 %v13536_v59, %s14636_s14  ;;  %8083 = vrot.lane.b32.xlu0 %v13541_v35, %s14651_s2 }
 0xb8b   : > { %8559 = vmatprep.subr.bf16.mxu1 %v7215_v5 }
 0xb8c   : > { %v7107_v11 = vpop.permute.xlu1 %7106  ;;  %v7205_v48 = vpop.permute.xlu0 %7204 }
 0xb8d   : > { %v7116_v28 = vsel %vm3221_vm0, %v13742_v24, %v7107_v11  ;;  %v7117_v25 = vsel %vm3221_vm0, %v7107_v11, %v7109_v2  ;;  %v7214_v47 = vsel %vm3415_vm11, %v7205_v48, %v7207_v54  ;;  %v14081_v24 = vld [vmem:[#allocation5 + $0x20] sm:$0xff]  ;;  %vm14885_vm0 = vcmask 228352  }
 0xb8e   : > { %7941 = vrot.lane.b32.xlu1 %v13543_v40, %s14642_s27  ;;  %8131 = vrot.lane.b32.xlu0 %v13541_v35, %s14654_s12 }
 0xb8f   : > { %8469 = vmatprep.subr.bf16.mxu0 %v7117_v25  ;;  %8560 = vmatpush1.bf16.msra.mxu1 %v7214_v47 }
 0xb90   : > { %v7255_v59 = vpop.permute.xlu1 %7254  ;;  %v7257_v1 = vpop.permute.xlu0 %7256  ;;  %8470 = vmatpush1.bf16.msra.mxu0 %v7116_v28 }
 0xb91   : > { %v7263_v58 = vsel %vm3512_vm10, %v7255_v59, %v7257_v1  ;;  %7277 = vst.msk [vmem:[#allocation5 + $0x1f0] sm:$0xff] %vm14884_vm15, %v7257_v1  ;;  %vm14894_vm15 = vmmov %vm14885_vm0 }
 0xb92   : > { %7841 = vrot.lane.b32.xlu1 %v14081_v24, %s14639_s17  ;;  %8081 = vrot.lane.b32.xlu0 %v14081_v24, %s14651_s2  ;;  %s14945_s17 = sld [smem:[#allocation41_spill]] }
 0xb93   : > { %8561 = vmatprep.subr.bf16.mxu1 %v7263_v58 }
 0xb94   : > { %v7155_v2 = vpop.permute.xlu1 %7154  ;;  %v7253_v35 = vpop.permute.xlu0 %7252 }
 0xb95   : > { %v7164_v29 = vsel %vm3318_vm1, %v13744_v51, %v7155_v2  ;;  %v7165_v34 = vsel %vm3318_vm1, %v7155_v2, %v7157_v0  ;;  %v7262_v33 = vsel %vm3512_vm10, %v7253_v35, %v7255_v59  ;;  %vm14887_vm1 = vmmov %vm14885_vm0 }
 0xb96   : > { %7989 = vrot.lane.b32.xlu1 %v13543_v40, %s14644_s28  ;;  %8129 = vrot.lane.b32.xlu0 %v14081_v24, %s14654_s12 }
 0xb97   : > { %8471 = vmatprep.subr.bf16.mxu0 %v7165_v34  ;;  %8562 = vmatpush1.bf16.msra.mxu1 %v7262_v33 }
 0xb98   : > { %v7303_v45 = vpop.permute.xlu1 %7302  ;;  %v7305_v22 = vpop.permute.xlu0 %7304  ;;  %8472 = vmatpush1.bf16.msra.mxu0 %v7164_v29 }
 0xb99   : > { %v7311_v6 = vsel %vm14885_vm0, %v7303_v45, %v7305_v22  ;;  %7325 = vst.msk [vmem:[#allocation5 + $0x228] sm:$0xff] %vm14886_vm5, %v7305_v22  ;;  %vm14896_vm5 = vmmov %vm14889_vm3 }
 0xb9a   : > { %7889 = vrot.lane.b32.xlu1 %v14081_v24, %s14641_s18  ;;  %8563 = vmatprep.subr.bf16.mxu1 %v7311_v6 }
 0xb9c   : > { %v7203_v51 = vpop.permute.xlu1 %7202  ;;  %v7301_v0 = vpop.permute.xlu0 %7300 }
 0xb9d   : > { %v7212_v3 = vsel %vm3415_vm11, %v13762_v42, %v7203_v51  ;;  %v7213_v54 = vsel %vm3415_vm11, %v7203_v51, %v7205_v48  ;;  %v7310_v17 = vsel %vm14887_vm1, %v7301_v0, %v7303_v45  ;;  %vm14890_vm11 = vmmov %vm14888_vm2 }
 0xb9e   : > { %8037 = vrot.lane.b32.xlu1 %v13543_v40, %s14648_s19  ;;  %8473 = vmatprep.subr.bf16.mxu0 %v7213_v54  ;;  %vm14897_vm1 = vmmov %vm14888_vm2 }
 0xb9f   : > { %8564 = vmatpush1.bf16.msra.mxu1 %v7310_v17  ;;  %8474 = vmatpush1.bf16.msra.mxu0 %v7212_v3 }
 0xba0   : > { %v7351_v5 = vpop.permute.xlu1 %7350  ;;  %v7353_v11 = vpop.permute.xlu0 %7352 }
 0xba1   : > { %v7359_v28 = vsel %vm14888_vm2, %v7351_v5, %v7353_v11  ;;  %7373 = vst.msk [vmem:[#allocation5 + $0x260] sm:$0xff] %vm14889_vm3, %v7353_v11  ;;  %vm14898_vm2 = vmmov %vm14897_vm1  ;;  %vm14899_vm3 = vcmask 138240  }
 0xba2   : > { %7937 = vrot.lane.b32.xlu1 %v14081_v24, %s14642_s27  ;;  %8565 = vmatprep.subr.bf16.mxu1 %v7359_v28 }
 0xba4   : > { %v7251_v42 = vpop.permute.xlu1 %7250  ;;  %v7349_v48 = vpop.permute.xlu0 %7348 }
 0xba5   : > { %v7260_v25 = vsel %vm3512_vm10, %v13764_v18, %v7251_v42  ;;  %v7261_v47 = vsel %vm3512_vm10, %v7251_v42, %v7253_v35  ;;  %v7358_v59 = vsel %vm14890_vm11, %v7349_v48, %v7351_v5  ;;  %vm14893_vm10 = vmmov %vm14885_vm0 }
 0xba6   : > { %8085 = vrot.lane.b32.xlu1 %v13543_v40, %s14651_s2  ;;  %8475 = vmatprep.subr.bf16.mxu0 %v7261_v47  ;;  %vm14895_vm0 = vmmov %vm14891_vm9 }
 0xba7   : > { %8566 = vmatpush1.bf16.msra.mxu1 %v7358_v59  ;;  %8476 = vmatpush1.bf16.msra.mxu0 %v7260_v25  ;;  %vm14900_vm11 = vmmov %vm14892_vm4 }
 0xba8   : > { %v7399_v1 = vpop.permute.xlu1 %7398  ;;  %v7401_v58 = vpop.permute.xlu0 %7400 }
 0xba9   : > { %v7407_v2 = vsel %vm14891_vm9, %v7399_v1, %v7401_v58  ;;  %7421 = vst.msk [vmem:[#allocation5 + $0x298] sm:$0xff] %vm14892_vm4, %v7401_v58  ;;  %vm14901_vm9 = vmmov %vm14895_vm0 }
 0xbaa   : > { %7985 = vrot.lane.b32.xlu1 %v14081_v24, %s14644_s28  ;;  %8567 = vmatprep.subr.bf16.mxu1 %v7407_v2  ;;  %vm14902_vm4 = vmmov %vm14895_vm0 }
 0xbac   : > { %v7299_v18 = vpop.permute.xlu1 %7298  ;;  %v7397_v35 = vpop.permute.xlu0 %7396 }
 0xbad   : > { %v7308_v29 = vsel %vm14893_vm10, %v13782_v14, %v7299_v18  ;;  %v7309_v34 = vsel %vm14894_vm15, %v7299_v18, %v7301_v0  ;;  %v7406_v33 = vsel %vm14895_vm0, %v7397_v35, %v7399_v1  ;;  %v7626_v14 = vld [vmem:[#allocation4 + $0x38] sm:$0xff]  ;;  %vm14903_vm10 = vmmov %vm14899_vm3 }
 0xbae   : > { %8133 = vrot.lane.b32.xlu1 %v13543_v40, %s14654_s12  ;;  %8477 = vmatprep.subr.bf16.mxu0 %v7309_v34  ;;  %vm14904_vm15 = vmmov %vm14896_vm5 }
 0xbaf   : > { %8568 = vmatpush1.bf16.msra.mxu1 %v7406_v33  ;;  %8478 = vmatpush1.bf16.msra.mxu0 %v7308_v29  ;;  %vm14905_vm0 = vmmov %vm14899_vm3 }
 0xbb0   : > { %v7447_v45 = vpop.permute.xlu1 %7446  ;;  %v7449_v22 = vpop.permute.xlu0 %7448 }
 0xbb1   : > { %v7455_v6 = vsel %vm3900_vm8, %v7447_v45, %v7449_v22  ;;  %7469 = vst.msk [vmem:[#allocation5 + $0x2d0] sm:$0xff] %vm14896_vm5, %v7449_v22  ;;  %vm14906_vm5 = vmmov %vm14905_vm0 }
 0xbb2   : > { %8033 = vrot.lane.b32.xlu1 %v14081_v24, %s14648_s19  ;;  %8569 = vmatprep.subr.bf16.mxu1 %v7455_v6 }
 0xbb4   : > { %v7347_v51 = vpop.permute.xlu1 %7346  ;;  %v7445_v0 = vpop.permute.xlu0 %7444 }
 0xbb5   : > { %v7356_v3 = vsel %vm14897_vm1, %v13784_v49, %v7347_v51  ;;  %v7357_v40 = vsel %vm14898_vm2, %v7347_v51, %v7349_v48  ;;  %v7454_v54 = vsel %vm3900_vm8, %v7445_v0, %v7447_v45  ;;  %vm14909_vm2 = vcmask 449536  }
 0xbb6   : > { %7649 = vrot.lane.b32.xlu1 %v7626_v14, %s14632_s26  ;;  %8479 = vmatprep.subr.bf16.mxu0 %v7357_v40 }
 0xbb7   : > { %8570 = vmatpush1.bf16.msra.mxu1 %v7454_v54  ;;  %8480 = vmatpush1.bf16.msra.mxu0 %v7356_v3 }
 0xbb8   : > { %v7495_v17 = vpop.permute.xlu1 %7494  ;;  %v7497_v5 = vpop.permute.xlu0 %7496 }
 0xbb9   : > { %v7503_v24 = vsel %vm14899_vm3, %v7495_v17, %v7497_v5  ;;  %7517 = vst.msk [vmem:[#allocation5 + $0x308] sm:$0xff] %vm14900_vm11, %v7497_v5  ;;  %vm14910_vm3 = vmmov %vm14909_vm2  ;;  %vm14911_vm11 = vcmask 441344  }
 0xbba   : > { %7702 = vrot.lane.b32.xlu1 %v7626_v14, %s14633_s24  ;;  %8571 = vmatprep.subr.bf16.mxu1 %v7503_v24 }
 0xbbc   : > { %v7395_v11 = vpop.permute.xlu1 %7394  ;;  %v7493_v49 = vpop.permute.xlu0 %7492 }
 0xbbd   : > { %v7404_v28 = vsel %vm14901_vm9, %v13802_v26, %v7395_v11  ;;  %v7405_v42 = vsel %vm14902_vm4, %v7395_v11, %v7397_v35  ;;  %v7502_v48 = vsel %vm14903_vm10, %v7493_v49, %v7495_v17  ;;  %vm14912_vm9 = vmmov %vm14911_vm11 }
 0xbbe   : > { %7596 = vrot.lane.b32.xlu1 %v7626_v14, %s14631_s16  ;;  %8481 = vmatprep.subr.bf16.mxu0 %v7405_v42 }
 0xbbf   : > { %8572 = vmatpush1.bf16.msra.mxu1 %v7502_v48  ;;  %8482 = vmatpush1.bf16.msra.mxu0 %v7404_v28 }
 0xbc0   : > { %v7543_v25 = vpop.permute.xlu1 %7542  ;;  %v7545_v47 = vpop.permute.xlu0 %7544 }
 0xbc1   : > { %v7551_v59 = vsel %vm4094_vm7, %v7543_v25, %v7545_v47  ;;  %7565 = vst.msk [vmem:[#allocation5 + $0x340] sm:$0xff] %vm14904_vm15, %v7545_v47  ;;  %vm14915_vm15 = vcmask 375808  }
 0xbc2   : > { %8573 = vmatprep.subr.bf16.mxu1 %v7551_v59 }
 0xbc4   : > { %v7443_v1 = vpop.permute.xlu1 %7442  ;;  %v7541_v58 = vpop.permute.xlu0 %7540 }
 0xbc5   : > { %v7452_v26 = vsel %vm3900_vm8, %v13812_v15, %v7443_v1  ;;  %v7453_v2 = vsel %vm3900_vm8, %v7443_v1, %v7445_v0  ;;  %v7550_v18 = vsel %vm4094_vm7, %v7541_v58, %v7543_v25  ;;  %vm14907_vm8 = vcmask 457728  }
 0xbc6   : > { %8483 = vmatprep.subr.bf16.mxu0 %v7453_v2  ;;  %8574 = vmatpush1.bf16.msra.mxu1 %v7550_v18  ;;  %vm14908_vm1 = vmmov %vm14907_vm8 }
 0xbc7   : > { %8484 = vmatpush1.bf16.msra.mxu0 %v7452_v26  ;;  %vm14913_vm4 = vmmov %vm14908_vm1 }
 0xbc8   : > { %v7593_v35 = vpop.permute.xlu1 %7592  ;;  %v14148_v29 = vpop.permute.xlu0 %7594  ;;  %vm14914_vm10 = vmmov %vm14908_vm1 }
 0xbc9   : > { %v7603_v34 = vsel %vm4199_vm12, %v7593_v35, %v14148_v29 }
 0xbca   : > { %8575 = vmatprep.subr.bf16.mxu1 %v7603_v34 }
 0xbcc   : > { %v7491_v33 = vpop.permute.xlu1 %7490  ;;  %v7591_v45 = vpop.permute.xlu0 %7590 }
 0xbcd   : > { %v7500_v22 = vsel %vm14905_vm0, %v13814_v9, %v7491_v33  ;;  %v7501_v15 = vsel %vm14906_vm5, %v7491_v33, %v7493_v49  ;;  %v7602_v6 = vsel %vm4199_vm12, %v7591_v45, %v7593_v35  ;;  %vm14916_vm0 = vmmov %vm14915_vm15 }
 0xbce   : > { %8485 = vmatprep.subr.bf16.mxu0 %v7501_v15  ;;  %8576 = vmatpush1.bf16.msra.mxu1 %v7602_v6  ;;  %vm14917_vm5 = vmmov %vm14909_vm2 }
 0xbcf   : > { %8486 = vmatpush1.bf16.msra.mxu0 %v7500_v22 }
 0xbd0   : > { %v7646_v14 = vpop.permute.xlu1 %7645  ;;  %v14156_v51 = vpop.permute.xlu0 %7647 }
 0xbd1   : > { %v7656_v0 = vsel %vm4306_vm13, %v7646_v14, %v14156_v51  ;;  %8578 = vmatmul.mubr.bf16.vlgmr.msra.gmra.mrb[40].mxu1 %v13855_v32 }
 0xbd2   : > { %8588 = vmatprep.subr.bf16.mxu1 %v7656_v0  ;;  %9458 = vmatprep.mubr.msk.bf16.mxu1 %vm8369_vm6, %v13864_v60 }
 0xbd4   : > { %v7539_v9 = vpop.permute.xlu1 %7538  ;;  %v7644_v3 = vpop.permute.xlu0 %7643 }
 0xbd5   : > { %v7548_v40 = vsel %vm4094_vm7, %v13832_v7, %v7539_v9  ;;  %v7549_v54 = vsel %vm4094_vm7, %v7539_v9, %v7541_v58  ;;  %v7655_v17 = vsel %vm4306_vm13, %v7644_v3, %v7646_v14 }
 0xbd6   : > { %8487 = vmatprep.subr.bf16.mxu0 %v7549_v54  ;;  %8589 = vmatpush1.bf16.msra.mxu1 %v7655_v17 }
 0xbd7   : > { %8488 = vmatpush1.bf16.msra.mxu0 %v7548_v40 }
 0xbd8   : > { %v7699_v5 = vpop.permute.xlu1 %7698  ;;  %v14167_v24 = vpop.permute.xlu0 %7700 }
 0xbd9   : > { %v7709_v11 = vsel %vm4413_vm14, %v7699_v5, %v14167_v24 }
 0xbda   : > { %8590 = vmatprep.subr.bf16.mxu1 %v7709_v11 }
 0xbdc   : > { %v7589_v49 = vpop.permute.xlu1 %7588  ;;  %v7697_v28 = vpop.permute.xlu0 %7696 }
 0xbdd   : > { %v7600_v42 = vsel %vm4199_vm12, %v13834_v37, %v7589_v49  ;;  %v7601_v7 = vsel %vm4199_vm12, %v7589_v49, %v7591_v45  ;;  %v7708_v48 = vsel %vm4413_vm14, %v7697_v28, %v7699_v5 }
 0xbde   : > { %8489 = vmatprep.subr.bf16.mxu0 %v7601_v7  ;;  %8591 = vmatpush1.bf16.msra.mxu1 %v7708_v48 }
 0xbdf   : > { %8490 = vmatpush1.bf16.msra.mxu0 %v7600_v42 }
 0xbe0   : > { %v7750_v25 = vpop.permute.xlu1 %7749  ;;  %v7748_v47 = vpop.permute.xlu0 %7747 }
 0xbe1   : > { %v7758_v59 = vsel %vm14907_vm8, %v7750_v25, %v13431_v8  ;;  %v7757_v1 = vsel %vm14908_vm1, %v7748_v47, %v7750_v25  ;;  %vm14918_vm8 = vmmov %vm14909_vm2  ;;  %vm14919_vm1 = vcmask 367616  }
 0xbe2   : > { %8592 = vmatprep.subr.bf16.mxu1 %v7758_v59  ;;  %8492 = vmatmul.mubr.bf16.vlgmr.msra.gmra.mrb[28].mxu0 %v13855_v32 }
 0xbe3   : > { %8593 = vmatpush1.bf16.msra.mxu1 %v7757_v1  ;;  %9457 = vmatprep.mubr.msk.bf16.mxu0 %vm8369_vm6, %v13864_v60 }
 0xbe4   : > { %v7642_v37 = vpop.permute.xlu1 %7641  ;;  %v7796_v58 = vpop.permute.xlu0 %7795 }
 0xbe5   : > { %v7653_v26 = vsel %vm4306_vm13, %v13857_v41, %v7642_v37  ;;  %v7654_v2 = vsel %vm4306_vm13, %v7642_v37, %v7644_v3 }
 0xbe6   : > { %8502 = vmatprep.subr.bf16.mxu0 %v7654_v2 }
 0xbe7   : > { %8503 = vmatpush1.bf16.msra.mxu0 %v7653_v26 }
 0xbe8   : > { %v7798_v18 = vpop.permute.xlu1 %7797  ;;  %v7844_v8 = vpop.permute.xlu0 %7843 }
 0xbe9   : > { %v7805_v35 = vsel %vm14909_vm2, %v7796_v58, %v7798_v18  ;;  %v7806_v32 = vsel %vm14910_vm3, %v7798_v18, %v13435_v30  ;;  %vm14920_vm2 = vmmov %vm14919_vm1 }
 0xbea   : > { %8594 = vmatprep.subr.bf16.mxu1 %v7806_v32  ;;  %vm14921_vm3 = vmmov %vm14912_vm9 }
 0xbeb   : > { %8595 = vmatpush1.bf16.msra.mxu1 %v7805_v35 }
 0xbec   : > { %v7695_v34 = vpop.permute.xlu1 %7694  ;;  %v7892_v60 = vpop.permute.xlu0 %7891 }
 0xbed   : > { %v7706_v33 = vsel %vm4413_vm14, %v13859_v57, %v7695_v34  ;;  %v7707_v41 = vsel %vm4413_vm14, %v7695_v34, %v7697_v28 }
 0xbee   : > { %8504 = vmatprep.subr.bf16.mxu0 %v7707_v41 }
 0xbef   : > { %8505 = vmatpush1.bf16.msra.mxu0 %v7706_v33 }
 0xbf0   : > { %v7846_v45 = vpop.permute.xlu1 %7845  ;;  %v7940_v22 = vpop.permute.xlu0 %7939 }
 0xbf1   : > { %v7853_v15 = vsel %vm14911_vm11, %v7844_v8, %v7846_v45  ;;  %v7854_v6 = vsel %vm14912_vm9, %v7846_v45, %v13439_v20  ;;  %vm14922_vm11 = vmmov %vm14921_vm3  ;;  %vm14923_vm9 = vcmask 285696  }
 0xbf2   : > { %8596 = vmatprep.subr.bf16.mxu1 %v7854_v6  ;;  %v9790_v6 = vld [vmem:[%s14836_s4 + $0xc] ss:$16 sps:$4 sm:$0xff]  }
 0xbf3   : > { %8597 = vmatpush1.bf16.msra.mxu1 %v7853_v15 }
 0xbf4   : > { %v7746_v30 = vpop.permute.xlu1 %7745  ;;  %v7988_v14 = vpop.permute.xlu0 %7987 }
 0xbf5   : > { %v7755_v0 = vsel %vm14913_vm4, %v13883_v39, %v7746_v30  ;;  %v7756_v57 = vsel %vm14914_vm10, %v7746_v30, %v7748_v47  ;;  %vm14924_vm4 = vmmov %vm14923_vm9  ;;  %vm14925_vm10 = vcmask 359424  }
 0xbf6   : > { %8506 = vmatprep.subr.bf16.mxu0 %v7756_v57 }
 0xbf7   : > { %8507 = vmatpush1.bf16.msra.mxu0 %v7755_v0  ;;  %v8223_v0 = vld [vmem:[#allocation5 + $0x1f0] sm:$0xff] }
 0xbf8   : > { %v7894_v9 = vpop.permute.xlu1 %7893  ;;  %v14196_v3 = vpop.permute.xlu0 %8035 }
 0xbf9   : > { %v7901_v40 = vsel %vm14915_vm15, %v7892_v60, %v7894_v9  ;;  %v7902_v54 = vsel %vm14916_vm0, %v7894_v9, %v13443_v4  ;;  %vm14926_vm15 = vmmov %vm14925_vm10  ;;  %vm14927_vm0 = vcmask 277504  }
 0xbfa   : > { %8598 = vmatprep.subr.bf16.mxu1 %v7902_v54 }
 0xbfb   : > { %8599 = vmatpush1.bf16.msra.mxu1 %v7901_v40 }
 0xbfc   : > { %v7794_v20 = vpop.permute.xlu1 %7793  ;;  %v8084_v17 = vpop.permute.xlu0 %8083 }
 0xbfd   : > { %v7803_v5 = vsel %vm14917_vm5, %v13892_v21, %v7794_v20  ;;  %v7804_v39 = vsel %vm14918_vm8, %v7794_v20, %v7796_v58  ;;  %vm14928_vm5 = vmmov %vm14927_vm0  ;;  %vm14929_vm8 = vcmask 375808  }
 0xbfe   : > { %8508 = vmatprep.subr.bf16.mxu0 %v7804_v39  ;;  %v8237_v39 = vld [vmem:[#allocation5 + $0x260] sm:$0xff] }
 0xbff   : > { %8509 = vmatpush1.bf16.msra.mxu0 %v7803_v5 }
 0xc00   : > { %v7942_v11 = vpop.permute.xlu1 %7941  ;;  %v8132_v49 = vpop.permute.xlu0 %8131 }
 0xc01   : > { %v7949_v28 = vsel %vm14919_vm1, %v7940_v22, %v7942_v11  ;;  %v7950_v42 = vsel %vm14920_vm2, %v7942_v11, %v13466_v55  ;;  %vm14930_vm1 = vmmov %vm14929_vm8  ;;  %vm14931_vm2 = vcmask 293888   ;;  %v8293_v11 = vld [vmem:[#allocation5 + $0x420] sm:$0xff] }
 0xc02   : > { %8600 = vmatprep.subr.bf16.mxu1 %v7950_v42  ;;  %v8300_v42 = vld [vmem:[#allocation5 + $0x458] sm:$0xff] }
 0xc03   : > { %8601 = vmatpush1.bf16.msra.mxu1 %v7949_v28  ;;  %v8244_v28 = vld [vmem:[#allocation5 + $0x298] sm:$0xff] }
 0xc04   : > { %v7842_v4 = vpop.permute.xlu1 %7841  ;;  %v8082_v7 = vpop.permute.xlu0 %8081 }
 0xc05   : > { %v7851_v48 = vsel %vm14921_vm3, %v13905_v31, %v7842_v4  ;;  %v7852_v21 = vsel %vm14922_vm11, %v7842_v4, %v7844_v8  ;;  %v8091_v25 = vsel %vm14923_vm9, %v13960_v56, %v8082_v7  ;;  %v8092_v47 = vsel %vm14924_vm4, %v8082_v7, %v8084_v17  ;;  %vm14932_vm3 = vmmov %vm14931_vm2  ;;  %v8188_v4 = vld [vmem:[#allocation5 + $0xd8] sm:$0xff]  ;;  %v8251_v7 = vld [vmem:[#allocation5 + $0x2d0] sm:$0xff] }
 0xc06   : > { %8510 = vmatprep.subr.bf16.mxu0 %v7852_v21  ;;  %vm14933_vm11 = vcmask 367616   ;;  %v8195_v21 = vld [vmem:[#allocation5 + $0x110] sm:$0xff] }
 0xc07   : > { %8511 = vmatpush1.bf16.msra.mxu0 %v7851_v48  ;;  %vm14934_vm9 = vmmov %vm14933_vm11  ;;  %v8307_v48 = vld [vmem:[#allocation5 + $0x490] sm:$0xff] }
 0xc08   : > { %v7990_v59 = vpop.permute.xlu1 %7989  ;;  %v8130_v1 = vpop.permute.xlu0 %8129 }
 0xc09   : > { %v7997_v55 = vsel %vm14925_vm10, %v7988_v14, %v7990_v59  ;;  %v7998_v37 = vsel %vm14926_vm15, %v7990_v59, %v13482_v23  ;;  %v8139_v58 = vsel %vm14927_vm0, %v13973_v36, %v8130_v1  ;;  %v8140_v31 = vsel %vm14928_vm5, %v8130_v1, %v8132_v49  ;;  %vm14935_vm10 = vmmov %vm14924_vm4  ;;  %v8202_v59 = vld [vmem:[#allocation5 + $0x148] sm:$0xff]  ;;  %v8265_v1 = vld [vmem:[#allocation5 + $0x340] sm:$0xff] }
 0xc0a   : > { %8602 = vmatprep.subr.bf16.mxu1 %v7998_v37  ;;  %vm14936_vm0 = vmmov %vm14926_vm15  ;;  %v8209_v37 = vld [vmem:[#allocation5 + $0x180] sm:$0xff] }
 0xc0b   : > { %8603 = vmatpush1.bf16.msra.mxu1 %v7997_v55  ;;  %v8321_v55 = vld [vmem:[#allocation5 + $0x500] sm:$0xff] }
 0xc0c   : > { %v7890_v26 = vpop.permute.xlu1 %7889 }
 0xc0d   : > { %v7899_v56 = vsel %vm14929_vm8, %v13914_v63, %v7890_v26  ;;  %v7900_v2 = vsel %vm14930_vm1, %v7890_v26, %v7892_v60  ;;  %vm14937_vm8 = vmmov %vm14928_vm5  ;;  %v8216_v26 = vld [vmem:[#allocation5 + $0x1b8] sm:$0xff] }
 0xc0e   : > { %8512 = vmatprep.subr.bf16.mxu0 %v7900_v2  ;;  %vm14938_vm1 = vmmov %vm14931_vm2  ;;  %v9792_v2 = vld [vmem:[%s14836_s4] ss:$16 sps:$4 sm:$0xff]  }
 0xc0f   : > { %8513 = vmatpush1.bf16.msra.mxu0 %v7899_v56  ;;  %v8335_v56 = vld [vmem:[#allocation5 + $0x570] sm:$0xff] }
 0xc10   : > { %v8038_v18 = vpop.permute.xlu1 %8037 }
 0xc11   : > { %v8045_v8 = vsel %vm14931_vm2, %v14196_v3, %v8038_v18  ;;  %v8046_v23 = vsel %vm14932_vm3, %v8038_v18, %v13490_v44  ;;  %vm14939_vm2 = vmmov %vm14938_vm1  ;;  %vm14940_vm3 = vcmask 80896   ;;  %v8342_v18 = vld [vmem:[#allocation5 + $0x5a8] sm:$0xff] }
 0xc12   : > { %8604 = vmatprep.subr.bf16.mxu1 %v8046_v23  ;;  %v9793_v23 = vld [vmem:[%s14836_s4 + $0x8] ss:$16 sps:$4 sm:$0xff]  }
 0xc13   : > { %8605 = vmatpush1.bf16.msra.mxu1 %v8045_v8  ;;  %v8349_v8 = vld [vmem:[#allocation5 + $0x5e0] sm:$0xff] }
 0xc14   : > { %v7938_v36 = vpop.permute.xlu1 %7937 }
 0xc15   : > { %v7947_v35 = vsel %vm14933_vm11, %v13927_v38, %v7938_v36  ;;  %v7948_v32 = vsel %vm14934_vm9, %v7938_v36, %v7940_v22  ;;  %vm14941_vm11 = vmmov %vm14940_vm3 }
 0xc16   : > { %8514 = vmatprep.subr.bf16.mxu0 %v7948_v32  ;;  %vm14947_vm9 = vmmov %vm14940_vm3 }
 0xc17   : > { %8515 = vmatpush1.bf16.msra.mxu0 %v7947_v35 }
 0xc18   : > { %v8086_v63 = vpop.permute.xlu1 %8085 }
 0xc19   : > { %v8093_v34 = vsel %vm14924_vm4, %v8084_v17, %v8086_v63  ;;  %v8094_v60 = vsel %vm14935_vm10, %v8086_v63, %v13496_v61  ;;  %vm14953_vm4 = vmmov %vm14940_vm3 }
 0xc1a   : > { %8606 = vmatprep.subr.bf16.mxu1 %v8094_v60 }
 0xc1b   : > { %8607 = vmatpush1.bf16.msra.mxu1 %v8093_v34 }
 0xc1c   : > { %v7986_v33 = vpop.permute.xlu1 %7985 }
 0xc1d   : > { %v7995_v44 = vsel %vm14926_vm15, %v13936_v53, %v7986_v33  ;;  %v7996_v41 = vsel %vm14936_vm0, %v7986_v33, %v7988_v14 }
 0xc1e   : > { %8516 = vmatprep.subr.bf16.mxu0 %v7996_v41 }
 0xc1f   : > { %8517 = vmatpush1.bf16.msra.mxu0 %v7995_v44 }
 0xc20   : > { %v8134_v38 = vpop.permute.xlu1 %8133 }
 0xc21   : > { %v8141_v45 = vsel %vm14928_vm5, %v8132_v49, %v8134_v38  ;;  %v8142_v22 = vsel %vm14937_vm8, %v8134_v38, %v13502_v52  ;;  %v8181_v49 = vld [vmem:[#allocation5 + $0xa0] sm:$0xff] }
 0xc22   : > { %8608 = vmatprep.subr.bf16.mxu1 %v8142_v22 }
 0xc23   : > { %8609 = vmatpush1.bf16.msra.mxu1 %v8141_v45 }
 0xc24   : > { %v8034_v15 = vpop.permute.xlu1 %8033  ;;  %8672 = vmatprep.subr.bf16.mxu1 %v13226_v50 }
 0xc25   : > { %v8043_v61 = vsel %vm14938_vm1, %v13951_v62, %v8034_v15  ;;  %v8044_v53 = vsel %vm14939_vm2, %v8034_v15, %v14196_v3 }
 0xc26   : > { %8518 = vmatprep.subr.bf16.mxu0 %v8044_v53  ;;  %8621 = vmatmul.mubr.bf16.vlgmr.msra.gmra.mrb[40].mxu1 %v13985_v12 }
 0xc27   : > { %8519 = vmatpush1.bf16.msra.mxu0 %v8043_v61  ;;  %9459 = vmatprep.mubr.msk.bf16.mxu1 %vm8369_vm6, %v9790_v6  ;;  %vm14942_vm6 = vmmov %vm14940_vm3 }
 0xc28   : > { %v7650_v52 = vpop.permute.xlu1 %7649  ;;  %8520 = vmatprep.subr.bf16.mxu0 %v8092_v47  ;;  %v8314_v47 = vld [vmem:[#allocation5 + $0x4c8] sm:$0xff] }
 0xc29   : > { %v7657_v30 = vsel %vm4306_vm13, %v14156_v51, %v7650_v52  ;;  %v8167_v51 = vld [vmem:[#allocation5 + $0x30] sm:$0xff]  ;;  %vm14944_vm13 = vmmov %vm14940_vm3 }
 0xc2a   : > { %7671 = vst.msk [vmem:[#allocation5 + $0x3b0] sm:$0xff] %vm14940_vm3, %v7657_v30 }
 0xc2b   : > { %8521 = vmatpush1.bf16.msra.mxu0 %v8091_v25  ;;  %v8258_v25 = vld [vmem:[#allocation5 + $0x308] sm:$0xff] }
 0xc2c   : > { %v7703_v62 = vpop.permute.xlu1 %7702  ;;  %8522 = vmatprep.subr.bf16.mxu0 %v8140_v31  ;;  %v8328_v31 = vld [vmem:[#allocation5 + $0x538] sm:$0xff] }
 0xc2d   : > { %v7710_v14 = vsel %vm4413_vm14, %v14167_v24, %v7703_v62  ;;  %v8230_v24 = vld [vmem:[#allocation5 + $0x228] sm:$0xff]  ;;  %vm14946_vm14 = vmmov %vm14940_vm3 }
 0xc2e   : > { %7724 = vst.msk [vmem:[#allocation5 + $0x3e8] sm:$0xff] %vm14941_vm11, %v7710_v14 }
 0xc2f   : > { %8523 = vmatpush1.bf16.msra.mxu0 %v8139_v58 }
 0xc30   : > { %v7597_v57 = vpop.permute.xlu1 %7596  ;;  %9549 = vmatprep.subr.bf16.mxu0 %v8223_v0 }
 0xc31   : > { %v7604_v9 = vsel %vm4199_vm12, %v14148_v29, %v7597_v57  ;;  %v8279_v3 = vld [vmem:[#allocation5 + $0x3b0] sm:$0xff]  ;;  %vm14943_vm12 = vmmov %vm14940_vm3 }
 0xc32   : > { %7618 = vst.msk [vmem:[#allocation5 + $0x378] sm:$0xff] %vm14942_vm6, %v7604_v9  ;;  %8673 = vmatpush1.bf16.msra.mxu1 %v8279_v3  ;;  %8535 = vmatmul.mubr.bf16.vlgmr.msra.gmra.mrb[28].mxu0 %v13985_v12  ;;  %v14258_v40 = vpop.f32.mrb[36].mxu1  ;;  %v9791_v29 = vld [vmem:[%s14836_s4 + $0x4] ss:$16 sps:$4 sm:$0xff]   ;;  %v8174_v12 = vld [vmem:[#allocation5 + $0x68] sm:$0xff] }
 0xc33   : > { %8674 = vmatprep.subr.bf16.mxu1 %v13226_v50  ;;  %9550 = vmatpush3.bf16.msra.mxu0 %v8167_v51  ;;  %v14261_v54 = vpop.f32.mrb[37].mxu1  ;;  %v8713_v44 = vmax.f32 %v14258_v40, 0.0 }
 0xc34   : > { %9551 = vmatprep.subr.bf16.mxu0 %v8230_v24  ;;  %8663 = vmatprep.mubr.bf16.mxu0 %v9791_v29  ;;  %v14266_v20 = vpop.f32.mrb[38].mxu1  ;;  %v8714_v41 = vmax.f32 %v14261_v54, 0.0 }
 0xc35   : > { %v8286_v17 = vld [vmem:[#allocation5 + $0x3e8] sm:$0xff]  ;;  %v14268_v5 = vpop.f32.mrb[39].mxu1  ;;  %v8720_v38 = vmax.f32 %v14266_v20, 0.0  ;;  %v8727_v15 = vmul.f32 %v8713_v44, %v13263_v46 }
 0xc36   : > { %8675 = vmatpush1.bf16.msra.mxu1 %v8286_v17  ;;  %v8721_v45 = vmax.f32 %v14268_v5, 0.0  ;;  %v8728_v61 = vmul.f32 %v8714_v41, %v13266_v13 }
 0xc37   : > { %8676 = vmatprep.subr.bf16.mxu1 %v13226_v50  ;;  %9552 = vmatpush3.bf16.msra.mxu0 %v8174_v12  ;;  %v8734_v52 = vmul.f32 %v8720_v38, %v13263_v46 }
 0xc38   : > { %9553 = vmatprep.subr.bf16.mxu0 %v8237_v39  ;;  %v8735_v30 = vmul.f32 %v8721_v45, %v13266_v13  ;;  %v8741_v3 = vadd.f32 %v8728_v61, %v8727_v15 }
 0xc39   : > { %v8272_v58 = vld [vmem:[#allocation5 + $0x378] sm:$0xff] }
 0xc3a   : > { %8677 = vmatpush1.bf16.msra.mxu1 %v8293_v11  ;;  %v8750_v12 = vadd.f32 %v8735_v30, %v8734_v52 }
 0xc3b   : > { %8678 = vmatprep.subr.bf16.mxu1 %v13226_v50  ;;  %9554 = vmatpush3.bf16.msra.mxu0 %v8181_v49 }
 0xc3c   : > { %9555 = vmatprep.subr.bf16.mxu0 %v8244_v28 }
 0xc3e   : > { %8679 = vmatpush1.bf16.msra.mxu1 %v8300_v42 }
 0xc3f   : > { %8680 = vmatprep.subr.bf16.mxu1 %v13226_v50  ;;  %9556 = vmatpush3.bf16.msra.mxu0 %v8188_v4 }
 0xc40   : > { %9557 = vmatprep.subr.bf16.mxu0 %v8251_v7 }
 0xc42   : > { %8681 = vmatpush1.bf16.msra.mxu1 %v8307_v48 }
 0xc43   : > { %8682 = vmatprep.subr.bf16.mxu1 %v13226_v50  ;;  %9558 = vmatpush3.bf16.msra.mxu0 %v8195_v21 }
 0xc44   : > { %9559 = vmatprep.subr.bf16.mxu0 %v8258_v25 }
 0xc46   : > { %8683 = vmatpush1.bf16.msra.mxu1 %v8314_v47 }
 0xc47   : > { %8684 = vmatprep.subr.bf16.mxu1 %v13226_v50  ;;  %9560 = vmatpush3.bf16.msra.mxu0 %v8202_v59 }
 0xc48   : > { %9561 = vmatprep.subr.bf16.mxu0 %v8265_v1 }
 0xc4a   : > { %8685 = vmatpush1.bf16.msra.mxu1 %v8321_v55 }
 0xc4b   : > { %8686 = vmatprep.subr.bf16.mxu1 %v13226_v50  ;;  %9562 = vmatpush3.bf16.msra.mxu0 %v8209_v37 }
 0xc4c   : > { %9563 = vmatprep.subr.bf16.mxu0 %v8272_v58 }
 0xc4e   : > { %8687 = vmatpush1.bf16.msra.mxu1 %v8328_v31 }
 0xc4f   : > { %8688 = vmatprep.subr.bf16.mxu1 %v13226_v50  ;;  %9564 = vmatpush3.bf16.msra.mxu0 %v8216_v26 }
 0xc52   : > { %8689 = vmatpush1.bf16.msra.mxu1 %v8335_v56  ;;  %8664 = vmatmul.mubr.bf16.vlgmr.msra.gmra.mrb[32].mxu0 %v9792_v2 }
 0xc53   : > { %8690 = vmatprep.subr.bf16.mxu1 %v13226_v50 }
 0xc56   : > { %8691 = vmatpush1.bf16.msra.mxu1 %v8342_v18 }
 0xc57   : > { %8692 = vmatprep.subr.bf16.mxu1 %v13226_v50 }
 0xc5a   : > { %8693 = vmatpush1.bf16.msra.mxu1 %v8349_v8 }
 0xc5d   : > { %8705 = vmatmul.mubr.bf16.vlgmr.msra.gmra.mrb[44].mxu1 %v9793_v23 }
 0xcf9   : > { %v14285_v36 = vpop.f32.mrb[40].mxu1 }
 0xcfa   : > { %v14287_v35 = vpop.f32.mrb[41].mxu1  ;;  %v8717_v49 = vmax.f32 %v14285_v36, 0.0 }
 0xcfb   : > { %v14289_v32 = vpop.f32.mrb[42].mxu1  ;;  %v8718_v21 = vmax.f32 %v14287_v35, 0.0 }
 0xcfc   : > { %v14291_v63 = vpop.f32.mrb[43].mxu1  ;;  %v8724_v4 = vmax.f32 %v14289_v32, 0.0  ;;  %v8731_v48 = vmul.f32 %v8717_v49, %v13298_v27 }
 0xcfd   : > { %v8725_v37 = vmax.f32 %v14291_v63, 0.0  ;;  %v8732_v18 = vmul.f32 %v8718_v21, %v13306_v10 }
 0xcfe   : > { %v8738_v55 = vmul.f32 %v8724_v4, %v13298_v27 }
 0xd05   : > { %v14293_v34 = vpop.f32.mrb[28].mxu0 }
 0xd06   : > { %v14295_v60 = vpop.f32.mrb[29].mxu0  ;;  %v8715_v22 = vmax.f32 %v14293_v34, 0.0 }
 0xd07   : > { %v14297_v50 = vpop.f32.mrb[30].mxu0  ;;  %v8716_v14 = vmax.f32 %v14295_v60, 0.0 }
 0xd08   : > { %v14299_v33 = vpop.f32.mrb[31].mxu0  ;;  %v8722_v53 = vmax.f32 %v14297_v50, 0.0  ;;  %v8729_v62 = vmul.f32 %v8715_v22, %v13271_v43 }
 0xd09   : > { %v8723_v24 = vmax.f32 %v14299_v33, 0.0  ;;  %v8730_v11 = vmul.f32 %v8716_v14, %v13290_v16  ;;  %v8739_v33 = vmul.f32 %v8725_v37, %v13306_v10 }
 0xd0a   : > { %v8736_v51 = vmul.f32 %v8722_v53, %v13271_v43  ;;  %v8742_v39 = vadd.f32 %v8741_v3, %v8729_v62 }
 0xd0b   : > { %v8737_v42 = vmul.f32 %v8723_v24, %v13290_v16 }
 0xd0c   : > { %v8751_v28 = vadd.f32 %v8750_v12, %v8736_v51  ;;  %v8743_v7 = vadd.f32 %v8742_v39, %v8730_v11  ;;  %v14359_v51 = vld [vmem:[%s14945_s17 + $0x8] sm:$0xff] }
 0xd0e   : > { %v8752_v25 = vadd.f32 %v8751_v28, %v8737_v42  ;;  %v8744_v58 = vadd.f32 %v8743_v7, %v8731_v48 }
 0xd10   : > { %v8753_v8 = vadd.f32 %v8752_v25, %v8738_v55  ;;  %v8745_v15 = vadd.f32 %v8744_v58, %v8732_v18 }
 0xd12   : > { %v8754_v52 = vadd.f32 %v8753_v8, %v8739_v33 }
 0xd25   : > { %v9565_v6 = vpop.f32.mrb[32].mxu0 }
 0xd26   : > { %v9566_v0 = vpop.f32.mrb[33].mxu0 }
 0xd27   : > { %v9567_v57 = vadd.f32 %v9566_v0, %v9565_v6  ;;  %v9568_v9 = vpop.f32.mrb[34].mxu0  ;;  %v8759_v0 = vld [vmem:[%s14945_s17] sm:$0xff] }
 0xd28   : > { %v9569_v29 = vpop.f32.mrb[35].mxu0  ;;  %9613 = vmatprep.mubr.msk.f32.mxu0 %vm4094_vm7, %v8759_v0 }
 0xd29   : > { %v9570_v17 = vadd.f32 %v9569_v29, %v9568_v9 }
 0xd30   : > { %v8706_v47 = vpop.f32.mrb[44].mxu1 }
 0xd31   : > { %v14337_v59 = vadd.f32 %v9567_v57, %v8706_v47  ;;  %v8708_v1 = vpop.f32.mrb[45].mxu1 }
 0xd32   : > { %v8709_v31 = vpop.f32.mrb[46].mxu1 }
 0xd33   : > { %v8719_v26 = vmax.f32 %v14337_v59, 0.0  ;;  %v8710_v56 = vadd.f32 %v9570_v17, %v8709_v31  ;;  %v8711_v2 = vpop.f32.mrb[47].mxu1 }
 0xd35   : > { %v8733_v23 = vmul.f32 %v8719_v26, %v13318_v19  ;;  %v8726_v32 = vmax.f32 %v8710_v56, 0.0 }
 0xd37   : > { %v8740_v63 = vmul.f32 %v8726_v32, %v13318_v19  ;;  %v8746_v61 = vsel %vm14943_vm12, %v8733_v23, 0.0 }
 0xd38   : > { %v8747_v6 = vadd.f32 %v8746_v61, %v8745_v15 }
 0xd39   : > { %v8755_v30 = vsel %vm14944_vm13, %v8740_v63, 0.0 }
 0xd3a   : > { %8748 = vadd.xlane.f32.xlu0 %v8747_v6  ;;  %v8756_v62 = vadd.f32 %v8755_v30, %v8754_v52 }
 0xd3c   : > { %8757 = vadd.xlane.f32.xlu1 %v8756_v62 }
 0xdc7   : > { %v8749_v57 = vpop.xlane.xlu0 %8748 }
 0xdc9   : > { %v8758_v9 = vpop.xlane.xlu1 %8757 }
 0xdca   : > { %v9631_v3 = vpack.c.bf16 %v8758_v9, %v8749_v57 }
 0xdcc   : > { %9632 = vmatprep.subr.bf16.mxu0 %v9631_v3 }
 0xdcd   : > { %9634 = vmatpush3.bf16.msra.mxu0 %v9631_v3 }
 0xdd0   : > { %9614 = vmatmul.mubr.msk.f32.vlgmr.msra.gmra.mrb[36].mxu0 %vm4094_vm7, %v14359_v51 }
 0xdd1   : > { %9620 = vmatprep.mubr.msk.f32.mxu0 %vm4094_vm7, %v8759_v0 }
 0xea3   : > { %v9615_v29 = vpop.f32.mrb[36].mxu0 }
 0xea4   : > { %v8843_v17 = vmul.f32 0.001953125, %v9615_v29  ;;  %v8833_v12 = vpop.f32.mrb[37].mxu0 }
 0xea5   : > { %v8842_v39 = vmul.f32 0.001953125, %v8833_v12 }
 0xea6   : > { %8851 = vperm.xlu1 %9743, %v8843_v17  }
 0xea7   : > { %8846 = vperm.xlu0 %9742, %v8842_v39  }
 0xf25   : > { %v8852_v11 = vpop.permute.xlu1 %8851 }
 0xf26   : > { %v14366_v28 = vsub.f32 %v8720_v38, %v8852_v11  ;;  %v14370_v42 = vsub.f32 %v8721_v45, %v8852_v11  ;;  %v14374_v7 = vsub.f32 %v8722_v53, %v8852_v11  ;;  %v8847_v48 = vpop.permute.xlu0 %8846  ;;  %v14376_v25 = vsub.f32 %v8723_v24, %v8852_v11 }
 0xf27   : > { %v14378_v47 = vsub.f32 %v8724_v4, %v8852_v11  ;;  %v14380_v1 = vsub.f32 %v8726_v32, %v8852_v11  ;;  %v14388_v5 = vsub.f32 %v8713_v44, %v8847_v48  ;;  %v14392_v50 = vsub.f32 %v8714_v41, %v8847_v48 }
 0xf28   : > { %v8875_v20 = vmul.f32 %v14366_v28, %v13263_v46  ;;  %v8876_v38 = vmul.f32 %v14370_v42, %v13266_v13  ;;  %v14396_v45 = vsub.f32 %v8715_v22, %v8847_v48  ;;  %v8877_v53 = vmul.f32 %v14374_v7, %v13271_v43 }
 0xf29   : > { %v14400_v24 = vsub.f32 %v8725_v37, %v8852_v11  ;;  %v8878_v4 = vmul.f32 %v14376_v25, %v13290_v16  ;;  %v14406_v44 = vsub.f32 %v8716_v14, %v8847_v48  ;;  %v8879_v54 = vmul.f32 %v14378_v47, %v13298_v27 }
 0xf2a   : > { %v8889_v55 = vmul.f32 %v8875_v20, %v8875_v20  ;;  %v8890_v40 = vmul.f32 %v8876_v38, %v8876_v38  ;;  %v8881_v34 = vmul.f32 %v14380_v1, %v13318_v19  ;;  %v8891_v41 = vmul.f32 %v8877_v53, %v8877_v53  ;;  %v8996_v53 = vld [vmem:[%s14949_s15 + $0x8] sm:$0xff] }
 0xf2b   : > { %v14414_v37 = vsub.f32 %v8717_v49, %v8847_v48  ;;  %v8868_v58 = vmul.f32 %v14388_v5, %v13263_v46  ;;  %v8869_v60 = vmul.f32 %v14392_v50, %v13266_v13  ;;  %v8870_v14 = vmul.f32 %v14396_v45, %v13271_v43 }
 0xf2c   : > { %v8905_v22 = vadd.f32 %v8890_v40, %v8889_v55  ;;  %v8880_v31 = vmul.f32 %v14400_v24, %v13306_v10  ;;  %v8892_v56 = vmul.f32 %v8878_v4, %v8878_v4  ;;  %v14426_v18 = vsub.f32 %v8719_v26, %v8847_v48  ;;  %v8995_v4 = vld [vmem:[%s14949_s15] sm:$0xff] }
 0xf2d   : > { %v14430_v36 = vsub.f32 %v8718_v21, %v8847_v48  ;;  %v8871_v46 = vmul.f32 %v14406_v44, %v13290_v16  ;;  %v8882_v13 = vmul.f32 %v8868_v58, %v8868_v58  ;;  %v8883_v49 = vmul.f32 %v8869_v60, %v8869_v60 }
 0xf2e   : > { %v8906_v2 = vadd.f32 %v8905_v22, %v8891_v41  ;;  %v8893_v8 = vmul.f32 %v8879_v54, %v8879_v54  ;;  %v8895_v23 = vmul.f32 %v8881_v34, %v8881_v34  ;;  %v8872_v32 = vmul.f32 %v14414_v37, %v13298_v27  ;;  %v9024_v34 = vld [vmem:[%s14950_s7 + $0x8] sm:$0xff]  ;;  %v9023_v41 = vld [vmem:[%s14950_s7] sm:$0xff] }
 0xf2f   : > { %v8884_v33 = vmul.f32 %v8870_v14, %v8870_v14  ;;  %v8896_v15 = vadd.f32 %v8883_v49, %v8882_v13  ;;  %v8894_v59 = vmul.f32 %v8880_v31, %v8880_v31  ;;  %v8874_v35 = vmul.f32 %v14426_v18, %v13318_v19 }
 0xf30   : > { %v8907_v43 = vadd.f32 %v8906_v2, %v8892_v56  ;;  %v8873_v21 = vmul.f32 %v14430_v36, %v13306_v10  ;;  %v8885_v63 = vmul.f32 %v8871_v46, %v8871_v46  ;;  %v8910_v6 = vsel %vm14946_vm14, %v8895_v23, 0.0 }
 0xf31   : > { %v8897_v16 = vadd.f32 %v8896_v15, %v8884_v33  ;;  %v8886_v52 = vmul.f32 %v8872_v32, %v8872_v32  ;;  %v8888_v0 = vmul.f32 %v8874_v35, %v8874_v35 }
 0xf32   : > { %v8908_v26 = vadd.f32 %v8907_v43, %v8893_v8  ;;  %v8887_v27 = vmul.f32 %v8873_v21, %v8873_v21 }
 0xf33   : > { %v8898_v30 = vadd.f32 %v8897_v16, %v8885_v63  ;;  %v8901_v3 = vsel %vm14947_vm9, %v8888_v0, 0.0 }
 0xf34   : > { %v8909_v61 = vadd.f32 %v8908_v26, %v8894_v59 }
 0xf35   : > { %v8899_v57 = vadd.f32 %v8898_v30, %v8886_v52 }
 0xf36   : > { %v8911_v62 = vadd.f32 %v8910_v6, %v8909_v61 }
 0xf37   : > { %v8900_v9 = vadd.f32 %v8899_v57, %v8887_v27 }
 0xf38   : > { %8912 = vadd.xlane.f32.xlu1 %v8911_v62 }
 0xf39   : > { %v8902_v29 = vadd.f32 %v8901_v3, %v8900_v9 }
 0xf3b   : > { %8903 = vadd.xlane.f32.xlu0 %v8902_v29 }
 0xfc5   : > { %v8913_v19 = vpop.xlane.xlu1 %8912 }
 0xfc8   : > { %v8904_v17 = vpop.xlane.xlu0 %8903 }
 0xfc9   : > { %v9635_v10 = vpack.c.bf16 %v8913_v19, %v8904_v17 }
 0xfcb   : > { %9636 = vmatprep.subr.bf16.mxu0 %v9635_v10 }
 0xfcc   : > { %9638 = vmatpush3.bf16.msra.mxu0 %v9635_v10 }
 0xfcf   : > { %9621 = vmatmul.mubr.msk.f32.vlgmr.msra.gmra.mrb[38].mxu0 %vm4094_vm7, %v14359_v51  ;;  %vm14952_vm7 = vmmov %vm14940_vm3 }
0x10a2   : > { %v9622_v12 = vpop.f32.mrb[38].mxu0 }
0x10a3   : > { %v8990_v39 = vmul.f32 0.001953125, %v9622_v12  ;;  %v8980_v11 = vpop.f32.mrb[39].mxu0 }
0x10a4   : > { %v8989_v48 = vmul.f32 0.001953125, %v8980_v11 }
0x10a5   : > { %v8992_v20 = vadd.f32 1e-05, %v8990_v39 }
0x10a6   : > { %v8991_v38 = vadd.f32 1e-05, %v8989_v48 }
0x10a7   : > { %9771 = vrsqrt.f32 %v8992_v20 }
0x10a8   : > { %9773 = vrsqrt.f32 %v8991_v38 }
0x10b1   : > { %v9772_v55 = vpop.eup %9771 }
0x10b2   : > { %v9774_v40 = vpop.eup %9773  ;;  %v8998_v51 = vmul.f32 %v9772_v55, %v8996_v53 }
0x10b3   : > { %v8997_v54 = vmul.f32 %v9774_v40, %v8995_v4 }
0x10b4   : > { %9006 = vperm.xlu1 %9743, %v8998_v51  }
0x10b5   : > { %9001 = vperm.xlu0 %9742, %v8997_v54  }
0x10b8   : > { %9032 = vperm.xlu1 %9743, %v9024_v34  }
0x10b9   : > { %9027 = vperm.xlu0 %9742, %v9023_v41  }
0x1133   : > { %v9007_v22 = vpop.permute.xlu1 %9006 }
0x1134   : > { %v9002_v58 = vpop.permute.xlu0 %9001  ;;  %v9016_v60 = vmul.f32 %v9007_v22, %v14366_v28  ;;  %v9017_v14 = vmul.f32 %v9007_v22, %v14370_v42  ;;  %v9018_v31 = vmul.f32 %v9007_v22, %v14374_v7  ;;  %v9019_v56 = vmul.f32 %v9007_v22, %v14376_v25 }
0x1135   : > { %v9020_v2 = vmul.f32 %v9007_v22, %v14378_v47  ;;  %v9021_v46 = vmul.f32 %v9007_v22, %v14400_v24  ;;  %v9022_v13 = vmul.f32 %v9007_v22, %v14380_v1  ;;  %v9009_v49 = vmul.f32 %v9002_v58, %v14388_v5 }
0x1136   : > { %v9010_v8 = vmul.f32 %v9002_v58, %v14392_v50  ;;  %v9011_v43 = vmul.f32 %v9002_v58, %v14396_v45  ;;  %v9012_v42 = vmul.f32 %v9002_v58, %v14406_v44  ;;  %v9013_v7 = vmul.f32 %v9002_v58, %v14414_v37 }
0x1137   : > { %v9033_v28 = vpop.permute.xlu1 %9032  ;;  %v9014_v25 = vmul.f32 %v9002_v58, %v14430_v36  ;;  %v9015_v47 = vmul.f32 %v9002_v58, %v14426_v18 }
0x1138   : > { %v9042_v1 = vadd.f32 %v9033_v28, %v9016_v60  ;;  %v9043_v5 = vadd.f32 %v9033_v28, %v9017_v14  ;;  %v9044_v50 = vadd.f32 %v9033_v28, %v9018_v31  ;;  %v9045_v45 = vadd.f32 %v9033_v28, %v9019_v56  ;;  %v9028_v24 = vpop.permute.xlu0 %9027 }
0x1139   : > { %v9046_v23 = vadd.f32 %v9033_v28, %v9020_v2  ;;  %v9047_v32 = vadd.f32 %v9033_v28, %v9021_v46  ;;  %v9048_v33 = vadd.f32 %v9033_v28, %v9022_v13  ;;  %v9035_v44 = vadd.f32 %v9028_v24, %v9009_v49 }
0x113a   : > { %9056 = vst [vmem:[%s14470_s1 + $0x38] sm:$0xff] %v9042_v1  ;;  %9057 = vst [vmem:[%s14470_s1 + $0x40] sm:$0xff] %v9043_v5  ;;  %v9036_v37 = vadd.f32 %v9028_v24, %v9010_v8  ;;  %v9037_v18 = vadd.f32 %v9028_v24, %v9011_v43  ;;  %v9038_v36 = vadd.f32 %v9028_v24, %v9012_v42 }
0x113b   : > { %9058 = vst [vmem:[%s14470_s1 + $0x48] sm:$0xff] %v9044_v50  ;;  %9059 = vst [vmem:[%s14470_s1 + $0x50] sm:$0xff] %v9045_v45  ;;  %v9039_v15 = vadd.f32 %v9028_v24, %v9013_v7  ;;  %v9040_v59 = vadd.f32 %v9028_v24, %v9014_v25  ;;  %v9041_v26 = vadd.f32 %v9028_v24, %v9015_v47 }
0x113c   : > { %9060 = vst [vmem:[%s14470_s1 + $0x58] sm:$0xff] %v9046_v23  ;;  %9061 = vst [vmem:[%s14470_s1 + $0x60] sm:$0xff] %v9047_v32 }
0x113d   : > { %9062 = vst.msk [vmem:[%s14470_s1 + $0x68] sm:$0xff] %vm14952_vm7, %v9048_v33  ;;  %9049 = vst [vmem:[%s14470_s1] sm:$0xff] %v9035_v44 }
0x113e   : > { %9050 = vst [vmem:[%s14470_s1 + $0x8] sm:$0xff] %v9036_v37  ;;  %9051 = vst [vmem:[%s14470_s1 + $0x10] sm:$0xff] %v9037_v18 }
0x113f   : > { %9052 = vst [vmem:[%s14470_s1 + $0x18] sm:$0xff] %v9038_v36  ;;  %9053 = vst [vmem:[%s14470_s1 + $0x20] sm:$0xff] %v9039_v15 }
0x1140   : > { %9054 = vst [vmem:[%s14470_s1 + $0x28] sm:$0xff] %v9040_v59  ;;  %9055 = vst.msk [vmem:[%s14470_s1 + $0x30] sm:$0xff] %vm14953_vm4, %v9041_v26 }
0x1141 PF: > { %s14954_s2 = sld [smem:[#allocation6_spill]] }
0x1147   : > { %s22_s21 = sadd.s32 1, %s14954_s2  }
0x1148   : > { %p19_p4 = scmp.ge.s32.totalorder %s22_s21, 4  }
0x114a   :  { %21 = sbr.rel (!%p19_p4) target bundleno = 14 (0xe), region = 101 }

</bundles_post_ra>
